<compile_context>
chip_gen: v6e
topology: v6e:2x2x1
jax: 0.10.0
libtpu: 0.0.40
codegen_flags: <defaults>
</compile_context>

<pallas_src>
import functools

import jax
import jax.numpy as jnp
from jax import lax
from jax.experimental import pallas as pl
from jax.experimental.pallas import tpu as pltpu

EPS = 1e-5                      # PyTorch BatchNorm2d default eps
LANES = 128                     # pad Cout to a lane-dense multiple of 128


def _round_up(x, m):
    return (x + m - 1) // m * m


def _default_vmem_limit():
    """~3/4 of physical VMEM, capped at 100 MiB (safe on v5e/v6e/v7x)."""
    try:
        cap = pltpu.get_tpu_info().vmem_capacity_bytes
    except Exception:                     # not on TPU / API drift -> safe default
        cap = 64 * 1024 * 1024
    return int(min(100 * 1024 * 1024, cap * 3 // 4))


_VMEM_LIMIT = _default_vmem_limit()


def _pick_tile_m(m, target=1024):
    """Largest divisor of m that is <= target and a multiple of 8."""
    for t in range(min(target, m), 7, -1):
        if m % t == 0 and t % 8 == 0:
            return t
    return m  # TODO(synk): awkward M silently falls back to one whole tile.


def _pick_rows(h, target=8):
    """Row-chunk size for the in-kernel conv2 loop (divisor of h)."""
    for t in range(min(target, h), 0, -1):
        if h % t == 0:
            return t
    return h


# ----------------------------- Pallas kernels ------------------------------

def _conv1_kernel(a_ref, w_ref, y_ref, ps_ref):
    """y = relu(im2col @ W1)  (single K=9*Cin matmul); emit partial stats."""
    y = jnp.dot(a_ref[...], w_ref[...], preferred_element_type=jnp.float32)
    y = jnp.maximum(y, 0.0)                       # ReLU before BatchNorm
    y_ref[...] = y.astype(y_ref.dtype)
    ps_ref[0, 0:1, :] = jnp.sum(y, axis=0, keepdims=True)
    ps_ref[0, 1:2, :] = jnp.sum(y * y, axis=0, keepdims=True)


def _conv2_kernel(y1_ref, stats1_ref, g_ref, b_ref, w_ref, y2_ref, ps_ref,
                  xpad_ref, *, h, w, th):
    """r1 = BN1(y1); y2 = relu(conv3x3(r1)) via K-packed MXU taps; partial stats."""
    cop = y2_ref.shape[-1]

    # Zero ONLY the 1-element halo border every step (safe under megacore
    # sharding); the interior is fully overwritten below.
    xpad_ref[0:1, :, :] = jnp.zeros((1, w + 2, cop), xpad_ref.dtype)
    xpad_ref[h + 1:h + 2, :, :] = jnp.zeros((1, w + 2, cop), xpad_ref.dtype)
    xpad_ref[:, 0:1, :] = jnp.zeros((h + 2, 1, cop), xpad_ref.dtype)
    xpad_ref[:, w + 1:w + 2, :] = jnp.zeros((h + 2, 1, cop), xpad_ref.dtype)

    mean = stats1_ref[0:1, :]
    var = stats1_ref[1:2, :]
    r1 = y1_ref[...].astype(jnp.float32)
    r1 = g_ref[...] * (r1 - mean) * lax.rsqrt(var + EPS) + b_ref[...]
    # Cast once to bf16 when writing the conv window (scratch is bf16).
    xpad_ref[1:h + 1, 1:w + 1, :] = r1.astype(xpad_ref.dtype).reshape(h, w, cop)

    # Taps packed pairwise along K: each MXU op has K = 2*Cop (=256).  Pair 4
    # re-uses tap 8's patch against zero weights (no contribution).
    pairs = ((0, 1), (2, 3), (4, 5), (6, 7), (8, 8))
    s1 = jnp.zeros((1, cop), jnp.float32)
    s2 = jnp.zeros((1, cop), jnp.float32)
    for c in range(h // th):                       # row chunks: acc fits vregs
        r0 = c * th
        acc = jnp.zeros((th * w, cop), jnp.float32)
        for p, (ta, tb) in enumerate(pairs):
            dya, dxa = divmod(ta, 3)
            dyb, dxb = divmod(tb, 3)
            pa = xpad_ref[r0 + dya:r0 + dya + th, dxa:dxa + w, :].reshape(th * w, cop)
            pb = xpad_ref[r0 + dyb:r0 + dyb + th, dxb:dxb + w, :].reshape(th * w, cop)
            acc += jnp.dot(jnp.concatenate([pa, pb], axis=-1), w_ref[p],
                           preferred_element_type=jnp.float32)
        yc = jnp.maximum(acc, 0.0)
        y2_ref[r0 * w:(r0 + th) * w, :] = yc.astype(y2_ref.dtype)
        s1 = s1 + jnp.sum(yc, axis=0, keepdims=True)
        s2 = s2 + jnp.sum(yc * yc, axis=0, keepdims=True)

    ps_ref[0, 0:1, :] = s1
    ps_ref[0, 1:2, :] = s2


def _shortcut_kernel(y2_ref, stats2_ref, g_ref, b_ref, x_ref, ws_ref,
                     y3_ref, ps_ref):
    """r2 = BN2(y2); s = relu(conv1x1(x)); y3 = r2 + s; partial stats of y3."""
    mean = stats2_ref[0:1, :]
    var = stats2_ref[1:2, :]
    r2 = y2_ref[...].astype(jnp.float32)
    r2 = g_ref[...] * (r2 - mean) * lax.rsqrt(var + EPS) + b_ref[...]
    s = jnp.dot(x_ref[...], ws_ref[...], preferred_element_type=jnp.float32)
    y = r2 + jnp.maximum(s, 0.0)       # shortcut conv_block: relu, no norm
    y3_ref[...] = y.astype(y3_ref.dtype)
    ps_ref[0, 0:1, :] = jnp.sum(y, axis=0, keepdims=True)
    ps_ref[0, 1:2, :] = jnp.sum(y * y, axis=0, keepdims=True)


def _bn_apply_kernel(y_ref, stats_ref, g_ref, b_ref, out_ref, *, cout):
    """out = gamma*(y - mean)*rsqrt(var+eps) + beta, written at TRUE Cout width."""
    mean = stats_ref[0:1, :]
    var = stats_ref[1:2, :]
    y = y_ref[...].astype(jnp.float32)
    out = g_ref[...] * (y - mean) * lax.rsqrt(var + EPS) + b_ref[...]
    out_ref[...] = out[:, :cout]


# ----------------------------- pallas_call glue -----------------------------

def _call_conv1(im2col, w1, m, tile_m, cop):
    k = im2col.shape[-1]
    steps = m // tile_m
    return pl.pallas_call(
        _conv1_kernel,
        out_shape=(jax.ShapeDtypeStruct((m, cop), jnp.bfloat16),
                   jax.ShapeDtypeStruct((steps, 2, cop), jnp.float32)),
        grid_spec=pltpu.PrefetchScalarGridSpec(
            num_scalar_prefetch=0,
            grid=(steps,),
            in_specs=[pl.BlockSpec((tile_m, k), lambda i: (i, 0)),
                      pl.BlockSpec((k, cop), lambda i: (0, 0))],      # resident
            out_specs=[pl.BlockSpec((tile_m, cop), lambda i: (i, 0)),
                       pl.BlockSpec((1, 2, cop), lambda i: (i, 0, 0))],
        ),
        compiler_params=pltpu.CompilerParams(
            dimension_semantics=("parallel",),
            vmem_limit_bytes=_VMEM_LIMIT),
    )(im2col, w1)


def _call_conv2(y1, stats1, g1, b1, w2p, n, h, w, cop, th):
    hw = h * w
    kern = functools.partial(_conv2_kernel, h=h, w=w, th=th)
    return pl.pallas_call(
        kern,
        out_shape=(jax.ShapeDtypeStruct((n * hw, cop), jnp.bfloat16),
                   jax.ShapeDtypeStruct((n, 2, cop), jnp.float32)),
        grid_spec=pltpu.PrefetchScalarGridSpec(
            num_scalar_prefetch=0,
            grid=(n,),
            in_specs=[
                pl.BlockSpec((hw, cop), lambda i: (i, 0)),
                pl.BlockSpec((2, cop), lambda i: (0, 0)),              # resident
                pl.BlockSpec((1, cop), lambda i: (0, 0)),              # resident
                pl.BlockSpec((1, cop), lambda i: (0, 0)),              # resident
                pl.BlockSpec((5, 2 * cop, cop), lambda i: (0, 0, 0)),  # resident
            ],
            out_specs=[pl.BlockSpec((hw, cop), lambda i: (i, 0)),
                       pl.BlockSpec((1, 2, cop), lambda i: (i, 0, 0))],
            scratch_shapes=[pltpu.VMEM((h + 2, w + 2, cop), jnp.bfloat16)],
        ),
        compiler_params=pltpu.CompilerParams(
            dimension_semantics=("parallel",),
            vmem_limit_bytes=_VMEM_LIMIT),
    )(y1, stats1, g1, b1, w2p)


def _call_shortcut(y2, stats2, g2, b2, x_flat, ws, tile_m, cop):
    m = y2.shape[0]
    cin = x_flat.shape[1]
    steps = m // tile_m
    return pl.pallas_call(
        _shortcut_kernel,
        out_shape=(jax.ShapeDtypeStruct((m, cop), jnp.bfloat16),
                   jax.ShapeDtypeStruct((steps, 2, cop), jnp.float32)),
        grid_spec=pltpu.PrefetchScalarGridSpec(
            num_scalar_prefetch=0,
            grid=(steps,),
            in_specs=[
                pl.BlockSpec((tile_m, cop), lambda i: (i, 0)),
                pl.BlockSpec((2, cop), lambda i: (0, 0)),
                pl.BlockSpec((1, cop), lambda i: (0, 0)),
                pl.BlockSpec((1, cop), lambda i: (0, 0)),
                pl.BlockSpec((tile_m, cin), lambda i: (i, 0)),
                pl.BlockSpec((cin, cop), lambda i: (0, 0)),
            ],
            out_specs=[pl.BlockSpec((tile_m, cop), lambda i: (i, 0)),
                       pl.BlockSpec((1, 2, cop), lambda i: (i, 0, 0))],
        ),
        compiler_params=pltpu.CompilerParams(
            dimension_semantics=("parallel",),
            vmem_limit_bytes=_VMEM_LIMIT),
    )(y2, stats2, g2, b2, x_flat, ws)


def _call_bn_apply(y3, stats3, gf, bf, tile_m, cop, cout):
    m = y3.shape[0]
    kern = functools.partial(_bn_apply_kernel, cout=cout)
    return pl.pallas_call(
        kern,
        out_shape=jax.ShapeDtypeStruct((m, cout), jnp.float32),
        grid_spec=pltpu.PrefetchScalarGridSpec(
            num_scalar_prefetch=0,
            grid=(m // tile_m,),
            in_specs=[
                pl.BlockSpec((tile_m, cop), lambda i: (i, 0)),
                pl.BlockSpec((2, cop), lambda i: (0, 0)),
                pl.BlockSpec((1, cop), lambda i: (0, 0)),
                pl.BlockSpec((1, cop), lambda i: (0, 0)),
            ],
            out_specs=pl.BlockSpec((tile_m, cout), lambda i: (i, 0)),
        ),
        compiler_params=pltpu.CompilerParams(
            dimension_semantics=("parallel",),
            vmem_limit_bytes=_VMEM_LIMIT),
    )(y3, stats3, gf, bf)


def _finalize_stats(partials, total_rows):
    """(steps, 2, C) partial (sum, sumsq) -> (2, C) [mean; biased var]."""
    s = jnp.sum(partials, axis=0)
    mean = s[0:1, :] / total_rows
    var = s[1:2, :] / total_rows - mean * mean
    # TODO(synk): E[y^2]-mean^2 can cancel for very large activations; fine for
    # this block's post-ReLU magnitudes.
    return jnp.concatenate([mean, var], axis=0)


# ------------------------------- public wrapper ------------------------------

@functools.partial(jax.jit, static_argnames=("cout",))
def residual_block_forward(x_nchw, params, *, cout):
    """Matches residual_block.forward for stride=1, kernel=3, pad=1 (training BN)."""
    x = jnp.transpose(x_nchw, (0, 2, 3, 1)).astype(jnp.float32)   # NCHW -> NHWC
    n, h, w, cin = x.shape
    cop = params["g1"].shape[-1]
    m = n * h * w

    # conv1 im2col (K = 9*Cin) built by XLA; tiny for small Cin.
    x_pad = jnp.pad(x, ((0, 0), (1, 1), (1, 1), (0, 0)))
    cols = [x_pad[:, dy:dy + h, dx:dx + w, :] for dy in range(3) for dx in range(3)]
    im2col = jnp.concatenate(cols, axis=-1).reshape(m, 9 * cin).astype(jnp.bfloat16)
    x_flat = x.reshape(m, cin).astype(jnp.bfloat16)               # 1x1 shortcut

    tile_m = _pick_tile_m(m)
    th = _pick_rows(h)

    # conv_block #1: conv3x3 -> relu  (BN#1 apply fused into conv2 pass)
    y1, ps1 = _call_conv1(im2col, params["w1"], m, tile_m, cop)
    stats1 = _finalize_stats(ps1, m)
    # conv_block #2: BN#1 -> conv3x3 -> relu
    y2, ps2 = _call_conv2(y1, stats1, params["g1"], params["b1"], params["w2"],
                          n, h, w, cop, th)
    stats2 = _finalize_stats(ps2, m)
    # BN#2 -> shortcut conv1x1 -> relu -> add
    y3, ps3 = _call_shortcut(y2, stats2, params["g2"], params["b2"],
                             x_flat, params["ws"], tile_m, cop)
    stats3 = _finalize_stats(ps3, m)
    # final BatchNorm apply, written at true Cout width
    out = _call_bn_apply(y3, stats3, params["gf"], params["bf"], tile_m, cop, cout)

    out = out.reshape(n, h, w, cout)
    return jnp.transpose(out, (0, 3, 1, 2))                        # NHWC -> NCHW


def prepare_params(w1_pt, w2_pt, ws_pt, g1, b1, g2, b2, gf, bf):
    """PyTorch-layout weights -> lane-dense (Cout padded to 128) kernel params."""
    cout, cin = w1_pt.shape[0], w1_pt.shape[1]
    cop = _round_up(cout, LANES)
    pad_co = cop - cout

    # conv1: (Cout, Cin, 3, 3) -> (9*Cin, Cop); K order matches wrapper im2col.
    w1 = jnp.transpose(w1_pt, (2, 3, 1, 0)).reshape(9 * cin, cout)
    w1 = jnp.pad(w1, ((0, 0), (0, pad_co))).astype(jnp.bfloat16)

    # conv2: (Cout, Cout, 3, 3) -> taps packed pairwise along K (K = 2*Cop).
    w2 = jnp.transpose(w2_pt, (2, 3, 1, 0)).reshape(9, cout, cout)
    w2 = jnp.pad(w2, ((0, 0), (0, pad_co), (0, pad_co)))
    w2_pairs = jnp.concatenate([w2[0:8:2], w2[1:9:2]], axis=1)      # (4, 2Cop, Cop)
    w2_last = jnp.concatenate([w2[8:9], jnp.zeros((1, cop, cop), w2.dtype)], axis=1)
    w2p = jnp.concatenate([w2_pairs, w2_last], axis=0).astype(jnp.bfloat16)

    # shortcut 1x1: (Cout, Cin, 1, 1) -> (Cin, Cop)
    ws = jnp.pad(ws_pt[:, :, 0, 0].T, ((0, 0), (0, pad_co))).astype(jnp.bfloat16)

    def pvec(v):
        return jnp.pad(v.reshape(1, -1), ((0, 0), (0, pad_co)))

    return {"w1": w1, "w2": w2p, "ws": ws,
            "g1": pvec(g1), "b1": pvec(b1),
            "g2": pvec(g2), "b2": pvec(b2),
            "gf": pvec(gf), "bf": pvec(bf)}


# ----------------------------- pure-JAX reference ---------------------------

def _bn_train(y, g, b):
    mean = jnp.mean(y, axis=(0, 1, 2), keepdims=True)
    var = jnp.mean((y - mean) ** 2, axis=(0, 1, 2), keepdims=True)
    return (g.reshape(1, 1, 1, -1) * (y - mean) * lax.rsqrt(var + EPS)
            + b.reshape(1, 1, 1, -1))


def _ref_forward(x_nchw, w1_pt, w2_pt, ws_pt, g1, b1, g2, b2, gf, bf):
    x = jnp.transpose(x_nchw, (0, 2, 3, 1)).astype(jnp.float32)
    dn = ("NHWC", "HWIO", "NHWC")
    w1 = jnp.transpose(w1_pt, (2, 3, 1, 0))
    w2 = jnp.transpose(w2_pt, (2, 3, 1, 0))
    ws = jnp.transpose(ws_pt, (2, 3, 1, 0))
    r = lax.conv_general_dilated(x, w1, (1, 1), ((1, 1), (1, 1)), dimension_numbers=dn)
    r = _bn_train(jnp.maximum(r, 0.0), g1, b1)
    r = lax.conv_general_dilated(r, w2, (1, 1), ((1, 1), (1, 1)), dimension_numbers=dn)
    r = _bn_train(jnp.maximum(r, 0.0), g2, b2)
    s = lax.conv_general_dilated(x, ws, (1, 1), ((0, 0), (0, 0)), dimension_numbers=dn)
    y = _bn_train(r + jnp.maximum(s, 0.0), gf, bf)
    return jnp.transpose(y, (0, 3, 1, 2))


# --------------------------------- main --------------------------------------

if __name__ == "__main__":
    N, Cin, Cout, H, W = 2, 4, 8, 16, 16

    key = jax.random.PRNGKey(0)
    kx, k1, k2, k3, kg = jax.random.split(key, 5)

    x = jax.random.normal(kx, (N, Cin, H, W), dtype=jnp.float32)

    # PyTorch-layout conv weights (out, in, kh, kw), no bias.
    w1_pt = 0.2 * jax.random.normal(k1, (Cout, Cin, 3, 3), dtype=jnp.float32)
    w2_pt = 0.2 * jax.random.normal(k2, (Cout, Cout, 3, 3), dtype=jnp.float32)
    ws_pt = 0.2 * jax.random.normal(k3, (Cout, Cin, 1, 1), dtype=jnp.float32)

    gk = jax.random.split(kg, 6)
    g1 = 1.0 + 0.1 * jax.random.normal(gk[0], (Cout,), jnp.float32)
    b1 = 0.1 * jax.random.normal(gk[1], (Cout,), jnp.float32)
    g2 = 1.0 + 0.1 * jax.random.normal(gk[2], (Cout,), jnp.float32)
    b2 = 0.1 * jax.random.normal(gk[3], (Cout,), jnp.float32)
    gf = 1.0 + 0.1 * jax.random.normal(gk[4], (Cout,), jnp.float32)
    bf = 0.1 * jax.random.normal(gk[5], (Cout,), jnp.float32)

    params = prepare_params(w1_pt, w2_pt, ws_pt, g1, b1, g2, b2, gf, bf)

    out = jax.block_until_ready(residual_block_forward(x, params, cout=Cout))
    ref = jax.block_until_ready(
        _ref_forward(x, w1_pt, w2_pt, ws_pt, g1, b1, g2, b2, gf, bf))

    assert out.shape == (N, Cout, H, W), out.shape
    err = float(jnp.max(jnp.abs(out - ref)))
    # Tolerance accounts for bf16 matmul operands / bf16 intermediate storage.
    assert err < 5e-2, f"mismatch vs reference: max abs err = {err}"

    print("KERNEL_OK")
</pallas_src>

<mosaic_0001>
module attributes {stable_mosaic.version = 11 : i64} {
  func.func @_conv1_kernel(%arg0: i32, %arg1: memref<512x36xbf16, #tpu.memory_space<vmem>>, %arg2: memref<36x128xbf16, #tpu.memory_space<vmem>>, %arg3: memref<512x128xbf16, #tpu.memory_space<vmem>>, %arg4: memref<1x2x128xf32, #tpu.memory_space<vmem>>) attributes {dimension_semantics = [#tpu.dimension_semantics<parallel>], iteration_bounds = array<i64: 1>, scalar_prefetch = 0 : i64, scratch_operands = 0 : i64, tpu.core_type = #tpu.core_type<tc>, window_params = [{transform_indices = @transform_0, window_bounds = array<i64: 512, 36>}, {pipeline_mode = #tpu.pipeline_mode<synchronous>, transform_indices = @transform_1, window_bounds = array<i64: 36, 128>}, {transform_indices = @transform_2, window_bounds = array<i64: 512, 128>}, {transform_indices = @transform_3, window_bounds = array<i64: 1, 2, 128>}]} {
    %c0 = arith.constant 0 : index
    %c0_0 = arith.constant 0 : index
    %0 = vector.load %arg1[%c0, %c0_0] : memref<512x36xbf16, #tpu.memory_space<vmem>>, vector<512x36xbf16>
    %c0_1 = arith.constant 0 : index
    %c0_2 = arith.constant 0 : index
    %1 = vector.load %arg2[%c0_1, %c0_2] : memref<36x128xbf16, #tpu.memory_space<vmem>>, vector<36x128xbf16>
    %cst = arith.constant dense<0.000000e+00> : vector<512x128xf32>
    %2 = tpu.matmul %0, %1, %cst {dimension_numbers = #tpu.dot_dimension_numbers<[1], [0], [0], [1], [0, 0, 1, 1], [], []>} : vector<512x36xbf16>, vector<36x128xbf16>, vector<512x128xf32> -> vector<512x128xf32>
    %cst_3 = arith.constant 0.000000e+00 : f32
    %3 = vector.broadcast %cst_3 : f32 to vector<512x128xf32>
    %4 = arith.maximumf %2, %3 : vector<512x128xf32>
    %5 = arith.truncf %4 : vector<512x128xf32> to vector<512x128xbf16>
    %c0_4 = arith.constant 0 : index
    %c0_5 = arith.constant 0 : index
    %6 = vector.load %arg3[%c0_4, %c0_5] : memref<512x128xbf16, #tpu.memory_space<vmem>>, vector<512x128xbf16>
    tpu.vector_store %arg3[%c0_4, %c0_5], %5 {strides = array<i32>} : memref<512x128xbf16, #tpu.memory_space<vmem>>, vector<512x128xbf16>,
    %cst_6 = arith.constant dense<0.000000e+00> : vector<128xf32>
    %7 = vector.multi_reduction <add>, %4, %cst_6 [0] : vector<512x128xf32> to vector<128xf32>
    %8 = vector.shape_cast %7 : vector<128xf32> to vector<1x128xf32>
    %c0_7 = arith.constant 0 : index
    %c0_8 = arith.constant 0 : index
    %c0_9 = arith.constant 0 : index
    %9 = vector.load %arg4[%c0_7, %c0_8, %c0_9] : memref<1x2x128xf32, #tpu.memory_space<vmem>>, vector<1x1x128xf32>
    %10 = vector.shape_cast %9 : vector<1x1x128xf32> to vector<1x128xf32>
    %11 = vector.shape_cast %8 : vector<1x128xf32> to vector<1x1x128xf32>
    tpu.vector_store %arg4[%c0_7, %c0_8, %c0_9], %11 {strides = array<i32>} : memref<1x2x128xf32, #tpu.memory_space<vmem>>, vector<1x1x128xf32>,
    %12 = arith.mulf %4, %4 : vector<512x128xf32>
    %cst_10 = arith.constant dense<0.000000e+00> : vector<128xf32>
    %13 = vector.multi_reduction <add>, %12, %cst_10 [0] : vector<512x128xf32> to vector<128xf32>
    %14 = vector.shape_cast %13 : vector<128xf32> to vector<1x128xf32>
    %c0_11 = arith.constant 0 : index
    %c1 = arith.constant 1 : index
    %c0_12 = arith.constant 0 : index
    %15 = vector.load %arg4[%c0_11, %c1, %c0_12] : memref<1x2x128xf32, #tpu.memory_space<vmem>>, vector<1x1x128xf32>
    %16 = vector.shape_cast %15 : vector<1x1x128xf32> to vector<1x128xf32>
    %17 = vector.shape_cast %14 : vector<1x128xf32> to vector<1x1x128xf32>
    tpu.vector_store %arg4[%c0_11, %c1, %c0_12], %17 {strides = array<i32>} : memref<1x2x128xf32, #tpu.memory_space<vmem>>, vector<1x1x128xf32>,
    return
  }
  func.func @transform_0(%arg0: i32) -> (i32, i32) {
    %c0_i32 = arith.constant 0 : i32
    %c0_i32_0 = arith.constant 0 : i32
    return %arg0, %c0_i32 : i32, i32
  }
  func.func @transform_1(%arg0: i32) -> (i32, i32) {
    %c0_i32 = arith.constant 0 : i32
    %c0_i32_0 = arith.constant 0 : i32
    %c0_i32_1 = arith.constant 0 : i32
    return %c0_i32, %c0_i32_0 : i32, i32
  }
  func.func @transform_2(%arg0: i32) -> (i32, i32) {
    %c0_i32 = arith.constant 0 : i32
    %c0_i32_0 = arith.constant 0 : i32
    return %arg0, %c0_i32 : i32, i32
  }
  func.func @transform_3(%arg0: i32) -> (i32, i32, i32) {
    %c0_i32 = arith.constant 0 : i32
    %c0_i32_0 = arith.constant 0 : i32
    %c0_i32_1 = arith.constant 0 : i32
    return %arg0, %c0_i32, %c0_i32_0 : i32, i32, i32
  }
}

module attributes {stable_mosaic.version = 11 : i64} {
  func.func @_conv2_kernel(%arg0: i32, %arg1: memref<256x128xbf16, #tpu.memory_space<vmem>>, %arg2: memref<2x128xf32, #tpu.memory_space<vmem>>, %arg3: memref<1x128xf32, #tpu.memory_space<vmem>>, %arg4: memref<1x128xf32, #tpu.memory_space<vmem>>, %arg5: memref<5x256x128xbf16, #tpu.memory_space<vmem>>, %arg6: memref<256x128xbf16, #tpu.memory_space<vmem>>, %arg7: memref<1x2x128xf32, #tpu.memory_space<vmem>>, %arg8: memref<18x18x128xbf16, #tpu.memory_space<vmem>>) attributes {dimension_semantics = [#tpu.dimension_semantics<parallel>], iteration_bounds = array<i64: 2>, scalar_prefetch = 0 : i64, scratch_operands = 1 : i64, tpu.core_type = #tpu.core_type<tc>, window_params = [{transform_indices = @transform_0, window_bounds = array<i64: 256, 128>}, {pipeline_mode = #tpu.pipeline_mode<synchronous>, transform_indices = @transform_1, window_bounds = array<i64: 2, 128>}, {pipeline_mode = #tpu.pipeline_mode<synchronous>, transform_indices = @transform_2, window_bounds = array<i64: 1, 128>}, {pipeline_mode = #tpu.pipeline_mode<synchronous>, transform_indices = @transform_3, window_bounds = array<i64: 1, 128>}, {pipeline_mode = #tpu.pipeline_mode<synchronous>, transform_indices = @transform_4, window_bounds = array<i64: 5, 256, 128>}, {transform_indices = @transform_5, window_bounds = array<i64: 256, 128>}, {transform_indices = @transform_6, window_bounds = array<i64: 1, 2, 128>}]} {
    %cst = arith.constant 0.000000e+00 : bf16
    %0 = vector.broadcast %cst : bf16 to vector<1x18x128xbf16>
    %c0 = arith.constant 0 : index
    %c0_0 = arith.constant 0 : index
    %c0_1 = arith.constant 0 : index
    %1 = vector.load %arg8[%c0, %c0_0, %c0_1] : memref<18x18x128xbf16, #tpu.memory_space<vmem>>, vector<1x18x128xbf16>
    tpu.vector_store %arg8[%c0, %c0_0, %c0_1], %0 {strides = array<i32>} : memref<18x18x128xbf16, #tpu.memory_space<vmem>>, vector<1x18x128xbf16>,
    %cst_2 = arith.constant 0.000000e+00 : bf16
    %2 = vector.broadcast %cst_2 : bf16 to vector<1x18x128xbf16>
    %c17 = arith.constant 17 : index
    %c0_3 = arith.constant 0 : index
    %c0_4 = arith.constant 0 : index
    %3 = vector.load %arg8[%c17, %c0_3, %c0_4] : memref<18x18x128xbf16, #tpu.memory_space<vmem>>, vector<1x18x128xbf16>
    tpu.vector_store %arg8[%c17, %c0_3, %c0_4], %2 {strides = array<i32>} : memref<18x18x128xbf16, #tpu.memory_space<vmem>>, vector<1x18x128xbf16>,
    %cst_5 = arith.constant 0.000000e+00 : bf16
    %4 = vector.broadcast %cst_5 : bf16 to vector<18x1x128xbf16>
    %c0_6 = arith.constant 0 : index
    %c0_7 = arith.constant 0 : index
    %c0_8 = arith.constant 0 : index
    %5 = vector.load %arg8[%c0_6, %c0_7, %c0_8] : memref<18x18x128xbf16, #tpu.memory_space<vmem>>, vector<18x1x128xbf16>
    tpu.vector_store %arg8[%c0_6, %c0_7, %c0_8], %4 {strides = array<i32>} : memref<18x18x128xbf16, #tpu.memory_space<vmem>>, vector<18x1x128xbf16>,
    %cst_9 = arith.constant 0.000000e+00 : bf16
    %6 = vector.broadcast %cst_9 : bf16 to vector<18x1x128xbf16>
    %c0_10 = arith.constant 0 : index
    %c17_11 = arith.constant 17 : index
    %c0_12 = arith.constant 0 : index
    %7 = vector.load %arg8[%c0_10, %c17_11, %c0_12] : memref<18x18x128xbf16, #tpu.memory_space<vmem>>, vector<18x1x128xbf16>
    tpu.vector_store %arg8[%c0_10, %c17_11, %c0_12], %6 {strides = array<i32>} : memref<18x18x128xbf16, #tpu.memory_space<vmem>>, vector<18x1x128xbf16>,
    %c0_13 = arith.constant 0 : index
    %c0_14 = arith.constant 0 : index
    %8 = vector.load %arg2[%c0_13, %c0_14] : memref<2x128xf32, #tpu.memory_space<vmem>>, vector<1x128xf32>
    %c1 = arith.constant 1 : index
    %c0_15 = arith.constant 0 : index
    %9 = vector.load %arg2[%c1, %c0_15] : memref<2x128xf32, #tpu.memory_space<vmem>>, vector<1x128xf32>
    %c0_16 = arith.constant 0 : index
    %c0_17 = arith.constant 0 : index
    %10 = vector.load %arg1[%c0_16, %c0_17] : memref<256x128xbf16, #tpu.memory_space<vmem>>, vector<256x128xbf16>
    %11 = arith.extf %10 : vector<256x128xbf16> to vector<256x128xf32>
    %c0_18 = arith.constant 0 : index
    %c0_19 = arith.constant 0 : index
    %12 = vector.load %arg3[%c0_18, %c0_19] : memref<1x128xf32, #tpu.memory_space<vmem>>, vector<1x128xf32>
    %13 = vector.broadcast %8 : vector<1x128xf32> to vector<256x128xf32>
    %14 = arith.subf %11, %13 : vector<256x128xf32>
    %15 = vector.broadcast %12 : vector<1x128xf32> to vector<256x128xf32>
    %16 = arith.mulf %15, %14 : vector<256x128xf32>
    %cst_20 = arith.constant 9.99999974E-6 : f32
    %17 = vector.broadcast %cst_20 : f32 to vector<1x128xf32>
    %18 = arith.addf %9, %17 : vector<1x128xf32>
    %19 = math.rsqrt %18 : vector<1x128xf32>
    %20 = vector.broadcast %19 : vector<1x128xf32> to vector<256x128xf32>
    %21 = arith.mulf %16, %20 : vector<256x128xf32>
    %c0_21 = arith.constant 0 : index
    %c0_22 = arith.constant 0 : index
    %22 = vector.load %arg4[%c0_21, %c0_22] : memref<1x128xf32, #tpu.memory_space<vmem>>, vector<1x128xf32>
    %23 = vector.broadcast %22 : vector<1x128xf32> to vector<256x128xf32>
    %24 = arith.addf %21, %23 : vector<256x128xf32>
    %25 = arith.truncf %24 : vector<256x128xf32> to vector<256x128xbf16>
    %26 = vector.shape_cast %25 : vector<256x128xbf16> to vector<16x16x128xbf16>
    %c1_23 = arith.constant 1 : index
    %c1_24 = arith.constant 1 : index
    %c0_25 = arith.constant 0 : index
    %27 = vector.load %arg8[%c1_23, %c1_24, %c0_25] : memref<18x18x128xbf16, #tpu.memory_space<vmem>>, vector<16x16x128xbf16>
    tpu.vector_store %arg8[%c1_23, %c1_24, %c0_25], %26 {strides = array<i32>} : memref<18x18x128xbf16, #tpu.memory_space<vmem>>, vector<16x16x128xbf16>,
    %cst_26 = arith.constant 0.000000e+00 : f32
    %28 = vector.broadcast %cst_26 : f32 to vector<1x128xf32>
    %cst_27 = arith.constant 0.000000e+00 : f32
    %29 = vector.broadcast %cst_27 : f32 to vector<1x128xf32>
    %cst_28 = arith.constant 0.000000e+00 : f32
    %30 = vector.broadcast %cst_28 : f32 to vector<128x128xf32>
    %c0_29 = arith.constant 0 : index
    %c0_30 = arith.constant 0 : index
    %c0_31 = arith.constant 0 : index
    %31 = vector.load %arg8[%c0_29, %c0_30, %c0_31] : memref<18x18x128xbf16, #tpu.memory_space<vmem>>, vector<8x16x128xbf16>
    %32 = vector.shape_cast %31 : vector<8x16x128xbf16> to vector<128x128xbf16>
    %c0_32 = arith.constant 0 : index
    %c1_33 = arith.constant 1 : index
    %c0_34 = arith.constant 0 : index
    %33 = vector.load %arg8[%c0_32, %c1_33, %c0_34] : memref<18x18x128xbf16, #tpu.memory_space<vmem>>, vector<8x16x128xbf16>
    %34 = vector.shape_cast %33 : vector<8x16x128xbf16> to vector<128x128xbf16>
    %35 = tpu.concatenate %32, %34 in 1 : vector<128x128xbf16>, vector<128x128xbf16> -> vector<128x256xbf16>
    %c0_35 = arith.constant 0 : index
    %c0_36 = arith.constant 0 : index
    %c0_37 = arith.constant 0 : index
    %36 = vector.load %arg5[%c0_35, %c0_36, %c0_37] : memref<5x256x128xbf16, #tpu.memory_space<vmem>>, vector<1x256x128xbf16>
    %37 = vector.shape_cast %36 : vector<1x256x128xbf16> to vector<256x128xbf16>
    %cst_38 = arith.constant dense<0.000000e+00> : vector<128x128xf32>
    %38 = tpu.matmul %35, %37, %cst_38 {dimension_numbers = #tpu.dot_dimension_numbers<[1], [0], [0], [1], [0, 0, 1, 1], [], []>} : vector<128x256xbf16>, vector<256x128xbf16>, vector<128x128xf32> -> vector<128x128xf32>
    %39 = arith.addf %30, %38 : vector<128x128xf32>
    %c0_39 = arith.constant 0 : index
    %c2 = arith.constant 2 : index
    %c0_40 = arith.constant 0 : index
    %40 = vector.load %arg8[%c0_39, %c2, %c0_40] : memref<18x18x128xbf16, #tpu.memory_space<vmem>>, vector<8x16x128xbf16>
    %41 = vector.shape_cast %40 : vector<8x16x128xbf16> to vector<128x128xbf16>
    %c1_41 = arith.constant 1 : index
    %c0_42 = arith.constant 0 : index
    %c0_43 = arith.constant 0 : index
    %42 = vector.load %arg8[%c1_41, %c0_42, %c0_43] : memref<18x18x128xbf16, #tpu.memory_space<vmem>>, vector<8x16x128xbf16>
    %43 = vector.shape_cast %42 : vector<8x16x128xbf16> to vector<128x128xbf16>
    %44 = tpu.concatenate %41, %43 in 1 : vector<128x128xbf16>, vector<128x128xbf16> -> vector<128x256xbf16>
    %c1_44 = arith.constant 1 : index
    %c0_45 = arith.constant 0 : index
    %c0_46 = arith.constant 0 : index
    %45 = vector.load %arg5[%c1_44, %c0_45, %c0_46] : memref<5x256x128xbf16, #tpu.memory_space<vmem>>, vector<1x256x128xbf16>
    %46 = vector.shape_cast %45 : vector<1x256x128xbf16> to vector<256x128xbf16>
    %cst_47 = arith.constant dense<0.000000e+00> : vector<128x128xf32>
    %47 = tpu.matmul %44, %46, %cst_47 {dimension_numbers = #tpu.dot_dimension_numbers<[1], [0], [0], [1], [0, 0, 1, 1], [], []>} : vector<128x256xbf16>, vector<256x128xbf16>, vector<128x128xf32> -> vector<128x128xf32>
    %48 = arith.addf %39, %47 : vector<128x128xf32>
    %c1_48 = arith.constant 1 : index
    %c1_49 = arith.constant 1 : index
    %c0_50 = arith.constant 0 : index
    %49 = vector.load %arg8[%c1_48, %c1_49, %c0_50] : memref<18x18x128xbf16, #tpu.memory_space<vmem>>, vector<8x16x128xbf16>
    %50 = vector.shape_cast %49 : vector<8x16x128xbf16> to vector<128x128xbf16>
    %c1_51 = arith.constant 1 : index
    %c2_52 = arith.constant 2 : index
    %c0_53 = arith.constant 0 : index
    %51 = vector.load %arg8[%c1_51, %c2_52, %c0_53] : memref<18x18x128xbf16, #tpu.memory_space<vmem>>, vector<8x16x128xbf16>
    %52 = vector.shape_cast %51 : vector<8x16x128xbf16> to vector<128x128xbf16>
    %53 = tpu.concatenate %50, %52 in 1 : vector<128x128xbf16>, vector<128x128xbf16> -> vector<128x256xbf16>
    %c2_54 = arith.constant 2 : index
    %c0_55 = arith.constant 0 : index
    %c0_56 = arith.constant 0 : index
    %54 = vector.load %arg5[%c2_54, %c0_55, %c0_56] : memref<5x256x128xbf16, #tpu.memory_space<vmem>>, vector<1x256x128xbf16>
    %55 = vector.shape_cast %54 : vector<1x256x128xbf16> to vector<256x128xbf16>
    %cst_57 = arith.constant dense<0.000000e+00> : vector<128x128xf32>
    %56 = tpu.matmul %53, %55, %cst_57 {dimension_numbers = #tpu.dot_dimension_numbers<[1], [0], [0], [1], [0, 0, 1, 1], [], []>} : vector<128x256xbf16>, vector<256x128xbf16>, vector<128x128xf32> -> vector<128x128xf32>
    %57 = arith.addf %48, %56 : vector<128x128xf32>
    %c2_58 = arith.constant 2 : index
    %c0_59 = arith.constant 0 : index
    %c0_60 = arith.constant 0 : index
    %58 = vector.load %arg8[%c2_58, %c0_59, %c0_60] : memref<18x18x128xbf16, #tpu.memory_space<vmem>>, vector<8x16x128xbf16>
    %59 = vector.shape_cast %58 : vector<8x16x128xbf16> to vector<128x128xbf16>
    %c2_61 = arith.constant 2 : index
    %c1_62 = arith.constant 1 : index
    %c0_63 = arith.constant 0 : index
    %60 = vector.load %arg8[%c2_61, %c1_62, %c0_63] : memref<18x18x128xbf16, #tpu.memory_space<vmem>>, vector<8x16x128xbf16>
    %61 = vector.shape_cast %60 : vector<8x16x128xbf16> to vector<128x128xbf16>
    %62 = tpu.concatenate %59, %61 in 1 : vector<128x128xbf16>, vector<128x128xbf16> -> vector<128x256xbf16>
    %c3 = arith.constant 3 : index
    %c0_64 = arith.constant 0 : index
    %c0_65 = arith.constant 0 : index
    %63 = vector.load %arg5[%c3, %c0_64, %c0_65] : memref<5x256x128xbf16, #tpu.memory_space<vmem>>, vector<1x256x128xbf16>
    %64 = vector.shape_cast %63 : vector<1x256x128xbf16> to vector<256x128xbf16>
    %cst_66 = arith.constant dense<0.000000e+00> : vector<128x128xf32>
    %65 = tpu.matmul %62, %64, %cst_66 {dimension_numbers = #tpu.dot_dimension_numbers<[1], [0], [0], [1], [0, 0, 1, 1], [], []>} : vector<128x256xbf16>, vector<256x128xbf16>, vector<128x128xf32> -> vector<128x128xf32>
    %66 = arith.addf %57, %65 : vector<128x128xf32>
    %c2_67 = arith.constant 2 : index
    %c2_68 = arith.constant 2 : index
    %c0_69 = arith.constant 0 : index
    %67 = vector.load %arg8[%c2_67, %c2_68, %c0_69] : memref<18x18x128xbf16, #tpu.memory_space<vmem>>, vector<8x16x128xbf16>
    %68 = vector.shape_cast %67 : vector<8x16x128xbf16> to vector<128x128xbf16>
    %c2_70 = arith.constant 2 : index
    %c2_71 = arith.constant 2 : index
    %c0_72 = arith.constant 0 : index
    %69 = vector.load %arg8[%c2_70, %c2_71, %c0_72] : memref<18x18x128xbf16, #tpu.memory_space<vmem>>, vector<8x16x128xbf16>
    %70 = vector.shape_cast %69 : vector<8x16x128xbf16> to vector<128x128xbf16>
    %71 = tpu.concatenate %68, %70 in 1 : vector<128x128xbf16>, vector<128x128xbf16> -> vector<128x256xbf16>
    %c4 = arith.constant 4 : index
    %c0_73 = arith.constant 0 : index
    %c0_74 = arith.constant 0 : index
    %72 = vector.load %arg5[%c4, %c0_73, %c0_74] : memref<5x256x128xbf16, #tpu.memory_space<vmem>>, vector<1x256x128xbf16>
    %73 = vector.shape_cast %72 : vector<1x256x128xbf16> to vector<256x128xbf16>
    %cst_75 = arith.constant dense<0.000000e+00> : vector<128x128xf32>
    %74 = tpu.matmul %71, %73, %cst_75 {dimension_numbers = #tpu.dot_dimension_numbers<[1], [0], [0], [1], [0, 0, 1, 1], [], []>} : vector<128x256xbf16>, vector<256x128xbf16>, vector<128x128xf32> -> vector<128x128xf32>
    %75 = arith.addf %66, %74 : vector<128x128xf32>
    %cst_76 = arith.constant 0.000000e+00 : f32
    %76 = vector.broadcast %cst_76 : f32 to vector<128x128xf32>
    %77 = arith.maximumf %75, %76 : vector<128x128xf32>
    %78 = arith.truncf %77 : vector<128x128xf32> to vector<128x128xbf16>
    %c0_77 = arith.constant 0 : index
    %c0_78 = arith.constant 0 : index
    %79 = vector.load %arg6[%c0_77, %c0_78] : memref<256x128xbf16, #tpu.memory_space<vmem>>, vector<128x128xbf16>
    tpu.vector_store %arg6[%c0_77, %c0_78], %78 {strides = array<i32>} : memref<256x128xbf16, #tpu.memory_space<vmem>>, vector<128x128xbf16>,
    %cst_79 = arith.constant dense<0.000000e+00> : vector<128xf32>
    %80 = vector.multi_reduction <add>, %77, %cst_79 [0] : vector<128x128xf32> to vector<128xf32>
    %81 = vector.shape_cast %80 : vector<128xf32> to vector<1x128xf32>
    %82 = arith.addf %28, %81 : vector<1x128xf32>
    %83 = arith.mulf %77, %77 : vector<128x128xf32>
    %cst_80 = arith.constant dense<0.000000e+00> : vector<128xf32>
    %84 = vector.multi_reduction <add>, %83, %cst_80 [0] : vector<128x128xf32> to vector<128xf32>
    %85 = vector.shape_cast %84 : vector<128xf32> to vector<1x128xf32>
    %86 = arith.addf %29, %85 : vector<1x128xf32>
    %cst_81 = arith.constant 0.000000e+00 : f32
    %87 = vector.broadcast %cst_81 : f32 to vector<128x128xf32>
    %c8 = arith.constant 8 : index
    %c0_82 = arith.constant 0 : index
    %c0_83 = arith.constant 0 : index
    %88 = vector.load %arg8[%c8, %c0_82, %c0_83] : memref<18x18x128xbf16, #tpu.memory_space<vmem>>, vector<8x16x128xbf16>
    %89 = vector.shape_cast %88 : vector<8x16x128xbf16> to vector<128x128xbf16>
    %c8_84 = arith.constant 8 : index
    %c1_85 = arith.constant 1 : index
    %c0_86 = arith.constant 0 : index
    %90 = vector.load %arg8[%c8_84, %c1_85, %c0_86] : memref<18x18x128xbf16, #tpu.memory_space<vmem>>, vector<8x16x128xbf16>
    %91 = vector.shape_cast %90 : vector<8x16x128xbf16> to vector<128x128xbf16>
    %92 = tpu.concatenate %89, %91 in 1 : vector<128x128xbf16>, vector<128x128xbf16> -> vector<128x256xbf16>
    %c0_87 = arith.constant 0 : index
    %c0_88 = arith.constant 0 : index
    %c0_89 = arith.constant 0 : index
    %93 = vector.load %arg5[%c0_87, %c0_88, %c0_89] : memref<5x256x128xbf16, #tpu.memory_space<vmem>>, vector<1x256x128xbf16>
    %94 = vector.shape_cast %93 : vector<1x256x128xbf16> to vector<256x128xbf16>
    %cst_90 = arith.constant dense<0.000000e+00> : vector<128x128xf32>
    %95 = tpu.matmul %92, %94, %cst_90 {dimension_numbers = #tpu.dot_dimension_numbers<[1], [0], [0], [1], [0, 0, 1, 1], [], []>} : vector<128x256xbf16>, vector<256x128xbf16>, vector<128x128xf32> -> vector<128x128xf32>
    %96 = arith.addf %87, %95 : vector<128x128xf32>
    %c8_91 = arith.constant 8 : index
    %c2_92 = arith.constant 2 : index
    %c0_93 = arith.constant 0 : index
    %97 = vector.load %arg8[%c8_91, %c2_92, %c0_93] : memref<18x18x128xbf16, #tpu.memory_space<vmem>>, vector<8x16x128xbf16>
    %98 = vector.shape_cast %97 : vector<8x16x128xbf16> to vector<128x128xbf16>
    %c9 = arith.constant 9 : index
    %c0_94 = arith.constant 0 : index
    %c0_95 = arith.constant 0 : index
    %99 = vector.load %arg8[%c9, %c0_94, %c0_95] : memref<18x18x128xbf16, #tpu.memory_space<vmem>>, vector<8x16x128xbf16>
    %100 = vector.shape_cast %99 : vector<8x16x128xbf16> to vector<128x128xbf16>
    %101 = tpu.concatenate %98, %100 in 1 : vector<128x128xbf16>, vector<128x128xbf16> -> vector<128x256xbf16>
    %c1_96 = arith.constant 1 : index
    %c0_97 = arith.constant 0 : index
    %c0_98 = arith.constant 0 : index
    %102 = vector.load %arg5[%c1_96, %c0_97, %c0_98] : memref<5x256x128xbf16, #tpu.memory_space<vmem>>, vector<1x256x128xbf16>
    %103 = vector.shape_cast %102 : vector<1x256x128xbf16> to vector<256x128xbf16>
    %cst_99 = arith.constant dense<0.000000e+00> : vector<128x128xf32>
    %104 = tpu.matmul %101, %103, %cst_99 {dimension_numbers = #tpu.dot_dimension_numbers<[1], [0], [0], [1], [0, 0, 1, 1], [], []>} : vector<128x256xbf16>, vector<256x128xbf16>, vector<128x128xf32> -> vector<128x128xf32>
    %105 = arith.addf %96, %104 : vector<128x128xf32>
    %c9_100 = arith.constant 9 : index
    %c1_101 = arith.constant 1 : index
    %c0_102 = arith.constant 0 : index
    %106 = vector.load %arg8[%c9_100, %c1_101, %c0_102] : memref<18x18x128xbf16, #tpu.memory_space<vmem>>, vector<8x16x128xbf16>
    %107 = vector.shape_cast %106 : vector<8x16x128xbf16> to vector<128x128xbf16>
    %c9_103 = arith.constant 9 : index
    %c2_104 = arith.constant 2 : index
    %c0_105 = arith.constant 0 : index
    %108 = vector.load %arg8[%c9_103, %c2_104, %c0_105] : memref<18x18x128xbf16, #tpu.memory_space<vmem>>, vector<8x16x128xbf16>
    %109 = vector.shape_cast %108 : vector<8x16x128xbf16> to vector<128x128xbf16>
    %110 = tpu.concatenate %107, %109 in 1 : vector<128x128xbf16>, vector<128x128xbf16> -> vector<128x256xbf16>
    %c2_106 = arith.constant 2 : index
    %c0_107 = arith.constant 0 : index
    %c0_108 = arith.constant 0 : index
    %111 = vector.load %arg5[%c2_106, %c0_107, %c0_108] : memref<5x256x128xbf16, #tpu.memory_space<vmem>>, vector<1x256x128xbf16>
    %112 = vector.shape_cast %111 : vector<1x256x128xbf16> to vector<256x128xbf16>
    %cst_109 = arith.constant dense<0.000000e+00> : vector<128x128xf32>
    %113 = tpu.matmul %110, %112, %cst_109 {dimension_numbers = #tpu.dot_dimension_numbers<[1], [0], [0], [1], [0, 0, 1, 1], [], []>} : vector<128x256xbf16>, vector<256x128xbf16>, vector<128x128xf32> -> vector<128x128xf32>
    %114 = arith.addf %105, %113 : vector<128x128xf32>
    %c10 = arith.constant 10 : index
    %c0_110 = arith.constant 0 : index
    %c0_111 = arith.constant 0 : index
    %115 = vector.load %arg8[%c10, %c0_110, %c0_111] : memref<18x18x128xbf16, #tpu.memory_space<vmem>>, vector<8x16x128xbf16>
    %116 = vector.shape_cast %115 : vector<8x16x128xbf16> to vector<128x128xbf16>
    %c10_112 = arith.constant 10 : index
    %c1_113 = arith.constant 1 : index
    %c0_114 = arith.constant 0 : index
    %117 = vector.load %arg8[%c10_112, %c1_113, %c0_114] : memref<18x18x128xbf16, #tpu.memory_space<vmem>>, vector<8x16x128xbf16>
    %118 = vector.shape_cast %117 : vector<8x16x128xbf16> to vector<128x128xbf16>
    %119 = tpu.concatenate %116, %118 in 1 : vector<128x128xbf16>, vector<128x128xbf16> -> vector<128x256xbf16>
    %c3_115 = arith.constant 3 : index
    %c0_116 = arith.constant 0 : index
    %c0_117 = arith.constant 0 : index
    %120 = vector.load %arg5[%c3_115, %c0_116, %c0_117] : memref<5x256x128xbf16, #tpu.memory_space<vmem>>, vector<1x256x128xbf16>
    %121 = vector.shape_cast %120 : vector<1x256x128xbf16> to vector<256x128xbf16>
    %cst_118 = arith.constant dense<0.000000e+00> : vector<128x128xf32>
    %122 = tpu.matmul %119, %121, %cst_118 {dimension_numbers = #tpu.dot_dimension_numbers<[1], [0], [0], [1], [0, 0, 1, 1], [], []>} : vector<128x256xbf16>, vector<256x128xbf16>, vector<128x128xf32> -> vector<128x128xf32>
    %123 = arith.addf %114, %122 : vector<128x128xf32>
    %c10_119 = arith.constant 10 : index
    %c2_120 = arith.constant 2 : index
    %c0_121 = arith.constant 0 : index
    %124 = vector.load %arg8[%c10_119, %c2_120, %c0_121] : memref<18x18x128xbf16, #tpu.memory_space<vmem>>, vector<8x16x128xbf16>
    %125 = vector.shape_cast %124 : vector<8x16x128xbf16> to vector<128x128xbf16>
    %c10_122 = arith.constant 10 : index
    %c2_123 = arith.constant 2 : index
    %c0_124 = arith.constant 0 : index
    %126 = vector.load %arg8[%c10_122, %c2_123, %c0_124] : memref<18x18x128xbf16, #tpu.memory_space<vmem>>, vector<8x16x128xbf16>
    %127 = vector.shape_cast %126 : vector<8x16x128xbf16> to vector<128x128xbf16>
    %128 = tpu.concatenate %125, %127 in 1 : vector<128x128xbf16>, vector<128x128xbf16> -> vector<128x256xbf16>
    %c4_125 = arith.constant 4 : index
    %c0_126 = arith.constant 0 : index
    %c0_127 = arith.constant 0 : index
    %129 = vector.load %arg5[%c4_125, %c0_126, %c0_127] : memref<5x256x128xbf16, #tpu.memory_space<vmem>>, vector<1x256x128xbf16>
    %130 = vector.shape_cast %129 : vector<1x256x128xbf16> to vector<256x128xbf16>
    %cst_128 = arith.constant dense<0.000000e+00> : vector<128x128xf32>
    %131 = tpu.matmul %128, %130, %cst_128 {dimension_numbers = #tpu.dot_dimension_numbers<[1], [0], [0], [1], [0, 0, 1, 1], [], []>} : vector<128x256xbf16>, vector<256x128xbf16>, vector<128x128xf32> -> vector<128x128xf32>
    %132 = arith.addf %123, %131 : vector<128x128xf32>
    %cst_129 = arith.constant 0.000000e+00 : f32
    %133 = vector.broadcast %cst_129 : f32 to vector<128x128xf32>
    %134 = arith.maximumf %132, %133 : vector<128x128xf32>
    %135 = arith.truncf %134 : vector<128x128xf32> to vector<128x128xbf16>
    %c128 = arith.constant 128 : index
    %c0_130 = arith.constant 0 : index
    %136 = vector.load %arg6[%c128, %c0_130] : memref<256x128xbf16, #tpu.memory_space<vmem>>, vector<128x128xbf16>
    tpu.vector_store %arg6[%c128, %c0_130], %135 {strides = array<i32>} : memref<256x128xbf16, #tpu.memory_space<vmem>>, vector<128x128xbf16>,
    %cst_131 = arith.constant dense<0.000000e+00> : vector<128xf32>
    %137 = vector.multi_reduction <add>, %134, %cst_131 [0] : vector<128x128xf32> to vector<128xf32>
    %138 = vector.shape_cast %137 : vector<128xf32> to vector<1x128xf32>
    %139 = arith.addf %82, %138 : vector<1x128xf32>
    %140 = arith.mulf %134, %134 : vector<128x128xf32>
    %cst_132 = arith.constant dense<0.000000e+00> : vector<128xf32>
    %141 = vector.multi_reduction <add>, %140, %cst_132 [0] : vector<128x128xf32> to vector<128xf32>
    %142 = vector.shape_cast %141 : vector<128xf32> to vector<1x128xf32>
    %143 = arith.addf %86, %142 : vector<1x128xf32>
    %c0_133 = arith.constant 0 : index
    %c0_134 = arith.constant 0 : index
    %c0_135 = arith.constant 0 : index
    %144 = vector.load %arg7[%c0_133, %c0_134, %c0_135] : memref<1x2x128xf32, #tpu.memory_space<vmem>>, vector<1x1x128xf32>
    %145 = vector.shape_cast %144 : vector<1x1x128xf32> to vector<1x128xf32>
    %146 = vector.shape_cast %139 : vector<1x128xf32> to vector<1x1x128xf32>
    tpu.vector_store %arg7[%c0_133, %c0_134, %c0_135], %146 {strides = array<i32>} : memref<1x2x128xf32, #tpu.memory_space<vmem>>, vector<1x1x128xf32>,
    %c0_136 = arith.constant 0 : index
    %c1_137 = arith.constant 1 : index
    %c0_138 = arith.constant 0 : index
    %147 = vector.load %arg7[%c0_136, %c1_137, %c0_138] : memref<1x2x128xf32, #tpu.memory_space<vmem>>, vector<1x1x128xf32>
    %148 = vector.shape_cast %147 : vector<1x1x128xf32> to vector<1x128xf32>
    %149 = vector.shape_cast %143 : vector<1x128xf32> to vector<1x1x128xf32>
    tpu.vector_store %arg7[%c0_136, %c1_137, %c0_138], %149 {strides = array<i32>} : memref<1x2x128xf32, #tpu.memory_space<vmem>>, vector<1x1x128xf32>,
    return
  }
  func.func @transform_0(%arg0: i32) -> (i32, i32) {
    %c0_i32 = arith.constant 0 : i32
    %c0_i32_0 = arith.constant 0 : i32
    return %arg0, %c0_i32 : i32, i32
  }
  func.func @transform_1(%arg0: i32) -> (i32, i32) {
    %c0_i32 = arith.constant 0 : i32
    %c0_i32_0 = arith.constant 0 : i32
    %c0_i32_1 = arith.constant 0 : i32
    return %c0_i32, %c0_i32_0 : i32, i32
  }
  func.func @transform_2(%arg0: i32) -> (i32, i32) {
    %c0_i32 = arith.constant 0 : i32
    %c0_i32_0 = arith.constant 0 : i32
    %c0_i32_1 = arith.constant 0 : i32
    return %c0_i32, %c0_i32_0 : i32, i32
  }
  func.func @transform_3(%arg0: i32) -> (i32, i32) {
    %c0_i32 = arith.constant 0 : i32
    %c0_i32_0 = arith.constant 0 : i32
    %c0_i32_1 = arith.constant 0 : i32
    return %c0_i32, %c0_i32_0 : i32, i32
  }
  func.func @transform_4(%arg0: i32) -> (i32, i32, i32) {
    %c0_i32 = arith.constant 0 : i32
    %c0_i32_0 = arith.constant 0 : i32
    %c0_i32_1 = arith.constant 0 : i32
    %c0_i32_2 = arith.constant 0 : i32
    return %c0_i32, %c0_i32_0, %c0_i32_1 : i32, i32, i32
  }
  func.func @transform_5(%arg0: i32) -> (i32, i32) {
    %c0_i32 = arith.constant 0 : i32
    %c0_i32_0 = arith.constant 0 : i32
    return %arg0, %c0_i32 : i32, i32
  }
  func.func @transform_6(%arg0: i32) -> (i32, i32, i32) {
    %c0_i32 = arith.constant 0 : i32
    %c0_i32_0 = arith.constant 0 : i32
    %c0_i32_1 = arith.constant 0 : i32
    return %arg0, %c0_i32, %c0_i32_0 : i32, i32, i32
  }
}

module attributes {stable_mosaic.version = 11 : i64} {
  func.func @_bn_apply_kernel(%arg0: i32, %arg1: memref<512x128xbf16, #tpu.memory_space<vmem>>, %arg2: memref<2x128xf32, #tpu.memory_space<vmem>>, %arg3: memref<1x128xf32, #tpu.memory_space<vmem>>, %arg4: memref<1x128xf32, #tpu.memory_space<vmem>>, %arg5: memref<512x8xf32, #tpu.memory_space<vmem>>) attributes {dimension_semantics = [#tpu.dimension_semantics<parallel>], iteration_bounds = array<i64: 1>, scalar_prefetch = 0 : i64, scratch_operands = 0 : i64, tpu.core_type = #tpu.core_type<tc>, window_params = [{transform_indices = @transform_0, window_bounds = array<i64: 512, 128>}, {pipeline_mode = #tpu.pipeline_mode<synchronous>, transform_indices = @transform_1, window_bounds = array<i64: 2, 128>}, {pipeline_mode = #tpu.pipeline_mode<synchronous>, transform_indices = @transform_2, window_bounds = array<i64: 1, 128>}, {pipeline_mode = #tpu.pipeline_mode<synchronous>, transform_indices = @transform_3, window_bounds = array<i64: 1, 128>}, {transform_indices = @transform_4, window_bounds = array<i64: 512, 8>}]} {
    %c0 = arith.constant 0 : index
    %c0_0 = arith.constant 0 : index
    %0 = vector.load %arg2[%c0, %c0_0] : memref<2x128xf32, #tpu.memory_space<vmem>>, vector<1x128xf32>
    %c1 = arith.constant 1 : index
    %c0_1 = arith.constant 0 : index
    %1 = vector.load %arg2[%c1, %c0_1] : memref<2x128xf32, #tpu.memory_space<vmem>>, vector<1x128xf32>
    %c0_2 = arith.constant 0 : index
    %c0_3 = arith.constant 0 : index
    %2 = vector.load %arg1[%c0_2, %c0_3] : memref<512x128xbf16, #tpu.memory_space<vmem>>, vector<512x128xbf16>
    %3 = arith.extf %2 : vector<512x128xbf16> to vector<512x128xf32>
    %c0_4 = arith.constant 0 : index
    %c0_5 = arith.constant 0 : index
    %4 = vector.load %arg3[%c0_4, %c0_5] : memref<1x128xf32, #tpu.memory_space<vmem>>, vector<1x128xf32>
    %5 = vector.broadcast %0 : vector<1x128xf32> to vector<512x128xf32>
    %6 = arith.subf %3, %5 : vector<512x128xf32>
    %7 = vector.broadcast %4 : vector<1x128xf32> to vector<512x128xf32>
    %8 = arith.mulf %7, %6 : vector<512x128xf32>
    %cst = arith.constant 9.99999974E-6 : f32
    %9 = vector.broadcast %cst : f32 to vector<1x128xf32>
    %10 = arith.addf %1, %9 : vector<1x128xf32>
    %11 = math.rsqrt %10 : vector<1x128xf32>
    %12 = vector.broadcast %11 : vector<1x128xf32> to vector<512x128xf32>
    %13 = arith.mulf %8, %12 : vector<512x128xf32>
    %c0_6 = arith.constant 0 : index
    %c0_7 = arith.constant 0 : index
    %14 = vector.load %arg4[%c0_6, %c0_7] : memref<1x128xf32, #tpu.memory_space<vmem>>, vector<1x128xf32>
    %15 = vector.broadcast %14 : vector<1x128xf32> to vector<512x128xf32>
    %16 = arith.addf %13, %15 : vector<512x128xf32>
    %17 = vector.extract_strided_slice %16 {offsets = [0, 0], sizes = [512, 8], strides = [1, 1]} : vector<512x128xf32> to vector<512x8xf32>
    %c0_8 = arith.constant 0 : index
    %c0_9 = arith.constant 0 : index
    %18 = vector.load %arg5[%c0_8, %c0_9] : memref<512x8xf32, #tpu.memory_space<vmem>>, vector<512x8xf32>
    tpu.vector_store %arg5[%c0_8, %c0_9], %17 {strides = array<i32>} : memref<512x8xf32, #tpu.memory_space<vmem>>, vector<512x8xf32>,
    return
  }
  func.func @transform_0(%arg0: i32) -> (i32, i32) {
    %c0_i32 = arith.constant 0 : i32
    %c0_i32_0 = arith.constant 0 : i32
    return %arg0, %c0_i32 : i32, i32
  }
  func.func @transform_1(%arg0: i32) -> (i32, i32) {
    %c0_i32 = arith.constant 0 : i32
    %c0_i32_0 = arith.constant 0 : i32
    %c0_i32_1 = arith.constant 0 : i32
    return %c0_i32, %c0_i32_0 : i32, i32
  }
  func.func @transform_2(%arg0: i32) -> (i32, i32) {
    %c0_i32 = arith.constant 0 : i32
    %c0_i32_0 = arith.constant 0 : i32
    %c0_i32_1 = arith.constant 0 : i32
    return %c0_i32, %c0_i32_0 : i32, i32
  }
  func.func @transform_3(%arg0: i32) -> (i32, i32) {
    %c0_i32 = arith.constant 0 : i32
    %c0_i32_0 = arith.constant 0 : i32
    %c0_i32_1 = arith.constant 0 : i32
    return %c0_i32, %c0_i32_0 : i32, i32
  }
  func.func @transform_4(%arg0: i32) -> (i32, i32) {
    %c0_i32 = arith.constant 0 : i32
    %c0_i32_0 = arith.constant 0 : i32
    return %arg0, %c0_i32 : i32, i32
  }
}

module attributes {stable_mosaic.version = 11 : i64} {
  func.func @_shortcut_kernel(%arg0: i32, %arg1: memref<512x128xbf16, #tpu.memory_space<vmem>>, %arg2: memref<2x128xf32, #tpu.memory_space<vmem>>, %arg3: memref<1x128xf32, #tpu.memory_space<vmem>>, %arg4: memref<1x128xf32, #tpu.memory_space<vmem>>, %arg5: memref<512x4xbf16, #tpu.memory_space<vmem>>, %arg6: memref<4x128xbf16, #tpu.memory_space<vmem>>, %arg7: memref<512x128xbf16, #tpu.memory_space<vmem>>, %arg8: memref<1x2x128xf32, #tpu.memory_space<vmem>>) attributes {dimension_semantics = [#tpu.dimension_semantics<parallel>], iteration_bounds = array<i64: 1>, scalar_prefetch = 0 : i64, scratch_operands = 0 : i64, tpu.core_type = #tpu.core_type<tc>, window_params = [{transform_indices = @transform_0, window_bounds = array<i64: 512, 128>}, {pipeline_mode = #tpu.pipeline_mode<synchronous>, transform_indices = @transform_1, window_bounds = array<i64: 2, 128>}, {pipeline_mode = #tpu.pipeline_mode<synchronous>, transform_indices = @transform_2, window_bounds = array<i64: 1, 128>}, {pipeline_mode = #tpu.pipeline_mode<synchronous>, transform_indices = @transform_3, window_bounds = array<i64: 1, 128>}, {transform_indices = @transform_4, window_bounds = array<i64: 512, 4>}, {pipeline_mode = #tpu.pipeline_mode<synchronous>, transform_indices = @transform_5, window_bounds = array<i64: 4, 128>}, {transform_indices = @transform_6, window_bounds = array<i64: 512, 128>}, {transform_indices = @transform_7, window_bounds = array<i64: 1, 2, 128>}]} {
    %c0 = arith.constant 0 : index
    %c0_0 = arith.constant 0 : index
    %0 = vector.load %arg2[%c0, %c0_0] : memref<2x128xf32, #tpu.memory_space<vmem>>, vector<1x128xf32>
    %c1 = arith.constant 1 : index
    %c0_1 = arith.constant 0 : index
    %1 = vector.load %arg2[%c1, %c0_1] : memref<2x128xf32, #tpu.memory_space<vmem>>, vector<1x128xf32>
    %c0_2 = arith.constant 0 : index
    %c0_3 = arith.constant 0 : index
    %2 = vector.load %arg1[%c0_2, %c0_3] : memref<512x128xbf16, #tpu.memory_space<vmem>>, vector<512x128xbf16>
    %3 = arith.extf %2 : vector<512x128xbf16> to vector<512x128xf32>
    %c0_4 = arith.constant 0 : index
    %c0_5 = arith.constant 0 : index
    %4 = vector.load %arg3[%c0_4, %c0_5] : memref<1x128xf32, #tpu.memory_space<vmem>>, vector<1x128xf32>
    %5 = vector.broadcast %0 : vector<1x128xf32> to vector<512x128xf32>
    %6 = arith.subf %3, %5 : vector<512x128xf32>
    %7 = vector.broadcast %4 : vector<1x128xf32> to vector<512x128xf32>
    %8 = arith.mulf %7, %6 : vector<512x128xf32>
    %cst = arith.constant 9.99999974E-6 : f32
    %9 = vector.broadcast %cst : f32 to vector<1x128xf32>
    %10 = arith.addf %1, %9 : vector<1x128xf32>
    %11 = math.rsqrt %10 : vector<1x128xf32>
    %12 = vector.broadcast %11 : vector<1x128xf32> to vector<512x128xf32>
    %13 = arith.mulf %8, %12 : vector<512x128xf32>
    %c0_6 = arith.constant 0 : index
    %c0_7 = arith.constant 0 : index
    %14 = vector.load %arg4[%c0_6, %c0_7] : memref<1x128xf32, #tpu.memory_space<vmem>>, vector<1x128xf32>
    %15 = vector.broadcast %14 : vector<1x128xf32> to vector<512x128xf32>
    %16 = arith.addf %13, %15 : vector<512x128xf32>
    %c0_8 = arith.constant 0 : index
    %c0_9 = arith.constant 0 : index
    %17 = vector.load %arg5[%c0_8, %c0_9] : memref<512x4xbf16, #tpu.memory_space<vmem>>, vector<512x4xbf16>
    %c0_10 = arith.constant 0 : index
    %c0_11 = arith.constant 0 : index
    %18 = vector.load %arg6[%c0_10, %c0_11] : memref<4x128xbf16, #tpu.memory_space<vmem>>, vector<4x128xbf16>
    %cst_12 = arith.constant dense<0.000000e+00> : vector<512x128xf32>
    %19 = tpu.matmul %17, %18, %cst_12 {dimension_numbers = #tpu.dot_dimension_numbers<[1], [0], [0], [1], [0, 0, 1, 1], [], []>} : vector<512x4xbf16>, vector<4x128xbf16>, vector<512x128xf32> -> vector<512x128xf32>
    %cst_13 = arith.constant 0.000000e+00 : f32
    %20 = vector.broadcast %cst_13 : f32 to vector<512x128xf32>
    %21 = arith.maximumf %19, %20 : vector<512x128xf32>
    %22 = arith.addf %16, %21 : vector<512x128xf32>
    %23 = arith.truncf %22 : vector<512x128xf32> to vector<512x128xbf16>
    %c0_14 = arith.constant 0 : index
    %c0_15 = arith.constant 0 : index
    %24 = vector.load %arg7[%c0_14, %c0_15] : memref<512x128xbf16, #tpu.memory_space<vmem>>, vector<512x128xbf16>
    tpu.vector_store %arg7[%c0_14, %c0_15], %23 {strides = array<i32>} : memref<512x128xbf16, #tpu.memory_space<vmem>>, vector<512x128xbf16>,
    %cst_16 = arith.constant dense<0.000000e+00> : vector<128xf32>
    %25 = vector.multi_reduction <add>, %22, %cst_16 [0] : vector<512x128xf32> to vector<128xf32>
    %26 = vector.shape_cast %25 : vector<128xf32> to vector<1x128xf32>
    %c0_17 = arith.constant 0 : index
    %c0_18 = arith.constant 0 : index
    %c0_19 = arith.constant 0 : index
    %27 = vector.load %arg8[%c0_17, %c0_18, %c0_19] : memref<1x2x128xf32, #tpu.memory_space<vmem>>, vector<1x1x128xf32>
    %28 = vector.shape_cast %27 : vector<1x1x128xf32> to vector<1x128xf32>
    %29 = vector.shape_cast %26 : vector<1x128xf32> to vector<1x1x128xf32>
    tpu.vector_store %arg8[%c0_17, %c0_18, %c0_19], %29 {strides = array<i32>} : memref<1x2x128xf32, #tpu.memory_space<vmem>>, vector<1x1x128xf32>,
    %30 = arith.mulf %22, %22 : vector<512x128xf32>
    %cst_20 = arith.constant dense<0.000000e+00> : vector<128xf32>
    %31 = vector.multi_reduction <add>, %30, %cst_20 [0] : vector<512x128xf32> to vector<128xf32>
    %32 = vector.shape_cast %31 : vector<128xf32> to vector<1x128xf32>
    %c0_21 = arith.constant 0 : index
    %c1_22 = arith.constant 1 : index
    %c0_23 = arith.constant 0 : index
    %33 = vector.load %arg8[%c0_21, %c1_22, %c0_23] : memref<1x2x128xf32, #tpu.memory_space<vmem>>, vector<1x1x128xf32>
    %34 = vector.shape_cast %33 : vector<1x1x128xf32> to vector<1x128xf32>
    %35 = vector.shape_cast %32 : vector<1x128xf32> to vector<1x1x128xf32>
    tpu.vector_store %arg8[%c0_21, %c1_22, %c0_23], %35 {strides = array<i32>} : memref<1x2x128xf32, #tpu.memory_space<vmem>>, vector<1x1x128xf32>,
    return
  }
  func.func @transform_0(%arg0: i32) -> (i32, i32) {
    %c0_i32 = arith.constant 0 : i32
    %c0_i32_0 = arith.constant 0 : i32
    return %arg0, %c0_i32 : i32, i32
  }
  func.func @transform_1(%arg0: i32) -> (i32, i32) {
    %c0_i32 = arith.constant 0 : i32
    %c0_i32_0 = arith.constant 0 : i32
    %c0_i32_1 = arith.constant 0 : i32
    return %c0_i32, %c0_i32_0 : i32, i32
  }
  func.func @transform_2(%arg0: i32) -> (i32, i32) {
    %c0_i32 = arith.constant 0 : i32
    %c0_i32_0 = arith.constant 0 : i32
    %c0_i32_1 = arith.constant 0 : i32
    return %c0_i32, %c0_i32_0 : i32, i32
  }
  func.func @transform_3(%arg0: i32) -> (i32, i32) {
    %c0_i32 = arith.constant 0 : i32
    %c0_i32_0 = arith.constant 0 : i32
    %c0_i32_1 = arith.constant 0 : i32
    return %c0_i32, %c0_i32_0 : i32, i32
  }
  func.func @transform_4(%arg0: i32) -> (i32, i32) {
    %c0_i32 = arith.constant 0 : i32
    %c0_i32_0 = arith.constant 0 : i32
    return %arg0, %c0_i32 : i32, i32
  }
  func.func @transform_5(%arg0: i32) -> (i32, i32) {
    %c0_i32 = arith.constant 0 : i32
    %c0_i32_0 = arith.constant 0 : i32
    %c0_i32_1 = arith.constant 0 : i32
    return %c0_i32, %c0_i32_0 : i32, i32
  }
  func.func @transform_6(%arg0: i32) -> (i32, i32) {
    %c0_i32 = arith.constant 0 : i32
    %c0_i32_0 = arith.constant 0 : i32
    return %arg0, %c0_i32 : i32, i32
  }
  func.func @transform_7(%arg0: i32) -> (i32, i32, i32) {
    %c0_i32 = arith.constant 0 : i32
    %c0_i32_0 = arith.constant 0 : i32
    %c0_i32_1 = arith.constant 0 : i32
    return %arg0, %c0_i32, %c0_i32_0 : i32, i32, i32
  }
}

</mosaic_0001>

<bundles_post_ra>
// kernel: residual_block_forward.4
= control target key start
LH: loop header
LB: loop body
LE: loop exit
PB: predicated region body
PF: predicated region fallthrough
CT: control target
= control target key end

     0   :  { %vm355_vm0 = vcmask 1041408   ;;  %vm258_vm1 = vcmask 293888   ;;  %s2229_s1 = inlined_call_operand.vmem [shape: bf16[36,128], index: 1, kind: input, shape index: {}]   ;;  %s2230_s0 = inlined_call_operand.vmem [shape: bf16[512,36], index: 0, kind: input, shape index: {}]   ;;  %s2231_s2 = inlined_call_operand.vmem [shape: bf16[512,128], index: 2, kind: output, shape index: {0}]   ;;  %s2232_s3 = inlined_call_operand.vmem [shape: f32[1,2,128], index: 3, kind: output, shape index: {1}]  }
   0x1   :  { %v1743_v0 = vld [vmem:[%s2229_s1 + $0x10] ss:$0 sps:$4 sm:$0x33]   ;;  %v1744_v1 = vld [vmem:[%s2229_s1 + $0x8] sm:$0xff]   ;;  %v1746_v3 = vld [vmem:[%s2230_s0] sm:$0xff]  }
   0x2   :  { %1741 = vmatprep.subr.msk.bf16.mxu0 %vm355_vm0, %v1743_v0  ;;  %v357_v2 = vsel %vm355_vm0, %v1743_v0, 0  ;;  %1742 = vmatprep.subr.msk.bf16.mxu1 %vm355_vm0, %v1743_v0  ;;  %v1745_v4 = vld [vmem:[%s2229_s1] sm:$0xff]   ;;  %v1747_v5 = vld [vmem:[%s2230_s0 + $0x8] sm:$0xff]   ;;  %v1748_v6 = vld [vmem:[%s2230_s0 + $0x10] sm:$0xff]  }
   0x3   :  { %1666 = vmatpush3.bf16.msra.mxu0 %v357_v2  ;;  %1738 = vmatpush3.bf16.msra.mxu1 %v357_v2  ;;  %v1749_v7 = vld [vmem:[%s2230_s0 + $0x18] sm:$0xff]   ;;  %v1750_v8 = vld [vmem:[%s2230_s0 + $0x20] sm:$0xff]   ;;  %v1763_v10 = vld [vmem:[%s2230_s0 + $0x88] sm:$0xff]  }
   0x4   :  { %1667 = vmatprep.subr.bf16.mxu0 %v1744_v1  ;;  %1736 = vmatprep.subr.bf16.mxu1 %v1744_v1  ;;  %v1762_v9 = vld [vmem:[%s2230_s0 + $0x80] sm:$0xff]   ;;  %v1764_v11 = vld [vmem:[%s2230_s0 + $0x90] sm:$0xff]   ;;  %v1751_v12 = vld [vmem:[%s2230_s0 + $0x28] sm:$0xff]  }
   0x5   :  { %1671 = vmatprep.mubr.msk.bf16.mxu0 %vm258_vm1, %v1746_v3  ;;  %1703 = vmatprep.mubr.msk.bf16.mxu1 %vm258_vm1, %v1762_v9  ;;  %v1752_v13 = vld [vmem:[%s2230_s0 + $0x30] sm:$0xff]   ;;  %v1765_v14 = vld [vmem:[%s2230_s0 + $0x98] sm:$0xff]   ;;  %v1766_v15 = vld [vmem:[%s2230_s0 + $0xa0] sm:$0xff]  }
   0x6   :  { %v1753_v16 = vld [vmem:[%s2230_s0 + $0x38] sm:$0xff]   ;;  %v1767_v17 = vld [vmem:[%s2230_s0 + $0xa8] sm:$0xff]   ;;  %v1754_v18 = vld [vmem:[%s2230_s0 + $0x40] sm:$0xff]  }
   0x7   :  { %1668 = vmatpush3.bf16.msra.mxu0 %v1744_v1  ;;  %1739 = vmatpush3.bf16.msra.mxu1 %v1744_v1  ;;  %v1768_v19 = vld [vmem:[%s2230_s0 + $0xb0] sm:$0xff]   ;;  %v1755_v20 = vld [vmem:[%s2230_s0 + $0x48] sm:$0xff]   ;;  %v1769_v21 = vld [vmem:[%s2230_s0 + $0xb8] sm:$0xff]  }
   0x8   :  { %1669 = vmatprep.subr.bf16.mxu0 %v1745_v4  ;;  %1737 = vmatprep.subr.bf16.mxu1 %v1745_v4  ;;  %v1756_v22 = vld [vmem:[%s2230_s0 + $0x50] sm:$0xff]   ;;  %v1770_v23 = vld [vmem:[%s2230_s0 + $0xc0] sm:$0xff]   ;;  %v1757_v24 = vld [vmem:[%s2230_s0 + $0x58] sm:$0xff]  }
   0x9   :  { %v1771_v25 = vld [vmem:[%s2230_s0 + $0xc8] sm:$0xff]   ;;  %v1758_v26 = vld [vmem:[%s2230_s0 + $0x60] sm:$0xff]   ;;  %v1772_v27 = vld [vmem:[%s2230_s0 + $0xd0] sm:$0xff]  }
   0xa   :  { %v1759_v28 = vld [vmem:[%s2230_s0 + $0x68] sm:$0xff]   ;;  %v1773_v29 = vld [vmem:[%s2230_s0 + $0xd8] sm:$0xff]   ;;  %v1760_v30 = vld [vmem:[%s2230_s0 + $0x70] sm:$0xff]  }
   0xb   :  { %1670 = vmatpush3.bf16.msra.mxu0 %v1745_v4  ;;  %1740 = vmatpush3.bf16.msra.mxu1 %v1745_v4  ;;  %v1774_v31 = vld [vmem:[%s2230_s0 + $0xe0] sm:$0xff]   ;;  %v1761_v32 = vld [vmem:[%s2230_s0 + $0x78] sm:$0xff]   ;;  %v1775_v33 = vld [vmem:[%s2230_s0 + $0xe8] sm:$0xff]  }
   0xc   :  { %v1776_v34 = vld [vmem:[%s2230_s0 + $0xf0] sm:$0xff]   ;;  %v1777_v35 = vld [vmem:[%s2230_s0 + $0xf8] sm:$0xff]  }
   0xe   :  { %1672 = vmatmul.mubr.msk.bf16.vlgmr.msra.gmra.mxu0 %vm258_vm1, %v1747_v5  ;;  %1704 = vmatmul.mubr.msk.bf16.vlgmr.msra.gmra.mxu1 %vm258_vm1, %v1763_v10 }
   0xf   :  { %1675 = vmatprep.mubr.msk.bf16.mxu0 %vm258_vm1, %v1748_v6  ;;  %1707 = vmatprep.mubr.msk.bf16.mxu1 %vm258_vm1, %v1764_v11 }
  0x16   :  { %1676 = vmatmul.mubr.msk.bf16.gmra.mxu0 %vm258_vm1, %v1749_v7  ;;  %1708 = vmatmul.mubr.msk.bf16.gmra.mxu1 %vm258_vm1, %v1765_v14 }
  0x17   :  { %1679 = vmatprep.mubr.msk.bf16.mxu0 %vm258_vm1, %v1750_v8  ;;  %1711 = vmatprep.mubr.msk.bf16.mxu1 %vm258_vm1, %v1766_v15 }
  0x1e   :  { %1680 = vmatmul.mubr.msk.bf16.gmra.mxu0 %vm258_vm1, %v1751_v12  ;;  %1712 = vmatmul.mubr.msk.bf16.gmra.mxu1 %vm258_vm1, %v1767_v17 }
  0x1f   :  { %1683 = vmatprep.mubr.msk.bf16.mxu0 %vm258_vm1, %v1752_v13  ;;  %1715 = vmatprep.mubr.msk.bf16.mxu1 %vm258_vm1, %v1768_v19 }
  0x26   :  { %1684 = vmatmul.mubr.msk.bf16.gmra.mxu0 %vm258_vm1, %v1753_v16  ;;  %1716 = vmatmul.mubr.msk.bf16.gmra.mxu1 %vm258_vm1, %v1769_v21 }
  0x27   :  { %1687 = vmatprep.mubr.msk.bf16.mxu0 %vm258_vm1, %v1754_v18  ;;  %1719 = vmatprep.mubr.msk.bf16.mxu1 %vm258_vm1, %v1770_v23 }
  0x2e   :  { %1688 = vmatmul.mubr.msk.bf16.gmra.mxu0 %vm258_vm1, %v1755_v20  ;;  %1720 = vmatmul.mubr.msk.bf16.gmra.mxu1 %vm258_vm1, %v1771_v25 }
  0x2f   :  { %1691 = vmatprep.mubr.msk.bf16.mxu0 %vm258_vm1, %v1756_v22  ;;  %1723 = vmatprep.mubr.msk.bf16.mxu1 %vm258_vm1, %v1772_v27 }
  0x36   :  { %1692 = vmatmul.mubr.msk.bf16.gmra.mxu0 %vm258_vm1, %v1757_v24  ;;  %1724 = vmatmul.mubr.msk.bf16.gmra.mxu1 %vm258_vm1, %v1773_v29 }
  0x37   :  { %1695 = vmatprep.mubr.msk.bf16.mxu0 %vm258_vm1, %v1758_v26  ;;  %1727 = vmatprep.mubr.msk.bf16.mxu1 %vm258_vm1, %v1774_v31 }
  0x3e   :  { %1696 = vmatmul.mubr.msk.bf16.gmra.mxu0 %vm258_vm1, %v1759_v28  ;;  %1728 = vmatmul.mubr.msk.bf16.gmra.mxu1 %vm258_vm1, %v1775_v33 }
  0x3f   :  { %1699 = vmatprep.mubr.msk.bf16.mxu0 %vm258_vm1, %v1760_v30  ;;  %1731 = vmatprep.mubr.msk.bf16.mxu1 %vm258_vm1, %v1776_v34 }
  0x46   :  { %1700 = vmatmul.mubr.msk.bf16.gmra.mxu0 %vm258_vm1, %v1761_v32  ;;  %1732 = vmatmul.mubr.msk.bf16.gmra.mxu1 %vm258_vm1, %v1777_v35 }
  0xce   :  { %v1673_v36 = vpop.f32.mrf.mxu0  ;;  %v1705_v46 = vpop.f32.mrf.mxu1 }
  0xcf   :  { %v650_v39 = vmax.f32 %v1673_v36, 0.0  ;;  %v1941_v59 = vmax.f32 %v1705_v46, 0.0 }
  0xd0   :  { %v393_v37 = vpop.f32.mrf.mxu0  ;;  %v521_v52 = vpop.f32.mrf.mxu1 }
  0xd1   :  { %v648_v40 = vmax.f32 %v393_v37, 0.0  ;;  %v1104_v53 = vmul.f32 %v650_v39, %v650_v39  ;;  %v1943_v2 = vmax.f32 %v521_v52, 0.0 }
  0xd2   :  { %v1674_v38 = vpop.f32.mrf.mxu0  ;;  %v1706_v60 = vpop.f32.mrf.mxu1 }
  0xd3   :  { %v651_v41 = vmax.f32 %v1674_v38, 0.0  ;;  %v1102_v47 = vmul.f32 %v648_v40, %v648_v40  ;;  %v1945_v3 = vmax.f32 %v1706_v60, 0.0 }
  0xd4   :  { %v396_v42 = vpop.f32.mrf.mxu0  ;;  %v524_v4 = vpop.f32.mrf.mxu1 }
  0xd5   :  { %v1447_v43 = vpack.c.bf16 %v651_v41, %v650_v39  ;;  %v649_v44 = vmax.f32 %v396_v42, 0.0  ;;  %v1105_v57 = vmul.f32 %v651_v41, %v651_v41  ;;  %v1527_v11 = vpack.c.bf16 %v1945_v3, %v1941_v59 }
  0xd6   :  { %v1677_v45 = vpop.f32.mrf.mxu0  ;;  %v1949_v12 = vmax.f32 %v524_v4, 0.0  ;;  %v1709_v13 = vpop.f32.mrf.mxu1 }
  0xd7   :  { %1599 = vst [vmem:[%s2231_s2 + $0x8] sm:$0xff] %v1447_v43   ;;  %v1442_v48 = vpack.c.bf16 %v649_v44, %v648_v40  ;;  %v1032_v49 = vadd.f32 %v649_v44, %v648_v40  ;;  %v1103_v50 = vmul.f32 %v649_v44, %v649_v44  ;;  %v654_v62 = vmax.f32 %v1677_v45, 0.0  ;;  %1615 = vst [vmem:[%s2231_s2 + $0x88] sm:$0xff] %v1527_v11  }
  0xd8   :  { %v409_v51 = vpop.f32.mrf.mxu0  ;;  %v1522_v19 = vpack.c.bf16 %v1949_v12, %v1943_v2  ;;  %v537_v20 = vpop.f32.mrf.mxu1  ;;  %v1959_v21 = vmax.f32 %v1709_v13, 0.0 }
  0xd9   :  { %1443 = vst [vmem:[%s2231_s2] sm:$0xff] %v1442_v48   ;;  %v1033_v54 = vadd.f32 %v1032_v49, %v650_v39  ;;  %v1166_v55 = vadd.f32 %v1103_v50, %v1102_v47  ;;  %v652_v56 = vmax.f32 %v409_v51, 0.0  ;;  %v1108_v22 = vmul.f32 %v654_v62, %v654_v62 }
  0xda   :  { %v1678_v58 = vpop.f32.mrf.mxu0  ;;  %1614 = vst [vmem:[%s2231_s2 + $0x80] sm:$0xff] %v1522_v19   ;;  %v1710_v27 = vpop.f32.mrf.mxu1  ;;  %v1969_v35 = vmax.f32 %v537_v20, 0.0 }
  0xdb   :  { %v1167_v61 = vadd.f32 %v1166_v55, %v1104_v53  ;;  %v1034_v63 = vadd.f32 %v1033_v54, %v651_v41  ;;  %v655_v0 = vmax.f32 %v1678_v58, 0.0  ;;  %v1106_v6 = vmul.f32 %v652_v56, %v652_v56 }
  0xdc   :  { %v412_v1 = vpop.f32.mrf.mxu0  ;;  %v1967_v30 = vmax.f32 %v1710_v27, 0.0  ;;  %v540_v36 = vpop.f32.mrf.mxu1 }
  0xdd   :  { %v1035_v5 = vadd.f32 %v1034_v63, %v652_v56  ;;  %v1168_v7 = vadd.f32 %v1167_v61, %v1105_v57  ;;  %v1457_v8 = vpack.c.bf16 %v655_v0, %v654_v62  ;;  %v653_v9 = vmax.f32 %v412_v1, 0.0 }
  0xde   :  { %v1681_v10 = vpop.f32.mrf.mxu0  ;;  %v1109_v31 = vmul.f32 %v655_v0, %v655_v0  ;;  %v1537_v39 = vpack.c.bf16 %v1967_v30, %v1959_v21  ;;  %v1973_v44 = vmax.f32 %v540_v36, 0.0  ;;  %v1713_v45 = vpop.f32.mrf.mxu1 }
  0xdf   :  { %v1169_v14 = vadd.f32 %v1168_v7, %v1106_v6  ;;  %1601 = vst [vmem:[%s2231_s2 + $0x18] sm:$0xff] %v1457_v8   ;;  %v1452_v15 = vpack.c.bf16 %v653_v9, %v652_v56  ;;  %v1036_v16 = vadd.f32 %v1035_v5, %v653_v9  ;;  %v1107_v17 = vmul.f32 %v653_v9, %v653_v9 }
  0xe0   :  { %v425_v18 = vpop.f32.mrf.mxu0  ;;  %v658_v28 = vmax.f32 %v1681_v10, 0.0  ;;  %1617 = vst [vmem:[%s2231_s2 + $0x98] sm:$0xff] %v1537_v39   ;;  %v1532_v51 = vpack.c.bf16 %v1973_v44, %v1969_v35  ;;  %v553_v52 = vpop.f32.mrf.mxu1  ;;  %v1986_v53 = vmax.f32 %v1713_v45, 0.0 }
  0xe1   :  { %1600 = vst [vmem:[%s2231_s2 + $0x10] sm:$0xff] %v1452_v15   ;;  %v1037_v23 = vadd.f32 %v1036_v16, %v654_v62  ;;  %v1170_v24 = vadd.f32 %v1169_v14, %v1107_v17  ;;  %v656_v25 = vmax.f32 %v425_v18, 0.0  ;;  %v1993_v6 = vmax.f32 %v553_v52, 0.0 }
  0xe2   :  { %v1682_v26 = vpop.f32.mrf.mxu0  ;;  %v1112_v54 = vmul.f32 %v658_v28, %v658_v28  ;;  %1616 = vst [vmem:[%s2231_s2 + $0x90] sm:$0xff] %v1532_v51   ;;  %v1714_v60 = vpop.f32.mrf.mxu1 }
  0xe3   :  { %v659_v29 = vmax.f32 %v1682_v26, 0.0  ;;  %v1171_v32 = vadd.f32 %v1170_v24, %v1108_v22  ;;  %v1038_v33 = vadd.f32 %v1037_v23, %v655_v0  ;;  %v1110_v41 = vmul.f32 %v656_v25, %v656_v25 }
  0xe4   :  { %v428_v34 = vpop.f32.mrf.mxu0  ;;  %v1991_v63 = vmax.f32 %v1714_v60, 0.0  ;;  %v556_v7 = vpop.f32.mrf.mxu1 }
  0xe5   :  { %v1467_v37 = vpack.c.bf16 %v659_v29, %v658_v28  ;;  %v657_v38 = vmax.f32 %v428_v34, 0.0  ;;  %v1039_v40 = vadd.f32 %v1038_v33, %v656_v25  ;;  %v1172_v42 = vadd.f32 %v1171_v32, %v1109_v31 }
  0xe6   :  { %v1685_v43 = vpop.f32.mrf.mxu0  ;;  %v1113_v0 = vmul.f32 %v659_v29, %v659_v29  ;;  %v1547_v10 = vpack.c.bf16 %v1991_v63, %v1986_v53  ;;  %v1997_v16 = vmax.f32 %v556_v7, 0.0  ;;  %v1717_v17 = vpop.f32.mrf.mxu1 }
  0xe7   :  { %1603 = vst [vmem:[%s2231_s2 + $0x28] sm:$0xff] %v1467_v37   ;;  %v1462_v46 = vpack.c.bf16 %v657_v38, %v656_v25  ;;  %v1111_v47 = vmul.f32 %v657_v38, %v657_v38  ;;  %v1173_v48 = vadd.f32 %v1172_v42, %v1110_v41  ;;  %v1040_v49 = vadd.f32 %v1039_v40, %v657_v38 }
  0xe8   :  { %v441_v50 = vpop.f32.mrf.mxu0  ;;  %v662_v61 = vmax.f32 %v1685_v43, 0.0  ;;  %1619 = vst [vmem:[%s2231_s2 + $0xa8] sm:$0xff] %v1547_v10   ;;  %v1542_v24 = vpack.c.bf16 %v1997_v16, %v1993_v6  ;;  %v569_v25 = vpop.f32.mrf.mxu1  ;;  %v2010_v26 = vmax.f32 %v1717_v17, 0.0 }
  0xe9   :  { %1602 = vst [vmem:[%s2231_s2 + $0x20] sm:$0xff] %v1462_v46   ;;  %v1041_v55 = vadd.f32 %v1040_v49, %v658_v28  ;;  %v1174_v56 = vadd.f32 %v1173_v48, %v1111_v47  ;;  %v660_v57 = vmax.f32 %v441_v50, 0.0  ;;  %v2017_v42 = vmax.f32 %v569_v25, 0.0 }
  0xea   :  { %v1686_v58 = vpop.f32.mrf.mxu0  ;;  %v1116_v27 = vmul.f32 %v662_v61, %v662_v61  ;;  %1618 = vst [vmem:[%s2231_s2 + $0xa0] sm:$0xff] %v1542_v24   ;;  %v1718_v33 = vpop.f32.mrf.mxu1 }
  0xeb   :  { %v663_v62 = vmax.f32 %v1686_v58, 0.0  ;;  %v1175_v1 = vadd.f32 %v1174_v56, %v1112_v54  ;;  %v1042_v4 = vadd.f32 %v1041_v55, %v659_v29  ;;  %v1114_v13 = vmul.f32 %v660_v57, %v660_v57 }
  0xec   :  { %v444_v5 = vpop.f32.mrf.mxu0  ;;  %v2015_v37 = vmax.f32 %v1718_v33, 0.0  ;;  %v572_v43 = vpop.f32.mrf.mxu1 }
  0xed   :  { %v1477_v8 = vpack.c.bf16 %v663_v62, %v662_v61  ;;  %v661_v9 = vmax.f32 %v444_v5, 0.0  ;;  %v1043_v11 = vadd.f32 %v1042_v4, %v660_v57  ;;  %v1176_v14 = vadd.f32 %v1175_v1, %v1113_v0 }
  0xee   :  { %v1689_v15 = vpop.f32.mrf.mxu0  ;;  %v1117_v38 = vmul.f32 %v663_v62, %v663_v62  ;;  %v1557_v47 = vpack.c.bf16 %v2015_v37, %v2010_v26  ;;  %v2021_v52 = vmax.f32 %v572_v43, 0.0  ;;  %v1721_v54 = vpop.f32.mrf.mxu1 }
  0xef   :  { %1605 = vst [vmem:[%s2231_s2 + $0x38] sm:$0xff] %v1477_v8   ;;  %v1472_v18 = vpack.c.bf16 %v661_v9, %v660_v57  ;;  %v1115_v19 = vmul.f32 %v661_v9, %v661_v9  ;;  %v1177_v20 = vadd.f32 %v1176_v14, %v1114_v13  ;;  %v1044_v22 = vadd.f32 %v1043_v11, %v661_v9 }
  0xf0   :  { %v457_v23 = vpop.f32.mrf.mxu0  ;;  %v666_v34 = vmax.f32 %v1689_v15, 0.0  ;;  %1621 = vst [vmem:[%s2231_s2 + $0xb8] sm:$0xff] %v1557_v47   ;;  %v2034_v0 = vmax.f32 %v1721_v54, 0.0 }
  0xf1   :  { %1604 = vst [vmem:[%s2231_s2 + $0x30] sm:$0xff] %v1472_v18   ;;  %v1045_v28 = vadd.f32 %v1044_v22, %v662_v61  ;;  %v1178_v29 = vadd.f32 %v1177_v20, %v1115_v19  ;;  %v664_v31 = vmax.f32 %v457_v23, 0.0  ;;  %v1552_v61 = vpack.c.bf16 %v2021_v52, %v2017_v42 }
  0xf2   :  { %v1690_v32 = vpop.f32.mrf.mxu0  ;;  %v1120_v1 = vmul.f32 %v666_v34, %v666_v34 }
  0xf3   :  { %v667_v36 = vmax.f32 %v1690_v32, 0.0  ;;  %v1179_v39 = vadd.f32 %v1178_v29, %v1116_v27  ;;  %v1046_v40 = vadd.f32 %v1045_v28, %v663_v62  ;;  %v1118_v49 = vmul.f32 %v664_v31, %v664_v31  ;;  %v585_v62 = vpop.f32.mrf.mxu1  ;;  %1620 = vst [vmem:[%s2231_s2 + $0xb0] sm:$0xff] %v1552_v61  }
  0xf4   :  { %v460_v41 = vpop.f32.mrf.mxu0  ;;  %v2041_v19 = vmax.f32 %v585_v62, 0.0 }
  0xf5   :  { %v1487_v45 = vpack.c.bf16 %v667_v36, %v666_v34  ;;  %v665_v46 = vmax.f32 %v460_v41, 0.0  ;;  %v1047_v48 = vadd.f32 %v1046_v40, %v664_v31  ;;  %v1180_v50 = vadd.f32 %v1179_v39, %v1117_v38  ;;  %v1722_v9 = vpop.f32.mrf.mxu1 }
  0xf6   :  { %v1693_v51 = vpop.f32.mrf.mxu0  ;;  %v2039_v13 = vmax.f32 %v1722_v9, 0.0  ;;  %v1121_v14 = vmul.f32 %v667_v36, %v667_v36 }
  0xf7   :  { %1607 = vst [vmem:[%s2231_s2 + $0x48] sm:$0xff] %v1487_v45   ;;  %v1482_v55 = vpack.c.bf16 %v665_v46, %v664_v31  ;;  %v1119_v56 = vmul.f32 %v665_v46, %v665_v46  ;;  %v1181_v57 = vadd.f32 %v1180_v50, %v1118_v49  ;;  %v1048_v58 = vadd.f32 %v1047_v48, %v665_v46  ;;  %v588_v20 = vpop.f32.mrf.mxu1 }
  0xf8   :  { %v473_v60 = vpop.f32.mrf.mxu0  ;;  %v670_v10 = vmax.f32 %v1693_v51, 0.0  ;;  %v1567_v24 = vpack.c.bf16 %v2039_v13, %v2034_v0  ;;  %v2045_v31 = vmax.f32 %v588_v20, 0.0 }
  0xf9   :  { %1606 = vst [vmem:[%s2231_s2 + $0x40] sm:$0xff] %v1482_v55   ;;  %v1049_v4 = vadd.f32 %v1048_v58, %v666_v34  ;;  %v1182_v5 = vadd.f32 %v1181_v57, %v1119_v56  ;;  %v668_v7 = vmax.f32 %v473_v60, 0.0  ;;  %v1725_v32 = vpop.f32.mrf.mxu1 }
  0xfa   :  { %v1694_v8 = vpop.f32.mrf.mxu0  ;;  %1623 = vst [vmem:[%s2231_s2 + $0xc8] sm:$0xff] %v1567_v24   ;;  %v1562_v40 = vpack.c.bf16 %v2045_v31, %v2041_v19  ;;  %v2058_v43 = vmax.f32 %v1725_v32, 0.0  ;;  %v1124_v45 = vmul.f32 %v670_v10, %v670_v10 }
  0xfb   :  { %v671_v11 = vmax.f32 %v1694_v8, 0.0  ;;  %v1183_v15 = vadd.f32 %v1182_v5, %v1120_v1  ;;  %v1050_v17 = vadd.f32 %v1049_v4, %v667_v36  ;;  %v1122_v27 = vmul.f32 %v668_v7, %v668_v7  ;;  %v601_v41 = vpop.f32.mrf.mxu1 }
  0xfc   :  { %v476_v18 = vpop.f32.mrf.mxu0  ;;  %1622 = vst [vmem:[%s2231_s2 + $0xc0] sm:$0xff] %v1562_v40   ;;  %v2065_v61 = vmax.f32 %v601_v41, 0.0 }
  0xfd   :  { %v1497_v22 = vpack.c.bf16 %v671_v11, %v670_v10  ;;  %v669_v23 = vmax.f32 %v476_v18, 0.0  ;;  %v1051_v25 = vadd.f32 %v1050_v17, %v668_v7  ;;  %v1184_v28 = vadd.f32 %v1183_v15, %v1121_v14  ;;  %v1726_v50 = vpop.f32.mrf.mxu1 }
  0xfe   :  { %v1697_v29 = vpop.f32.mrf.mxu0  ;;  %v2063_v55 = vmax.f32 %v1726_v50, 0.0  ;;  %v1125_v56 = vmul.f32 %v671_v11, %v671_v11 }
  0xff   :  { %1609 = vst [vmem:[%s2231_s2 + $0x58] sm:$0xff] %v1497_v22   ;;  %v1492_v33 = vpack.c.bf16 %v669_v23, %v668_v7  ;;  %v1123_v34 = vmul.f32 %v669_v23, %v669_v23  ;;  %v1185_v36 = vadd.f32 %v1184_v28, %v1122_v27  ;;  %v1052_v38 = vadd.f32 %v1051_v25, %v669_v23  ;;  %v604_v62 = vpop.f32.mrf.mxu1 }
 0x100   :  { %v489_v39 = vpop.f32.mrf.mxu0  ;;  %v674_v51 = vmax.f32 %v1697_v29, 0.0  ;;  %v1577_v5 = vpack.c.bf16 %v2063_v55, %v2058_v43  ;;  %v2069_v14 = vmax.f32 %v604_v62, 0.0 }
 0x101   :  { %1608 = vst [vmem:[%s2231_s2 + $0x50] sm:$0xff] %v1492_v33   ;;  %v1053_v46 = vadd.f32 %v1052_v38, %v670_v10  ;;  %v1186_v47 = vadd.f32 %v1185_v36, %v1123_v34  ;;  %v672_v48 = vmax.f32 %v489_v39, 0.0  ;;  %v1729_v15 = vpop.f32.mrf.mxu1 }
 0x102   :  { %v1698_v49 = vpop.f32.mrf.mxu0  ;;  %1625 = vst [vmem:[%s2231_s2 + $0xd8] sm:$0xff] %v1577_v5   ;;  %v1572_v23 = vpack.c.bf16 %v2069_v14, %v2065_v61  ;;  %v2082_v25 = vmax.f32 %v1729_v15, 0.0  ;;  %v1128_v27 = vmul.f32 %v674_v51, %v674_v51 }
 0x103   :  { %v675_v54 = vmax.f32 %v1698_v49, 0.0  ;;  %v1187_v57 = vadd.f32 %v1186_v47, %v1124_v45  ;;  %v1054_v58 = vadd.f32 %v1053_v46, %v671_v11  ;;  %v1126_v8 = vmul.f32 %v672_v48, %v672_v48  ;;  %v617_v24 = vpop.f32.mrf.mxu1 }
 0x104   :  { %v492_v60 = vpop.f32.mrf.mxu0  ;;  %1624 = vst [vmem:[%s2231_s2 + $0xd0] sm:$0xff] %v1572_v23   ;;  %v2089_v47 = vmax.f32 %v617_v24, 0.0 }
 0x105   :  { %v1507_v1 = vpack.c.bf16 %v675_v54, %v674_v51  ;;  %v673_v4 = vmax.f32 %v492_v60, 0.0  ;;  %v1055_v7 = vadd.f32 %v1054_v58, %v672_v48  ;;  %v1188_v9 = vadd.f32 %v1187_v57, %v1125_v56  ;;  %v1730_v34 = vpop.f32.mrf.mxu1 }
 0x106   :  { %v1701_v10 = vpop.f32.mrf.mxu0  ;;  %v2087_v39 = vmax.f32 %v1730_v34, 0.0  ;;  %v1129_v40 = vmul.f32 %v675_v54, %v675_v54 }
 0x107   :  { %1611 = vst [vmem:[%s2231_s2 + $0x68] sm:$0xff] %v1507_v1   ;;  %v1502_v11 = vpack.c.bf16 %v673_v4, %v672_v48  ;;  %v1127_v17 = vmul.f32 %v673_v4, %v673_v4  ;;  %v1189_v18 = vadd.f32 %v1188_v9, %v1126_v8  ;;  %v1056_v20 = vadd.f32 %v1055_v7, %v673_v4  ;;  %v620_v48 = vpop.f32.mrf.mxu1 }
 0x108   :  { %v505_v22 = vpop.f32.mrf.mxu0  ;;  %v678_v36 = vmax.f32 %v1701_v10, 0.0  ;;  %v2093_v60 = vmax.f32 %v620_v48, 0.0  ;;  %v1137_v48 = vmul.f32 %v1945_v3, %v1945_v3 }
 0x109   :  { %1610 = vst [vmem:[%s2231_s2 + $0x60] sm:$0xff] %v1502_v11   ;;  %v1057_v28 = vadd.f32 %v1056_v20, %v674_v51  ;;  %v1190_v29 = vadd.f32 %v1189_v18, %v1127_v17  ;;  %v676_v32 = vmax.f32 %v505_v22, 0.0  ;;  %v1587_v51 = vpack.c.bf16 %v2087_v39, %v2082_v25  ;;  %v1733_v62 = vpop.f32.mrf.mxu1 }
 0x10a   :  { %v1702_v33 = vpop.f32.mrf.mxu0  ;;  %v1582_v7 = vpack.c.bf16 %v2093_v60, %v2089_v47  ;;  %v2106_v9 = vmax.f32 %v1733_v62, 0.0  ;;  %v1132_v10 = vmul.f32 %v678_v36, %v678_v36  ;;  %v1139_v62 = vmul.f32 %v1973_v44, %v1973_v44 }
 0x10b   :  { %v679_v38 = vmax.f32 %v1702_v33, 0.0  ;;  %v1191_v41 = vadd.f32 %v1190_v29, %v1128_v27  ;;  %v1058_v45 = vadd.f32 %v1057_v28, %v675_v54  ;;  %v1130_v57 = vmul.f32 %v676_v32, %v676_v32  ;;  %1627 = vst [vmem:[%s2231_s2 + $0xe8] sm:$0xff] %v1587_v51   ;;  %v633_v8 = vpop.f32.mrf.mxu1 }
 0x10c   :  { %v508_v46 = vpop.f32.mrf.mxu0  ;;  %1626 = vst [vmem:[%s2231_s2 + $0xe0] sm:$0xff] %v1582_v7   ;;  %v2111_v18 = vmax.f32 %v633_v8, 0.0  ;;  %v1142_v7 = vmul.f32 %v1993_v6, %v1993_v6 }
 0x10d   :  { %v1517_v49 = vpack.c.bf16 %v679_v38, %v678_v36  ;;  %v677_v50 = vmax.f32 %v508_v46, 0.0  ;;  %v1059_v56 = vadd.f32 %v1058_v45, %v676_v32  ;;  %v1192_v58 = vadd.f32 %v1191_v41, %v1129_v40  ;;  %v1734_v17 = vpop.f32.mrf.mxu1 }
 0x10e   :  { %v2113_v20 = vmax.f32 %v1734_v17, 0.0  ;;  %v1133_v22 = vmul.f32 %v679_v38, %v679_v38  ;;  %v1135_v40 = vmul.f32 %v1949_v12, %v1949_v12 }
 0x10f   :  { %1613 = vst [vmem:[%s2231_s2 + $0x78] sm:$0xff] %v1517_v49   ;;  %v1512_v54 = vpack.c.bf16 %v677_v50, %v676_v32  ;;  %v1131_v1 = vmul.f32 %v677_v50, %v677_v50  ;;  %v1193_v4 = vadd.f32 %v1192_v58, %v1130_v57  ;;  %v1060_v5 = vadd.f32 %v1059_v56, %v677_v50  ;;  %v636_v27 = vpop.f32.mrf.mxu1 }
 0x110   :  { %v1597_v28 = vpack.c.bf16 %v2113_v20, %v2106_v9  ;;  %v2117_v29 = vmax.f32 %v636_v27, 0.0  ;;  %v1134_v32 = vmul.f32 %v1943_v2, %v1943_v2 }
 0x111   :  { %1612 = vst [vmem:[%s2231_s2 + $0x70] sm:$0xff] %v1512_v54   ;;  %v1061_v15 = vadd.f32 %v1060_v5, %v678_v36  ;;  %v1194_v11 = vadd.f32 %v1193_v4, %v1131_v1 }
 0x112   :  { %1629 = vst [vmem:[%s2231_s2 + $0xf8] sm:$0xff] %v1597_v28   ;;  %v1592_v36 = vpack.c.bf16 %v2117_v29, %v2111_v18 }
 0x113   :  { %v1062_v23 = vadd.f32 %v1061_v15, %v679_v38  ;;  %v1195_v24 = vadd.f32 %v1194_v11, %v1132_v10  ;;  %v1143_v15 = vmul.f32 %v1997_v16, %v1997_v16 }
 0x114   :  { %1628 = vst [vmem:[%s2231_s2 + $0xf0] sm:$0xff] %v1592_v36  }
 0x115   :  { %v1196_v33 = vadd.f32 %v1195_v24, %v1133_v22  ;;  %v1063_v34 = vadd.f32 %v1062_v23, %v1943_v2  ;;  %v1136_v2 = vmul.f32 %v1941_v59, %v1941_v59  ;;  %v1146_v24 = vmul.f32 %v2017_v42, %v2017_v42 }
 0x117   :  { %v1064_v38 = vadd.f32 %v1063_v34, %v1949_v12  ;;  %v1197_v41 = vadd.f32 %v1196_v33, %v1134_v32  ;;  %v1138_v12 = vmul.f32 %v1969_v35, %v1969_v35  ;;  %v1147_v32 = vmul.f32 %v2021_v52, %v2021_v52 }
 0x119   :  { %v1065_v45 = vadd.f32 %v1064_v38, %v1941_v59  ;;  %v1198_v46 = vadd.f32 %v1197_v41, %v1135_v40  ;;  %v1140_v59 = vmul.f32 %v1959_v21, %v1959_v21  ;;  %v1150_v40 = vmul.f32 %v2041_v19, %v2041_v19 }
 0x11b   :  { %v1199_v49 = vadd.f32 %v1198_v46, %v1136_v2  ;;  %v1066_v50 = vadd.f32 %v1065_v45, %v1945_v3  ;;  %v1141_v3 = vmul.f32 %v1967_v30, %v1967_v30  ;;  %v1151_v45 = vmul.f32 %v2045_v31, %v2045_v31 }
 0x11d   :  { %v1067_v51 = vadd.f32 %v1066_v50, %v1969_v35  ;;  %v1200_v56 = vadd.f32 %v1199_v49, %v1137_v48 }
 0x11f   :  { %v1201_v57 = vadd.f32 %v1200_v56, %v1138_v12  ;;  %v1068_v58 = vadd.f32 %v1067_v51, %v1973_v44  ;;  %v1154_v51 = vmul.f32 %v2065_v61, %v2065_v61 }
 0x121   :  { %v1069_v54 = vadd.f32 %v1068_v58, %v1959_v21  ;;  %v1202_v1 = vadd.f32 %v1201_v57, %v1139_v62  ;;  %v1144_v21 = vmul.f32 %v1986_v53, %v1986_v53  ;;  %v1155_v57 = vmul.f32 %v2069_v14, %v2069_v14 }
 0x123   :  { %v1203_v4 = vadd.f32 %v1202_v1, %v1140_v59  ;;  %v1070_v5 = vadd.f32 %v1069_v54, %v1967_v30  ;;  %v1145_v30 = vmul.f32 %v1991_v63, %v1991_v63  ;;  %v1158_v1 = vmul.f32 %v2089_v47, %v2089_v47 }
 0x125   :  { %v1071_v35 = vadd.f32 %v1070_v5, %v1993_v6  ;;  %v1204_v8 = vadd.f32 %v1203_v4, %v1141_v3  ;;  %v1159_v5 = vmul.f32 %v2093_v60, %v2093_v60 }
 0x127   :  { %v1205_v10 = vadd.f32 %v1204_v8, %v1142_v7  ;;  %v1072_v44 = vadd.f32 %v1071_v35, %v1997_v16 }
 0x129   :  { %v1073_v11 = vadd.f32 %v1072_v44, %v1986_v53  ;;  %v1206_v17 = vadd.f32 %v1205_v10, %v1143_v15  ;;  %v1148_v53 = vmul.f32 %v2010_v26, %v2010_v26  ;;  %v1162_v44 = vmul.f32 %v2111_v18, %v2111_v18 }
 0x12b   :  { %v1207_v22 = vadd.f32 %v1206_v17, %v1144_v21  ;;  %v1074_v23 = vadd.f32 %v1073_v11, %v1991_v63  ;;  %v1149_v63 = vmul.f32 %v2015_v37, %v2015_v37  ;;  %v1163_v11 = vmul.f32 %v2117_v29, %v2117_v29 }
 0x12d   :  { %v1075_v6 = vadd.f32 %v1074_v23, %v2017_v42  ;;  %v1208_v27 = vadd.f32 %v1207_v22, %v1145_v30 }
 0x12f   :  { %v1209_v28 = vadd.f32 %v1208_v27, %v1146_v24  ;;  %v1076_v16 = vadd.f32 %v1075_v6, %v2021_v52 }
 0x131   :  { %v1077_v33 = vadd.f32 %v1076_v16, %v2010_v26  ;;  %v1210_v34 = vadd.f32 %v1209_v28, %v1147_v32  ;;  %v1152_v26 = vmul.f32 %v2034_v0, %v2034_v0 }
 0x133   :  { %v1211_v36 = vadd.f32 %v1210_v34, %v1148_v53  ;;  %v1078_v38 = vadd.f32 %v1077_v33, %v2015_v37  ;;  %v1153_v37 = vmul.f32 %v2039_v13, %v2039_v13 }
 0x135   :  { %v1079_v42 = vadd.f32 %v1078_v38, %v2041_v19  ;;  %v1212_v41 = vadd.f32 %v1211_v36, %v1149_v63 }
 0x137   :  { %v1213_v2 = vadd.f32 %v1212_v41, %v1150_v40  ;;  %v1080_v52 = vadd.f32 %v1079_v42, %v2045_v31 }
 0x139   :  { %v1081_v46 = vadd.f32 %v1080_v52, %v2034_v0  ;;  %v1214_v48 = vadd.f32 %v1213_v2, %v1151_v45  ;;  %v1156_v0 = vmul.f32 %v2058_v43, %v2058_v43 }
 0x13b   :  { %v1215_v49 = vadd.f32 %v1214_v48, %v1152_v26  ;;  %v1082_v50 = vadd.f32 %v1081_v46, %v2039_v13  ;;  %v1157_v13 = vmul.f32 %v2063_v55, %v2063_v55 }
 0x13d   :  { %v1083_v19 = vadd.f32 %v1082_v50, %v2065_v61  ;;  %v1216_v12 = vadd.f32 %v1215_v49, %v1153_v37 }
 0x13f   :  { %v1217_v56 = vadd.f32 %v1216_v12, %v1154_v51  ;;  %v1084_v31 = vadd.f32 %v1083_v19, %v2069_v14 }
 0x141   :  { %v1085_v58 = vadd.f32 %v1084_v31, %v2058_v43  ;;  %v1218_v62 = vadd.f32 %v1217_v56, %v1155_v57  ;;  %v1160_v43 = vmul.f32 %v2082_v25, %v2082_v25 }
 0x143   :  { %v1219_v59 = vadd.f32 %v1218_v62, %v1156_v0  ;;  %v1086_v54 = vadd.f32 %v1085_v58, %v2063_v55  ;;  %v1161_v55 = vmul.f32 %v2087_v39, %v2087_v39 }
 0x145   :  { %v1087_v61 = vadd.f32 %v1086_v54, %v2089_v47  ;;  %v1220_v3 = vadd.f32 %v1219_v59, %v1157_v13 }
 0x147   :  { %v1221_v4 = vadd.f32 %v1220_v3, %v1158_v1  ;;  %v1088_v14 = vadd.f32 %v1087_v61, %v2093_v60 }
 0x149   :  { %v1089_v35 = vadd.f32 %v1088_v14, %v2082_v25  ;;  %v1222_v7 = vadd.f32 %v1221_v4, %v1159_v5  ;;  %v1164_v25 = vmul.f32 %v2106_v9, %v2106_v9 }
 0x14b   :  { %v1223_v8 = vadd.f32 %v1222_v7, %v1160_v43  ;;  %v1090_v10 = vadd.f32 %v1089_v35, %v2087_v39  ;;  %v1165_v39 = vmul.f32 %v2113_v20, %v2113_v20 }
 0x14d   :  { %v1091_v47 = vadd.f32 %v1090_v10, %v2111_v18  ;;  %v1224_v15 = vadd.f32 %v1223_v8, %v1161_v55 }
 0x14f   :  { %v1225_v21 = vadd.f32 %v1224_v15, %v1162_v44  ;;  %v1092_v60 = vadd.f32 %v1091_v47, %v2117_v29 }
 0x151   :  { %v1093_v17 = vadd.f32 %v1092_v60, %v2106_v9  ;;  %v1226_v30 = vadd.f32 %v1225_v21, %v1163_v11 }
 0x153   :  { %v1094_v22 = vadd.f32 %v1093_v17, %v2113_v20  ;;  %v1227_v23 = vadd.f32 %v1226_v30, %v1164_v25 }
 0x155   :  { %v1095_v18 = vrot.slane %v1094_v22, 4  ;;  %v1228_v6 = vadd.f32 %v1227_v23, %v1165_v39 }
 0x157   :  { %v1096_v24 = vadd.f32 %v1095_v18, %v1094_v22  ;;  %v1229_v27 = vrot.slane %v1228_v6, 4 }
 0x159   :  { %v1097_v28 = vrot.slane %v1096_v24, 2  ;;  %v1230_v16 = vadd.f32 %v1229_v27, %v1228_v6 }
 0x15b   :  { %v1098_v32 = vadd.f32 %v1097_v28, %v1096_v24  ;;  %v1231_v29 = vrot.slane %v1230_v16, 2 }
 0x15d   :  { %v1099_v53 = vrot.slane %v1098_v32, 1  ;;  %v1232_v33 = vadd.f32 %v1231_v29, %v1230_v16 }
 0x15f   :  { %v1100_v34 = vadd.f32 %v1099_v53, %v1098_v32  ;;  %v1233_v63 = vrot.slane %v1232_v33, 1 }
 0x161   :  { %1101 = vst [vmem:[%s2232_s3] sm:$0x1] %v1100_v34  ;;  %v1234_v9 = vadd.f32 %v1233_v63, %v1232_v33 }
 0x163   :  { %1235 = vst [vmem:[%s2232_s3 + $0x1] sm:$0x1] %v1234_v9 }

// kernel: residual_block_forward.7
= control target key start
LH: loop header
LB: loop body
LE: loop exit
PB: predicated region body
PF: predicated region fallthrough
CT: control target
= control target key end

     0   :  { %v288_v0 = vlaneseq  ;;  %vm427_vm0 = vcmask 64512   ;;  %s1334_s0 = inlined_call_operand.vmem [shape: bf16[512,128], index: 0, kind: input, shape index: {}]   ;;  %s1335_s1 = inlined_call_operand.vmem [shape: f32[2,128], index: 1, kind: input, shape index: {}]   ;;  %s1336_s2 = inlined_call_operand.vmem [shape: f32[1,128], index: 2, kind: input, shape index: {}]   ;;  %s1337_s3 = inlined_call_operand.vmem [shape: f32[1,128], index: 3, kind: input, shape index: {}]   ;;  %s1338_s4 = inlined_call_operand.vmem [shape: f32[512,8], index: 4, kind: output, shape index: {}]  }
   0x1   :  { %v688_v1 = vld [vmem:[%s1335_s1] ss:$0 sm:$0xff]  ;;  %v18_v2 = vld [vmem:[%s1335_s1 + $0x1] sm:$0x1]  ;;  %v627_v8 = vld [vmem:[%s1334_s0 + $0x8] sm:$0xff]  }
   0x2   :  { %v500_v3 = vld [vmem:[%s1334_s0] sm:$0xff]   ;;  %v286_v5 = vadd.f32 1e-05, %v18_v2  ;;  %v696_v6 = vshrl.u32 %v288_v0, 7  ;;  %v505_v10 = vunpack.c.l.bf16 %v627_v8  ;;  %v506_v11 = vunpack.c.h.bf16 %v627_v8  ;;  %v628_v12 = vld [vmem:[%s1334_s0 + $0x10] sm:$0xff]   ;;  %v629_v13 = vld [vmem:[%s1334_s0 + $0x18] sm:$0xff]  }
   0x3   :  { %v501_v4 = vunpack.c.l.bf16 %v500_v3  ;;  %v502_v7 = vunpack.c.h.bf16 %v500_v3  ;;  %v704_v9 = vld [vmem:[%s1336_s2] ss:$0 sm:$0xff]  ;;  %v509_v19 = vunpack.c.l.bf16 %v628_v12  ;;  %v510_v20 = vunpack.c.h.bf16 %v628_v12  ;;  %v631_v26 = vld [vmem:[%s1334_s0 + $0x28] sm:$0xff]   ;;  %v632_v35 = vld [vmem:[%s1334_s0 + $0x30] sm:$0xff]  }
   0x4   :  { %658 = vrsqrt.f32 %v286_v5  ;;  %v290_v15 = vsub.s32 0, %v696_v6  ;;  %v154_v17 = vsub.f32 %v505_v10, %v688_v1  ;;  %v155_v18 = vsub.f32 %v506_v11, %v688_v1  ;;  %v630_v21 = vld [vmem:[%s1334_s0 + $0x20] sm:$0xff]   ;;  %v633_v40 = vld [vmem:[%s1334_s0 + $0x38] sm:$0xff]   ;;  %v635_v54 = vld [vmem:[%s1334_s0 + $0x48] sm:$0xff]  }
   0x5   :  { %v152_v14 = vsub.f32 %v501_v4, %v688_v1  ;;  %v153_v16 = vsub.f32 %v502_v7, %v688_v1  ;;  %v513_v24 = vunpack.c.l.bf16 %v629_v13  ;;  %v514_v25 = vunpack.c.h.bf16 %v629_v13  ;;  %v634_v49 = vld [vmem:[%s1334_s0 + $0x40] sm:$0xff]   ;;  %v636_v63 = vld [vmem:[%s1334_s0 + $0x50] sm:$0xff]   ;;  %v775_v5 = vld [vmem:[%s1334_s0 + $0x58] sm:$0xff]  }
   0x6   :  { %v730_v27 = vmul.f32 %v704_v9, %v154_v17  ;;  %v733_v28 = vmul.f32 %v704_v9, %v155_v18  ;;  %v156_v29 = vsub.f32 %v509_v19, %v688_v1  ;;  %v157_v30 = vsub.f32 %v510_v20, %v688_v1 }
   0x7   :  { %v721_v22 = vmul.f32 %v704_v9, %v152_v14  ;;  %v724_v23 = vmul.f32 %v704_v9, %v153_v16  ;;  %v158_v31 = vsub.f32 %v513_v24, %v688_v1  ;;  %v159_v32 = vsub.f32 %v514_v25, %v688_v1  ;;  %v793_v24 = vld [vmem:[%s1337_s3] ss:$0 sm:$0xff] }
   0x8   :  { %v517_v33 = vunpack.c.l.bf16 %v630_v21  ;;  %v518_v34 = vunpack.c.h.bf16 %v630_v21  ;;  %v226_v36 = vmul.f32 %v704_v9, %v156_v29  ;;  %v227_v37 = vmul.f32 %v704_v9, %v157_v30 }
   0x9   :  { %v521_v38 = vunpack.c.l.bf16 %v631_v26  ;;  %v522_v39 = vunpack.c.h.bf16 %v631_v26  ;;  %v228_v41 = vmul.f32 %v704_v9, %v158_v31  ;;  %v229_v42 = vmul.f32 %v704_v9, %v159_v32 }
   0xa   :  { %v160_v43 = vsub.f32 %v517_v33, %v688_v1  ;;  %v161_v44 = vsub.f32 %v518_v34, %v688_v1  ;;  %v525_v47 = vunpack.c.l.bf16 %v632_v35  ;;  %v526_v48 = vunpack.c.h.bf16 %v632_v35 }
   0xb   :  { %v162_v45 = vsub.f32 %v521_v38, %v688_v1  ;;  %v163_v46 = vsub.f32 %v522_v39, %v688_v1  ;;  %v529_v52 = vunpack.c.l.bf16 %v633_v40  ;;  %v530_v53 = vunpack.c.h.bf16 %v633_v40 }
   0xc   :  { %v230_v50 = vmul.f32 %v704_v9, %v160_v43  ;;  %v231_v51 = vmul.f32 %v704_v9, %v161_v44  ;;  %v164_v57 = vsub.f32 %v525_v47, %v688_v1  ;;  %v165_v58 = vsub.f32 %v526_v48, %v688_v1 }
   0xd   :  { %v232_v55 = vmul.f32 %v704_v9, %v162_v45  ;;  %v233_v56 = vmul.f32 %v704_v9, %v163_v46  ;;  %v166_v59 = vsub.f32 %v529_v52, %v688_v1  ;;  %v167_v60 = vsub.f32 %v530_v53, %v688_v1 }
   0xe   :  { %v533_v61 = vunpack.c.l.bf16 %v634_v49  ;;  %v534_v62 = vunpack.c.h.bf16 %v634_v49  ;;  %v234_v0 = vmul.f32 %v704_v9, %v164_v57  ;;  %v235_v2 = vmul.f32 %v704_v9, %v165_v58 }
   0xf   :  { %v537_v3 = vunpack.c.l.bf16 %v635_v54  ;;  %v538_v4 = vunpack.c.h.bf16 %v635_v54  ;;  %v236_v7 = vmul.f32 %v704_v9, %v166_v59  ;;  %v237_v8 = vmul.f32 %v704_v9, %v167_v60 }
  0x10   :  { %v168_v10 = vsub.f32 %v533_v61, %v688_v1  ;;  %v169_v11 = vsub.f32 %v534_v62, %v688_v1  ;;  %v541_v16 = vunpack.c.l.bf16 %v636_v63  ;;  %v542_v17 = vunpack.c.h.bf16 %v636_v63 }
  0x11   :  { %v659_v12 = vpop.eup %658  ;;  %v170_v13 = vsub.f32 %v537_v3, %v688_v1  ;;  %v171_v14 = vsub.f32 %v538_v4, %v688_v1  ;;  %v545_v21 = vunpack.c.l.bf16 %v775_v5  ;;  %v639_v3 = vld [vmem:[%s1334_s0 + $0x68] sm:$0xff]  }
  0x12   :  { %v785_v18 = vrot.slane %v659_v12, %v290_v15  ;;  %v238_v19 = vmul.f32 %v704_v9, %v168_v10  ;;  %v239_v20 = vmul.f32 %v704_v9, %v169_v11  ;;  %v172_v29 = vsub.f32 %v541_v16, %v688_v1 }
  0x13   :  { %v240_v25 = vmul.f32 %v704_v9, %v170_v13  ;;  %v241_v26 = vmul.f32 %v704_v9, %v171_v14  ;;  %v173_v6 = vsub.f32 %v542_v17, %v688_v1  ;;  %v174_v63 = vsub.f32 %v545_v21, %v688_v1 }
  0x14   :  { %v292_v15 = vmul.f32 %v785_v18, %v721_v22  ;;  %v293_v30 = vmul.f32 %v785_v18, %v724_v23  ;;  %v294_v31 = vmul.f32 %v785_v18, %v730_v27  ;;  %v295_v32 = vmul.f32 %v785_v18, %v733_v28 }
  0x15   :  { %v296_v33 = vmul.f32 %v785_v18, %v226_v36  ;;  %v297_v34 = vmul.f32 %v785_v18, %v227_v37  ;;  %v298_v35 = vmul.f32 %v785_v18, %v228_v41  ;;  %v299_v38 = vmul.f32 %v785_v18, %v229_v42 }
  0x16   :  { %v363_v39 = vadd.f32 %v793_v24, %v292_v15  ;;  %v364_v22 = vadd.f32 %v793_v24, %v293_v30  ;;  %v365_v23 = vadd.f32 %v793_v24, %v294_v31  ;;  %v366_v40 = vadd.f32 %v793_v24, %v295_v32  ;;  %v641_v32 = vld [vmem:[%s1334_s0 + $0x78] sm:$0xff]  }
  0x17   :  { %v367_v27 = vadd.f32 %v793_v24, %v296_v33  ;;  %v368_v28 = vadd.f32 %v793_v24, %v297_v34  ;;  %v369_v36 = vadd.f32 %v793_v24, %v298_v35  ;;  %v370_v37 = vadd.f32 %v793_v24, %v299_v38 }
  0x18   :  { %428 = vst.msk [vmem:[%s1338_s4] sm:$0xff] %vm427_vm0, %v363_v39  ;;  %429 = vst.msk [vmem:[%s1338_s4 + $0x8] sm:$0xff] %vm427_vm0, %v364_v22  ;;  %v300_v41 = vmul.f32 %v785_v18, %v230_v50  ;;  %v301_v42 = vmul.f32 %v785_v18, %v231_v51  ;;  %v302_v43 = vmul.f32 %v785_v18, %v232_v55  ;;  %v553_v17 = vunpack.c.l.bf16 %v639_v3 }
  0x19   :  { %430 = vst.msk [vmem:[%s1338_s4 + $0x10] sm:$0xff] %vm427_vm0, %v365_v23  ;;  %431 = vst.msk [vmem:[%s1338_s4 + $0x18] sm:$0xff] %vm427_vm0, %v366_v40  ;;  %v303_v44 = vmul.f32 %v785_v18, %v233_v56  ;;  %v304_v45 = vmul.f32 %v785_v18, %v234_v0  ;;  %v305_v46 = vmul.f32 %v785_v18, %v235_v2  ;;  %v546_v0 = vunpack.c.h.bf16 %v775_v5  ;;  %v638_v2 = vld [vmem:[%s1334_s0 + $0x60] sm:$0xff]  }
  0x1a   :  { %432 = vst.msk [vmem:[%s1338_s4 + $0x20] sm:$0xff] %vm427_vm0, %v367_v27  ;;  %433 = vst.msk [vmem:[%s1338_s4 + $0x28] sm:$0xff] %vm427_vm0, %v368_v28  ;;  %v306_v47 = vmul.f32 %v785_v18, %v236_v7  ;;  %v307_v48 = vmul.f32 %v785_v18, %v237_v8  ;;  %v371_v49 = vadd.f32 %v793_v24, %v300_v41  ;;  %v549_v14 = vunpack.c.l.bf16 %v638_v2 }
  0x1b   :  { %434 = vst.msk [vmem:[%s1338_s4 + $0x30] sm:$0xff] %vm427_vm0, %v369_v36  ;;  %435 = vst.msk [vmem:[%s1338_s4 + $0x38] sm:$0xff] %vm427_vm0, %v370_v37  ;;  %v372_v50 = vadd.f32 %v793_v24, %v301_v42  ;;  %v373_v51 = vadd.f32 %v793_v24, %v302_v43  ;;  %v374_v52 = vadd.f32 %v793_v24, %v303_v44  ;;  %v550_v16 = vunpack.c.h.bf16 %v638_v2 }
  0x1c   :  { %v375_v53 = vadd.f32 %v793_v24, %v304_v45  ;;  %v376_v54 = vadd.f32 %v793_v24, %v305_v46  ;;  %v377_v55 = vadd.f32 %v793_v24, %v306_v47  ;;  %v378_v56 = vadd.f32 %v793_v24, %v307_v48  ;;  %436 = vst.msk [vmem:[%s1338_s4 + $0x40] sm:$0xff] %vm427_vm0, %v371_v49  ;;  %v642_v49 = vld [vmem:[%s1334_s0 + $0x80] sm:$0xff]  }
  0x1d   :  { %437 = vst.msk [vmem:[%s1338_s4 + $0x48] sm:$0xff] %vm427_vm0, %v372_v50  ;;  %438 = vst.msk [vmem:[%s1338_s4 + $0x50] sm:$0xff] %vm427_vm0, %v373_v51  ;;  %v308_v57 = vmul.f32 %v785_v18, %v238_v19  ;;  %v309_v58 = vmul.f32 %v785_v18, %v239_v20  ;;  %v310_v59 = vmul.f32 %v785_v18, %v240_v25  ;;  %v554_v19 = vunpack.c.h.bf16 %v639_v3  ;;  %v640_v20 = vld [vmem:[%s1334_s0 + $0x70] sm:$0xff]   ;;  %v643_v50 = vld [vmem:[%s1334_s0 + $0x88] sm:$0xff]  }
  0x1e   :  { %439 = vst.msk [vmem:[%s1338_s4 + $0x58] sm:$0xff] %vm427_vm0, %v374_v52  ;;  %v311_v60 = vmul.f32 %v785_v18, %v241_v26  ;;  %440 = vst.msk [vmem:[%s1338_s4 + $0x60] sm:$0xff] %vm427_vm0, %v375_v53  ;;  %v242_v61 = vmul.f32 %v704_v9, %v172_v29  ;;  %v243_v62 = vmul.f32 %v704_v9, %v173_v6  ;;  %v557_v35 = vunpack.c.l.bf16 %v640_v20 }
  0x1f   :  { %441 = vst.msk [vmem:[%s1338_s4 + $0x68] sm:$0xff] %vm427_vm0, %v376_v54  ;;  %442 = vst.msk [vmem:[%s1338_s4 + $0x70] sm:$0xff] %vm427_vm0, %v377_v55  ;;  %v379_v4 = vadd.f32 %v793_v24, %v308_v57  ;;  %v380_v7 = vadd.f32 %v793_v24, %v309_v58  ;;  %v381_v8 = vadd.f32 %v793_v24, %v310_v59  ;;  %v558_v38 = vunpack.c.h.bf16 %v640_v20 }
  0x20   :  { %443 = vst.msk [vmem:[%s1338_s4 + $0x78] sm:$0xff] %vm427_vm0, %v378_v56  ;;  %v382_v10 = vadd.f32 %v793_v24, %v311_v60  ;;  %v312_v11 = vmul.f32 %v785_v18, %v242_v61  ;;  %v313_v5 = vmul.f32 %v785_v18, %v243_v62  ;;  %v244_v12 = vmul.f32 %v704_v9, %v174_v63  ;;  %v644_v63 = vld [vmem:[%s1334_s0 + $0x90] sm:$0xff]  }
  0x21   :  { %v175_v13 = vsub.f32 %v546_v0, %v688_v1  ;;  %444 = vst.msk [vmem:[%s1338_s4 + $0x80] sm:$0xff] %vm427_vm0, %v379_v4  ;;  %445 = vst.msk [vmem:[%s1338_s4 + $0x88] sm:$0xff] %vm427_vm0, %v380_v7  ;;  %v176_v6 = vsub.f32 %v549_v14, %v688_v1  ;;  %v177_v15 = vsub.f32 %v550_v16, %v688_v1  ;;  %v561_v37 = vunpack.c.l.bf16 %v641_v32 }
  0x22   :  { %446 = vst.msk [vmem:[%s1338_s4 + $0x90] sm:$0xff] %vm427_vm0, %v381_v8  ;;  %447 = vst.msk [vmem:[%s1338_s4 + $0x98] sm:$0xff] %vm427_vm0, %v382_v10  ;;  %v383_v21 = vadd.f32 %v793_v24, %v312_v11  ;;  %v384_v25 = vadd.f32 %v793_v24, %v313_v5  ;;  %v314_v26 = vmul.f32 %v785_v18, %v244_v12  ;;  %v562_v48 = vunpack.c.h.bf16 %v641_v32  ;;  %v645_v5 = vld [vmem:[%s1334_s0 + $0x98] sm:$0xff]  }
  0x23   :  { %v245_v29 = vmul.f32 %v704_v9, %v175_v13  ;;  %v178_v30 = vsub.f32 %v553_v17, %v688_v1  ;;  %v179_v31 = vsub.f32 %v554_v19, %v688_v1  ;;  %v246_v39 = vmul.f32 %v704_v9, %v176_v6 }
  0x24   :  { %448 = vst.msk [vmem:[%s1338_s4 + $0xa0] sm:$0xff] %vm427_vm0, %v383_v21  ;;  %449 = vst.msk [vmem:[%s1338_s4 + $0xa8] sm:$0xff] %vm427_vm0, %v384_v25  ;;  %v385_v33 = vadd.f32 %v793_v24, %v314_v26  ;;  %v247_v22 = vmul.f32 %v704_v9, %v177_v15  ;;  %v180_v28 = vsub.f32 %v557_v35, %v688_v1  ;;  %v565_v59 = vunpack.c.l.bf16 %v642_v49 }
  0x25   :  { %v315_v34 = vmul.f32 %v785_v18, %v245_v29  ;;  %v248_v23 = vmul.f32 %v704_v9, %v178_v30  ;;  %v249_v40 = vmul.f32 %v704_v9, %v179_v31  ;;  %v181_v36 = vsub.f32 %v558_v38, %v688_v1 }
  0x26   :  { %450 = vst.msk [vmem:[%s1338_s4 + $0xb0] sm:$0xff] %vm427_vm0, %v385_v33  ;;  %v316_v41 = vmul.f32 %v785_v18, %v246_v39  ;;  %v317_v42 = vmul.f32 %v785_v18, %v247_v22  ;;  %v250_v45 = vmul.f32 %v704_v9, %v180_v28  ;;  %v182_v47 = vsub.f32 %v561_v37, %v688_v1  ;;  %v646_v39 = vld [vmem:[%s1334_s0 + $0xa0] sm:$0xff]   ;;  %v647_v22 = vld [vmem:[%s1334_s0 + $0xa8] sm:$0xff]  }
  0x27   :  { %v386_v27 = vadd.f32 %v793_v24, %v315_v34  ;;  %v318_v43 = vmul.f32 %v785_v18, %v248_v23  ;;  %v319_v44 = vmul.f32 %v785_v18, %v249_v40  ;;  %v251_v46 = vmul.f32 %v704_v9, %v181_v36 }
  0x28   :  { %v387_v51 = vadd.f32 %v793_v24, %v316_v41  ;;  %v388_v52 = vadd.f32 %v793_v24, %v317_v42  ;;  %v320_v55 = vmul.f32 %v785_v18, %v250_v45  ;;  %v252_v57 = vmul.f32 %v704_v9, %v182_v47  ;;  %v648_v47 = vld [vmem:[%s1334_s0 + $0xb0] sm:$0xff]  }
  0x29   :  { %451 = vst.msk [vmem:[%s1338_s4 + $0xb8] sm:$0xff] %vm427_vm0, %v386_v27  ;;  %v389_v53 = vadd.f32 %v793_v24, %v318_v43  ;;  %v390_v54 = vadd.f32 %v793_v24, %v319_v44  ;;  %v321_v56 = vmul.f32 %v785_v18, %v251_v46  ;;  %v183_v58 = vsub.f32 %v562_v48, %v688_v1 }
  0x2a   :  { %452 = vst.msk [vmem:[%s1338_s4 + $0xc0] sm:$0xff] %vm427_vm0, %v387_v51  ;;  %453 = vst.msk [vmem:[%s1338_s4 + $0xc8] sm:$0xff] %vm427_vm0, %v388_v52  ;;  %v566_v60 = vunpack.c.h.bf16 %v642_v49  ;;  %v569_v61 = vunpack.c.l.bf16 %v643_v50  ;;  %v570_v62 = vunpack.c.h.bf16 %v643_v50  ;;  %v391_v0 = vadd.f32 %v793_v24, %v320_v55 }
  0x2b   :  { %454 = vst.msk [vmem:[%s1338_s4 + $0xd0] sm:$0xff] %vm427_vm0, %v389_v53  ;;  %455 = vst.msk [vmem:[%s1338_s4 + $0xd8] sm:$0xff] %vm427_vm0, %v390_v54  ;;  %v392_v2 = vadd.f32 %v793_v24, %v321_v56  ;;  %v322_v3 = vmul.f32 %v785_v18, %v252_v57  ;;  %v253_v4 = vmul.f32 %v704_v9, %v183_v58  ;;  %v573_v14 = vunpack.c.l.bf16 %v644_v63  ;;  %v649_v56 = vld [vmem:[%s1334_s0 + $0xb8] sm:$0xff]  }
  0x2c   :  { %v184_v7 = vsub.f32 %v565_v59, %v688_v1  ;;  %v185_v8 = vsub.f32 %v566_v60, %v688_v1  ;;  %v186_v10 = vsub.f32 %v569_v61, %v688_v1  ;;  %v187_v11 = vsub.f32 %v570_v62, %v688_v1  ;;  %456 = vst.msk [vmem:[%s1338_s4 + $0xe0] sm:$0xff] %vm427_vm0, %v391_v0 }
  0x2d   :  { %457 = vst.msk [vmem:[%s1338_s4 + $0xe8] sm:$0xff] %vm427_vm0, %v392_v2  ;;  %v393_v12 = vadd.f32 %v793_v24, %v322_v3  ;;  %v323_v13 = vmul.f32 %v785_v18, %v253_v4  ;;  %v574_v16 = vunpack.c.h.bf16 %v644_v63  ;;  %v188_v26 = vsub.f32 %v573_v14, %v688_v1 }
  0x2e   :  { %v254_v17 = vmul.f32 %v704_v9, %v184_v7  ;;  %v255_v19 = vmul.f32 %v704_v9, %v185_v8  ;;  %v256_v20 = vmul.f32 %v704_v9, %v186_v10  ;;  %v257_v21 = vmul.f32 %v704_v9, %v187_v11 }
  0x2f   :  { %458 = vst.msk [vmem:[%s1338_s4 + $0xf0] sm:$0xff] %vm427_vm0, %v393_v12  ;;  %v394_v25 = vadd.f32 %v793_v24, %v323_v13  ;;  %v189_v29 = vsub.f32 %v574_v16, %v688_v1  ;;  %v577_v6 = vunpack.c.l.bf16 %v645_v5  ;;  %v258_v33 = vmul.f32 %v704_v9, %v188_v26 }
  0x30   :  { %v324_v15 = vmul.f32 %v785_v18, %v254_v17  ;;  %v325_v30 = vmul.f32 %v785_v18, %v255_v19  ;;  %v326_v31 = vmul.f32 %v785_v18, %v256_v20  ;;  %v327_v32 = vmul.f32 %v785_v18, %v257_v21  ;;  %v650_v17 = vld [vmem:[%s1334_s0 + $0xc0] sm:$0xff]   ;;  %v651_v19 = vld [vmem:[%s1334_s0 + $0xc8] sm:$0xff]  }
  0x31   :  { %459 = vst.msk [vmem:[%s1338_s4 + $0xf8] sm:$0xff] %vm427_vm0, %v394_v25  ;;  %v259_v34 = vmul.f32 %v704_v9, %v189_v29  ;;  %v190_v35 = vsub.f32 %v577_v6, %v688_v1  ;;  %v578_v38 = vunpack.c.h.bf16 %v645_v5  ;;  %v328_v36 = vmul.f32 %v785_v18, %v258_v33 }
  0x32   :  { %v395_v23 = vadd.f32 %v793_v24, %v324_v15  ;;  %v396_v40 = vadd.f32 %v793_v24, %v325_v30  ;;  %v397_v27 = vadd.f32 %v793_v24, %v326_v31  ;;  %v398_v28 = vadd.f32 %v793_v24, %v327_v32 }
  0x33   :  { %v329_v37 = vmul.f32 %v785_v18, %v259_v34  ;;  %v260_v41 = vmul.f32 %v704_v9, %v190_v35  ;;  %v191_v42 = vsub.f32 %v578_v38, %v688_v1  ;;  %v581_v43 = vunpack.c.l.bf16 %v646_v39  ;;  %v652_v35 = vld [vmem:[%s1334_s0 + $0xd0] sm:$0xff]  }
  0x34   :  { %460 = vst.msk [vmem:[%s1338_s4 + $0x100] sm:$0xff] %vm427_vm0, %v395_v23  ;;  %461 = vst.msk [vmem:[%s1338_s4 + $0x108] sm:$0xff] %vm427_vm0, %v396_v40  ;;  %v582_v44 = vunpack.c.h.bf16 %v646_v39  ;;  %v585_v45 = vunpack.c.l.bf16 %v647_v22  ;;  %v586_v46 = vunpack.c.h.bf16 %v647_v22  ;;  %v399_v48 = vadd.f32 %v793_v24, %v328_v36 }
  0x35   :  { %462 = vst.msk [vmem:[%s1338_s4 + $0x110] sm:$0xff] %vm427_vm0, %v397_v27  ;;  %463 = vst.msk [vmem:[%s1338_s4 + $0x118] sm:$0xff] %vm427_vm0, %v398_v28  ;;  %v400_v49 = vadd.f32 %v793_v24, %v329_v37  ;;  %v330_v50 = vmul.f32 %v785_v18, %v260_v41  ;;  %v261_v51 = vmul.f32 %v704_v9, %v191_v42  ;;  %v589_v59 = vunpack.c.l.bf16 %v648_v47  ;;  %v653_v37 = vld [vmem:[%s1334_s0 + $0xd8] sm:$0xff]  }
  0x36   :  { %v192_v52 = vsub.f32 %v581_v43, %v688_v1  ;;  %v193_v53 = vsub.f32 %v582_v44, %v688_v1  ;;  %v194_v54 = vsub.f32 %v585_v45, %v688_v1  ;;  %v195_v55 = vsub.f32 %v586_v46, %v688_v1  ;;  %464 = vst.msk [vmem:[%s1338_s4 + $0x120] sm:$0xff] %vm427_vm0, %v399_v48 }
  0x37   :  { %465 = vst.msk [vmem:[%s1338_s4 + $0x128] sm:$0xff] %vm427_vm0, %v400_v49  ;;  %v401_v57 = vadd.f32 %v793_v24, %v330_v50  ;;  %v331_v58 = vmul.f32 %v785_v18, %v261_v51  ;;  %v590_v60 = vunpack.c.h.bf16 %v648_v47  ;;  %v196_v3 = vsub.f32 %v589_v59, %v688_v1 }
  0x38   :  { %v262_v61 = vmul.f32 %v704_v9, %v192_v52  ;;  %v263_v62 = vmul.f32 %v704_v9, %v193_v53  ;;  %v264_v63 = vmul.f32 %v704_v9, %v194_v54  ;;  %v265_v0 = vmul.f32 %v704_v9, %v195_v55 }
  0x39   :  { %466 = vst.msk [vmem:[%s1338_s4 + $0x130] sm:$0xff] %vm427_vm0, %v401_v57  ;;  %v402_v2 = vadd.f32 %v793_v24, %v331_v58  ;;  %v197_v4 = vsub.f32 %v590_v60, %v688_v1  ;;  %v593_v7 = vunpack.c.l.bf16 %v649_v56  ;;  %v266_v12 = vmul.f32 %v704_v9, %v196_v3 }
  0x3a   :  { %v332_v8 = vmul.f32 %v785_v18, %v262_v61  ;;  %v333_v10 = vmul.f32 %v785_v18, %v263_v62  ;;  %v334_v11 = vmul.f32 %v785_v18, %v264_v63  ;;  %v335_v5 = vmul.f32 %v785_v18, %v265_v0  ;;  %v654_v61 = vld [vmem:[%s1334_s0 + $0xe0] sm:$0xff]   ;;  %v655_v62 = vld [vmem:[%s1334_s0 + $0xe8] sm:$0xff]  }
  0x3b   :  { %467 = vst.msk [vmem:[%s1338_s4 + $0x138] sm:$0xff] %vm427_vm0, %v402_v2  ;;  %v267_v13 = vmul.f32 %v704_v9, %v197_v4  ;;  %v198_v14 = vsub.f32 %v593_v7, %v688_v1  ;;  %v594_v16 = vunpack.c.h.bf16 %v649_v56  ;;  %v336_v29 = vmul.f32 %v785_v18, %v266_v12 }
  0x3c   :  { %v403_v20 = vadd.f32 %v793_v24, %v332_v8  ;;  %v404_v21 = vadd.f32 %v793_v24, %v333_v10  ;;  %v405_v25 = vadd.f32 %v793_v24, %v334_v11  ;;  %v406_v26 = vadd.f32 %v793_v24, %v335_v5 }
  0x3d   :  { %v337_v6 = vmul.f32 %v785_v18, %v267_v13  ;;  %v268_v15 = vmul.f32 %v704_v9, %v198_v14  ;;  %v199_v30 = vsub.f32 %v594_v16, %v688_v1  ;;  %v597_v31 = vunpack.c.l.bf16 %v650_v17  ;;  %v656_v14 = vld [vmem:[%s1334_s0 + $0xf0] sm:$0xff]  }
  0x3e   :  { %468 = vst.msk [vmem:[%s1338_s4 + $0x140] sm:$0xff] %vm427_vm0, %v403_v20  ;;  %469 = vst.msk [vmem:[%s1338_s4 + $0x148] sm:$0xff] %vm427_vm0, %v404_v21  ;;  %v598_v32 = vunpack.c.h.bf16 %v650_v17  ;;  %v601_v33 = vunpack.c.l.bf16 %v651_v19  ;;  %v602_v34 = vunpack.c.h.bf16 %v651_v19  ;;  %v407_v38 = vadd.f32 %v793_v24, %v336_v29 }
  0x3f   :  { %470 = vst.msk [vmem:[%s1338_s4 + $0x150] sm:$0xff] %vm427_vm0, %v405_v25  ;;  %471 = vst.msk [vmem:[%s1338_s4 + $0x158] sm:$0xff] %vm427_vm0, %v406_v26  ;;  %v408_v39 = vadd.f32 %v793_v24, %v337_v6  ;;  %v338_v22 = vmul.f32 %v785_v18, %v268_v15  ;;  %v269_v23 = vmul.f32 %v704_v9, %v199_v30  ;;  %v605_v43 = vunpack.c.l.bf16 %v652_v35  ;;  %v657_v6 = vld [vmem:[%s1334_s0 + $0xf8] sm:$0xff]  }
  0x40   :  { %v200_v40 = vsub.f32 %v597_v31, %v688_v1  ;;  %v201_v27 = vsub.f32 %v598_v32, %v688_v1  ;;  %v202_v28 = vsub.f32 %v601_v33, %v688_v1  ;;  %v203_v36 = vsub.f32 %v602_v34, %v688_v1  ;;  %472 = vst.msk [vmem:[%s1338_s4 + $0x160] sm:$0xff] %vm427_vm0, %v407_v38 }
  0x41   :  { %473 = vst.msk [vmem:[%s1338_s4 + $0x168] sm:$0xff] %vm427_vm0, %v408_v39  ;;  %v409_v41 = vadd.f32 %v793_v24, %v338_v22  ;;  %v339_v42 = vmul.f32 %v785_v18, %v269_v23  ;;  %v606_v44 = vunpack.c.h.bf16 %v652_v35  ;;  %v204_v50 = vsub.f32 %v605_v43, %v688_v1 }
  0x42   :  { %v270_v45 = vmul.f32 %v704_v9, %v200_v40  ;;  %v271_v46 = vmul.f32 %v704_v9, %v201_v27  ;;  %v272_v47 = vmul.f32 %v704_v9, %v202_v28  ;;  %v273_v48 = vmul.f32 %v704_v9, %v203_v36 }
  0x43   :  { %474 = vst.msk [vmem:[%s1338_s4 + $0x170] sm:$0xff] %vm427_vm0, %v409_v41  ;;  %v410_v49 = vadd.f32 %v793_v24, %v339_v42  ;;  %v205_v51 = vsub.f32 %v606_v44, %v688_v1  ;;  %v609_v52 = vunpack.c.l.bf16 %v653_v37  ;;  %v274_v57 = vmul.f32 %v704_v9, %v204_v50 }
  0x44   :  { %v340_v53 = vmul.f32 %v785_v18, %v270_v45  ;;  %v341_v54 = vmul.f32 %v785_v18, %v271_v46  ;;  %v342_v55 = vmul.f32 %v785_v18, %v272_v47  ;;  %v343_v56 = vmul.f32 %v785_v18, %v273_v48 }
  0x45   :  { %475 = vst.msk [vmem:[%s1338_s4 + $0x178] sm:$0xff] %vm427_vm0, %v410_v49  ;;  %v275_v58 = vmul.f32 %v704_v9, %v205_v51  ;;  %v206_v59 = vsub.f32 %v609_v52, %v688_v1  ;;  %v610_v60 = vunpack.c.h.bf16 %v653_v37  ;;  %v344_v4 = vmul.f32 %v785_v18, %v274_v57 }
  0x46   :  { %v411_v63 = vadd.f32 %v793_v24, %v340_v53  ;;  %v412_v0 = vadd.f32 %v793_v24, %v341_v54  ;;  %v413_v2 = vadd.f32 %v793_v24, %v342_v55  ;;  %v414_v3 = vadd.f32 %v793_v24, %v343_v56 }
  0x47   :  { %v345_v7 = vmul.f32 %v785_v18, %v275_v58  ;;  %v276_v8 = vmul.f32 %v704_v9, %v206_v59  ;;  %v207_v10 = vsub.f32 %v610_v60, %v688_v1  ;;  %v613_v11 = vunpack.c.l.bf16 %v654_v61 }
  0x48   :  { %476 = vst.msk [vmem:[%s1338_s4 + $0x180] sm:$0xff] %vm427_vm0, %v411_v63  ;;  %477 = vst.msk [vmem:[%s1338_s4 + $0x188] sm:$0xff] %vm427_vm0, %v412_v0  ;;  %v614_v5 = vunpack.c.h.bf16 %v654_v61  ;;  %v617_v12 = vunpack.c.l.bf16 %v655_v62  ;;  %v618_v13 = vunpack.c.h.bf16 %v655_v62  ;;  %v415_v16 = vadd.f32 %v793_v24, %v344_v4 }
  0x49   :  { %478 = vst.msk [vmem:[%s1338_s4 + $0x190] sm:$0xff] %vm427_vm0, %v413_v2  ;;  %479 = vst.msk [vmem:[%s1338_s4 + $0x198] sm:$0xff] %vm427_vm0, %v414_v3  ;;  %v416_v17 = vadd.f32 %v793_v24, %v345_v7  ;;  %v346_v19 = vmul.f32 %v785_v18, %v276_v8  ;;  %v277_v20 = vmul.f32 %v704_v9, %v207_v10  ;;  %v621_v31 = vunpack.c.l.bf16 %v656_v14 }
  0x4a   :  { %v208_v21 = vsub.f32 %v613_v11, %v688_v1  ;;  %v209_v25 = vsub.f32 %v614_v5, %v688_v1  ;;  %v210_v26 = vsub.f32 %v617_v12, %v688_v1  ;;  %v211_v29 = vsub.f32 %v618_v13, %v688_v1  ;;  %480 = vst.msk [vmem:[%s1338_s4 + $0x1a0] sm:$0xff] %vm427_vm0, %v415_v16 }
  0x4b   :  { %481 = vst.msk [vmem:[%s1338_s4 + $0x1a8] sm:$0xff] %vm427_vm0, %v416_v17  ;;  %v417_v15 = vadd.f32 %v793_v24, %v346_v19  ;;  %v347_v30 = vmul.f32 %v785_v18, %v277_v20  ;;  %v622_v32 = vunpack.c.h.bf16 %v656_v14  ;;  %v212_v22 = vsub.f32 %v621_v31, %v688_v1 }
  0x4c   :  { %v278_v33 = vmul.f32 %v704_v9, %v208_v21  ;;  %v279_v34 = vmul.f32 %v704_v9, %v209_v25  ;;  %v280_v35 = vmul.f32 %v704_v9, %v210_v26  ;;  %v281_v38 = vmul.f32 %v704_v9, %v211_v29 }
  0x4d   :  { %482 = vst.msk [vmem:[%s1338_s4 + $0x1b0] sm:$0xff] %vm427_vm0, %v417_v15  ;;  %v418_v39 = vadd.f32 %v793_v24, %v347_v30  ;;  %v213_v23 = vsub.f32 %v622_v32, %v688_v1  ;;  %v625_v40 = vunpack.c.l.bf16 %v657_v6  ;;  %v282_v41 = vmul.f32 %v704_v9, %v212_v22 }
  0x4e   :  { %v348_v27 = vmul.f32 %v785_v18, %v278_v33  ;;  %v349_v28 = vmul.f32 %v785_v18, %v279_v34  ;;  %v350_v36 = vmul.f32 %v785_v18, %v280_v35  ;;  %v351_v37 = vmul.f32 %v785_v18, %v281_v38 }
  0x4f   :  { %483 = vst.msk [vmem:[%s1338_s4 + $0x1b8] sm:$0xff] %vm427_vm0, %v418_v39  ;;  %v283_v42 = vmul.f32 %v704_v9, %v213_v23  ;;  %v214_v43 = vsub.f32 %v625_v40, %v688_v1  ;;  %v626_v44 = vunpack.c.h.bf16 %v657_v6  ;;  %v352_v49 = vmul.f32 %v785_v18, %v282_v41 }
  0x50   :  { %v419_v45 = vadd.f32 %v793_v24, %v348_v27  ;;  %v420_v46 = vadd.f32 %v793_v24, %v349_v28  ;;  %v421_v47 = vadd.f32 %v793_v24, %v350_v36  ;;  %v422_v48 = vadd.f32 %v793_v24, %v351_v37 }
  0x51   :  { %v353_v50 = vmul.f32 %v785_v18, %v283_v42  ;;  %v284_v51 = vmul.f32 %v704_v9, %v214_v43  ;;  %v215_v52 = vsub.f32 %v626_v44, %v688_v1  ;;  %v423_v1 = vadd.f32 %v793_v24, %v352_v49 }
  0x52   :  { %484 = vst.msk [vmem:[%s1338_s4 + $0x1c0] sm:$0xff] %vm427_vm0, %v419_v45  ;;  %485 = vst.msk [vmem:[%s1338_s4 + $0x1c8] sm:$0xff] %vm427_vm0, %v420_v46 }
  0x53   :  { %486 = vst.msk [vmem:[%s1338_s4 + $0x1d0] sm:$0xff] %vm427_vm0, %v421_v47  ;;  %487 = vst.msk [vmem:[%s1338_s4 + $0x1d8] sm:$0xff] %vm427_vm0, %v422_v48  ;;  %v424_v53 = vadd.f32 %v793_v24, %v353_v50  ;;  %v354_v54 = vmul.f32 %v785_v18, %v284_v51  ;;  %v285_v55 = vmul.f32 %v704_v9, %v215_v52 }
  0x54   :  { %488 = vst.msk [vmem:[%s1338_s4 + $0x1e0] sm:$0xff] %vm427_vm0, %v423_v1 }
  0x55   :  { %489 = vst.msk [vmem:[%s1338_s4 + $0x1e8] sm:$0xff] %vm427_vm0, %v424_v53  ;;  %v425_v56 = vadd.f32 %v793_v24, %v354_v54  ;;  %v355_v57 = vmul.f32 %v785_v18, %v285_v55 }
  0x57   :  { %490 = vst.msk [vmem:[%s1338_s4 + $0x1f0] sm:$0xff] %vm427_vm0, %v425_v56  ;;  %v426_v9 = vadd.f32 %v793_v24, %v355_v57 }
  0x59   :  { %491 = vst.msk [vmem:[%s1338_s4 + $0x1f8] sm:$0xff] %vm427_vm0, %v426_v9 }

// kernel: residual_block_forward.6
= control target key start
LH: loop header
LB: loop body
LE: loop exit
PB: predicated region body
PF: predicated region fallthrough
CT: control target
= control target key end

     0   :  { %vm758_vm0 = vcmask 1041408   ;;  %vm661_vm1 = vcmask 31744   ;;  %v297_v36 = vlaneseq  ;;  %s3495_s5 = inlined_call_operand.vmem [shape: bf16[4,128], index: 5, kind: input, shape index: {}]   ;;  %s3496_s4 = inlined_call_operand.vmem [shape: bf16[512,4], index: 4, kind: input, shape index: {}]   ;;  %s3497_s1 = inlined_call_operand.vmem [shape: f32[2,128], index: 1, kind: input, shape index: {}]   ;;  %s3498_s0 = inlined_call_operand.vmem [shape: bf16[512,128], index: 0, kind: input, shape index: {}]   ;;  %s3499_s2 = inlined_call_operand.vmem [shape: f32[1,128], index: 2, kind: input, shape index: {}]   ;;  %s3500_s3 = inlined_call_operand.vmem [shape: f32[1,128], index: 3, kind: input, shape index: {}]   ;;  %s3501_s6 = inlined_call_operand.vmem [shape: bf16[512,128], index: 6, kind: output, shape index: {0}]   ;;  %s3502_s7 = inlined_call_operand.vmem [shape: f32[1,2,128], index: 7, kind: output, shape index: {1}]  }
   0x1   :  { %v500_v0 = vld [vmem:[%s3495_s5] sm:$0x3]  ;;  %v2360_v3 = vld [vmem:[%s3496_s4 + $0x8] sm:$0xff]   ;;  %v2361_v4 = vld [vmem:[%s3496_s4 + $0x10] sm:$0xff]  }
   0x2   :  { %2357 = vmatprep.subr.msk.bf16.mxu0 %vm758_vm0, %v500_v0  ;;  %v760_v1 = vsel %vm758_vm0, %v500_v0, 0  ;;  %v2359_v2 = vld [vmem:[%s3496_s4] sm:$0xff]   ;;  %2358 = vmatprep.subr.msk.bf16.mxu1 %vm758_vm0, %v500_v0  ;;  %v2362_v5 = vld [vmem:[%s3496_s4 + $0x18] sm:$0xff]   ;;  %v2364_v7 = vld [vmem:[%s3496_s4 + $0x28] sm:$0xff]   ;;  %v298_v40 = vshrl.u32 %v297_v36, 7 }
   0x3   :  { %2290 = vmatpush3.bf16.msra.mxu0 %v760_v1  ;;  %2356 = vmatpush3.bf16.msra.mxu1 %v760_v1  ;;  %v2363_v6 = vld [vmem:[%s3496_s4 + $0x20] sm:$0xff]   ;;  %v2365_v8 = vld [vmem:[%s3496_s4 + $0x30] sm:$0xff]   ;;  %v2376_v10 = vld [vmem:[%s3496_s4 + $0x88] sm:$0xff]  }
   0x4   :  { %2291 = vmatprep.mubr.msk.bf16.mxu0 %vm661_vm1, %v2359_v2  ;;  %v2375_v9 = vld [vmem:[%s3496_s4 + $0x80] sm:$0xff]   ;;  %v2377_v11 = vld [vmem:[%s3496_s4 + $0x90] sm:$0xff]   ;;  %v2366_v12 = vld [vmem:[%s3496_s4 + $0x38] sm:$0xff]   ;;  %v299_v48 = vsub.s32 0, %v298_v40 }
   0x5   :  { %2323 = vmatprep.mubr.msk.bf16.mxu1 %vm661_vm1, %v2375_v9  ;;  %v2378_v13 = vld [vmem:[%s3496_s4 + $0x98] sm:$0xff]   ;;  %v2379_v14 = vld [vmem:[%s3496_s4 + $0xa0] sm:$0xff]   ;;  %v2380_v16 = vld [vmem:[%s3496_s4 + $0xa8] sm:$0xff]  }
   0x6   :  { %2292 = vmatmul.mubr.msk.bf16.vlgmr.msra.gmra.mxu0 %vm661_vm1, %v2360_v3  ;;  %2324 = vmatmul.mubr.msk.bf16.vlgmr.msra.gmra.mxu1 %vm661_vm1, %v2376_v10  ;;  %v2367_v15 = vld [vmem:[%s3496_s4 + $0x40] sm:$0xff]   ;;  %v2368_v17 = vld [vmem:[%s3496_s4 + $0x48] sm:$0xff]   ;;  %v2381_v18 = vld [vmem:[%s3496_s4 + $0xb0] sm:$0xff]  }
   0x7   :  { %2295 = vmatprep.mubr.msk.bf16.mxu0 %vm661_vm1, %v2361_v4  ;;  %2327 = vmatprep.mubr.msk.bf16.mxu1 %vm661_vm1, %v2377_v11  ;;  %v2369_v19 = vld [vmem:[%s3496_s4 + $0x50] sm:$0xff]   ;;  %v2382_v20 = vld [vmem:[%s3496_s4 + $0xb8] sm:$0xff]   ;;  %v2383_v22 = vld [vmem:[%s3496_s4 + $0xc0] sm:$0xff]  }
   0x8   :  { %v2370_v21 = vld [vmem:[%s3496_s4 + $0x58] sm:$0xff]   ;;  %v2371_v23 = vld [vmem:[%s3496_s4 + $0x60] sm:$0xff]   ;;  %v2384_v24 = vld [vmem:[%s3496_s4 + $0xc8] sm:$0xff]  }
   0x9   :  { %v2372_v25 = vld [vmem:[%s3496_s4 + $0x68] sm:$0xff]   ;;  %v2385_v26 = vld [vmem:[%s3496_s4 + $0xd0] sm:$0xff]   ;;  %v2386_v28 = vld [vmem:[%s3496_s4 + $0xd8] sm:$0xff]  }
   0xa   :  { %v2373_v27 = vld [vmem:[%s3496_s4 + $0x70] sm:$0xff]   ;;  %v2374_v29 = vld [vmem:[%s3496_s4 + $0x78] sm:$0xff]   ;;  %v2387_v30 = vld [vmem:[%s3496_s4 + $0xe0] sm:$0xff]  }
   0xb   :  { %v2388_v31 = vld [vmem:[%s3496_s4 + $0xe8] sm:$0xff]   ;;  %v2389_v32 = vld [vmem:[%s3496_s4 + $0xf0] sm:$0xff]   ;;  %v2390_v33 = vld [vmem:[%s3496_s4 + $0xf8] sm:$0xff]  }
   0xc   :  { %v27_v34 = vld [vmem:[%s3497_s1 + $0x1] sm:$0x1]  ;;  %v2194_v37 = vld [vmem:[%s3498_s0 + $0x8] sm:$0xff]   ;;  %v2578_v41 = vld [vmem:[%s3497_s1] ss:$0 sm:$0xff] }
   0xd   :  { %v295_v35 = vadd.f32 1e-05, %v27_v34  ;;  %v1907_v38 = vld [vmem:[%s3498_s0] sm:$0xff]   ;;  %v1912_v39 = vunpack.c.l.bf16 %v2194_v37  ;;  %v1913_v43 = vunpack.c.h.bf16 %v2194_v37  ;;  %v2196_v44 = vld [vmem:[%s3498_s0 + $0x18] sm:$0xff]   ;;  %v2195_v46 = vld [vmem:[%s3498_s0 + $0x10] sm:$0xff]  }
   0xe   :  { %2296 = vmatmul.mubr.msk.bf16.gmra.mxu0 %vm661_vm1, %v2362_v5  ;;  %2328 = vmatmul.mubr.msk.bf16.gmra.mxu1 %vm661_vm1, %v2378_v13  ;;  %v1908_v42 = vunpack.c.l.bf16 %v1907_v38  ;;  %v1909_v45 = vunpack.c.h.bf16 %v1907_v38  ;;  %v2590_v50 = vld [vmem:[%s3499_s2] ss:$0 sm:$0xff]  ;;  %v1920_v52 = vunpack.c.l.bf16 %v2196_v44  ;;  %v1916_v54 = vunpack.c.l.bf16 %v2195_v46  ;;  %v2198_v62 = vld [vmem:[%s3498_s0 + $0x28] sm:$0xff]   ;;  %v2200_v10 = vld [vmem:[%s3498_s0 + $0x38] sm:$0xff]  }
   0xf   :  { %2299 = vmatprep.mubr.msk.bf16.mxu0 %vm661_vm1, %v2363_v6  ;;  %2331 = vmatprep.mubr.msk.bf16.mxu1 %vm661_vm1, %v2379_v14  ;;  %2391 = vrsqrt.f32 %v295_v35  ;;  %v163_v47 = vsub.f32 %v1912_v39, %v2578_v41  ;;  %v164_v53 = vsub.f32 %v1913_v43, %v2578_v41  ;;  %v1921_v55 = vunpack.c.h.bf16 %v2196_v44  ;;  %v2197_v3 = vld [vmem:[%s3498_s0 + $0x20] sm:$0xff]   ;;  %v2199_v11 = vld [vmem:[%s3498_s0 + $0x30] sm:$0xff]  }
  0x10   :  { %v161_v51 = vsub.f32 %v1908_v42, %v2578_v41  ;;  %v162_v56 = vsub.f32 %v1909_v45, %v2578_v41  ;;  %v167_v60 = vsub.f32 %v1920_v52, %v2578_v41  ;;  %v1917_v61 = vunpack.c.h.bf16 %v2195_v46  ;;  %v2614_v6 = vld [vmem:[%s3500_s3] ss:$0 sm:$0xff] }
  0x11   :  { %v233_v57 = vmul.f32 %v2590_v50, %v163_v47  ;;  %v234_v63 = vmul.f32 %v2590_v50, %v164_v53  ;;  %v165_v0 = vsub.f32 %v1916_v54, %v2578_v41  ;;  %v168_v1 = vsub.f32 %v1921_v55, %v2578_v41 }
  0x12   :  { %v231_v59 = vmul.f32 %v2590_v50, %v161_v51  ;;  %v232_v2 = vmul.f32 %v2590_v50, %v162_v56  ;;  %v1928_v5 = vunpack.c.l.bf16 %v2198_v62  ;;  %v166_v9 = vsub.f32 %v1917_v61, %v2578_v41  ;;  %v2204_v51 = vld [vmem:[%s3498_s0 + $0x58] sm:$0xff]   ;;  %v2203_v56 = vld [vmem:[%s3498_s0 + $0x50] sm:$0xff]  }
  0x13   :  { %v235_v13 = vmul.f32 %v2590_v50, %v165_v0  ;;  %v238_v14 = vmul.f32 %v2590_v50, %v168_v1  ;;  %v1933_v36 = vunpack.c.h.bf16 %v2199_v11  ;;  %v1952_v1 = vunpack.c.l.bf16 %v2204_v51 }
  0x15   :  { %v174_v54 = vsub.f32 %v1933_v36, %v2578_v41 }
  0x16   :  { %2300 = vmatmul.mubr.msk.bf16.gmra.mxu0 %vm661_vm1, %v2364_v7  ;;  %2332 = vmatmul.mubr.msk.bf16.gmra.mxu1 %vm661_vm1, %v2380_v16 }
  0x17   :  { %2303 = vmatprep.mubr.msk.bf16.mxu0 %vm661_vm1, %v2365_v8  ;;  %2335 = vmatprep.mubr.msk.bf16.mxu1 %vm661_vm1, %v2381_v18  ;;  %v237_v8 = vmul.f32 %v2590_v50, %v167_v60  ;;  %v1925_v18 = vunpack.c.h.bf16 %v2197_v3 }
  0x19   :  { %v170_v35 = vsub.f32 %v1925_v18, %v2578_v41  ;;  %v1949_v18 = vunpack.c.h.bf16 %v2203_v56 }
  0x1b   :  { %v240_v53 = vmul.f32 %v2590_v50, %v170_v35 }
  0x1c   :  { %v2392_v49 = vpop.eup %2391 }
  0x1d   :  { %v2596_v58 = vrot.slane %v2392_v49, %v299_v48 }
  0x1e   :  { %2304 = vmatmul.mubr.msk.bf16.gmra.mxu0 %vm661_vm1, %v2366_v12  ;;  %2336 = vmatmul.mubr.msk.bf16.gmra.mxu1 %vm661_vm1, %v2382_v20  ;;  %v171_v20 = vsub.f32 %v1928_v5, %v2578_v41  ;;  %v1953_v5 = vunpack.c.h.bf16 %v2204_v51 }
  0x1f   :  { %2307 = vmatprep.mubr.msk.bf16.mxu0 %vm661_vm1, %v2367_v15  ;;  %2339 = vmatprep.mubr.msk.bf16.mxu1 %vm661_vm1, %v2383_v22  ;;  %v303_v4 = vmul.f32 %v2596_v58, %v233_v57  ;;  %v301_v7 = vmul.f32 %v2596_v58, %v231_v59  ;;  %v304_v12 = vmul.f32 %v2596_v58, %v234_v63  ;;  %v1924_v15 = vunpack.c.l.bf16 %v2197_v3 }
  0x20   :  { %v302_v16 = vmul.f32 %v2596_v58, %v232_v2  ;;  %v1932_v22 = vunpack.c.l.bf16 %v2199_v11  ;;  %v241_v37 = vmul.f32 %v2590_v50, %v171_v20  ;;  %v2206_v20 = vld [vmem:[%s3498_s0 + $0x68] sm:$0xff]  }
  0x21   :  { %v1960_v36 = vunpack.c.l.bf16 %v2206_v20 }
  0x22   :  { %v173_v39 = vsub.f32 %v1932_v22, %v2578_v41  ;;  %v311_v57 = vmul.f32 %v2596_v58, %v241_v37 }
  0x24   :  { %v243_v60 = vmul.f32 %v2590_v50, %v173_v39  ;;  %v2695_v11 = vadd.f32 %v2614_v6, %v311_v57  ;;  %v187_v57 = vsub.f32 %v1960_v36, %v2578_v41 }
  0x26   :  { %2308 = vmatmul.mubr.msk.bf16.gmra.mxu0 %vm661_vm1, %v2368_v17  ;;  %2340 = vmatmul.mubr.msk.bf16.gmra.mxu1 %vm661_vm1, %v2384_v24  ;;  %v1929_v17 = vunpack.c.h.bf16 %v2198_v62  ;;  %v307_v24 = vmul.f32 %v2596_v58, %v237_v8  ;;  %v310_v8 = vmul.f32 %v2596_v58, %v240_v53 }
  0x27   :  { %2311 = vmatprep.mubr.msk.bf16.mxu0 %vm661_vm1, %v2369_v19  ;;  %2343 = vmatprep.mubr.msk.bf16.mxu1 %vm661_vm1, %v2385_v26  ;;  %v2630_v19 = vadd.f32 %v2614_v6, %v303_v4  ;;  %v1937_v26 = vunpack.c.h.bf16 %v2200_v10  ;;  %v1948_v4 = vunpack.c.l.bf16 %v2203_v56 }
  0x28   :  { %v172_v34 = vsub.f32 %v1929_v17, %v2578_v41  ;;  %v2659_v42 = vadd.f32 %v2614_v6, %v307_v24  ;;  %v183_v17 = vsub.f32 %v1952_v1, %v2578_v41  ;;  %v2210_v1 = vld [vmem:[%s3498_s0 + $0x88] sm:$0xff]  }
  0x29   :  { %v176_v44 = vsub.f32 %v1937_v26, %v2578_v41  ;;  %v181_v24 = vsub.f32 %v1948_v4, %v2578_v41 }
  0x2a   :  { %v242_v52 = vmul.f32 %v2590_v50, %v172_v34  ;;  %v253_v39 = vmul.f32 %v2590_v50, %v183_v17  ;;  %v1976_v17 = vunpack.c.l.bf16 %v2210_v1 }
  0x2b   :  { %v246_v63 = vmul.f32 %v2590_v50, %v176_v44  ;;  %v2207_v44 = vld [vmem:[%s3498_s0 + $0x70] sm:$0xff]  }
  0x2e   :  { %2312 = vmatmul.mubr.msk.bf16.gmra.mxu0 %vm661_vm1, %v2370_v21  ;;  %2344 = vmatmul.mubr.msk.bf16.gmra.mxu1 %vm661_vm1, %v2386_v28  ;;  %v1936_v21 = vunpack.c.l.bf16 %v2200_v10  ;;  %v2642_v28 = vadd.f32 %v2614_v6, %v304_v12 }
  0x2f   :  { %2315 = vmatprep.mubr.msk.bf16.mxu0 %vm661_vm1, %v2371_v23  ;;  %2347 = vmatprep.mubr.msk.bf16.mxu1 %vm661_vm1, %v2387_v30  ;;  %v2634_v23 = vadd.f32 %v2614_v6, %v301_v7  ;;  %v308_v30 = vmul.f32 %v2596_v58, %v238_v14  ;;  %v312_v7 = vmul.f32 %v2596_v58, %v242_v52 }
  0x30   :  { %v175_v38 = vsub.f32 %v1936_v21, %v2578_v41 }
  0x31   :  { %v2667_v47 = vadd.f32 %v2614_v6, %v308_v30  ;;  %v2713_v26 = vadd.f32 %v2614_v6, %v312_v7 }
  0x32   :  { %v245_v59 = vmul.f32 %v2590_v50, %v175_v38 }
  0x34   :  { %v315_v12 = vmul.f32 %v2596_v58, %v245_v59 }
  0x36   :  { %2316 = vmatmul.mubr.msk.bf16.gmra.mxu0 %vm661_vm1, %v2372_v25  ;;  %2348 = vmatmul.mubr.msk.bf16.gmra.mxu1 %vm661_vm1, %v2388_v31  ;;  %v236_v25 = vmul.f32 %v2590_v50, %v166_v9  ;;  %v169_v31 = vsub.f32 %v1924_v15, %v2578_v41  ;;  %v244_v9 = vmul.f32 %v2590_v50, %v174_v54  ;;  %v1961_v54 = vunpack.c.h.bf16 %v2206_v20 }
  0x37   :  { %2319 = vmatprep.mubr.msk.bf16.mxu0 %vm661_vm1, %v2373_v27  ;;  %2351 = vmatprep.mubr.msk.bf16.mxu1 %vm661_vm1, %v2389_v32  ;;  %v2202_v27 = vld [vmem:[%s3498_s0 + $0x48] sm:$0xff]   ;;  %v2201_v32 = vld [vmem:[%s3498_s0 + $0x40] sm:$0xff]   ;;  %v316_v15 = vmul.f32 %v2596_v58, %v246_v63  ;;  %v323_v63 = vmul.f32 %v2596_v58, %v253_v39 }
  0x38   :  { %v1944_v40 = vunpack.c.l.bf16 %v2202_v27  ;;  %v306_v43 = vmul.f32 %v2596_v58, %v236_v25  ;;  %v1940_v45 = vunpack.c.l.bf16 %v2201_v32  ;;  %v239_v48 = vmul.f32 %v2590_v50, %v169_v31  ;;  %v2205_v31 = vld [vmem:[%s3498_s0 + $0x60] sm:$0xff]  }
  0x39   :  { %v1945_v49 = vunpack.c.h.bf16 %v2202_v27  ;;  %v1941_v55 = vunpack.c.h.bf16 %v2201_v32  ;;  %v184_v25 = vsub.f32 %v1953_v5, %v2578_v41  ;;  %v2716_v27 = vadd.f32 %v2614_v6, %v310_v8  ;;  %v2209_v8 = vld [vmem:[%s3498_s0 + $0x80] sm:$0xff]  }
  0x3a   :  { %v179_v61 = vsub.f32 %v1944_v40, %v2578_v41  ;;  %v2684_v62 = vadd.f32 %v2614_v6, %v306_v43  ;;  %v177_v0 = vsub.f32 %v1940_v45, %v2578_v41  ;;  %v309_v2 = vmul.f32 %v2596_v58, %v239_v48  ;;  %v2208_v43 = vld [vmem:[%s3498_s0 + $0x78] sm:$0xff]  }
  0x3b   :  { %v180_v3 = vsub.f32 %v1945_v49, %v2578_v41  ;;  %v178_v10 = vsub.f32 %v1941_v55, %v2578_v41  ;;  %v2724_v32 = vadd.f32 %v2614_v6, %v315_v12  ;;  %v2731_v37 = vadd.f32 %v2614_v6, %v316_v15 }
  0x3c   :  { %v249_v14 = vmul.f32 %v2590_v50, %v179_v61  ;;  %v2707_v21 = vadd.f32 %v2614_v6, %v309_v2  ;;  %v182_v40 = vsub.f32 %v1949_v18, %v2578_v41  ;;  %v251_v48 = vmul.f32 %v2590_v50, %v181_v24 }
  0x3d   :  { %v250_v22 = vmul.f32 %v2590_v50, %v180_v3  ;;  %v248_v30 = vmul.f32 %v2590_v50, %v178_v10  ;;  %v254_v49 = vmul.f32 %v2590_v50, %v184_v25  ;;  %v1956_v51 = vunpack.c.l.bf16 %v2205_v31 }
  0x3e   :  { %2320 = vmatmul.mubr.msk.bf16.gmra.mxu0 %vm661_vm1, %v2374_v29  ;;  %2352 = vmatmul.mubr.msk.bf16.gmra.mxu1 %vm661_vm1, %v2390_v33  ;;  %v305_v29 = vmul.f32 %v2596_v58, %v235_v13  ;;  %v2651_v33 = vadd.f32 %v2614_v6, %v302_v16  ;;  %v313_v13 = vmul.f32 %v2596_v58, %v243_v60  ;;  %v1957_v55 = vunpack.c.h.bf16 %v2205_v31 }
  0x3f   :  { %v247_v16 = vmul.f32 %v2590_v50, %v177_v0  ;;  %v319_v35 = vmul.f32 %v2596_v58, %v249_v14  ;;  %v320_v45 = vmul.f32 %v2596_v58, %v250_v22  ;;  %v318_v53 = vmul.f32 %v2596_v58, %v248_v30 }
  0x40   :  { %v2664_v46 = vadd.f32 %v2614_v6, %v305_v29  ;;  %v314_v29 = vmul.f32 %v2596_v58, %v244_v9  ;;  %v2727_v34 = vadd.f32 %v2614_v6, %v313_v13  ;;  %v1968_v59 = vunpack.c.l.bf16 %v2208_v43 }
  0x41   :  { %v317_v38 = vmul.f32 %v2596_v58, %v247_v16  ;;  %v2750_v56 = vadd.f32 %v2614_v6, %v319_v35  ;;  %v1964_v60 = vunpack.c.l.bf16 %v2207_v44  ;;  %v252_v0 = vmul.f32 %v2590_v50, %v182_v40  ;;  %v2212_v35 = vld [vmem:[%s3498_s0 + $0x98] sm:$0xff]  }
  0x42   :  { %v2746_v52 = vadd.f32 %v2614_v6, %v314_v29  ;;  %v1969_v2 = vunpack.c.h.bf16 %v2208_v43  ;;  %v2762_v3 = vadd.f32 %v2614_v6, %v320_v45  ;;  %v321_v4 = vmul.f32 %v2596_v58, %v251_v48  ;;  %v2211_v43 = vld [vmem:[%s3498_s0 + $0x90] sm:$0xff]  }
  0x43   :  { %v2754_v61 = vadd.f32 %v2614_v6, %v317_v38  ;;  %v324_v5 = vmul.f32 %v2596_v58, %v254_v49  ;;  %v185_v7 = vsub.f32 %v1956_v51, %v2578_v41  ;;  %v2771_v9 = vadd.f32 %v2614_v6, %v318_v53 }
  0x44   :  { %v188_v10 = vsub.f32 %v1961_v54, %v2578_v41  ;;  %v186_v12 = vsub.f32 %v1957_v55, %v2578_v41  ;;  %v1965_v13 = vunpack.c.h.bf16 %v2207_v44  ;;  %v257_v14 = vmul.f32 %v2590_v50, %v187_v57 }
  0x45   :  { %v191_v15 = vsub.f32 %v1968_v59, %v2578_v41  ;;  %v189_v16 = vsub.f32 %v1964_v60, %v2578_v41  ;;  %v2779_v18 = vadd.f32 %v2614_v6, %v323_v63  ;;  %v322_v20 = vmul.f32 %v2596_v58, %v252_v0 }
  0x46   :  { %v192_v22 = vsub.f32 %v1969_v2, %v2578_v41  ;;  %v1972_v24 = vunpack.c.l.bf16 %v2209_v8  ;;  %v2784_v25 = vadd.f32 %v2614_v6, %v321_v4  ;;  %v2787_v29 = vadd.f32 %v2614_v6, %v324_v5 }
  0x47   :  { %v255_v30 = vmul.f32 %v2590_v50, %v185_v7  ;;  %v1977_v31 = vunpack.c.h.bf16 %v2210_v1  ;;  %v258_v36 = vmul.f32 %v2590_v50, %v188_v10  ;;  %v256_v38 = vmul.f32 %v2590_v50, %v186_v12 }
  0x48   :  { %v190_v39 = vsub.f32 %v1965_v13, %v2578_v41  ;;  %v1973_v40 = vunpack.c.h.bf16 %v2209_v8  ;;  %v327_v44 = vmul.f32 %v2596_v58, %v257_v14  ;;  %v261_v45 = vmul.f32 %v2590_v50, %v191_v15 }
  0x49   :  { %v259_v48 = vmul.f32 %v2590_v50, %v189_v16  ;;  %v195_v49 = vsub.f32 %v1976_v17, %v2578_v41  ;;  %v2804_v51 = vadd.f32 %v2614_v6, %v322_v20  ;;  %v262_v53 = vmul.f32 %v2590_v50, %v192_v22  ;;  %v2214_v16 = vld [vmem:[%s3498_s0 + $0xa8] sm:$0xff]  }
  0x4a   :  { %v193_v54 = vsub.f32 %v1972_v24, %v2578_v41  ;;  %v1984_v55 = vunpack.c.l.bf16 %v2212_v35  ;;  %v325_v57 = vmul.f32 %v2596_v58, %v255_v30  ;;  %v196_v59 = vsub.f32 %v1977_v31, %v2578_v41 }
  0x4b   :  { %3503 = vst [vmem:[#allocation2_spill] sm:$0xff] %v2804_v51  ;;  %v1980_v60 = vunpack.c.l.bf16 %v2211_v43  ;;  %v1985_v63 = vunpack.c.h.bf16 %v2212_v35  ;;  %v328_v0 = vmul.f32 %v2596_v58, %v258_v36  ;;  %v326_v1 = vmul.f32 %v2596_v58, %v256_v38  ;;  %v2213_v38 = vld [vmem:[%s3498_s0 + $0xa0] sm:$0xff]  }
  0x4c   :  { %v260_v2 = vmul.f32 %v2590_v50, %v190_v39  ;;  %v194_v4 = vsub.f32 %v1973_v40, %v2578_v41  ;;  %v2815_v5 = vadd.f32 %v2614_v6, %v327_v44  ;;  %v331_v7 = vmul.f32 %v2596_v58, %v261_v45 }
  0x4d   :  { %v329_v8 = vmul.f32 %v2596_v58, %v259_v48  ;;  %v265_v10 = vmul.f32 %v2590_v50, %v195_v49  ;;  %v332_v12 = vmul.f32 %v2596_v58, %v262_v53  ;;  %v263_v13 = vmul.f32 %v2590_v50, %v193_v54  ;;  %v2216_v54 = vld [vmem:[%s3498_s0 + $0xb8] sm:$0xff]  }
  0x4e   :  { %3504 = vst [vmem:[#allocation3_spill] sm:$0xff] %v2815_v5  ;;  %v199_v14 = vsub.f32 %v1984_v55, %v2578_v41  ;;  %v1981_v15 = vunpack.c.h.bf16 %v2211_v43  ;;  %v2827_v17 = vadd.f32 %v2614_v6, %v325_v57  ;;  %v266_v20 = vmul.f32 %v2590_v50, %v196_v59  ;;  %v2215_v55 = vld [vmem:[%s3498_s0 + $0xb0] sm:$0xff]  }
  0x4f   :  { %v197_v22 = vsub.f32 %v1980_v60, %v2578_v41  ;;  %v200_v24 = vsub.f32 %v1985_v63, %v2578_v41  ;;  %v2833_v30 = vadd.f32 %v2614_v6, %v328_v0  ;;  %v2836_v31 = vadd.f32 %v2614_v6, %v326_v1 }
  0x50   :  { %3505 = vst [vmem:[#allocation4_spill] sm:$0xff] %v2827_v17  ;;  %v330_v35 = vmul.f32 %v2596_v58, %v260_v2  ;;  %v264_v36 = vmul.f32 %v2590_v50, %v194_v4  ;;  %v2844_v39 = vadd.f32 %v2614_v6, %v331_v7  ;;  %v2847_v40 = vadd.f32 %v2614_v6, %v329_v8 }
  0x51   :  { %3506 = vst [vmem:[#allocation5_spill] sm:$0xff] %v2833_v30  ;;  %3507 = vst [vmem:[#allocation6_spill] sm:$0xff] %v2836_v31  ;;  %v335_v43 = vmul.f32 %v2596_v58, %v265_v10  ;;  %v1992_v44 = vunpack.c.l.bf16 %v2214_v16  ;;  %v2851_v45 = vadd.f32 %v2614_v6, %v332_v12  ;;  %v333_v48 = vmul.f32 %v2596_v58, %v263_v13 }
  0x52   :  { %3508 = vst [vmem:[#allocation7_spill] sm:$0xff] %v2844_v39  ;;  %3509 = vst [vmem:[#allocation8_spill] sm:$0xff] %v2847_v40  ;;  %v269_v49 = vmul.f32 %v2590_v50, %v199_v14  ;;  %v198_v53 = vsub.f32 %v1981_v15, %v2578_v41  ;;  %v336_v57 = vmul.f32 %v2596_v58, %v266_v20  ;;  %v1988_v63 = vunpack.c.l.bf16 %v2213_v38 }
  0x53   :  { %3510 = vst [vmem:[#allocation9_spill] sm:$0xff] %v2851_v45  ;;  %v267_v59 = vmul.f32 %v2590_v50, %v197_v22  ;;  %v270_v60 = vmul.f32 %v2590_v50, %v200_v24  ;;  %v2866_v0 = vadd.f32 %v2614_v6, %v330_v35  ;;  %v334_v1 = vmul.f32 %v2596_v58, %v264_v36 }
  0x54   :  { %v1993_v2 = vunpack.c.h.bf16 %v2214_v16  ;;  %v1989_v4 = vunpack.c.h.bf16 %v2213_v38  ;;  %v2870_v7 = vadd.f32 %v2614_v6, %v335_v43  ;;  %v203_v8 = vsub.f32 %v1992_v44, %v2578_v41  ;;  %v2218_v16 = vld [vmem:[%s3498_s0 + $0xc8] sm:$0xff]   ;;  %v2217_v38 = vld [vmem:[%s3498_s0 + $0xc0] sm:$0xff]  }
  0x55   :  { %3511 = vst [vmem:[#allocation10_spill] sm:$0xff] %v2866_v0  ;;  %v2000_v10 = vunpack.c.l.bf16 %v2216_v54  ;;  %v1996_v12 = vunpack.c.l.bf16 %v2215_v55  ;;  %v2874_v13 = vadd.f32 %v2614_v6, %v333_v48  ;;  %v339_v14 = vmul.f32 %v2596_v58, %v269_v49 }
  0x56   :  { %v268_v15 = vmul.f32 %v2590_v50, %v198_v53  ;;  %v2001_v20 = vunpack.c.h.bf16 %v2216_v54  ;;  %v2882_v22 = vadd.f32 %v2614_v6, %v336_v57  ;;  %v337_v24 = vmul.f32 %v2596_v58, %v267_v59 }
  0x57   :  { %v340_v35 = vmul.f32 %v2596_v58, %v270_v60  ;;  %v201_v36 = vsub.f32 %v1988_v63, %v2578_v41  ;;  %v2891_v43 = vadd.f32 %v2614_v6, %v334_v1  ;;  %v204_v44 = vsub.f32 %v1993_v2, %v2578_v41 }
  0x58   :  { %v202_v48 = vsub.f32 %v1989_v4, %v2578_v41  ;;  %v1997_v49 = vunpack.c.h.bf16 %v2215_v55  ;;  %v273_v53 = vmul.f32 %v2590_v50, %v203_v8  ;;  %v207_v54 = vsub.f32 %v2000_v10, %v2578_v41  ;;  %v2220_v10 = vld [vmem:[%s3498_s0 + $0xd8] sm:$0xff]  }
  0x59   :  { %v205_v57 = vsub.f32 %v1996_v12, %v2578_v41  ;;  %v2008_v59 = vunpack.c.l.bf16 %v2218_v16  ;;  %v2899_v60 = vadd.f32 %v2614_v6, %v339_v14  ;;  %v338_v63 = vmul.f32 %v2596_v58, %v268_v15 }
  0x5a   :  { %v208_v1 = vsub.f32 %v2001_v20, %v2578_v41  ;;  %v2004_v0 = vunpack.c.l.bf16 %v2217_v38  ;;  %v2904_v2 = vadd.f32 %v2614_v6, %v337_v24  ;;  %v2907_v55 = vadd.f32 %v2614_v6, %v340_v35  ;;  %v2219_v24 = vld [vmem:[%s3498_s0 + $0xd0] sm:$0xff]  }
  0x5b   :  { %v271_v4 = vmul.f32 %v2590_v50, %v201_v36  ;;  %v2009_v8 = vunpack.c.h.bf16 %v2218_v16  ;;  %v274_v12 = vmul.f32 %v2590_v50, %v204_v44  ;;  %v272_v14 = vmul.f32 %v2590_v50, %v202_v48 }
  0x5c   :  { %v206_v15 = vsub.f32 %v1997_v49, %v2578_v41  ;;  %v2005_v20 = vunpack.c.h.bf16 %v2217_v38  ;;  %v343_v35 = vmul.f32 %v2596_v58, %v273_v53  ;;  %v277_v36 = vmul.f32 %v2590_v50, %v207_v54 }
  0x5d   :  { %v275_v16 = vmul.f32 %v2590_v50, %v205_v57  ;;  %v211_v45 = vsub.f32 %v2008_v59, %v2578_v41  ;;  %v2924_v39 = vadd.f32 %v2614_v6, %v338_v63  ;;  %v278_v44 = vmul.f32 %v2590_v50, %v208_v1 }
  0x5e   :  { %v209_v48 = vsub.f32 %v2004_v0, %v2578_v41  ;;  %v2016_v38 = vunpack.c.l.bf16 %v2220_v10  ;;  %v341_v49 = vmul.f32 %v2596_v58, %v271_v4  ;;  %v212_v40 = vsub.f32 %v2009_v8, %v2578_v41 }
  0x5f   :  { %v2012_v31 = vunpack.c.l.bf16 %v2219_v24  ;;  %v2017_v53 = vunpack.c.h.bf16 %v2220_v10  ;;  %v344_v54 = vmul.f32 %v2596_v58, %v274_v12  ;;  %v342_v57 = vmul.f32 %v2596_v58, %v272_v14 }
  0x60   :  { %v276_v59 = vmul.f32 %v2590_v50, %v206_v15  ;;  %v210_v63 = vsub.f32 %v2005_v20, %v2578_v41  ;;  %v2935_v30 = vadd.f32 %v2614_v6, %v343_v35  ;;  %v347_v0 = vmul.f32 %v2596_v58, %v277_v36  ;;  %v2222_v15 = vld [vmem:[%s3498_s0 + $0xe8] sm:$0xff]  }
  0x61   :  { %v345_v1 = vmul.f32 %v2596_v58, %v275_v16  ;;  %v281_v4 = vmul.f32 %v2590_v50, %v211_v45  ;;  %v348_v8 = vmul.f32 %v2596_v58, %v278_v44  ;;  %v279_v10 = vmul.f32 %v2590_v50, %v209_v48 }
  0x62   :  { %v215_v12 = vsub.f32 %v2016_v38, %v2578_v41  ;;  %v2013_v14 = vunpack.c.h.bf16 %v2219_v24  ;;  %v2947_v20 = vadd.f32 %v2614_v6, %v341_v49  ;;  %v282_v35 = vmul.f32 %v2590_v50, %v212_v40  ;;  %v2221_v38 = vld [vmem:[%s3498_s0 + $0xe0] sm:$0xff]  }
  0x63   :  { %v213_v36 = vsub.f32 %v2012_v31, %v2578_v41  ;;  %v216_v45 = vsub.f32 %v2017_v53, %v2578_v41  ;;  %v2953_v16 = vadd.f32 %v2614_v6, %v344_v54  ;;  %v2956_v44 = vadd.f32 %v2614_v6, %v342_v57 }
  0x64   :  { %3512 = vst [vmem:[#allocation11_spill] sm:$0xff] %v2947_v20  ;;  %v346_v24 = vmul.f32 %v2596_v58, %v276_v59  ;;  %v280_v48 = vmul.f32 %v2590_v50, %v210_v63  ;;  %v2964_v40 = vadd.f32 %v2614_v6, %v347_v0  ;;  %v2967_v31 = vadd.f32 %v2614_v6, %v345_v1 }
  0x65   :  { %3513 = vst [vmem:[#allocation12_spill] sm:$0xff] %v2956_v44  ;;  %v351_v53 = vmul.f32 %v2596_v58, %v281_v4  ;;  %v2024_v54 = vunpack.c.l.bf16 %v2222_v15  ;;  %v2971_v57 = vadd.f32 %v2614_v6, %v348_v8  ;;  %v349_v59 = vmul.f32 %v2596_v58, %v279_v10 }
  0x66   :  { %3514 = vst [vmem:[#allocation13_spill] sm:$0xff] %v2964_v40  ;;  %3515 = vst [vmem:[#allocation14_spill] sm:$0xff] %v2967_v31  ;;  %v285_v63 = vmul.f32 %v2590_v50, %v215_v12  ;;  %v214_v5 = vsub.f32 %v2013_v14, %v2578_v41  ;;  %v352_v51 = vmul.f32 %v2596_v58, %v282_v35  ;;  %v2020_v31 = vunpack.c.l.bf16 %v2221_v38 }
  0x67   :  { %3516 = vst [vmem:[#allocation15_spill] sm:$0xff] %v2971_v57  ;;  %v283_v0 = vmul.f32 %v2590_v50, %v213_v36  ;;  %v286_v1 = vmul.f32 %v2590_v50, %v216_v45  ;;  %v2980_v44 = vadd.f32 %v2614_v6, %v346_v24  ;;  %v350_v8 = vmul.f32 %v2596_v58, %v280_v48 }
  0x68   :  { %v2984_v12 = vadd.f32 %v2614_v6, %v351_v53  ;;  %v219_v14 = vsub.f32 %v2024_v54, %v2578_v41  ;;  %v2025_v57 = vunpack.c.h.bf16 %v2222_v15  ;;  %v2021_v35 = vunpack.c.h.bf16 %v2221_v38 }
  0x69   :  { %v2988_v36 = vadd.f32 %v2614_v6, %v349_v59  ;;  %v355_v45 = vmul.f32 %v2596_v58, %v285_v63  ;;  %v353_v48 = vmul.f32 %v2596_v58, %v283_v0  ;;  %v356_v53 = vmul.f32 %v2596_v58, %v286_v1 }
  0x6a   :  { %v217_v54 = vsub.f32 %v2020_v31, %v2578_v41  ;;  %v218_v0 = vsub.f32 %v2021_v35, %v2578_v41 }
  0xc6   :  { %v2293_v49 = vpop.f32.mrf.mxu0 }
  0xc7   :  { %v1053_v40 = vmax.f32 %v2293_v49, 0.0  ;;  %v2993_v49 = vadd.f32 %v2614_v6, %v352_v51  ;;  %v289_v51 = vmul.f32 %v2590_v50, %v219_v14 }
  0xc8   :  { %v796_v17 = vpop.f32.mrf.mxu0 }
  0xc9   :  { %v1051_v4 = vmax.f32 %v796_v17, 0.0  ;;  %v284_v17 = vmul.f32 %v2590_v50, %v214_v5  ;;  %3517 = vst [vmem:[#allocation16_spill] sm:$0xff] %v2993_v49  ;;  %v1117_v15 = vadd.f32 %v1053_v40, %v2630_v19  ;;  %v3002_v5 = vadd.f32 %v2614_v6, %v350_v8 }
  0xca   :  { %v2294_v10 = vpop.f32.mrf.mxu0  ;;  %v220_v49 = vsub.f32 %v2025_v57, %v2578_v41  ;;  %v3009_v19 = vadd.f32 %v2614_v6, %v355_v45  ;;  %v3013_v40 = vadd.f32 %v2614_v6, %v353_v48  ;;  %v287_v57 = vmul.f32 %v2590_v50, %v217_v54 }
  0xcb   :  { %v1054_v20 = vmax.f32 %v2294_v10, 0.0  ;;  %v1115_v38 = vadd.f32 %v1051_v4, %v2634_v23  ;;  %3518 = vst [vmem:[#allocation17_spill] sm:$0xff] %v3002_v5  ;;  %v354_v23 = vmul.f32 %v2596_v58, %v284_v17  ;;  %v3016_v4 = vadd.f32 %v2614_v6, %v356_v53  ;;  %v2325_v5 = vpop.f32.mrf.mxu1 }
  0xcc   :  { %v799_v24 = vpop.f32.mrf.mxu0  ;;  %3519 = vst [vmem:[#allocation18_spill] sm:$0xff] %v3009_v19  ;;  %3520 = vst [vmem:[#allocation19_spill] sm:$0xff] %v3013_v40  ;;  %v290_v48 = vmul.f32 %v2590_v50, %v220_v49  ;;  %v1571_v53 = vmul.f32 %v1117_v15, %v1117_v15 }
  0xcd   :  { %v1118_v59 = vadd.f32 %v1054_v20, %v2642_v28  ;;  %v1052_v10 = vmax.f32 %v799_v24, 0.0  ;;  %3521 = vst [vmem:[#allocation20_spill] sm:$0xff] %v3016_v4  ;;  %v1569_v8 = vmul.f32 %v1115_v38, %v1115_v38  ;;  %v359_v24 = vmul.f32 %v2596_v58, %v289_v51 }
  0xce   :  { %v2297_v63 = vpop.f32.mrf.mxu0  ;;  %v357_v51 = vmul.f32 %v2596_v58, %v287_v57 }
  0xcf   :  { %v2042_v1 = vpack.c.bf16 %v1118_v59, %v1117_v15  ;;  %v1116_v31 = vadd.f32 %v1052_v10, %v2651_v33  ;;  %v1057_v28 = vmax.f32 %v2297_v63, 0.0  ;;  %v288_v10 = vmul.f32 %v2590_v50, %v218_v0 }
  0xd0   :  { %v812_v20 = vpop.f32.mrf.mxu0 }
  0xd1   :  { %2225 = vst [vmem:[%s3501_s6 + $0x8] sm:$0xff] %v2042_v1   ;;  %v2037_v33 = vpack.c.bf16 %v1116_v31, %v1115_v38  ;;  %v1499_v14 = vadd.f32 %v1116_v31, %v1115_v38  ;;  %v1570_v35 = vmul.f32 %v1116_v31, %v1116_v31  ;;  %v1055_v45 = vmax.f32 %v812_v20, 0.0 }
  0xd2   :  { %v2298_v17 = vpop.f32.mrf.mxu0  ;;  %v1572_v1 = vmul.f32 %v1118_v59, %v1118_v59  ;;  %v1121_v38 = vadd.f32 %v1057_v28, %v2659_v42  ;;  %v3038_v42 = vadd.f32 %v2614_v6, %v354_v23  ;;  %v358_v28 = vmul.f32 %v2596_v58, %v288_v10 }
  0xd3   :  { %2038 = vst [vmem:[%s3501_s6] sm:$0xff] %v2037_v33   ;;  %v1500_v54 = vadd.f32 %v1499_v14, %v1117_v15  ;;  %v1633_v63 = vadd.f32 %v1570_v35, %v1569_v8  ;;  %v1058_v40 = vmax.f32 %v2298_v17, 0.0  ;;  %v1119_v31 = vadd.f32 %v1055_v45, %v2664_v46  ;;  %v3035_v15 = vld [vmem:[%s3498_s0 + $0xf8] sm:$0xff]   ;;  %v924_v35 = vpop.f32.mrf.mxu1 }
  0xd4   :  { %v815_v20 = vpop.f32.mrf.mxu0  ;;  %v360_v46 = vmul.f32 %v2596_v58, %v290_v48  ;;  %v1085_v14 = vmax.f32 %v2325_v5, 0.0  ;;  %v3049_v23 = vadd.f32 %v2614_v6, %v359_v24  ;;  %v3052_v48 = vadd.f32 %v2614_v6, %v357_v51 }
  0xd5   :  { %v1634_v4 = vadd.f32 %v1633_v63, %v1571_v53  ;;  %v1501_v49 = vadd.f32 %v1500_v54, %v1118_v59  ;;  %v1122_v0 = vadd.f32 %v1058_v40, %v2667_v47  ;;  %v1056_v19 = vmax.f32 %v815_v20, 0.0  ;;  %v3045_v47 = vld [vmem:[%s3498_s0 + $0xf0] sm:$0xff]   ;;  %v2326_v5 = vpop.f32.mrf.mxu1 }
  0xd6   :  { %v1573_v8 = vmul.f32 %v1119_v31, %v1119_v31  ;;  %v2301_v33 = vpop.f32.mrf.mxu0  ;;  %3522 = vst [vmem:[#allocation21_spill] sm:$0xff] %v3052_v48  ;;  %v3060_v20 = vadd.f32 %v2614_v6, %v360_v46  ;;  %v1575_v51 = vmul.f32 %v1121_v38, %v1121_v38 }
  0xd7   :  { %v1502_v59 = vadd.f32 %v1501_v49, %v1119_v31  ;;  %v1635_v40 = vadd.f32 %v1634_v4, %v1572_v1  ;;  %v2052_v57 = vpack.c.bf16 %v1122_v0, %v1121_v38  ;;  %v1120_v45 = vadd.f32 %v1056_v19, %v2684_v62  ;;  %v927_v10 = vpop.f32.mrf.mxu1 }
  0xd8   :  { %v828_v17 = vpop.f32.mrf.mxu0  ;;  %v1061_v4 = vmax.f32 %v2301_v33, 0.0  ;;  %3523 = vst [vmem:[#allocation22_spill] sm:$0xff] %v3060_v20 }
  0xd9   :  { %v1636_v53 = vadd.f32 %v1635_v40, %v1573_v8  ;;  %2227 = vst [vmem:[%s3501_s6 + $0x18] sm:$0xff] %v2052_v57   ;;  %v1059_v54 = vmax.f32 %v828_v17, 0.0  ;;  %v2047_v62 = vpack.c.bf16 %v1120_v45, %v1119_v31  ;;  %v1503_v19 = vadd.f32 %v1502_v59, %v1120_v45 }
  0xda   :  { %v1574_v1 = vmul.f32 %v1120_v45, %v1120_v45  ;;  %v2302_v24 = vpop.f32.mrf.mxu0  ;;  %v3063_v8 = vadd.f32 %v1085_v14, %v2870_v7  ;;  %v1083_v40 = vmax.f32 %v924_v35, 0.0  ;;  %v1086_v45 = vmax.f32 %v2326_v5, 0.0  ;;  %v2329_v7 = vpop.f32.mrf.mxu1 }
  0xdb   :  { %v1062_v49 = vmax.f32 %v2302_v24, 0.0  ;;  %2226 = vst [vmem:[%s3501_s6 + $0x10] sm:$0xff] %v2047_v62   ;;  %v1504_v33 = vadd.f32 %v1503_v19, %v1121_v38  ;;  %v1123_v31 = vadd.f32 %v1059_v54, %v2707_v21  ;;  %v1576_v17 = vmul.f32 %v1122_v0, %v1122_v0 }
  0xdc   :  { %v1637_v57 = vadd.f32 %v1636_v53, %v1574_v1  ;;  %v831_v59 = vpop.f32.mrf.mxu0  ;;  %v1125_v46 = vadd.f32 %v1061_v4, %v2695_v11  ;;  %v3072_v20 = vadd.f32 %v1086_v45, %v2882_v22  ;;  %v1084_v62 = vmax.f32 %v927_v10, 0.0  ;;  %v3078_v54 = vpop.f32.mrf.mxu1 }
  0xdd   :  { %v1126_v24 = vadd.f32 %v1062_v49, %v2713_v26  ;;  %v1060_v63 = vmax.f32 %v831_v59, 0.0  ;;  %v1505_v35 = vadd.f32 %v1504_v33, %v1122_v0  ;;  %v3076_v21 = vadd.f32 %v1083_v40, %v2874_v13 }
  0xde   :  { %v1638_v14 = vadd.f32 %v1637_v57, %v1575_v51  ;;  %v2305_v48 = vpop.f32.mrf.mxu0  ;;  %v3081_v11 = vadd.f32 %v2614_v6, %v358_v28  ;;  %v1577_v4 = vmul.f32 %v1123_v31, %v1123_v31  ;;  %v2122_v22 = vpack.c.bf16 %v3072_v20, %v3063_v8  ;;  %v2330_v19 = vpop.f32.mrf.mxu1 }
  0xdf   :  { %v2062_v38 = vpack.c.bf16 %v1126_v24, %v1125_v46  ;;  %v1124_v53 = vadd.f32 %v1060_v63, %v2716_v27  ;;  %v1506_v26 = vadd.f32 %v1505_v35, %v1123_v31  ;;  %v1065_v13 = vmax.f32 %v2305_v48, 0.0 }
  0xe0   :  { %v1639_v5 = vadd.f32 %v1638_v14, %v1576_v17  ;;  %v844_v0 = vpop.f32.mrf.mxu0  ;;  %2241 = vst [vmem:[%s3501_s6 + $0x88] sm:$0xff] %v2122_v22   ;;  %v3092_v28 = vadd.f32 %v1084_v62, %v2891_v43  ;;  %v2033_v49 = vunpack.c.h.bf16 %v3035_v15  ;;  %v1579_v40 = vmul.f32 %v1125_v46, %v1125_v46  ;;  %v943_v57 = vpop.f32.mrf.mxu1 }
  0xe1   :  { %2229 = vst [vmem:[%s3501_s6 + $0x28] sm:$0xff] %v2062_v38   ;;  %v2057_v27 = vpack.c.bf16 %v1124_v53, %v1123_v31  ;;  %v1578_v10 = vmul.f32 %v1124_v53, %v1124_v53  ;;  %v1063_v63 = vmax.f32 %v844_v0, 0.0  ;;  %v1507_v51 = vadd.f32 %v1506_v26, %v1124_v53 }
  0xe2   :  { %v1640_v1 = vadd.f32 %v1639_v5, %v1577_v4  ;;  %v2306_v6 = vpop.f32.mrf.mxu0  ;;  %v1089_v33 = vmax.f32 %v2329_v7, 0.0  ;;  %v2029_v31 = vunpack.c.h.bf16 %v3045_v47  ;;  %v2117_v43 = vpack.c.bf16 %v3092_v28, %v3076_v21  ;;  %v3104_v53 = vpop.f32.mrf.mxu1 }
  0xe3   :  { %2228 = vst [vmem:[%s3501_s6 + $0x20] sm:$0xff] %v2057_v27   ;;  %v1066_v48 = vmax.f32 %v2306_v6, 0.0  ;;  %v1508_v59 = vadd.f32 %v1507_v51, %v1125_v46  ;;  %v1127_v17 = vadd.f32 %v1063_v63, %v2727_v34  ;;  %v1129_v35 = vadd.f32 %v1065_v13, %v2724_v32 }
  0xe4   :  { %v1641_v45 = vadd.f32 %v1640_v1, %v1578_v10  ;;  %v847_v14 = vpop.f32.mrf.mxu0  ;;  %v3524_v7 = vunpack.c.l.bf16 %v3035_v15  ;;  %v1580_v4 = vmul.f32 %v1126_v24, %v1126_v24  ;;  %2240 = vst [vmem:[%s3501_s6 + $0x80] sm:$0xff] %v2117_v43   ;;  %v1090_v34 = vmax.f32 %v2330_v19, 0.0  ;;  %v3114_v27 = vpop.f32.mrf.mxu1 }
  0xe5   :  { %v1130_v62 = vadd.f32 %v1066_v48, %v2731_v37  ;;  %v1064_v38 = vmax.f32 %v847_v14, 0.0  ;;  %v1509_v5 = vadd.f32 %v1508_v59, %v1126_v24  ;;  %v1087_v37 = vmax.f32 %v3078_v54, 0.0 }
  0xe6   :  { %v223_v26 = vsub.f32 %v3524_v7, %v2578_v41  ;;  %v1642_v46 = vadd.f32 %v1641_v45, %v1579_v40  ;;  %v2309_v0 = vpop.f32.mrf.mxu0  ;;  %v3525_v15 = vunpack.c.l.bf16 %v3045_v47  ;;  %v1581_v24 = vmul.f32 %v1127_v17, %v1127_v17  ;;  %v3127_v40 = vpop.f32.mrf.mxu1 }
  0xe7   :  { %v2072_v22 = vpack.c.bf16 %v1130_v62, %v1129_v35  ;;  %v1128_v32 = vadd.f32 %v1064_v38, %v2746_v52  ;;  %v1510_v13 = vadd.f32 %v1509_v5, %v1127_v17  ;;  %v3122_v51 = vadd.f32 %v1089_v33, %v2899_v60 }
  0xe8   :  { %v3119_v10 = vsub.f32 %v3525_v15, %v2578_v41  ;;  %v1643_v63 = vadd.f32 %v1642_v46, %v1580_v4  ;;  %v860_v1 = vpop.f32.mrf.mxu0  ;;  %v1069_v19 = vmax.f32 %v2309_v0, 0.0  ;;  %v3130_v45 = vadd.f32 %v1090_v34, %v2907_v55 }
  0xe9   :  { %2231 = vst [vmem:[%s3501_s6 + $0x38] sm:$0xff] %v2072_v22   ;;  %v2067_v52 = vpack.c.bf16 %v1128_v32, %v1127_v17  ;;  %v1582_v54 = vmul.f32 %v1128_v32, %v1128_v32  ;;  %v1067_v6 = vmax.f32 %v860_v1, 0.0  ;;  %v1511_v48 = vadd.f32 %v1510_v13, %v1128_v32  ;;  %v959_v17 = vpop.f32.mrf.mxu1 }
  0xea   :  { %v1644_v47 = vadd.f32 %v1643_v63, %v1581_v24  ;;  %v2310_v59 = vpop.f32.mrf.mxu0  ;;  %v1088_v14 = vmax.f32 %v943_v57, 0.0  ;;  %v1583_v43 = vmul.f32 %v1129_v35, %v1129_v35  ;;  %v3136_v33 = vadd.f32 %v1087_v37, %v2904_v2 }
  0xeb   :  { %2230 = vst [vmem:[%s3501_s6 + $0x30] sm:$0xff] %v2067_v52   ;;  %v1070_v60 = vmax.f32 %v2310_v59, 0.0  ;;  %v3139_v38 = vsub.f32 %v2033_v49, %v2578_v41  ;;  %v1512_v7 = vadd.f32 %v1511_v48, %v1129_v35  ;;  %v1131_v46 = vadd.f32 %v1067_v6, %v2754_v61  ;;  %v3149_v22 = vpop.f32.mrf.mxu1 }
  0xec   :  { %v1645_v4 = vadd.f32 %v1644_v47, %v1582_v54  ;;  %v863_v55 = vpop.f32.mrf.mxu0  ;;  %v2132_v57 = vpack.c.bf16 %v3130_v45, %v3122_v51  ;;  %v1133_v5 = vadd.f32 %v1069_v19, %v2750_v56  ;;  %v3147_v2 = vadd.f32 %v1088_v14, %v2924_v39 }
  0xed   :  { %v1134_v0 = vadd.f32 %v1070_v60, %v2762_v3  ;;  %v1068_v34 = vmax.f32 %v863_v55, 0.0  ;;  %v1584_v49 = vmul.f32 %v1130_v62, %v1130_v62  ;;  %v1513_v35 = vadd.f32 %v1512_v7, %v1130_v62  ;;  %v3159_v39 = vpop.f32.mrf.mxu1 }
  0xee   :  { %v1646_v32 = vadd.f32 %v1645_v4, %v1583_v43  ;;  %v2313_v37 = vpop.f32.mrf.mxu0  ;;  %2243 = vst [vmem:[%s3501_s6 + $0x98] sm:$0xff] %v2132_v57   ;;  %v3155_v61 = vsub.f32 %v2029_v31, %v2578_v41  ;;  %v1093_v15 = vmax.f32 %v3104_v53, 0.0  ;;  %v3162_v13 = vmul.f32 %v2590_v50, %v223_v26 }
  0xef   :  { %v2082_v56 = vpack.c.bf16 %v1134_v0, %v1133_v5  ;;  %v1132_v3 = vadd.f32 %v1068_v34, %v2771_v9  ;;  %v1514_v24 = vadd.f32 %v1513_v35, %v1131_v46  ;;  %v1585_v62 = vmul.f32 %v1131_v46, %v1131_v46  ;;  %v3169_v54 = vpop.f32.mrf.mxu1 }
  0xf0   :  { %v1647_v63 = vadd.f32 %v1646_v32, %v1584_v49  ;;  %v876_v1 = vpop.f32.mrf.mxu0  ;;  %v2127_v52 = vpack.c.bf16 %v3147_v2, %v3136_v33  ;;  %v1073_v31 = vmax.f32 %v2313_v37, 0.0  ;;  %v1587_v19 = vmul.f32 %v1133_v5, %v1133_v5  ;;  %v3526_v37 = vld [vmem:[#allocation11_spill] sm:$0xff] }
  0xf1   :  { %2233 = vst [vmem:[%s3501_s6 + $0x48] sm:$0xff] %v2082_v56   ;;  %v2077_v41 = vpack.c.bf16 %v1132_v3, %v1131_v46  ;;  %v1586_v9 = vmul.f32 %v1132_v3, %v1132_v3  ;;  %v1071_v53 = vmax.f32 %v876_v1, 0.0  ;;  %v1515_v26 = vadd.f32 %v1514_v24, %v1132_v3  ;;  %v3183_v60 = vpop.f32.mrf.mxu1 }
  0xf2   :  { %v1648_v50 = vadd.f32 %v1647_v63, %v1585_v62  ;;  %v2314_v6 = vpop.f32.mrf.mxu0  ;;  %2242 = vst [vmem:[%s3501_s6 + $0x90] sm:$0xff] %v2127_v52   ;;  %v1091_v47 = vmax.f32 %v3114_v27, 0.0  ;;  %v3180_v14 = vadd.f32 %v1093_v15, %v2935_v30  ;;  %v1094_v43 = vmax.f32 %v3127_v40, 0.0 }
  0xf3   :  { %2232 = vst [vmem:[%s3501_s6 + $0x40] sm:$0xff] %v2077_v41   ;;  %v1135_v48 = vadd.f32 %v1071_v53, %v2784_v25  ;;  %v1074_v59 = vmax.f32 %v2314_v6, 0.0  ;;  %v1588_v7 = vmul.f32 %v1134_v0, %v1134_v0  ;;  %v1516_v4 = vadd.f32 %v1515_v26, %v1133_v5  ;;  %v3190_v32 = vpop.f32.mrf.mxu1  ;;  %v3527_v5 = vld [vmem:[#allocation12_spill] sm:$0xff] }
  0xf4   :  { %v1649_v46 = vadd.f32 %v1648_v50, %v1586_v9  ;;  %v879_v55 = vpop.f32.mrf.mxu0  ;;  %v1092_v57 = vmax.f32 %v959_v17, 0.0  ;;  %v1137_v27 = vadd.f32 %v1073_v31, %v2779_v18  ;;  %v3188_v25 = vadd.f32 %v1094_v43, %v2953_v16  ;;  %v3528_v18 = vld [vmem:[#allocation2_spill] sm:$0xff] }
  0xf5   :  { %v1138_v34 = vadd.f32 %v1074_v59, %v2787_v29  ;;  %v1072_v49 = vmax.f32 %v879_v55, 0.0  ;;  %v1517_v35 = vadd.f32 %v1516_v4, %v1134_v0  ;;  %v3193_v56 = vadd.f32 %v1091_v47, %v3526_v37  ;;  %v3199_v29 = vpop.f32.mrf.mxu1  ;;  %v2393_v16 = vld [vmem:[%s3499_s2] ss:$0 sm:$0xff]  ;;  %v3531_v37 = vld [vmem:[#allocation3_spill] sm:$0xff] }
  0xf6   :  { %v1650_v30 = vadd.f32 %v1649_v46, %v1587_v19  ;;  %v2317_v40 = vpop.f32.mrf.mxu0  ;;  %v3196_v3 = vadd.f32 %v1092_v57, %v3527_v5  ;;  %v1589_v17 = vmul.f32 %v1135_v48, %v1135_v48  ;;  %v291_v62 = vmul.f32 %v2393_v16, %v3119_v10 }
  0xf7   :  { %v2092_v15 = vpack.c.bf16 %v1138_v34, %v1137_v27  ;;  %v1136_v24 = vadd.f32 %v1072_v49, %v3528_v18  ;;  %v1518_v0 = vadd.f32 %v1517_v35, %v1135_v48  ;;  %v2142_v52 = vpack.c.bf16 %v3188_v25, %v3180_v14  ;;  %v3211_v50 = vpop.f32.mrf.mxu1 }
  0xf8   :  { %v1651_v63 = vadd.f32 %v1650_v30, %v1588_v7  ;;  %v892_v1 = vpop.f32.mrf.mxu0  ;;  %v1097_v41 = vmax.f32 %v3149_v22, 0.0  ;;  %v1077_v53 = vmax.f32 %v2317_v40, 0.0  ;;  %v2137_v22 = vpack.c.bf16 %v3196_v3, %v3193_v56 }
  0xf9   :  { %2235 = vst [vmem:[%s3501_s6 + $0x58] sm:$0xff] %v2092_v15   ;;  %v2087_v9 = vpack.c.bf16 %v1136_v24, %v1135_v48  ;;  %v1590_v31 = vmul.f32 %v1136_v24, %v1136_v24  ;;  %v1075_v19 = vmax.f32 %v892_v1, 0.0  ;;  %v1519_v10 = vadd.f32 %v1518_v0, %v1136_v24  ;;  %2245 = vst [vmem:[%s3501_s6 + $0xa8] sm:$0xff] %v2142_v52   ;;  %v3529_v48 = vld [vmem:[#allocation4_spill] sm:$0xff]  ;;  %v3223_v4 = vpop.f32.mrf.mxu1 }
  0xfa   :  { %v1652_v26 = vadd.f32 %v1651_v63, %v1589_v17  ;;  %v2318_v6 = vpop.f32.mrf.mxu0  ;;  %v294_v47 = vmul.f32 %v2393_v16, %v3139_v38  ;;  %v1591_v59 = vmul.f32 %v1137_v27, %v1137_v27  ;;  %v3226_v46 = vmul.f32 %v2393_v16, %v3155_v61  ;;  %2244 = vst [vmem:[%s3501_s6 + $0xa0] sm:$0xff] %v2137_v22   ;;  %v3530_v38 = vld [vmem:[#allocation13_spill] sm:$0xff]  ;;  %v3533_v63 = vld [vmem:[#allocation15_spill] sm:$0xff] }
  0xfb   :  { %2234 = vst [vmem:[%s3501_s6 + $0x50] sm:$0xff] %v2087_v9   ;;  %v1139_v43 = vadd.f32 %v1075_v19, %v3529_v48  ;;  %v1078_v7 = vmax.f32 %v2318_v6, 0.0  ;;  %v1520_v55 = vadd.f32 %v1519_v10, %v1137_v27  ;;  %v3232_v30 = vadd.f32 %v1097_v41, %v3530_v38  ;;  %v3532_v17 = vld [vmem:[#allocation5_spill] sm:$0xff]  ;;  %v3237_v61 = vpop.f32.mrf.mxu1  ;;  %v3534_v41 = vld [vmem:[#allocation6_spill] sm:$0xff] }
  0xfc   :  { %v1653_v57 = vadd.f32 %v1652_v26, %v1590_v31  ;;  %v895_v49 = vpop.f32.mrf.mxu0  ;;  %v1098_v35 = vmax.f32 %v3169_v54, 0.0  ;;  %v1592_v40 = vmul.f32 %v1138_v34, %v1138_v34  ;;  %v1141_v5 = vadd.f32 %v1077_v53, %v3531_v37 }
  0xfd   :  { %v1142_v15 = vadd.f32 %v1078_v7, %v3532_v17  ;;  %v1076_v18 = vmax.f32 %v895_v49, 0.0  ;;  %v1521_v24 = vadd.f32 %v1520_v55, %v1138_v34  ;;  %v1095_v0 = vmax.f32 %v3159_v39, 0.0  ;;  %v3244_v54 = vpop.f32.mrf.mxu1 }
  0xfe   :  { %v1654_v27 = vadd.f32 %v1653_v57, %v1591_v59  ;;  %v2321_v16 = vpop.f32.mrf.mxu0  ;;  %v3241_v1 = vadd.f32 %v1098_v35, %v3533_v63  ;;  %v3248_v31 = vmul.f32 %v2596_v58, %v3162_v13  ;;  %v3251_v53 = vmul.f32 %v2596_v58, %v291_v62  ;;  %v3535_v57 = vld [vmem:[#allocation14_spill] sm:$0xff]  ;;  %v3537_v63 = vld [vmem:[#allocation7_spill] sm:$0xff] }
  0xff   :  { %v2102_v52 = vpack.c.bf16 %v1142_v15, %v1141_v5  ;;  %v1140_v9 = vadd.f32 %v1076_v18, %v3534_v41  ;;  %v1522_v19 = vadd.f32 %v1521_v24, %v1139_v43  ;;  %v1593_v34 = vmul.f32 %v1139_v43, %v1139_v43  ;;  %v3258_v13 = vpop.f32.mrf.mxu1  ;;  %v3538_v41 = vld [vmem:[#allocation9_spill] sm:$0xff] }
 0x100   :  { %v1655_v26 = vadd.f32 %v1654_v27, %v1592_v40  ;;  %v908_v10 = vpop.f32.mrf.mxu0  ;;  %v2152_v39 = vpack.c.bf16 %v3241_v1, %v3232_v30  ;;  %v1081_v59 = vmax.f32 %v2321_v16, 0.0  ;;  %v3261_v49 = vadd.f32 %v1095_v0, %v3535_v57 }
 0x101   :  { %2237 = vst [vmem:[%s3501_s6 + $0x68] sm:$0xff] %v2102_v52   ;;  %v2097_v6 = vpack.c.bf16 %v1140_v9, %v1139_v43  ;;  %v1594_v22 = vmul.f32 %v1140_v9, %v1140_v9  ;;  %v1079_v48 = vmax.f32 %v908_v10, 0.0  ;;  %v1523_v62 = vadd.f32 %v1522_v19, %v1140_v9  ;;  %v3536_v43 = vld [vmem:[#allocation8_spill] sm:$0xff]  ;;  %v3272_v18 = vpop.f32.mrf.mxu1 }
 0x102   :  { %v1656_v7 = vadd.f32 %v1655_v26, %v1593_v34  ;;  %v2322_v55 = vpop.f32.mrf.mxu0  ;;  %2247 = vst [vmem:[%s3501_s6 + $0xb8] sm:$0xff] %v2152_v39   ;;  %v1096_v38 = vmax.f32 %v3183_v60, 0.0  ;;  %v1595_v35 = vmul.f32 %v1141_v5, %v1141_v5  ;;  %v1101_v17 = vmax.f32 %v3190_v32, 0.0 }
 0x103   :  { %2236 = vst [vmem:[%s3501_s6 + $0x60] sm:$0xff] %v2097_v6   ;;  %v1143_v40 = vadd.f32 %v1079_v48, %v3536_v43  ;;  %v1082_v37 = vmax.f32 %v2322_v55, 0.0  ;;  %v1524_v27 = vadd.f32 %v1523_v62, %v1141_v5  ;;  %v1099_v60 = vmax.f32 %v3199_v29, 0.0  ;;  %v2349_v34 = vpop.f32.mrf.mxu1 }
 0x104   :  { %v1657_v24 = vadd.f32 %v1656_v7, %v1594_v22  ;;  %v911_v16 = vpop.f32.mrf.mxu0  ;;  %v3275_v0 = vadd.f32 %v1096_v38, %v2980_v44  ;;  %v1145_v52 = vadd.f32 %v1081_v59, %v3537_v63  ;;  %v3281_v26 = vmul.f32 %v2596_v58, %v294_v47  ;;  %v3539_v22 = vld [vmem:[#allocation10_spill] sm:$0xff] }
 0x105   :  { %v1146_v9 = vadd.f32 %v1082_v37, %v3538_v41  ;;  %v1080_v19 = vmax.f32 %v911_v16, 0.0  ;;  %v1596_v32 = vmul.f32 %v1142_v15, %v1142_v15  ;;  %v1525_v39 = vadd.f32 %v1524_v27, %v1142_v15  ;;  %v1020_v59 = vpop.f32.mrf.mxu1 }
 0x106   :  { %v1658_v10 = vadd.f32 %v1657_v24, %v1595_v35  ;;  %v2147_v5 = vpack.c.bf16 %v3275_v0, %v3261_v49  ;;  %v1597_v6 = vmul.f32 %v1143_v40, %v1143_v40  ;;  %v3287_v29 = vadd.f32 %v1101_v17, %v2984_v12  ;;  %v3540_v17 = vld [vmem:[#allocation16_spill] sm:$0xff] }
 0x107   :  { %v2112_v44 = vpack.c.bf16 %v1146_v9, %v1145_v52  ;;  %v1144_v48 = vadd.f32 %v1080_v19, %v3539_v22  ;;  %v1526_v7 = vadd.f32 %v1525_v39, %v1143_v40  ;;  %v3293_v47 = vadd.f32 %v1099_v60, %v2988_v36  ;;  %v2350_v35 = vpop.f32.mrf.mxu1  ;;  %v3542_v19 = vld [vmem:[#allocation18_spill] sm:$0xff] }
 0x108   :  { %v1659_v62 = vadd.f32 %v1658_v10, %v1596_v32  ;;  %2246 = vst [vmem:[%s3501_s6 + $0xb0] sm:$0xff] %v2147_v5   ;;  %v1102_v15 = vmax.f32 %v3211_v50, 0.0  ;;  %v1100_v12 = vmax.f32 %v3223_v4, 0.0  ;;  %v1105_v38 = vmax.f32 %v3237_v61, 0.0  ;;  %v2394_v10 = vld [vmem:[%s3500_s3] ss:$0 sm:$0xff] }
 0x109   :  { %2239 = vst [vmem:[%s3501_s6 + $0x78] sm:$0xff] %v2112_v44   ;;  %v2107_v55 = vpack.c.bf16 %v1144_v48, %v1143_v40  ;;  %v1598_v57 = vmul.f32 %v1144_v48, %v1144_v48  ;;  %v1527_v37 = vadd.f32 %v1526_v7, %v1144_v48  ;;  %v362_v36 = vmul.f32 %v2596_v58, %v3226_v46  ;;  %v3541_v40 = vld [vmem:[#allocation17_spill] sm:$0xff]  ;;  %v1023_v16 = vpop.f32.mrf.mxu1  ;;  %v3544_v48 = vld [vmem:[#allocation19_spill] sm:$0xff] }
 0x10a   :  { %v1660_v43 = vadd.f32 %v1659_v62, %v1597_v6  ;;  %v3302_v27 = vadd.f32 %v1102_v15, %v3540_v17  ;;  %v1599_v50 = vmul.f32 %v1145_v52, %v1145_v52  ;;  %v3310_v24 = vadd.f32 %v1100_v12, %v3541_v40  ;;  %v3543_v6 = vld [vmem:[#allocation20_spill] sm:$0xff]  ;;  %v3546_v40 = vld [vmem:[#allocation21_spill] sm:$0xff] }
 0x10b   :  { %2238 = vst [vmem:[%s3501_s6 + $0x70] sm:$0xff] %v2107_v55   ;;  %v1103_v4 = vmax.f32 %v3244_v54, 0.0  ;;  %v1106_v61 = vmax.f32 %v3258_v13, 0.0  ;;  %v1528_v60 = vadd.f32 %v1527_v37, %v1145_v52  ;;  %v3317_v58 = vadd.f32 %v1105_v38, %v3542_v19  ;;  %v2353_v13 = vpop.f32.mrf.mxu1 }
 0x10c   :  { %v1661_v63 = vadd.f32 %v1660_v43, %v1598_v57  ;;  %v2162_v41 = vpack.c.bf16 %v3302_v27, %v3287_v29  ;;  %v1600_v46 = vmul.f32 %v1146_v9, %v1146_v9  ;;  %v2157_v32 = vpack.c.bf16 %v3310_v24, %v3293_v47 }
 0x10d   :  { %v434_v54 = vadd.f32 %v2394_v10, %v3248_v31  ;;  %v432_v52 = vadd.f32 %v2394_v10, %v3251_v53  ;;  %v1529_v39 = vadd.f32 %v1528_v60, %v1146_v9  ;;  %v3330_v44 = vadd.f32 %v1106_v61, %v3543_v6  ;;  %v1036_v62 = vpop.f32.mrf.mxu1 }
 0x10e   :  { %v1662_v5 = vadd.f32 %v1661_v63, %v1599_v50  ;;  %2249 = vst [vmem:[%s3501_s6 + $0xc8] sm:$0xff] %v2162_v41   ;;  %v1104_v22 = vmax.f32 %v3272_v18, 0.0  ;;  %2248 = vst [vmem:[%s3501_s6 + $0xc0] sm:$0xff] %v2157_v32   ;;  %v3337_v31 = vadd.f32 %v1103_v4, %v3544_v48  ;;  %v1109_v7 = vmax.f32 %v2349_v34, 0.0 }
 0x10f   :  { %v1107_v53 = vmax.f32 %v1020_v59, 0.0  ;;  %v1110_v9 = vmax.f32 %v2350_v35, 0.0  ;;  %v1601_v15 = vmul.f32 %v3076_v21, %v3076_v21  ;;  %v1530_v57 = vadd.f32 %v1529_v39, %v3076_v21  ;;  %v3545_v59 = vld [vmem:[#allocation22_spill] sm:$0xff]  ;;  %v2354_v43 = vpop.f32.mrf.mxu1 }
 0x110   :  { %v1663_v55 = vadd.f32 %v1662_v5, %v1600_v46  ;;  %v2172_v18 = vpack.c.bf16 %v3330_v44, %v3317_v58  ;;  %v1602_v12 = vmul.f32 %v3092_v28, %v3092_v28  ;;  %v3347_v38 = vadd.f32 %v1104_v22, %v3038_v42 }
 0x111   :  { %v3350_v34 = vadd.f32 %v1109_v7, %v3049_v23  ;;  %v3353_v35 = vadd.f32 %v1110_v9, %v3545_v59  ;;  %v1531_v37 = vadd.f32 %v1530_v57, %v3092_v28  ;;  %v1108_v21 = vmax.f32 %v1023_v16, 0.0  ;;  %v1039_v60 = vpop.f32.mrf.mxu1 }
 0x112   :  { %v1664_v17 = vadd.f32 %v1663_v55, %v1601_v15  ;;  %2251 = vst [vmem:[%s3501_s6 + $0xd8] sm:$0xff] %v2172_v18   ;;  %v1113_v50 = vmax.f32 %v2353_v13, 0.0  ;;  %v2167_v42 = vpack.c.bf16 %v3347_v38, %v3337_v31  ;;  %v3362_v4 = vadd.f32 %v1107_v53, %v3546_v40 }
 0x113   :  { %v435_v23 = vadd.f32 %v2394_v10, %v3281_v26  ;;  %v433_v61 = vadd.f32 %v2394_v10, %v362_v36  ;;  %v1603_v28 = vmul.f32 %v3063_v8, %v3063_v8  ;;  %v1532_v63 = vadd.f32 %v1531_v37, %v3063_v8 }
 0x114   :  { %v1665_v41 = vadd.f32 %v1664_v17, %v1602_v12  ;;  %v2182_v16 = vpack.c.bf16 %v3353_v35, %v3350_v34  ;;  %v1604_v19 = vmul.f32 %v3072_v20, %v3072_v20  ;;  %2250 = vst [vmem:[%s3501_s6 + $0xd0] sm:$0xff] %v2167_v42   ;;  %v3376_v26 = vadd.f32 %v1108_v21, %v3081_v11 }
 0x115   :  { %v1111_v36 = vmax.f32 %v1036_v62, 0.0  ;;  %v1114_v46 = vmax.f32 %v2354_v43, 0.0  ;;  %v1533_v10 = vadd.f32 %v1532_v63, %v3072_v20  ;;  %v3382_v8 = vadd.f32 %v1113_v50, %v434_v54 }
 0x116   :  { %v1666_v32 = vadd.f32 %v1665_v41, %v1603_v28  ;;  %2253 = vst [vmem:[%s3501_s6 + $0xe8] sm:$0xff] %v2182_v16   ;;  %v1112_v13 = vmax.f32 %v1039_v60, 0.0  ;;  %v1605_v39 = vmul.f32 %v3136_v33, %v3136_v33  ;;  %v2177_v5 = vpack.c.bf16 %v3376_v26, %v3362_v4 }
 0x117   :  { %v3388_v11 = vadd.f32 %v1111_v36, %v432_v52  ;;  %v1534_v6 = vadd.f32 %v1533_v10, %v3136_v33  ;;  %v3391_v48 = vadd.f32 %v1114_v46, %v435_v23  ;;  %v1606_v53 = vmul.f32 %v3147_v2, %v3147_v2 }
 0x118   :  { %v1667_v22 = vadd.f32 %v1666_v32, %v1604_v19  ;;  %v3393_v20 = vadd.f32 %v1112_v13, %v433_v61  ;;  %2252 = vst [vmem:[%s3501_s6 + $0xe0] sm:$0xff] %v2177_v5   ;;  %v1607_v9 = vmul.f32 %v3122_v51, %v3122_v51  ;;  %v1610_v37 = vmul.f32 %v3196_v3, %v3196_v3 }
 0x119   :  { %v1535_v7 = vadd.f32 %v1534_v6, %v3147_v2  ;;  %v2192_v52 = vpack.c.bf16 %v3391_v48, %v3382_v8  ;;  %v1608_v2 = vmul.f32 %v3130_v45, %v3130_v45  ;;  %v1611_v17 = vmul.f32 %v3180_v14, %v3180_v14 }
 0x11a   :  { %v1668_v54 = vadd.f32 %v1667_v22, %v1605_v39  ;;  %v2187_v33 = vpack.c.bf16 %v3393_v20, %v3388_v11  ;;  %v1613_v23 = vmul.f32 %v3261_v49, %v3261_v49  ;;  %v1614_v28 = vmul.f32 %v3275_v0, %v3275_v0 }
 0x11b   :  { %v1536_v62 = vadd.f32 %v1535_v7, %v3122_v51  ;;  %2255 = vst [vmem:[%s3501_s6 + $0xf8] sm:$0xff] %v2192_v52   ;;  %v1609_v51 = vmul.f32 %v3193_v56, %v3193_v56  ;;  %v1617_v36 = vmul.f32 %v3293_v47, %v3293_v47  ;;  %v1618_v10 = vmul.f32 %v3310_v24, %v3310_v24 }
 0x11c   :  { %v1669_v15 = vadd.f32 %v1668_v54, %v1606_v53  ;;  %2254 = vst [vmem:[%s3501_s6 + $0xf0] sm:$0xff] %v2187_v33   ;;  %v1621_v22 = vmul.f32 %v3337_v31, %v3337_v31  ;;  %v1622_v53 = vmul.f32 %v3347_v38, %v3347_v38 }
 0x11d   :  { %v1537_v57 = vadd.f32 %v1536_v62, %v3130_v45  ;;  %v1612_v45 = vmul.f32 %v3188_v25, %v3188_v25 }
 0x11e   :  { %v1670_v55 = vadd.f32 %v1669_v15, %v1607_v9  ;;  %v1625_v15 = vmul.f32 %v3362_v4, %v3362_v4 }
 0x11f   :  { %v1538_v18 = vadd.f32 %v1537_v57, %v3193_v56  ;;  %v1626_v57 = vmul.f32 %v3376_v26, %v3376_v26 }
 0x120   :  { %v1671_v12 = vadd.f32 %v1670_v55, %v1608_v2 }
 0x121   :  { %v1539_v43 = vadd.f32 %v1538_v18, %v3196_v3 }
 0x122   :  { %v1672_v59 = vadd.f32 %v1671_v12, %v1609_v51 }
 0x123   :  { %v1540_v21 = vadd.f32 %v1539_v43, %v3180_v14  ;;  %v1615_v14 = vmul.f32 %v3232_v30, %v3232_v30  ;;  %v1629_v43 = vmul.f32 %v3388_v11, %v3388_v11 }
 0x124   :  { %v1673_v50 = vadd.f32 %v1672_v59, %v1610_v37 }
 0x125   :  { %v1541_v40 = vadd.f32 %v1540_v21, %v3188_v25  ;;  %v1616_v25 = vmul.f32 %v3241_v1, %v3241_v1  ;;  %v1630_v21 = vmul.f32 %v3393_v20, %v3393_v20 }
 0x126   :  { %v1674_v42 = vadd.f32 %v1673_v50, %v1611_v17 }
 0x127   :  { %v1542_v56 = vadd.f32 %v1541_v40, %v3261_v49 }
 0x128   :  { %v1675_v61 = vadd.f32 %v1674_v42, %v1612_v45 }
 0x129   :  { %v1543_v3 = vadd.f32 %v1542_v56, %v3275_v0 }
 0x12a   :  { %v1676_v60 = vadd.f32 %v1675_v61, %v1613_v23 }
 0x12b   :  { %v1544_v63 = vadd.f32 %v1543_v3, %v3232_v30  ;;  %v1619_v30 = vmul.f32 %v3287_v29, %v3287_v29 }
 0x12c   :  { %v1677_v41 = vadd.f32 %v1676_v60, %v1614_v28 }
 0x12d   :  { %v1545_v19 = vadd.f32 %v1544_v63, %v3241_v1  ;;  %v1620_v1 = vmul.f32 %v3302_v27, %v3302_v27 }
 0x12e   :  { %v1678_v16 = vadd.f32 %v1677_v41, %v1615_v14 }
 0x12f   :  { %v1546_v49 = vadd.f32 %v1545_v19, %v3293_v47 }
 0x130   :  { %v1679_v46 = vadd.f32 %v1678_v16, %v1616_v25 }
 0x131   :  { %v1547_v0 = vadd.f32 %v1546_v49, %v3310_v24 }
 0x132   :  { %v1680_v32 = vadd.f32 %v1679_v46, %v1617_v36 }
 0x133   :  { %v1548_v13 = vadd.f32 %v1547_v0, %v3287_v29  ;;  %v1623_v29 = vmul.f32 %v3317_v58, %v3317_v58 }
 0x134   :  { %v1681_v39 = vadd.f32 %v1680_v32, %v1618_v10 }
 0x135   :  { %v1549_v6 = vadd.f32 %v1548_v13, %v3302_v27  ;;  %v1624_v27 = vmul.f32 %v3330_v44, %v3330_v44 }
 0x136   :  { %v1682_v5 = vadd.f32 %v1681_v39, %v1619_v30 }
 0x137   :  { %v1550_v47 = vadd.f32 %v1549_v6, %v3337_v31 }
 0x138   :  { %v1683_v54 = vadd.f32 %v1682_v5, %v1620_v1 }
 0x139   :  { %v1551_v24 = vadd.f32 %v1550_v47, %v3347_v38 }
 0x13a   :  { %v1684_v7 = vadd.f32 %v1683_v54, %v1621_v22 }
 0x13b   :  { %v1552_v52 = vadd.f32 %v1551_v24, %v3317_v58  ;;  %v1627_v58 = vmul.f32 %v3350_v34, %v3350_v34 }
 0x13c   :  { %v1685_v33 = vadd.f32 %v1684_v7, %v1622_v53 }
 0x13d   :  { %v1553_v62 = vadd.f32 %v1552_v52, %v3330_v44  ;;  %v1628_v44 = vmul.f32 %v3353_v35, %v3353_v35 }
 0x13e   :  { %v1686_v9 = vadd.f32 %v1685_v33, %v1623_v29 }
 0x13f   :  { %v1554_v31 = vadd.f32 %v1553_v62, %v3362_v4 }
 0x140   :  { %v1687_v2 = vadd.f32 %v1686_v9, %v1624_v27 }
 0x141   :  { %v1555_v38 = vadd.f32 %v1554_v31, %v3376_v26 }
 0x142   :  { %v1688_v55 = vadd.f32 %v1687_v2, %v1625_v15 }
 0x143   :  { %v1556_v18 = vadd.f32 %v1555_v38, %v3350_v34  ;;  %v1631_v34 = vmul.f32 %v3382_v8, %v3382_v8 }
 0x144   :  { %v1689_v51 = vadd.f32 %v1688_v55, %v1626_v57 }
 0x145   :  { %v1557_v59 = vadd.f32 %v1556_v18, %v3353_v35  ;;  %v1632_v35 = vmul.f32 %v3391_v48, %v3391_v48 }
 0x146   :  { %v1690_v12 = vadd.f32 %v1689_v51, %v1627_v58 }
 0x147   :  { %v1558_v4 = vadd.f32 %v1557_v59, %v3388_v11 }
 0x148   :  { %v1691_v37 = vadd.f32 %v1690_v12, %v1628_v44 }
 0x149   :  { %v1559_v26 = vadd.f32 %v1558_v4, %v3393_v20 }
 0x14a   :  { %v1692_v17 = vadd.f32 %v1691_v37, %v1629_v43 }
 0x14b   :  { %v1560_v50 = vadd.f32 %v1559_v26, %v3382_v8 }
 0x14c   :  { %v1693_v45 = vadd.f32 %v1692_v17, %v1630_v21 }
 0x14d   :  { %v1561_v42 = vadd.f32 %v1560_v50, %v3391_v48 }
 0x14e   :  { %v1694_v40 = vadd.f32 %v1693_v45, %v1631_v34 }
 0x14f   :  { %v1562_v11 = vrot.slane %v1561_v42, 4 }
 0x150   :  { %v1695_v56 = vadd.f32 %v1694_v40, %v1632_v35 }
 0x151   :  { %v1563_v23 = vadd.f32 %v1562_v11, %v1561_v42 }
 0x152   :  { %v1696_v61 = vrot.slane %v1695_v56, 4 }
 0x153   :  { %v1564_v60 = vrot.slane %v1563_v23, 2 }
 0x154   :  { %v1697_v3 = vadd.f32 %v1696_v61, %v1695_v56 }
 0x155   :  { %v1565_v28 = vadd.f32 %v1564_v60, %v1563_v23 }
 0x156   :  { %v1698_v20 = vrot.slane %v1697_v3, 2 }
 0x157   :  { %v1566_v14 = vrot.slane %v1565_v28, 1 }
 0x158   :  { %v1699_v63 = vadd.f32 %v1698_v20, %v1697_v3 }
 0x159   :  { %v1567_v41 = vadd.f32 %v1566_v14, %v1565_v28 }
 0x15a   :  { %v1700_v25 = vrot.slane %v1699_v63, 1 }
 0x15b   :  { %1568 = vst [vmem:[%s3502_s7] sm:$0x1] %v1567_v41 }
 0x15c   :  { %v1701_v8 = vadd.f32 %v1700_v25, %v1699_v63 }
 0x15e   :  { %1702 = vst [vmem:[%s3502_s7 + $0x1] sm:$0x1] %v1701_v8 }

// kernel: residual_block_forward.5
= control target key start
LH: loop header
LB: loop body
LE: loop exit
PB: predicated region body
PF: predicated region fallthrough
CT: control target
= control target key end

     0   :  { %s8255_s21 = smov 0   ;;  %s11054_s0 = inlined_call_operand.vmem [shape: bf16[512,128], index: 0, kind: input, shape index: {}]   ;;  %s11055_s1 = inlined_call_operand.vmem [shape: f32[2,128], index: 1, kind: input, shape index: {}]   ;;  %s11056_s2 = inlined_call_operand.vmem [shape: f32[1,128], index: 2, kind: input, shape index: {}]   ;;  %s11057_s3 = inlined_call_operand.vmem [shape: f32[1,128], index: 3, kind: input, shape index: {}]   ;;  %s11058_s4 = inlined_call_operand.vmem [shape: bf16[5,256,128], index: 4, kind: input, shape index: {}]   ;;  %s11059_s5 = inlined_call_operand.vmem [shape: bf16[512,128], index: 5, kind: output, shape index: {0}]   ;;  %s11060_s6 = inlined_call_operand.vmem [shape: f32[2,2,128], index: 6, kind: output, shape index: {1}]  }
   0x1 LB: > { %s8261_s22 = sadd.s32 4294967295, %s8217_s21   ;;  %p6399_p0 = scmp.ge.s32.totalorder %s8217_s21, 1  ;;  %s8217_s21 = sphi %s8255_s21, %s17_s21  }
   0x2   : > { %p216_p1 = scmp.lt.s32.totalorder %s8217_s21, 3 }
   0x4   : > { %p217_p2 = pnand %p6399_p0, %p216_p1 }
   0x6   : > { %220 = sbr.rel (%p217_p2) target bundleno = 704 (0x2c0), region = 40 }
   0xb   : > { %v7969_v0 = vld [vmem:[%s11058_s4 + $0x78] sm:$0xff]   ;;  %v8219_v2 = vmov 0   ;;  %v7973_v5 = vld [vmem:[%s11058_s4 + $0x70] sm:$0xff]   ;;  %v7977_v9 = vld [vmem:[%s11058_s4 + $0x68] sm:$0xff]   ;;  %s6400_s23 = sshll.u32 %s8261_s22, 5  ;;  %vm274_vm0 = vcmask 1040384   ;;  %v530_v41 = vlaneseq }
   0xc   : > { %v7970_v1 = vld [vmem:[%s11058_s4 + $0x38] sm:$0xff]   ;;  %267 = vst [vmem:[#allocation2] sm:$0xf] %v8219_v2  ;;  %268 = vst [vmem:[#allocation2 + $0x4] sm:$0xf] %v8219_v2  ;;  %7384 = vmatprep.subr.bf16.mxu1 %v7969_v0  ;;  %v7974_v6 = vld [vmem:[%s11058_s4 + $0x30] sm:$0xff]  }
   0xd   : > { %269 = vst [vmem:[#allocation2 + $0x8] sm:$0x1] %v8219_v2  ;;  %271 = vst [vmem:[#allocation2 + $0xcc] sm:$0xf] %v8219_v2  ;;  %v7971_v3 = vld [vmem:[%s11058_s4 + $0xf8] sm:$0xff]   ;;  %7385 = vmatpush3.bf16.msra.mxu1 %v7970_v1  ;;  %v7975_v7 = vld [vmem:[%s11058_s4 + $0xf0] sm:$0xff]  }
   0xe   : > { %272 = vst [vmem:[#allocation2 + $0xd0] sm:$0xf] %v8219_v2  ;;  %273 = vst [vmem:[#allocation2 + $0xd4] sm:$0x1] %v8219_v2  ;;  %v7972_v4 = vld [vmem:[%s11058_s4 + $0xb8] sm:$0xff]   ;;  %7320 = vmatprep.subr.bf16.mxu0 %v7971_v3  ;;  %7386 = vmatprep.subr.bf16.mxu1 %v7973_v5  ;;  %v7976_v8 = vld [vmem:[%s11058_s4 + $0xb0] sm:$0xff]  }
   0xf   : > { %7321 = vmatpush3.bf16.msra.mxu0 %v7972_v4  ;;  %v7978_v10 = vld [vmem:[%s11058_s4 + $0x28] sm:$0xff]   ;;  %v7981_v13 = vld [vmem:[%s11058_s4 + $0x60] sm:$0xff]   ;;  %v7985_v17 = vld [vmem:[%s11058_s4 + $0x58] sm:$0xff]   ;;  %p251_p3 = scmp.lt.s32.totalorder %s6400_s23, 63  ;;  %vm275_vm1 = vsmask.f32 256 }
  0x10   : > { %7322 = vmatprep.subr.bf16.mxu0 %v7975_v7  ;;  %v7979_v11 = vld [vmem:[%s11058_s4 + $0xe8] sm:$0xff]   ;;  %v7982_v14 = vld [vmem:[%s11058_s4 + $0x20] sm:$0xff]   ;;  %v7986_v18 = vld [vmem:[%s11058_s4 + $0x18] sm:$0xff]   ;;  %vm331_vm2 = vsmask.f32 7938  ;;  %v11068_v33 = vmov 0 }
  0x11   : > { %7387 = vmatpush3.bf16.msra.mxu1 %v7974_v6  ;;  %v7980_v12 = vld [vmem:[%s11058_s4 + $0xa8] sm:$0xff]   ;;  %v7983_v15 = vld [vmem:[%s11058_s4 + $0xe0] sm:$0xff]   ;;  %v7987_v19 = vld [vmem:[%s11058_s4 + $0xd8] sm:$0xff]   ;;  %s11190_s23 = smov (!%p251_p3, %s6400_s23), 63  ;;  %v11071_v37 = vmov 0  ;;  %v8399_v51 = vshrl.u32 %v530_v41, 7 }
  0x12   : > { %7388 = vmatprep.subr.bf16.mxu1 %v7977_v9  ;;  %v7984_v16 = vld [vmem:[%s11058_s4 + $0xa0] sm:$0xff]   ;;  %v7988_v20 = vld [vmem:[%s11058_s4 + $0x98] sm:$0xff]   ;;  %v7989_v21 = vld [vmem:[%s11058_s4 + $0x50] sm:$0xff]   ;;  %s6401_s18 = sshll.u32 %s11190_s23, 2  ;;  %vm1162_vm5 = vsmask.f32 3328 }
  0x13   : > { %7323 = vmatpush3.bf16.msra.mxu0 %v7976_v8  ;;  %v7990_v22 = vld [vmem:[%s11058_s4 + $0x10] sm:$0xff]   ;;  %v7993_v25 = vld [vmem:[%s11058_s4 + $0x48] sm:$0xff]   ;;  %v7997_v29 = vld [vmem:[%s11058_s4 + $0x40] sm:$0xff]   ;;  %s8390_s26 = scalar_lea.vmem %s11054_s0, %s6401_s18  ;;  %vm1493_vm6 = vcmask 1042432   ;;  %vm1163_vm7 = vsmask.f32 7440 }
  0x14   : > { %7324 = vmatprep.subr.bf16.mxu0 %v7979_v11  ;;  %v7991_v23 = vld [vmem:[%s11058_s4 + $0xd0] sm:$0xff]   ;;  %v7994_v26 = vld [vmem:[%s11058_s4 + $0x8] sm:$0xff]   ;;  %v7998_v30 = vld [vmem:[%s11058_s4] sm:$0xff]   ;;  %vm1494_vm8 = vcmask 1046532   ;;  %vm701_vm11 = vsmask.f32 4368 }
  0x15   : > { %7389 = vmatpush3.bf16.msra.mxu1 %v7978_v10  ;;  %v7992_v24 = vld [vmem:[%s11058_s4 + $0x90] sm:$0xff]   ;;  %v7995_v27 = vld [vmem:[%s11058_s4 + $0xc8] sm:$0xff]   ;;  %v7999_v31 = vld [vmem:[%s11058_s4 + $0xc0] sm:$0xff]   ;;  %vm1024_vm12 = vcmask 1043456   ;;  %p262_p4 = scmp.lt.s32.totalorder %s8261_s22, 1 }
  0x16   : > { %7390 = vmatprep.subr.bf16.mxu1 %v7981_v13  ;;  %v7996_v28 = vld [vmem:[%s11058_s4 + $0x88] sm:$0xff]   ;;  %v277_v32 = vld [vmem:[#allocation2] sm:$0x1]  ;;  %vm8362_vm3 = vmand %vm274_vm0, %vm275_vm1 }
  0x17   : > { %7325 = vmatpush3.bf16.msra.mxu0 %v7980_v12  ;;  %v11069_v33 = vsel %vm8362_vm3, 4294967295, %v11068_v33  ;;  %v333_v34 = vld [vmem:[#allocation2 + $0x8] sm:$0x1]  ;;  %v8366_v35 = vld [vmem:[#allocation2 + $0x4] sm:$0xf]  ;;  %v278_v36 = vsel %vm8362_vm3, 0, %v277_v32  ;;  %vm8372_vm4 = vmand %vm274_vm0, %vm331_vm2 }
  0x18   : > { %7326 = vmatprep.subr.bf16.mxu0 %v7983_v15  ;;  %11070 = vst [vmem:[#allocation3_spill] sm:$0xff] %v11069_v33  ;;  %v11072_v37 = vsel %vm8372_vm4, 4294967295, %v11071_v37  ;;  %v1175_v38 = vshll.u32 %v8366_v35, 16  ;;  %v1179_v39 = vshrl.u32 %v8366_v35, 16  ;;  %v8000_v40 = vld [vmem:[%s11058_s4 + $0x80] sm:$0xff]   ;;  %v334_v42 = vsel %vm8372_vm4, 0, %v333_v34  ;;  %vm8417_vm9 = vmor %vm1162_vm5, %vm1163_vm7 }
  0x19   : > { %7391 = vmatpush3.bf16.msra.mxu1 %v7982_v14  ;;  %11073 = vst [vmem:[#allocation4_spill] sm:$0xff] %v11072_v37  ;;  %279 = vst [vmem:[#allocation2] sm:$0x1] %v278_v36  ;;  %v280_v45 = vld [vmem:[#allocation2 + $0xc] sm:$0x1]  ;;  %v8003_v52 = vld [vmem:[%s11058_s4 + $0x178] sm:$0xff]  }
  0x1a   : > { %7392 = vmatprep.subr.bf16.mxu1 %v7985_v17  ;;  %335 = vst [vmem:[#allocation2 + $0x8] sm:$0x1] %v334_v42  ;;  %v8383_v43 = vrot.slane %v1175_v38, 5  ;;  %v1181_v44 = vrot.slane %v1179_v39, 4  ;;  %v336_v46 = vld [vmem:[#allocation2 + $0x14] sm:$0x1]  ;;  %vm8431_vm10 = vmor %vm1493_vm6, %vm1494_vm8 }
  0x1b   : > { %7327 = vmatpush3.bf16.msra.mxu0 %v7984_v16  ;;  %v281_v47 = vsel %vm8362_vm3, 0, %v280_v45  ;;  %v337_v48 = vsel %vm8372_vm4, 0, %v336_v46  ;;  %v388_v49 = vld [vmem:[%s11055_s1 + $0x1] sm:$0x1]  ;;  %v1498_v55 = vrot.slane %v8366_v35, 5  ;;  %v8005_v0 = vld [vmem:[%s11058_s4 + $0x1f8] sm:$0xff]   ;;  %vm8514_vm13 = vmand %vm1024_vm12, %vm331_vm2 }
  0x1c   : > { %7328 = vmatprep.subr.bf16.mxu0 %v7987_v19  ;;  %282 = vst [vmem:[#allocation2 + $0xc] sm:$0x1] %v281_v47  ;;  %338 = vst [vmem:[#allocation2 + $0x14] sm:$0x1] %v337_v48  ;;  %v528_v50 = vadd.f32 1e-05, %v388_v49  ;;  %v1182_v54 = vor.u32 %v1181_v44, %v8383_v43 }
  0x1d   : > { %7393 = vmatpush3.bf16.msra.mxu1 %v7986_v18  ;;  %v7147_v53 = vld [vmem:[%s8390_s26] sm:$0xff]   ;;  %v1500_v8 = vrot.slane %v1498_v55, 4  ;;  %v283_v12 = vld [vmem:[#allocation2 + $0x18] sm:$0x1]  ;;  %v7290_v13 = vld [vmem:[%s8390_s26 + $0x8] sm:$0xff]   ;;  %v532_v19 = vsub.s32 0, %v8399_v51 }
  0x1e   : > { %7394 = vmatprep.subr.bf16.mxu1 %v7989_v21  ;;  %8177 = vrsqrt.f32 %v528_v50  ;;  %v8410_v56 = vld [vmem:[%s11055_s1] ss:$0 sm:$0xff]  ;;  %v1469_v57 = vld [vmem:[#allocation2] sm:$0xe]  ;;  %v7148_v59 = vunpack.c.l.bf16 %v7147_v53  ;;  %v7149_v60 = vunpack.c.h.bf16 %v7147_v53  ;;  %v1183_v1 = vrot.slane %v1182_v54, 4  ;;  %v8006_v38 = vld [vmem:[%s11058_s4 + $0x1b8] sm:$0xff]  }
  0x1f   : > { %7329 = vmatpush3.bf16.msra.mxu0 %v7988_v20  ;;  %v8424_v6 = vld [vmem:[%s11056_s2] ss:$0 sm:$0xff]  ;;  %v6456_v7 = vrot.slane %v1469_v57, 9  ;;  %v284_v17 = vsel %vm8362_vm3, 0, %v283_v12  ;;  %v7152_v18 = vunpack.c.l.bf16 %v7290_v13  ;;  %v7153_v20 = vunpack.c.h.bf16 %v7290_v13  ;;  %v8011_v44 = vld [vmem:[%s11058_s4 + $0x1f0] sm:$0xff]   ;;  %vm8523_vm14 = vmor %vm275_vm1, %vm701_vm11  ;;  %s11192_s22 = smov (!%p262_p4, %s8261_s22), 1 }
  0x20   : > { %7330 = vmatprep.subr.bf16.mxu0 %v7991_v23  ;;  %v1138_v58 = vld [vmem:[#allocation2] sm:$0xf]  ;;  %v458_v10 = vsub.f32 %v7148_v59, %v8410_v56  ;;  %v459_v11 = vsub.f32 %v7149_v60, %v8410_v56  ;;  %285 = vst [vmem:[#allocation2 + $0x18] sm:$0x1] %v284_v17  ;;  %v8012_v51 = vld [vmem:[%s11058_s4 + $0x1b0] sm:$0xff]   ;;  %s6404_s23 = sshll.u32 %s11192_s22, 1 }
  0x21   : > { %7395 = vmatpush3.bf16.msra.mxu1 %v7990_v22  ;;  %v1154_v61 = vld [vmem:[#allocation2 + $0x8] sm:$0x1]  ;;  %v1166_v62 = vshrl.u32 %v1138_v58, 16  ;;  %v1169_v63 = vshll.u32 %v1138_v58, 16  ;;  %v6440_v23 = vcombine.low %v1138_v58, %v8366_v35  ;;  %v7291_v35 = vld [vmem:[%s8390_s26 + $0x10] sm:$0xff]   ;;  %v7292_v58 = vld [vmem:[%s8390_s26 + $0x18] sm:$0xff]   ;;  %s265_s19 = scalar_lea.vmem %s11060_s6, %s6404_s23 }
  0x22   : > { %7396 = vmatprep.subr.bf16.mxu1 %v7993_v25  ;;  %v1185_v2 = vshll.u32 %v1154_v61, 16  ;;  %v1501_v15 = vrot.slane %v1154_v61, 5  ;;  %v496_v25 = vmul.f32 %v8424_v6, %v458_v10  ;;  %v7157_v41 = vunpack.c.h.bf16 %v7291_v35  ;;  %v339_v42 = vld [vmem:[#allocation2 + $0x20] sm:$0x1]  ;;  %v289_v57 = vld [vmem:[#allocation2 + $0x30] sm:$0x1] }
  0x23   : > { %7331 = vmatpush3.bf16.msra.mxu0 %v7992_v24  ;;  %v1168_v4 = vrot.slane %v1166_v62, 4  ;;  %v1171_v5 = vrot.slane %v1169_v63, 5  ;;  %v460_v24 = vsub.f32 %v7152_v18, %v8410_v56  ;;  %v340_v45 = vsel %vm8372_vm4, 0, %v339_v42  ;;  %v8474_v47 = vld [vmem:[%s11057_s3] ss:$0 sm:$0xff]  ;;  %v8017_v61 = vld [vmem:[%s11058_s4 + $0x1e8] sm:$0xff]  }
  0x24   : > { %7332 = vmatprep.subr.bf16.mxu0 %v7995_v27  ;;  %v1187_v9 = vrot.slane %v1185_v2, 5  ;;  %v8446_v27 = vsel %vm8431_vm10, %v6456_v7, %v1498_v55  ;;  %v463_v49 = vsub.f32 %v7157_v41, %v8410_v56  ;;  %341 = vst [vmem:[#allocation2 + $0x20] sm:$0x1] %v340_v45  ;;  %v290_v62 = vsel %vm8362_vm3, 0, %v289_v57  ;;  %v8024_v41 = vld [vmem:[%s11058_s4 + $0x1a0] sm:$0xff]  }
  0x25   : > { %7397 = vmatpush3.bf16.msra.mxu1 %v7994_v26  ;;  %v1172_v14 = vor.u32 %v1171_v5, %v1168_v4  ;;  %v497_v26 = vmul.f32 %v8424_v6, %v459_v11  ;;  %v498_v32 = vmul.f32 %v8424_v6, %v460_v24  ;;  %v7160_v63 = vunpack.c.l.bf16 %v7292_v58  ;;  %291 = vst [vmem:[#allocation2 + $0x30] sm:$0x1] %v290_v62  ;;  %v292_v57 = vld [vmem:[#allocation2 + $0x3c] sm:$0x1] }
  0x26   : > { %7398 = vmatprep.subr.bf16.mxu1 %v7997_v29  ;;  %v1188_v22 = vsel %vm8417_vm9, %v1183_v1, %v1187_v9  ;;  %v286_v29 = vld [vmem:[#allocation2 + $0x24] sm:$0x1]  ;;  %v501_v60 = vmul.f32 %v8424_v6, %v463_v49 }
  0x27   : > { %7333 = vmatpush3.bf16.msra.mxu0 %v7996_v28  ;;  %v1173_v21 = vrot.slane %v1172_v14, 4  ;;  %v461_v28 = vsub.f32 %v7153_v20, %v8410_v56  ;;  %v287_v34 = vsel %vm8362_vm3, 0, %v286_v29  ;;  %v464_v9 = vsub.f32 %v7160_v63, %v8410_v56  ;;  %v8018_v14 = vld [vmem:[%s11058_s4 + $0x1a8] sm:$0xff]   ;;  %v8023_v20 = vld [vmem:[%s11058_s4 + $0x1e0] sm:$0xff]  }
  0x28   : > { %7334 = vmatprep.subr.bf16.mxu0 %v7999_v31  ;;  %v8454_v31 = vsel %vm8431_vm10, %v1500_v8, %v1501_v15  ;;  %288 = vst [vmem:[#allocation2 + $0x24] sm:$0x1] %v287_v34  ;;  %v7161_v8 = vunpack.c.h.bf16 %v7292_v58  ;;  %v8029_v58 = vld [vmem:[%s11058_s4 + $0x1d8] sm:$0xff]  }
  0x29   : > { %7399 = vmatpush3.bf16.msra.mxu1 %v7998_v30  ;;  %v1178_v30 = vsel %vm8417_vm9, %v1173_v21, %v8383_v43  ;;  %v499_v39 = vmul.f32 %v8424_v6, %v461_v28  ;;  %v6464_v50 = vcombine.low %v8446_v27, %v8454_v31 }
  0x2a   : > { %7512 = vmatprep.subr.bf16.mxu1 %v8005_v0  ;;  %v6448_v36 = vcombine.low %v1178_v30, %v1188_v22  ;;  %v465_v18 = vsub.f32 %v7161_v8, %v8410_v56 }
  0x2b   : > { %7335 = vmatpush3.bf16.msra.mxu0 %v8000_v40  ;;  %v7156_v40 = vunpack.c.l.bf16 %v7291_v35  ;;  %v8178_v43 = vpop.eup %8177  ;;  %v1037_v45 = vld [vmem:[#allocation2 + $0x20] sm:$0x1] }
  0x2c   : > { %7448 = vmatprep.subr.bf16.mxu0 %v8003_v52  ;;  %2002 = vmatprep.mubr.bf16.mxu1 %v6448_v36  ;;  %v8469_v46 = vrot.slane %v8178_v43, %v532_v19  ;;  %v502_v19 = vmul.f32 %v8424_v6, %v464_v9 }
  0x2d   : > { %v462_v48 = vsub.f32 %v7156_v40, %v8410_v56  ;;  %2003 = vmatmul.mubr.bf16.vlgmr.msra.gmra.mxu1 %v6440_v23 }
  0x2e   : > { %v534_v52 = vmul.f32 %v8469_v46, %v496_v25  ;;  %v535_v53 = vmul.f32 %v8469_v46, %v497_v26  ;;  %7513 = vmatpush3.bf16.msra.mxu1 %v8006_v38  ;;  %v536_v54 = vmul.f32 %v8469_v46, %v498_v32  ;;  %v537_v55 = vmul.f32 %v8469_v46, %v499_v39  ;;  %v1026_v25 = vld [vmem:[#allocation2 + $0xc] sm:$0xf]  ;;  %v1030_v26 = vld [vmem:[#allocation2 + $0x14] sm:$0x1]  ;;  %v1033_v38 = vld [vmem:[#allocation2 + $0x18] sm:$0xf] }
  0x2f   : > { %7514 = vmatprep.subr.bf16.mxu1 %v8011_v44  ;;  %v500_v59 = vmul.f32 %v8424_v6, %v462_v48  ;;  %v539_v7 = vmul.f32 %v8469_v46, %v501_v60  ;;  %v503_v48 = vmul.f32 %v8424_v6, %v465_v18  ;;  %v540_v49 = vmul.f32 %v8469_v46, %v502_v19 }
  0x30   : > { %v573_v0 = vadd.f32 %v8474_v47, %v534_v52  ;;  %v574_v1 = vadd.f32 %v8474_v47, %v535_v53  ;;  %v575_v2 = vadd.f32 %v8474_v47, %v536_v54  ;;  %v576_v4 = vadd.f32 %v8474_v47, %v537_v55  ;;  %v342_v55 = vld [vmem:[#allocation2 + $0x2c] sm:$0x1] }
  0x31   : > { %v538_v5 = vmul.f32 %v8469_v46, %v500_v59  ;;  %v578_v17 = vadd.f32 %v8474_v47, %v539_v7  ;;  %v579_v18 = vadd.f32 %v8474_v47, %v540_v49  ;;  %v343_v19 = vsel %vm8372_vm4, 0, %v342_v55 }
  0x32   : > { %v7082_v10 = vpack.c.bf16 %v573_v0, %v573_v0  ;;  %v7083_v11 = vpack.c.bf16 %v574_v1, %v574_v1  ;;  %v7084_v12 = vpack.c.bf16 %v575_v2, %v575_v2  ;;  %v7085_v13 = vpack.c.bf16 %v576_v4, %v576_v4  ;;  %7515 = vmatpush3.bf16.msra.mxu1 %v8012_v51  ;;  %v8030_v4 = vld [vmem:[%s11058_s4 + $0x198] sm:$0xff]  }
  0x33   : > { %v577_v15 = vadd.f32 %v8474_v47, %v538_v5  ;;  %7516 = vmatprep.subr.bf16.mxu1 %v8017_v61  ;;  %v7087_v40 = vpack.c.bf16 %v578_v17, %v578_v17  ;;  %344 = vst [vmem:[#allocation2 + $0x2c] sm:$0x1] %v343_v19 }
  0x34   : > { %v704_v21 = vshrl.u32 %v7082_v10, 16  ;;  %v707_v22 = vshll.u32 %v7082_v10, 16  ;;  %v712_v23 = vshrl.u32 %v7083_v11, 16  ;;  %v715_v24 = vshll.u32 %v7083_v11, 16  ;;  %v1040_v10 = vld [vmem:[#allocation2 + $0x24] sm:$0xf] }
  0x35   : > { %v721_v28 = vshrl.u32 %v7084_v12, 16  ;;  %v724_v29 = vshll.u32 %v7084_v12, 16  ;;  %v729_v30 = vshrl.u32 %v7085_v13, 16  ;;  %v732_v32 = vshll.u32 %v7085_v13, 16  ;;  %v7293_v11 = vld [vmem:[%s8390_s26 + $0x20] sm:$0xff]  }
  0x36   : > { %v706_v34 = vrot.slane %v704_v21, 7  ;;  %v714_v35 = vrot.slane %v712_v23, 7  ;;  %v7086_v39 = vpack.c.bf16 %v577_v15, %v577_v15  ;;  %7517 = vmatpush3.bf16.msra.mxu1 %v8018_v14  ;;  %v746_v9 = vshrl.u32 %v7087_v40, 16  ;;  %v345_v21 = vld [vmem:[#allocation2 + $0x38] sm:$0x1] }
  0x37   : > { %v723_v43 = vrot.slane %v721_v28, 7  ;;  %v731_v44 = vrot.slane %v729_v30, 7  ;;  %7518 = vmatprep.subr.bf16.mxu1 %v8023_v20  ;;  %v749_v13 = vshll.u32 %v7087_v40, 16  ;;  %v541_v15 = vmul.f32 %v8469_v46, %v503_v48  ;;  %v8035_v28 = vld [vmem:[%s11058_s4 + $0x1d0] sm:$0xff]  }
  0x38   : > { %v709_v51 = vor.u32 %v707_v22, %v706_v34  ;;  %v710_v52 = vrot.slane %v706_v34, 4  ;;  %v717_v53 = vor.u32 %v715_v24, %v714_v35  ;;  %v719_v54 = vrot.slane %v714_v35, 4  ;;  %v7294_v22 = vld [vmem:[%s8390_s26 + $0x28] sm:$0xff]   ;;  %v8036_v35 = vld [vmem:[%s11058_s4 + $0x190] sm:$0xff]  }
  0x39   : > { %v726_v59 = vor.u32 %v724_v29, %v723_v43  ;;  %v727_v60 = vrot.slane %v723_v43, 4  ;;  %v734_v61 = vor.u32 %v732_v32, %v731_v44  ;;  %v736_v62 = vrot.slane %v731_v44, 4  ;;  %v8576_v43 = vld [vmem:[%s8390_s26 + $0x30] sm:$0xff]   ;;  %v8004_v44 = vld [vmem:[%s11058_s4 + $0x138] sm:$0xff]  }
  0x3a   : > { %v718_v63 = vsel %vm8523_vm14, %v710_v52, %v717_v53  ;;  %v1027_v0 = vsel %vm8514_vm13, %v709_v51, %v1026_v25  ;;  %v1031_v1 = vsel %vm8362_vm3, %v719_v54, %v1030_v26  ;;  %v738_v2 = vshrl.u32 %v7086_v39, 16  ;;  %7519 = vmatpush3.bf16.msra.mxu1 %v8024_v41 }
  0x3b   : > { %1028 = vst [vmem:[#allocation2 + $0xc] sm:$0xf] %v1027_v0  ;;  %1029 = vst [vmem:[#allocation2 + $0x10] sm:$0xf] %v718_v63  ;;  %v735_v5 = vsel %vm8523_vm14, %v727_v60, %v734_v61  ;;  %v1034_v7 = vsel %vm8514_vm13, %v726_v59, %v1033_v38  ;;  %v741_v8 = vshll.u32 %v7086_v39, 16  ;;  %7520 = vmatprep.subr.bf16.mxu1 %v8029_v58  ;;  %v8549_v17 = vrot.slane %v746_v9, 7 }
  0x3c   : > { %1032 = vst [vmem:[#allocation2 + $0x14] sm:$0x1] %v1031_v1  ;;  %1035 = vst [vmem:[#allocation2 + $0x18] sm:$0xf] %v1034_v7  ;;  %v740_v12 = vrot.slane %v738_v2, 7  ;;  %v1038_v14 = vsel %vm8362_vm3, %v736_v62, %v1037_v45  ;;  %v293_v20 = vsel %vm8362_vm3, 0, %v292_v57  ;;  %v580_v25 = vadd.f32 %v8474_v47, %v541_v15 }
  0x3d   : > { %1036 = vst [vmem:[#allocation2 + $0x1c] sm:$0xf] %v735_v5  ;;  %1039 = vst [vmem:[#allocation2 + $0x20] sm:$0x1] %v1038_v14  ;;  %v7164_v26 = vunpack.c.l.bf16 %v7293_v11  ;;  %v751_v29 = vor.u32 %v749_v13, %v8549_v17  ;;  %v753_v30 = vrot.slane %v8549_v17, 4  ;;  %v8563_v32 = vpack.c.bf16 %v579_v18, %v579_v18  ;;  %v8008_v45 = vld [vmem:[%s11058_s4 + $0x170] sm:$0xff]  }
  0x3e   : > { %v743_v23 = vor.u32 %v741_v8, %v740_v12  ;;  %v744_v24 = vrot.slane %v740_v12, 4  ;;  %294 = vst [vmem:[#allocation2 + $0x3c] sm:$0x1] %v293_v20  ;;  %7521 = vmatpush3.bf16.msra.mxu1 %v8030_v4  ;;  %v7165_v34 = vunpack.c.h.bf16 %v7293_v11  ;;  %v8570_v39 = vpack.c.bf16 %v580_v25, %v580_v25  ;;  %v8009_v2 = vld [vmem:[%s11058_s4 + $0x130] sm:$0xff]   ;;  %v8014_v14 = vld [vmem:[%s11058_s4 + $0x168] sm:$0xff]  }
  0x3f   : > { %v466_v40 = vsub.f32 %v7164_v26, %v8410_v56  ;;  %v346_v41 = vsel %vm8372_vm4, 0, %v345_v21  ;;  %7522 = vmatprep.subr.bf16.mxu1 %v8035_v28  ;;  %v755_v49 = vshrl.u32 %v8563_v32, 16  ;;  %v758_v51 = vshll.u32 %v8563_v32, 16  ;;  %v8027_v32 = vld [vmem:[%s11058_s4 + $0x118] sm:$0xff]  }
  0x40   : > { %v1041_v38 = vsel %vm8514_vm13, %v743_v23, %v1040_v10  ;;  %v752_v48 = vsel %vm8523_vm14, %v744_v24, %v751_v29  ;;  %v467_v52 = vsub.f32 %v7165_v34, %v8410_v56  ;;  %347 = vst [vmem:[#allocation2 + $0x38] sm:$0x1] %v346_v41  ;;  %v763_v54 = vshrl.u32 %v8570_v39, 16 }
  0x41   : > { %1042 = vst [vmem:[#allocation2 + $0x24] sm:$0xf] %v1041_v38  ;;  %1043 = vst [vmem:[#allocation2 + $0x28] sm:$0xf] %v752_v48  ;;  %v504_v55 = vmul.f32 %v8424_v6, %v466_v40  ;;  %v7168_v57 = vunpack.c.l.bf16 %v7294_v22  ;;  %v7169_v58 = vunpack.c.h.bf16 %v7294_v22  ;;  %v8591_v60 = vrot.slane %v755_v49, 7 }
  0x42   : > { %v8002_v53 = vld [vmem:[#allocation2 + $0xc] sm:$0xff]   ;;  %7523 = vmatpush3.bf16.msra.mxu1 %v8036_v35  ;;  %v8594_v61 = vmul.f32 %v8424_v6, %v467_v52  ;;  %v7172_v62 = vunpack.c.l.bf16 %v8576_v43  ;;  %v7173_v8 = vunpack.c.h.bf16 %v8576_v43 }
  0x43   : > { %1809 = vmatprep.mubr.bf16.mxu0 %v8002_v53  ;;  %v8597_v63 = vld [vmem:[#allocation2 + $0x10] sm:$0xf]  ;;  %v1155_v0 = vld [vmem:[#allocation2 + $0x14] sm:$0x1]  ;;  %v1470_v1 = vld [vmem:[#allocation2 + $0xc] sm:$0xe]  ;;  %v8603_v4 = vmul.f32 %v8469_v46, %v504_v55  ;;  %v8606_v5 = vsub.f32 %v7168_v57, %v8410_v56  ;;  %v8609_v7 = vsub.f32 %v7169_v58, %v8410_v56 }
  0x44   : > { %v8007_v59 = vld [vmem:[#allocation2 + $0x18] sm:$0xff]   ;;  %1810 = vmatmul.mubr.bf16.vlgmr.msra.gmra.mxu0 %v6464_v50  ;;  %v6457_v9 = vrot.slane %v1470_v1, 9  ;;  %v1505_v10 = vrot.slane %v8597_v63, 5  ;;  %v1508_v11 = vrot.slane %v1155_v0, 5  ;;  %v8616_v12 = vld [vmem:[#allocation2 + $0xc] sm:$0xf] }
  0x45   : > { %v1199_v13 = vshll.u32 %v8597_v63, 16  ;;  %7449 = vmatpush3.bf16.msra.mxu0 %v8004_v44  ;;  %1817 = vmatprep.mubr.bf16.mxu0 %v8007_v59  ;;  %v1190_v15 = vshrl.u32 %v8616_v12, 16  ;;  %v1193_v18 = vshll.u32 %v8616_v12, 16  ;;  %v1203_v27 = vshrl.u32 %v8597_v63, 16  ;;  %v8625_v50 = vld [vmem:[#allocation2 + $0x1c] sm:$0xf] }
  0x46   : > { %v1209_v31 = vshll.u32 %v1155_v0, 16  ;;  %7450 = vmatprep.subr.bf16.mxu0 %v8008_v45  ;;  %v1506_v19 = vsel %vm8431_vm10, %v6457_v9, %v1505_v10  ;;  %v1507_v20 = vrot.slane %v1505_v10, 4  ;;  %v6441_v22 = vcombine.low %v8616_v12, %v8597_v63  ;;  %v1156_v23 = vld [vmem:[#allocation2 + $0x20] sm:$0x1]  ;;  %v1471_v24 = vld [vmem:[#allocation2 + $0x18] sm:$0xe] }
  0x47   : > { %v1201_v21 = vrot.slane %v1199_v13, 5  ;;  %v1192_v25 = vrot.slane %v1190_v15, 4  ;;  %v1195_v26 = vrot.slane %v1193_v18, 5  ;;  %v1205_v28 = vrot.slane %v1203_v27, 4  ;;  %v8634_v49 = vld [vmem:[#allocation2 + $0x18] sm:$0xf] }
  0x48   : > { %v1211_v29 = vrot.slane %v1209_v31, 5  ;;  %v1509_v34 = vsel %vm8431_vm10, %v1507_v20, %v1508_v11  ;;  %v6458_v35 = vrot.slane %v1471_v24, 9  ;;  %v1512_v38 = vrot.slane %v8625_v50, 5  ;;  %v8013_v48 = vld [vmem:[#allocation2 + $0x24] sm:$0xff]   ;;  %v1047_v27 = vld [vmem:[#allocation2 + $0x30] sm:$0xf] }
  0x49   : > { %v1515_v40 = vrot.slane %v1156_v23, 5  ;;  %v6465_v41 = vcombine.low %v1506_v19, %v1509_v34  ;;  %v1196_v44 = vor.u32 %v1195_v26, %v1192_v25  ;;  %v1206_v45 = vor.u32 %v1205_v28, %v1201_v21  ;;  %7451 = vmatpush3.bf16.msra.mxu0 %v8009_v2  ;;  %v8015_v53 = vld [vmem:[%s11058_s4 + $0x128] sm:$0xff]   ;;  %v8020_v0 = vld [vmem:[%s11058_s4 + $0x160] sm:$0xff]  }
  0x4a   : > { %v1223_v52 = vshll.u32 %v8625_v50, 16  ;;  %7452 = vmatprep.subr.bf16.mxu0 %v8014_v14  ;;  %v8642_v55 = vsel %vm8431_vm10, %v6458_v35, %v1512_v38  ;;  %v1514_v57 = vrot.slane %v1512_v38, 4  ;;  %v1214_v58 = vshrl.u32 %v8634_v49, 16  ;;  %v8021_v11 = vld [vmem:[%s11058_s4 + $0x120] sm:$0xff]   ;;  %v8041_v31 = vld [vmem:[%s11058_s4 + $0x1c8] sm:$0xff]  }
  0x4b   : > { %v1217_v59 = vshll.u32 %v8634_v49, 16  ;;  %v1197_v1 = vrot.slane %v1196_v44, 4  ;;  %v1207_v2 = vrot.slane %v1206_v45, 4  ;;  %v1227_v10 = vshrl.u32 %v8625_v50, 16  ;;  %v1044_v26 = vld [vmem:[#allocation2 + $0x2c] sm:$0x1]  ;;  %7524 = vmatprep.subr.bf16.mxu1 %v8041_v31 }
  0x4c   : > { %v8649_v9 = vrot.slane %v1223_v52, 5  ;;  %1818 = vmatmul.mubr.bf16.gmra.mxu0 %v6465_v41  ;;  %v1516_v13 = vsel %vm8431_vm10, %v1514_v57, %v1515_v40  ;;  %v1216_v14 = vrot.slane %v1214_v58, 4  ;;  %v1233_v18 = vshll.u32 %v1156_v23, 16  ;;  %v1472_v28 = vld [vmem:[#allocation2 + $0x24] sm:$0xe]  ;;  %v8042_v23 = vld [vmem:[%s11058_s4 + $0x188] sm:$0xff]  }
  0x4d   : > { %v1219_v15 = vrot.slane %v1217_v59, 5  ;;  %v1202_v19 = vsel %vm8417_vm9, %v1197_v1, %v1201_v21  ;;  %v1212_v20 = vsel %vm8417_vm9, %v1207_v2, %v1211_v29  ;;  %1825 = vmatprep.mubr.bf16.mxu0 %v8013_v48  ;;  %v6466_v24 = vcombine.low %v8642_v55, %v1516_v13  ;;  %7453 = vmatpush3.bf16.msra.mxu0 %v8015_v53  ;;  %v8670_v40 = vld [vmem:[#allocation2 + $0x28] sm:$0xf]  ;;  %v8672_v29 = vld [vmem:[#allocation2 + $0x24] sm:$0xf]  ;;  %v8026_v41 = vld [vmem:[%s11058_s4 + $0x158] sm:$0xff]  }
  0x4e   : > { %v1229_v25 = vrot.slane %v1227_v10, 4  ;;  %v6449_v34 = vcombine.low %v1202_v19, %v1212_v20  ;;  %v1235_v38 = vrot.slane %v1233_v18, 5  ;;  %v6442_v21 = vcombine.low %v8634_v49, %v8625_v50  ;;  %7454 = vmatprep.subr.bf16.mxu0 %v8020_v0  ;;  %7525 = vmatpush3.bf16.msra.mxu1 %v8042_v23  ;;  %v348_v13 = vld [vmem:[#allocation2 + $0x44] sm:$0x1]  ;;  %v8033_v31 = vld [vmem:[%s11058_s4 + $0x110] sm:$0xff]   ;;  %v8038_v19 = vld [vmem:[%s11058_s4 + $0x148] sm:$0xff]  }
  0x4f   : > { %v1220_v35 = vor.u32 %v1219_v15, %v1216_v14  ;;  %v760_v45 = vor.u32 %v758_v51, %v8591_v60  ;;  %v761_v48 = vrot.slane %v8591_v60, 4  ;;  %v765_v52 = vrot.slane %v763_v54, 7  ;;  %v8044_v50 = vld [vmem:[%s11058_s4 + $0x140] sm:$0xff]  }
  0x50   : > { %v1230_v44 = vor.u32 %v1229_v25, %v8649_v9  ;;  %2010 = vmatprep.mubr.bf16.mxu1 %v6449_v34  ;;  %v766_v55 = vshll.u32 %v8570_v39, 16  ;;  %v1045_v57 = vsel %vm8362_vm3, %v753_v30, %v1044_v26  ;;  %v6459_v58 = vrot.slane %v1472_v28, 9  ;;  %v295_v39 = vld [vmem:[#allocation2 + $0x48] sm:$0x1]  ;;  %v8032_v30 = vld [vmem:[%s11058_s4 + $0x150] sm:$0xff]  }
  0x51   : > { %v1221_v53 = vrot.slane %v1220_v35, 4  ;;  %2011 = vmatmul.mubr.bf16.gmra.mxu1 %v6441_v22  ;;  %v770_v54 = vrot.slane %v765_v52, 4  ;;  %v1048_v60 = vsel %vm8514_vm13, %v760_v45, %v1047_v27  ;;  %1046 = vst [vmem:[#allocation2 + $0x2c] sm:$0x1] %v1045_v57  ;;  %v1519_v17 = vrot.slane %v8670_v40, 5  ;;  %7455 = vmatpush3.bf16.msra.mxu0 %v8021_v11  ;;  %v8048_v45 = vld [vmem:[%s11058_s4 + $0x180] sm:$0xff]  }
  0x52   : > { %v1231_v51 = vrot.slane %v1230_v44, 4  ;;  %v768_v63 = vor.u32 %v766_v55, %v765_v52  ;;  %1049 = vst [vmem:[#allocation2 + $0x30] sm:$0xf] %v1048_v60  ;;  %v1238_v12 = vshrl.u32 %v8672_v29, 16  ;;  %v1241_v22 = vshll.u32 %v8672_v29, 16  ;;  %7456 = vmatprep.subr.bf16.mxu0 %v8026_v41 }
  0x53   : > { %v1226_v59 = vsel %vm8417_vm9, %v1221_v53, %v8649_v9  ;;  %v8710_v1 = vsel %vm8431_vm10, %v6459_v58, %v1519_v17  ;;  %v1521_v2 = vrot.slane %v1519_v17, 4  ;;  %v1247_v10 = vshll.u32 %v8670_v40, 16  ;;  %v1051_v11 = vld [vmem:[#allocation2 + $0x38] sm:$0x1]  ;;  %v298_v9 = vld [vmem:[#allocation2 + $0x54] sm:$0x1] }
  0x54   : > { %v1236_v0 = vsel %vm8417_vm9, %v1231_v51, %v1235_v38  ;;  %1826 = vmatmul.mubr.bf16.gmra.mxu0 %v6466_v24  ;;  %v769_v15 = vsel %vm8523_vm14, %v761_v48, %v768_v63  ;;  %v1240_v18 = vrot.slane %v1238_v12, 4  ;;  %v1243_v27 = vrot.slane %v1241_v22, 5  ;;  %v8047_v38 = vld [vmem:[%s11058_s4 + $0x1c0] sm:$0xff]   ;;  %v1054_v22 = vld [vmem:[#allocation2 + $0x3c] sm:$0xf] }
  0x55   : > { %v6450_v14 = vcombine.low %v1226_v59, %v1236_v0  ;;  %1050 = vst [vmem:[#allocation2 + $0x34] sm:$0xf] %v769_v15  ;;  %v8721_v20 = vrot.slane %v1247_v10, 5  ;;  %v1251_v25 = vshrl.u32 %v8670_v40, 16  ;;  %v6443_v24 = vcombine.low %v8672_v29, %v8670_v40  ;;  %7457 = vmatpush3.bf16.msra.mxu0 %v8027_v32  ;;  %7526 = vmatprep.subr.bf16.mxu1 %v8047_v38  ;;  %v8052_v0 = vld [vmem:[%s11058_s4 + $0xf8] sm:$0xff]  }
  0x56   : > { %v543_v26 = vmul.f32 %v8469_v46, %v8594_v61  ;;  %v1244_v28 = vor.u32 %v1243_v27, %v1240_v18  ;;  %v581_v23 = vadd.f32 %v8474_v47, %v8603_v4  ;;  %v1052_v34 = vsel %vm8362_vm3, %v770_v54, %v1051_v11  ;;  %7458 = vmatprep.subr.bf16.mxu0 %v8032_v30 }
  0x57   : > { %2018 = vmatprep.mubr.bf16.mxu1 %v6450_v14  ;;  %v296_v35 = vsel %vm8362_vm3, 0, %v295_v39  ;;  %v1253_v41 = vrot.slane %v1251_v25, 4  ;;  %1053 = vst [vmem:[#allocation2 + $0x38] sm:$0x1] %v1052_v34  ;;  %v506_v44 = vmul.f32 %v8424_v6, %v8606_v5  ;;  %v8742_v4 = vmul.f32 %v8424_v6, %v8609_v7  ;;  %v8039_v5 = vld [vmem:[%s11058_s4 + $0x108] sm:$0xff]   ;;  %7527 = vmatpush3.bf16.msra.mxu1 %v8048_v45 }
  0x58   : > { %v582_v61 = vadd.f32 %v8474_v47, %v543_v26  ;;  %297 = vst [vmem:[#allocation2 + $0x48] sm:$0x1] %v296_v35  ;;  %v1157_v48 = vld [vmem:[#allocation2 + $0x2c] sm:$0x1]  ;;  %v1245_v52 = vrot.slane %v1244_v28, 4  ;;  %v7090_v53 = vpack.c.bf16 %v581_v23, %v581_v23  ;;  %v349_v55 = vsel %vm8372_vm4, 0, %v348_v13  ;;  %7640 = vmatprep.subr.bf16.mxu1 %v8052_v0 }
  0x59   : > { %v299_v57 = vsel %vm8362_vm3, 0, %v298_v9  ;;  %2019 = vmatmul.mubr.bf16.gmra.mxu1 %v6442_v21  ;;  %v1522_v7 = vrot.slane %v1157_v48, 5  ;;  %v1254_v58 = vor.u32 %v1253_v41, %v8721_v20  ;;  %v1257_v32 = vshll.u32 %v1157_v48, 16  ;;  %v1473_v54 = vld [vmem:[#allocation2 + $0x30] sm:$0xe]  ;;  %7459 = vmatpush3.bf16.msra.mxu0 %v8033_v31  ;;  %v8049_v23 = vld [vmem:[%s11058_s4 + $0x278] sm:$0xff]  }
  0x5a   : > { %v7091_v51 = vpack.c.bf16 %v582_v61, %v582_v61  ;;  %350 = vst [vmem:[#allocation2 + $0x44] sm:$0x1] %v349_v55  ;;  %300 = vst [vmem:[#allocation2 + $0x54] sm:$0x1] %v299_v57  ;;  %v1250_v60 = vsel %vm8417_vm9, %v1245_v52, %v8721_v20  ;;  %v772_v17 = vshrl.u32 %v7090_v53, 16  ;;  %v775_v39 = vshll.u32 %v7090_v53, 16  ;;  %7460 = vmatprep.subr.bf16.mxu0 %v8038_v19 }
  0x5b   : > { %v6460_v30 = vrot.slane %v1473_v54, 9  ;;  %v8761_v59 = vld [vmem:[#allocation2 + $0x30] sm:$0xf]  ;;  %v1523_v49 = vsel %vm8431_vm10, %v1521_v2, %v1522_v7  ;;  %v1255_v21 = vrot.slane %v1254_v58, 4  ;;  %v1259_v63 = vrot.slane %v1257_v32, 5  ;;  %v8045_v19 = vld [vmem:[%s11058_s4 + $0x100] sm:$0xff]  }
  0x5c   : > { %v780_v12 = vshrl.u32 %v7091_v51, 16  ;;  %v8019_v10 = vld [vmem:[#allocation2 + $0x30] sm:$0xff]   ;;  %v6467_v11 = vcombine.low %v8710_v1, %v1523_v49  ;;  %v774_v13 = vrot.slane %v772_v17, 7  ;;  %v783_v9 = vshll.u32 %v7091_v51, 16  ;;  %v301_v17 = vld [vmem:[#allocation2 + $0x60] sm:$0x1] }
  0x5d   : > { %v1262_v14 = vshrl.u32 %v8761_v59, 16  ;;  %v1260_v15 = vsel %vm8417_vm9, %v1255_v21, %v1259_v63  ;;  %v8775_v2 = vld [vmem:[#allocation2 + $0x34] sm:$0xf]  ;;  %v1265_v27 = vshll.u32 %v8761_v59, 16  ;;  %v544_v31 = vmul.f32 %v8469_v46, %v506_v44  ;;  %7461 = vmatpush3.bf16.msra.mxu0 %v8039_v5  ;;  %1833 = vmatprep.mubr.bf16.mxu0 %v8019_v10 }
  0x5e   : > { %v782_v18 = vrot.slane %v780_v12, 7  ;;  %v6451_v1 = vcombine.low %v1250_v60, %v1260_v15  ;;  %v777_v20 = vor.u32 %v775_v39, %v774_v13  ;;  %v778_v25 = vrot.slane %v774_v13, 4  ;;  %v1158_v26 = vld [vmem:[#allocation2 + $0x38] sm:$0x1]  ;;  %7462 = vmatprep.subr.bf16.mxu0 %v8044_v50  ;;  %1834 = vmatmul.mubr.bf16.gmra.mxu0 %v6467_v11 }
  0x5f   : > { %v1526_v28 = vrot.slane %v8775_v2, 5  ;;  %v1529_v38 = vrot.slane %v1158_v26, 5  ;;  %v1264_v41 = vrot.slane %v1262_v14, 4  ;;  %v1267_v48 = vrot.slane %v1265_v27, 5  ;;  %v1061_v27 = vld [vmem:[#allocation2 + $0x48] sm:$0xf] }
  0x60   : > { %v785_v34 = vor.u32 %v783_v9, %v782_v18  ;;  %v787_v35 = vrot.slane %v782_v18, 4  ;;  %2026 = vmatprep.mubr.bf16.mxu1 %v6451_v1  ;;  %v1055_v61 = vsel %vm8514_vm13, %v777_v20, %v1054_v22  ;;  %v1271_v55 = vshll.u32 %v8775_v2, 16 }
  0x61   : > { %v8790_v44 = vsel %vm8431_vm10, %v6460_v30, %v1526_v28  ;;  %v1528_v45 = vrot.slane %v1526_v28, 4  ;;  %v1058_v52 = vld [vmem:[#allocation2 + $0x44] sm:$0x1]  ;;  %2027 = vmatmul.mubr.bf16.gmra.mxu1 %v6443_v24  ;;  %1056 = vst [vmem:[#allocation2 + $0x3c] sm:$0xf] %v1055_v61  ;;  %v1275_v57 = vshrl.u32 %v8775_v2, 16  ;;  %7463 = vmatpush3.bf16.msra.mxu0 %v8045_v19  ;;  %v1268_v58 = vor.u32 %v1267_v48, %v1264_v41 }
  0x62   : > { %v786_v53 = vsel %vm8523_vm14, %v778_v25, %v785_v34  ;;  %v1281_v5 = vshll.u32 %v1158_v26, 16  ;;  %v6444_v40 = vcombine.low %v8761_v59, %v8775_v2  ;;  %v545_v29 = vmul.f32 %v8469_v46, %v8742_v4  ;;  %v351_v24 = vld [vmem:[#allocation2 + $0x50] sm:$0x1]  ;;  %7576 = vmatprep.subr.bf16.mxu0 %v8049_v23  ;;  %v8811_v59 = vld [vmem:[%s8390_s26 + $0x38] sm:$0xff]  }
  0x63   : > { %1057 = vst [vmem:[#allocation2 + $0x40] sm:$0xf] %v786_v53  ;;  %v1530_v7 = vsel %vm8431_vm10, %v1528_v45, %v1529_v38  ;;  %v1273_v51 = vrot.slane %v1271_v55, 5  ;;  %v1277_v54 = vrot.slane %v1275_v57, 4  ;;  %v1269_v39 = vrot.slane %v1268_v58, 4 }
  0x64   : > { %v6468_v32 = vcombine.low %v8790_v44, %v1530_v7  ;;  %v1283_v60 = vrot.slane %v1281_v5, 5  ;;  %v583_v30 = vadd.f32 %v8474_v47, %v544_v31  ;;  %v584_v50 = vadd.f32 %v8474_v47, %v545_v29 }
  0x65   : > { %v1059_v49 = vsel %vm8362_vm3, %v787_v35, %v1058_v52  ;;  %v1278_v21 = vor.u32 %v1277_v54, %v1273_v51  ;;  %v470_v4 = vsub.f32 %v7172_v62, %v8410_v56  ;;  %v471_v63 = vsub.f32 %v7173_v8, %v8410_v56 }
  0x66   : > { %1060 = vst [vmem:[#allocation2 + $0x44] sm:$0x1] %v1059_v49  ;;  %v352_v12 = vsel %vm8372_vm4, 0, %v351_v24  ;;  %v1274_v22 = vsel %vm8417_vm9, %v1269_v39, %v1273_v51  ;;  %v7092_v0 = vpack.c.bf16 %v583_v30, %v583_v30  ;;  %v7093_v10 = vpack.c.bf16 %v584_v50, %v584_v50  ;;  %v354_v49 = vld [vmem:[#allocation2 + $0x5c] sm:$0x1] }
  0x67   : > { %353 = vst [vmem:[#allocation2 + $0x50] sm:$0x1] %v352_v12  ;;  %v302_v11 = vsel %vm8362_vm3, 0, %v301_v17  ;;  %v1279_v13 = vrot.slane %v1278_v21, 4  ;;  %v508_v9 = vmul.f32 %v8424_v6, %v470_v4  ;;  %v509_v62 = vmul.f32 %v8424_v6, %v471_v63 }
  0x68   : > { %303 = vst [vmem:[#allocation2 + $0x60] sm:$0x1] %v302_v11  ;;  %v7176_v56 = vunpack.c.l.bf16 %v8811_v59  ;;  %v789_v43 = vshrl.u32 %v7092_v0, 16  ;;  %v792_v8 = vshll.u32 %v7092_v0, 16  ;;  %v797_v14 = vshrl.u32 %v7093_v10, 16 }
  0x69   : > { %v800_v15 = vshll.u32 %v7093_v10, 16  ;;  %v1284_v2 = vsel %vm8417_vm9, %v1279_v13, %v1283_v60  ;;  %v546_v19 = vmul.f32 %v8469_v46, %v508_v9  ;;  %v547_v1 = vmul.f32 %v8469_v46, %v509_v62  ;;  %v1474_v28 = vld [vmem:[#allocation2 + $0x3c] sm:$0xe]  ;;  %v8179_v0 = vld [vmem:[%s11055_s1] ss:$0 sm:$0xff] }
  0x6a   : > { %v8025_v18 = vld [vmem:[#allocation2 + $0x3c] sm:$0xff]   ;;  %v7177_v6 = vunpack.c.h.bf16 %v8811_v59  ;;  %v6452_v20 = vcombine.low %v1274_v22, %v1284_v2  ;;  %v791_v25 = vrot.slane %v789_v43, 7  ;;  %v799_v26 = vrot.slane %v797_v14, 7  ;;  %v8857_v13 = vld [vmem:[#allocation2 + $0x10] sm:$0xf] }
  0x6b   : > { %v8830_v31 = vld [vmem:[#allocation2 + $0x40] sm:$0xf]  ;;  %1841 = vmatprep.mubr.bf16.mxu0 %v8025_v18  ;;  %v6461_v34 = vrot.slane %v1474_v28, 9  ;;  %v8836_v35 = vld [vmem:[#allocation2 + $0x3c] sm:$0xf]  ;;  %v585_v61 = vadd.f32 %v8474_v47, %v546_v19  ;;  %v586_v50 = vadd.f32 %v8474_v47, %v547_v1  ;;  %v472_v10 = vsub.f32 %v7176_v56, %v8179_v0 }
  0x6c   : > { %v1533_v23 = vrot.slane %v8830_v31, 5  ;;  %v1295_v38 = vshll.u32 %v8830_v31, 16  ;;  %v1299_v41 = vshrl.u32 %v8830_v31, 16  ;;  %1842 = vmatmul.mubr.bf16.gmra.mxu0 %v6468_v32  ;;  %2034 = vmatprep.mubr.bf16.mxu1 %v6452_v20  ;;  %v794_v44 = vor.u32 %v792_v8, %v791_v25  ;;  %v1068_v18 = vld [vmem:[#allocation2 + $0x54] sm:$0xf] }
  0x6d   : > { %v795_v45 = vrot.slane %v791_v25, 4  ;;  %v802_v48 = vor.u32 %v800_v15, %v799_v26  ;;  %v804_v52 = vrot.slane %v799_v26, 4  ;;  %v1159_v53 = vld [vmem:[#allocation2 + $0x44] sm:$0x1]  ;;  %2035 = vmatmul.mubr.bf16.gmra.mxu1 %v6444_v40  ;;  %v1286_v7 = vshrl.u32 %v8836_v35, 16 }
  0x6e   : > { %v1534_v55 = vsel %vm8431_vm10, %v6461_v34, %v1533_v23  ;;  %v1535_v57 = vrot.slane %v1533_v23, 4  ;;  %v1536_v5 = vrot.slane %v1159_v53, 5  ;;  %v1062_v29 = vsel %vm8514_vm13, %v794_v44, %v1061_v27  ;;  %v1065_v51 = vld [vmem:[#allocation2 + $0x50] sm:$0x1]  ;;  %v8180_v2 = vld [vmem:[%s11056_s2] ss:$0 sm:$0xff] }
  0x6f   : > { %v803_v58 = vsel %vm8523_vm14, %v795_v45, %v802_v48  ;;  %v1289_v24 = vshll.u32 %v8836_v35, 16  ;;  %v1297_v32 = vrot.slane %v1295_v38, 5  ;;  %1063 = vst [vmem:[#allocation2 + $0x48] sm:$0xf] %v1062_v29  ;;  %v1288_v54 = vrot.slane %v1286_v7, 4 }
  0x70   : > { %1064 = vst [vmem:[#allocation2 + $0x4c] sm:$0xf] %v803_v58  ;;  %v1537_v40 = vsel %vm8431_vm10, %v1535_v57, %v1536_v5  ;;  %v1301_v60 = vrot.slane %v1299_v41, 4  ;;  %v1305_v17 = vshll.u32 %v1159_v53, 16  ;;  %v7094_v4 = vpack.c.bf16 %v585_v61, %v585_v61 }
  0x71   : > { %v6469_v39 = vcombine.low %v1534_v55, %v1537_v40  ;;  %v1291_v30 = vrot.slane %v1289_v24, 5  ;;  %v1066_v63 = vsel %vm8362_vm3, %v804_v52, %v1065_v51  ;;  %v7095_v22 = vpack.c.bf16 %v586_v50, %v586_v50 }
  0x72   : > { %v1302_v59 = vor.u32 %v1301_v60, %v1297_v32  ;;  %v1307_v21 = vrot.slane %v1305_v17, 5  ;;  %1067 = vst [vmem:[#allocation2 + $0x50] sm:$0x1] %v1066_v63  ;;  %v473_v11 = vsub.f32 %v7177_v6, %v8179_v0  ;;  %v806_v47 = vshrl.u32 %v7094_v4, 16  ;;  %v8895_v0 = vld [vmem:[#allocation2 + $0xc] sm:$0xe] }
  0x73   : > { %v1292_v12 = vor.u32 %v1291_v30, %v1288_v54  ;;  %v809_v62 = vshll.u32 %v7094_v4, 16  ;;  %v355_v43 = vsel %vm8372_vm4, 0, %v354_v49  ;;  %v814_v14 = vshrl.u32 %v7095_v22, 16  ;;  %v8181_v49 = vld [vmem:[%s11057_s3] ss:$0 sm:$0xff] }
  0x74   : > { %v1303_v9 = vrot.slane %v1302_v59, 4  ;;  %v817_v15 = vshll.u32 %v7095_v22, 16  ;;  %v510_v27 = vmul.f32 %v8180_v2, %v472_v10  ;;  %356 = vst [vmem:[#allocation2 + $0x5c] sm:$0x1] %v355_v43  ;;  %v808_v19 = vrot.slane %v806_v47, 7 }
  0x75   : > { %v1293_v8 = vrot.slane %v1292_v12, 4  ;;  %v511_v1 = vmul.f32 %v8180_v2, %v473_v11  ;;  %v2101_v6 = vshll.u32 %v8857_v13, 16  ;;  %v6445_v26 = vcombine.low %v8836_v35, %v8830_v31  ;;  %v8906_v2 = vld [vmem:[#allocation2 + $0x24] sm:$0xf] }
  0x76   : > { %v1308_v56 = vsel %vm8417_vm9, %v1303_v9, %v1307_v21  ;;  %v816_v28 = vrot.slane %v814_v14, 7  ;;  %v548_v23 = vmul.f32 %v8469_v46, %v510_v27  ;;  %v811_v38 = vor.u32 %v809_v62, %v808_v19  ;;  %v1475_v44 = vld [vmem:[#allocation2 + $0x48] sm:$0xe]  ;;  %v8893_v21 = vld [vmem:[#allocation2 + $0x14] sm:$0x1] }
  0x77   : > { %v8031_v20 = vld [vmem:[#allocation2 + $0x48] sm:$0xff]   ;;  %v1298_v25 = vsel %vm8417_vm9, %v1293_v8, %v1297_v32  ;;  %v812_v41 = vrot.slane %v808_v19, 4  ;;  %v549_v45 = vmul.f32 %v8469_v46, %v511_v1  ;;  %v6462_v53 = vrot.slane %v1475_v44, 9 }
  0x78   : > { %v6453_v34 = vcombine.low %v1298_v25, %v1308_v56  ;;  %v8872_v61 = vld [vmem:[#allocation2 + $0x4c] sm:$0xf]  ;;  %1849 = vmatprep.mubr.bf16.mxu0 %v8031_v20  ;;  %v819_v48 = vor.u32 %v817_v15, %v816_v28  ;;  %v821_v52 = vrot.slane %v816_v28, 4  ;;  %v8876_v57 = vld [vmem:[#allocation2 + $0x48] sm:$0xf]  ;;  %v1069_v31 = vsel %vm8514_vm13, %v811_v38, %v1068_v18 }
  0x79   : > { %v1540_v55 = vrot.slane %v8872_v61, 5  ;;  %1850 = vmatmul.mubr.bf16.gmra.mxu0 %v6469_v39  ;;  %v1160_v35 = vld [vmem:[#allocation2 + $0x50] sm:$0x1]  ;;  %v1310_v5 = vshrl.u32 %v8876_v57, 16  ;;  %v1313_v7 = vshll.u32 %v8876_v57, 16  ;;  %v1319_v58 = vshll.u32 %v8872_v61, 16 }
  0x7a   : > { %2042 = vmatprep.mubr.bf16.mxu1 %v6453_v34  ;;  %v820_v29 = vsel %vm8523_vm14, %v812_v41, %v819_v48  ;;  %1070 = vst [vmem:[#allocation2 + $0x54] sm:$0xf] %v1069_v31  ;;  %v1543_v51 = vrot.slane %v1160_v35, 5  ;;  %v1323_v17 = vshrl.u32 %v8872_v61, 16  ;;  %v1329_v50 = vshll.u32 %v1160_v35, 16 }
  0x7b   : > { %2043 = vmatmul.mubr.bf16.gmra.mxu1 %v6445_v26  ;;  %v1541_v24 = vsel %vm8431_vm10, %v6462_v53, %v1540_v55  ;;  %v1542_v32 = vrot.slane %v1540_v55, 4  ;;  %1071 = vst [vmem:[#allocation2 + $0x58] sm:$0xf] %v820_v29  ;;  %v1312_v40 = vrot.slane %v1310_v5, 4  ;;  %v1315_v54 = vrot.slane %v1313_v7, 5 }
  0x7c   : > { %v1321_v60 = vrot.slane %v1319_v58, 5  ;;  %v1072_v39 = vld [vmem:[#allocation2 + $0x5c] sm:$0x1]  ;;  %v587_v59 = vadd.f32 %v8181_v49, %v548_v23  ;;  %v1325_v12 = vrot.slane %v1323_v17, 4  ;;  %v588_v22 = vadd.f32 %v8181_v49, %v549_v45  ;;  %v8902_v15 = vld [vmem:[#allocation2 + $0x18] sm:$0xf] }
  0x7d   : > { %v1544_v30 = vsel %vm8431_vm10, %v1542_v32, %v1543_v51  ;;  %v1316_v63 = vor.u32 %v1315_v54, %v1312_v40  ;;  %v1331_v10 = vrot.slane %v1329_v50, 5  ;;  %v1073_v9 = vsel %vm8362_vm3, %v821_v52, %v1072_v39  ;;  %v8904_v18 = vld [vmem:[#allocation2 + $0x1c] sm:$0xf]  ;;  %v8908_v27 = vld [vmem:[#allocation2 + $0x28] sm:$0xf] }
  0x7e   : > { %v6470_v4 = vcombine.low %v1541_v24, %v1544_v30  ;;  %v7096_v11 = vpack.c.bf16 %v587_v59, %v587_v59  ;;  %v8899_v47 = vrot.slane %v2101_v6, 5  ;;  %v1326_v43 = vor.u32 %v1325_v12, %v1321_v60  ;;  %1074 = vst [vmem:[#allocation2 + $0x5c] sm:$0x1] %v1073_v9  ;;  %v8912_v20 = vld [vmem:[#allocation2 + $0x30] sm:$0xf] }
  0x7f   : > { %v1317_v62 = vrot.slane %v1316_v63, 4  ;;  %v7097_v8 = vpack.c.bf16 %v588_v22, %v588_v22  ;;  %v2105_v14 = vshrl.u32 %v8857_v13, 16  ;;  %v2111_v1 = vshll.u32 %v8893_v21, 16  ;;  %v8914_v25 = vld [vmem:[#allocation2 + $0x34] sm:$0xf] }
  0x80   : > { %v823_v56 = vshrl.u32 %v7096_v11, 16  ;;  %v826_v19 = vshll.u32 %v7096_v11, 16  ;;  %v6544_v6 = vrot.slane %v8895_v0, 9  ;;  %v1327_v28 = vrot.slane %v1326_v43, 4  ;;  %v1075_v38 = vld [vmem:[#allocation2 + $0x60] sm:$0xf] }
  0x81   : > { %v1322_v26 = vsel %vm8417_vm9, %v1317_v62, %v1321_v60  ;;  %v831_v23 = vshrl.u32 %v7097_v8, 16  ;;  %v834_v34 = vshll.u32 %v7097_v8, 16  ;;  %v6446_v44 = vcombine.low %v8876_v57, %v8872_v61  ;;  %v1476_v35 = vld [vmem:[#allocation2 + $0x54] sm:$0xe]  ;;  %v2067_v11 = vld [vmem:[#allocation2 + $0xc] sm:$0xf] }
  0x82   : > { %v8037_v41 = vld [vmem:[#allocation2 + $0x54] sm:$0xff]   ;;  %v825_v45 = vrot.slane %v823_v56, 7  ;;  %v6616_v52 = vcombine.low %v8902_v15, %v8904_v18  ;;  %v6617_v53 = vcombine.low %v8906_v2, %v8908_v27  ;;  %v1332_v55 = vsel %vm8417_vm9, %v1327_v28, %v1331_v10 }
  0x83   : > { %v8920_v48 = vld [vmem:[#allocation2 + $0x58] sm:$0xf]  ;;  %v8928_v31 = vrot.slane %v831_v23, 7  ;;  %v8931_v7 = vld [vmem:[#allocation2 + $0x54] sm:$0xf]  ;;  %v6618_v61 = vcombine.low %v8912_v20, %v8914_v25  ;;  %1857 = vmatprep.mubr.bf16.mxu0 %v8037_v41  ;;  %v6454_v57 = vcombine.low %v1322_v26, %v1332_v55  ;;  %v6463_v24 = vrot.slane %v1476_v35, 9 }
  0x84   : > { %v1547_v5 = vrot.slane %v8920_v48, 5  ;;  %v828_v58 = vor.u32 %v826_v19, %v825_v45  ;;  %v829_v29 = vrot.slane %v825_v45, 4  ;;  %1858 = vmatmul.mubr.bf16.gmra.mxu0 %v6470_v4  ;;  %v1334_v54 = vshrl.u32 %v8931_v7, 16  ;;  %v2694_v35 = vld [vmem:[#allocation2 + $0x20] sm:$0x1] }
  0x85   : > { %v836_v32 = vor.u32 %v834_v34, %v8928_v31  ;;  %v838_v51 = vrot.slane %v8928_v31, 4  ;;  %2050 = vmatprep.mubr.bf16.mxu1 %v6454_v57  ;;  %v1161_v17 = vld [vmem:[#allocation2 + $0x5c] sm:$0x1]  ;;  %v1337_v30 = vshll.u32 %v8931_v7, 16  ;;  %v1343_v50 = vshll.u32 %v8920_v48, 16 }
  0x86   : > { %v1549_v40 = vrot.slane %v1547_v5, 4  ;;  %v1076_v60 = vsel %vm8514_vm13, %v828_v58, %v1075_v38  ;;  %v1548_v39 = vsel %vm8431_vm10, %v6463_v24, %v1547_v5  ;;  %2051 = vmatmul.mubr.bf16.gmra.mxu1 %v6446_v44  ;;  %v1550_v59 = vrot.slane %v1161_v17, 5  ;;  %v2072_v57 = vld [vmem:[#allocation2 + $0x20] sm:$0x1] }
  0x87   : > { %v837_v49 = vsel %vm8523_vm14, %v829_v29, %v836_v32  ;;  %1077 = vst [vmem:[#allocation2 + $0x60] sm:$0xf] %v1076_v60  ;;  %v1336_v4 = vrot.slane %v1334_v54, 4  ;;  %v1347_v63 = vshrl.u32 %v8920_v48, 16  ;;  %v1339_v12 = vrot.slane %v1337_v30, 5 }
  0x88   : > { %1078 = vst [vmem:[#allocation2 + $0x64] sm:$0xf] %v837_v49  ;;  %v1345_v22 = vrot.slane %v1343_v50, 5  ;;  %v1353_v0 = vshll.u32 %v1161_v17, 16  ;;  %v6447_v10 = vcombine.low %v8931_v7, %v8920_v48  ;;  %v1551_v9 = vsel %vm8431_vm10, %v1549_v40, %v1550_v59  ;;  %v9261_v31 = vld [vmem:[%s11055_s1] ss:$0 sm:$0xff] }
  0x89   : > { %v1349_v62 = vrot.slane %v1347_v63, 4  ;;  %v2107_v43 = vrot.slane %v2105_v14, 4  ;;  %v2113_v8 = vrot.slane %v2111_v1, 5  ;;  %v6471_v56 = vcombine.low %v1548_v39, %v1551_v9  ;;  %v2070_v39 = vld [vmem:[#allocation2 + $0x18] sm:$0xf] }
  0x8a   : > { %v1340_v19 = vor.u32 %v1339_v12, %v1336_v4  ;;  %v1355_v26 = vrot.slane %v1353_v0, 5  ;;  %v2317_v28 = vrot.slane %v8857_v13, 5  ;;  %v2320_v38 = vrot.slane %v8893_v21, 5  ;;  %v2284_v13 = vld [vmem:[#allocation2 + $0x18] sm:$0xe] }
  0x8b   : > { %v1350_v23 = vor.u32 %v1349_v62, %v1345_v22  ;;  %v2108_v34 = vor.u32 %v2107_v43, %v8899_v47  ;;  %v2092_v41 = vshrl.u32 %v2067_v11, 16  ;;  %v2095_v55 = vshll.u32 %v2067_v11, 16 }
  0x8c   : > { %v1341_v44 = vrot.slane %v1340_v19, 4  ;;  %v2318_v45 = vsel %vm8431_vm10, %v6544_v6, %v2317_v28  ;;  %v2319_v48 = vrot.slane %v2317_v28, 4  ;;  %v2703_v7 = vshrl.u32 %v8902_v15, 16  ;;  %v2071_v6 = vld [vmem:[#allocation2 + $0x1c] sm:$0xf] }
  0x8d   : > { %v1351_v14 = vrot.slane %v1350_v23, 4  ;;  %v2109_v1 = vrot.slane %v2108_v34, 4  ;;  %v2094_v5 = vrot.slane %v2092_v41, 4  ;;  %v2097_v29 = vrot.slane %v2095_v55, 5 }
  0x8e   : > { %v1346_v58 = vsel %vm8417_vm9, %v1341_v44, %v1345_v22  ;;  %v2321_v21 = vsel %vm8431_vm10, %v2319_v48, %v2320_v38  ;;  %v2706_v24 = vshll.u32 %v8902_v15, 16  ;;  %v2705_v17 = vrot.slane %v2703_v7, 4  ;;  %v8050_v48 = vld [vmem:[%s11058_s4 + $0x238] sm:$0xff]  }
  0x8f   : > { %v8043_v32 = vld [vmem:[#allocation2 + $0x60] sm:$0xff]   ;;  %v1356_v40 = vsel %vm8417_vm9, %v1351_v14, %v1355_v26  ;;  %v6560_v54 = vcombine.low %v2318_v45, %v2321_v21  ;;  %v2114_v60 = vsel %vm8417_vm9, %v2109_v1, %v2113_v8  ;;  %v2098_v50 = vor.u32 %v2097_v29, %v2094_v5  ;;  %v8054_v21 = vld [vmem:[%s11058_s4 + $0x270] sm:$0xff]  }
  0x90   : > { %v6455_v30 = vcombine.low %v1346_v58, %v1356_v40  ;;  %v2708_v49 = vrot.slane %v2706_v24, 5  ;;  %v2712_v59 = vshll.u32 %v8904_v18, 16  ;;  %1865 = vmatprep.mubr.bf16.mxu0 %v8043_v32  ;;  %v2716_v4 = vshrl.u32 %v8904_v18, 16  ;;  %v8053_v58 = vld [vmem:[%s11058_s4 + $0xb8] sm:$0xff]  }
  0x91   : > { %v2722_v63 = vshll.u32 %v2694_v35, 16  ;;  %v6545_v12 = vrot.slane %v2284_v13, 9  ;;  %v2324_v22 = vrot.slane %v2071_v6, 5  ;;  %1866 = vmatmul.mubr.bf16.gmra.mxu0 %v6471_v56  ;;  %v2099_v0 = vrot.slane %v2098_v50, 4  ;;  %v8980_v13 = vld [vmem:[#allocation2 + $0x2c] sm:$0x1] }
  0x92   : > { %2058 = vmatprep.mubr.bf16.mxu1 %v6455_v30  ;;  %v2709_v11 = vor.u32 %v2708_v49, %v2705_v17  ;;  %v2714_v9 = vrot.slane %v2712_v59, 5  ;;  %v2327_v62 = vrot.slane %v2072_v57, 5  ;;  %2596 = vmatprep.mubr.bf16.mxu0 %v6560_v54  ;;  %v2718_v43 = vrot.slane %v2716_v4, 4  ;;  %v8991_v54 = vld [vmem:[#allocation2 + $0x2c] sm:$0x1]  ;;  %v8055_v30 = vld [vmem:[%s11058_s4 + $0x230] sm:$0xff]  }
  0x93   : > { %2059 = vmatmul.mubr.bf16.gmra.mxu1 %v6447_v10  ;;  %v2724_v8 = vrot.slane %v2722_v63, 5  ;;  %v2325_v19 = vsel %vm8431_vm10, %v6545_v12, %v2324_v22  ;;  %v2326_v26 = vrot.slane %v2324_v22, 4  ;;  %v2104_v28 = vsel %vm8417_vm9, %v2099_v0, %v8899_v47  ;;  %v8999_v50 = vld [vmem:[#allocation2 + $0x28] sm:$0xf]  ;;  %v2073_v49 = vld [vmem:[#allocation2 + $0x24] sm:$0xf] }
  0x94   : > { %v2710_v23 = vrot.slane %v2709_v11, 4  ;;  %v2116_v34 = vshrl.u32 %v2070_v39, 16  ;;  %v2119_v56 = vshll.u32 %v2070_v39, 16  ;;  %v6552_v38 = vcombine.low %v2104_v28, %v2114_v60  ;;  %v8057_v22 = vld [vmem:[%s11058_s4 + $0xf0] sm:$0xff]  }
  0x95   : > { %v2719_v41 = vor.u32 %v2718_v43, %v2714_v9  ;;  %v2328_v44 = vsel %vm8431_vm10, %v2326_v26, %v2327_v62  ;;  %v2125_v10 = vshll.u32 %v2071_v6, 16  ;;  %v2129_v5 = vshrl.u32 %v2071_v6, 16  ;;  %v8059_v43 = vld [vmem:[%s11058_s4 + $0x268] sm:$0xff]  }
  0x96   : > { %v2715_v45 = vsel %vm8417_vm9, %v2710_v23, %v2714_v9  ;;  %v6561_v55 = vcombine.low %v2325_v19, %v2328_v44  ;;  %v2118_v35 = vrot.slane %v2116_v34, 4  ;;  %v2121_v14 = vrot.slane %v2119_v56, 5  ;;  %v8058_v44 = vld [vmem:[%s11058_s4 + $0xb0] sm:$0xff]  }
  0x97   : > { %v2720_v47 = vrot.slane %v2719_v41, 4  ;;  %v2127_v1 = vrot.slane %v2125_v10, 5  ;;  %v2135_v7 = vshll.u32 %v2072_v57, 16  ;;  %v2727_v24 = vshrl.u32 %v8906_v2, 16  ;;  %v2285_v57 = vld [vmem:[#allocation2 + $0x24] sm:$0xe] }
  0x98   : > { %v2122_v29 = vor.u32 %v2121_v14, %v2118_v35  ;;  %v2730_v32 = vshll.u32 %v8906_v2, 16  ;;  %v2736_v40 = vshll.u32 %v8908_v27, 16  ;;  %v2131_v60 = vrot.slane %v2129_v5, 4  ;;  %v8060_v35 = vld [vmem:[%s11058_s4 + $0x228] sm:$0xff]  }
  0x99   : > { %v2725_v6 = vsel %vm8417_vm9, %v2720_v47, %v2724_v8  ;;  %v2137_v17 = vrot.slane %v2135_v7, 5  ;;  %v2740_v39 = vshrl.u32 %v8908_v27, 16  ;;  %2597 = vmatmul.mubr.bf16.vlgmr.msra.gmra.mxu0 %v6552_v38  ;;  %v2729_v63 = vrot.slane %v2727_v24, 4  ;;  %v9030_v7 = vld [vmem:[#allocation2 + $0x38] sm:$0x1] }
  0x9a   : > { %v6624_v59 = vcombine.low %v2715_v45, %v2725_v6  ;;  %v2123_v4 = vrot.slane %v2122_v29, 4  ;;  %v2732_v12 = vrot.slane %v2730_v32, 5  ;;  %7577 = vmatpush3.bf16.msra.mxu0 %v8050_v48  ;;  %2604 = vmatprep.mubr.bf16.mxu0 %v6561_v55  ;;  %v2132_v0 = vor.u32 %v2131_v60, %v2127_v1 }
  0x9b   : > { %v2738_v11 = vrot.slane %v2736_v40, 5  ;;  %v2742_v9 = vrot.slane %v2740_v39, 4  ;;  %v2746_v62 = vshll.u32 %v8980_v13, 16  ;;  %7578 = vmatprep.subr.bf16.mxu0 %v8054_v21  ;;  %v6546_v26 = vrot.slane %v2285_v57, 9  ;;  %v8064_v21 = vld [vmem:[%s11058_s4 + $0x260] sm:$0xff]   ;;  %v8063_v39 = vld [vmem:[%s11058_s4 + $0xa8] sm:$0xff]  }
  0x9c   : > { %3135 = vmatprep.mubr.bf16.mxu1 %v6624_v59  ;;  %v2128_v8 = vsel %vm8417_vm9, %v2123_v4, %v2127_v1  ;;  %v2733_v19 = vor.u32 %v2732_v12, %v2729_v63  ;;  %v2331_v28 = vrot.slane %v8999_v50, 5  ;;  %v2133_v23 = vrot.slane %v2132_v0, 4  ;;  %v2077_v63 = vld [vmem:[#allocation2 + $0x34] sm:$0xf]  ;;  %v2286_v12 = vld [vmem:[#allocation2 + $0x30] sm:$0xe] }
  0x9d   : > { %3136 = vmatmul.mubr.bf16.vlgmr.msra.gmra.mxu1 %v6616_v52  ;;  %v2743_v34 = vor.u32 %v2742_v9, %v2738_v11  ;;  %v2748_v56 = vrot.slane %v2746_v62, 5  ;;  %v2334_v38 = vrot.slane %v8991_v54, 5  ;;  %v2140_v48 = vshrl.u32 %v2073_v49, 16 }
  0x9e   : > { %7641 = vmatpush3.bf16.msra.mxu1 %v8053_v58  ;;  %v2734_v41 = vrot.slane %v2733_v19, 4  ;;  %v2332_v10 = vsel %vm8431_vm10, %v6546_v26, %v2331_v28  ;;  %v2333_v45 = vrot.slane %v2331_v28, 4  ;;  %v2138_v15 = vsel %vm8417_vm9, %v2133_v23, %v2137_v17  ;;  %7579 = vmatpush3.bf16.msra.mxu0 %v8055_v30  ;;  %v8062_v58 = vld [vmem:[%s11058_s4 + $0xe8] sm:$0xff]   ;;  %v8065_v30 = vld [vmem:[%s11058_s4 + $0x220] sm:$0xff]  }
  0x9f   : > { %v2744_v18 = vrot.slane %v2743_v34, 4  ;;  %7642 = vmatprep.subr.bf16.mxu1 %v8057_v22  ;;  %v2143_v52 = vshll.u32 %v2073_v49, 16  ;;  %v2149_v55 = vshll.u32 %v8999_v50, 16  ;;  %v6553_v14 = vcombine.low %v2128_v8, %v2138_v15  ;;  %7580 = vmatprep.subr.bf16.mxu0 %v8059_v43  ;;  %v8067_v49 = vld [vmem:[%s11058_s4 + $0xe0] sm:$0xff]   ;;  %v8069_v22 = vld [vmem:[%s11058_s4 + $0x258] sm:$0xff]  }
  0xa0   : > { %v2739_v47 = vsel %vm8417_vm9, %v2734_v41, %v2738_v11  ;;  %v2335_v1 = vsel %vm8431_vm10, %v2333_v45, %v2334_v38  ;;  %v2142_v5 = vrot.slane %v2140_v48, 4  ;;  %v2153_v6 = vshrl.u32 %v8999_v50, 16  ;;  %v9061_v43 = vld [vmem:[#allocation2 + $0x38] sm:$0x1]  ;;  %v8068_v8 = vld [vmem:[%s11058_s4 + $0xa0] sm:$0xff]  }
  0xa1   : > { %v2749_v29 = vsel %vm8417_vm9, %v2744_v18, %v2748_v56  ;;  %v6562_v24 = vcombine.low %v2332_v10, %v2335_v1  ;;  %v2145_v32 = vrot.slane %v2143_v52, 5  ;;  %v9040_v40 = vrot.slane %v2149_v55, 5  ;;  %2605 = vmatmul.mubr.bf16.gmra.mxu0 %v6553_v14  ;;  %v2076_v34 = vld [vmem:[#allocation2 + $0x30] sm:$0xf]  ;;  %v8070_v10 = vld [vmem:[%s11058_s4 + $0x218] sm:$0xff]  }
  0xa2   : > { %v6625_v57 = vcombine.low %v2739_v47, %v2749_v29  ;;  %7643 = vmatpush3.bf16.msra.mxu1 %v8058_v44  ;;  %v2159_v60 = vshll.u32 %v8991_v54, 16  ;;  %v2751_v17 = vshrl.u32 %v8912_v20, 16  ;;  %v2754_v50 = vshll.u32 %v8912_v20, 16  ;;  %7581 = vmatpush3.bf16.msra.mxu0 %v8060_v35  ;;  %v8072_v48 = vld [vmem:[%s11058_s4 + $0xd8] sm:$0xff]   ;;  %v8074_v14 = vld [vmem:[%s11058_s4 + $0x250] sm:$0xff]  }
  0xa3   : > { %2612 = vmatprep.mubr.bf16.mxu0 %v6562_v24  ;;  %v2146_v59 = vor.u32 %v2145_v32, %v2142_v5  ;;  %v2760_v54 = vshll.u32 %v8914_v25, 16  ;;  %v2764_v4 = vshrl.u32 %v8914_v25, 16  ;;  %v2155_v0 = vrot.slane %v2153_v6, 4  ;;  %7644 = vmatprep.subr.bf16.mxu1 %v8062_v58  ;;  %v9082_v35 = vld [vmem:[#allocation2 + $0x3c] sm:$0xf] }
  0xa4   : > { %3143 = vmatprep.mubr.bf16.mxu1 %v6625_v57  ;;  %v2161_v11 = vrot.slane %v2159_v60, 5  ;;  %v2753_v9 = vrot.slane %v2751_v17, 4  ;;  %v2770_v62 = vshll.u32 %v9030_v7, 16  ;;  %v2756_v26 = vrot.slane %v2754_v50, 5  ;;  %7582 = vmatprep.subr.bf16.mxu0 %v8064_v21  ;;  %v8073_v57 = vld [vmem:[%s11058_s4 + $0x98] sm:$0xff]  }
  0xa5   : > { %3144 = vmatmul.mubr.bf16.gmra.mxu1 %v6617_v53  ;;  %v2147_v19 = vrot.slane %v2146_v59, 4  ;;  %v2762_v28 = vrot.slane %v2760_v54, 5  ;;  %v2766_v23 = vrot.slane %v2764_v4, 4  ;;  %v2156_v56 = vor.u32 %v2155_v0, %v9040_v40 }
  0xa6   : > { %v2772_v38 = vrot.slane %v2770_v62, 5  ;;  %7645 = vmatpush3.bf16.msra.mxu1 %v8063_v39  ;;  %v6547_v41 = vrot.slane %v2286_v12, 9  ;;  %v2338_v44 = vrot.slane %v2077_v63, 5  ;;  %v2757_v27 = vor.u32 %v2756_v26, %v2753_v9  ;;  %7583 = vmatpush3.bf16.msra.mxu0 %v8065_v30  ;;  %v9100_v30 = vld [vmem:[#allocation2 + $0x44] sm:$0x1]  ;;  %v8077_v9 = vld [vmem:[%s11058_s4 + $0xd0] sm:$0xff]  }
  0xa7   : > { %v2152_v2 = vsel %vm8417_vm9, %v2147_v19, %v9040_v40  ;;  %v2767_v53 = vor.u32 %v2766_v23, %v2762_v28  ;;  %v2341_v45 = vrot.slane %v9061_v43, 5  ;;  %7646 = vmatprep.subr.bf16.mxu1 %v8067_v49  ;;  %v2157_v15 = vrot.slane %v2156_v56, 4  ;;  %7584 = vmatprep.subr.bf16.mxu0 %v8069_v22  ;;  %v9091_v40 = vld [vmem:[#allocation2 + $0x40] sm:$0xf]  ;;  %v8075_v49 = vld [vmem:[%s11058_s4 + $0x210] sm:$0xff]   ;;  %v8080_v62 = vld [vmem:[%s11058_s4 + $0x208] sm:$0xff]  }
  0xa8   : > { %v2339_v18 = vsel %vm8431_vm10, %v6547_v41, %v2338_v44  ;;  %v2340_v52 = vrot.slane %v2338_v44, 4  ;;  %v2164_v55 = vshrl.u32 %v2076_v34, 16  ;;  %v2758_v47 = vrot.slane %v2757_v27, 4  ;;  %v2081_v23 = vld [vmem:[#allocation2 + $0x44] sm:$0x1]  ;;  %v8078_v56 = vld [vmem:[%s11058_s4 + $0x90] sm:$0xff]  }
  0xa9   : > { %v2768_v1 = vrot.slane %v2767_v53, 4  ;;  %v2167_v5 = vshll.u32 %v2076_v34, 16  ;;  %v2173_v58 = vshll.u32 %v2077_v63, 16  ;;  %v2162_v21 = vsel %vm8417_vm9, %v2157_v15, %v2161_v11  ;;  %v2287_v34 = vld [vmem:[#allocation2 + $0x3c] sm:$0xe]  ;;  %v8082_v53 = vld [vmem:[%s11058_s4 + $0xc8] sm:$0xff]  }
  0xaa   : > { %v2342_v29 = vsel %vm8431_vm10, %v2340_v52, %v2341_v45  ;;  %v2166_v24 = vrot.slane %v2164_v55, 4  ;;  %v2177_v32 = vshrl.u32 %v2077_v63, 16  ;;  %7647 = vmatpush3.bf16.msra.mxu1 %v8068_v8  ;;  %v6554_v6 = vcombine.low %v2152_v2, %v2162_v21  ;;  %7585 = vmatpush3.bf16.msra.mxu0 %v8070_v10  ;;  %v8079_v63 = vld [vmem:[%s11058_s4 + $0x248] sm:$0xff]   ;;  %v2079_v27 = vld [vmem:[#allocation2 + $0x3c] sm:$0xf] }
  0xab   : > { %v2763_v60 = vsel %vm8417_vm9, %v2758_v47, %v2762_v28  ;;  %v2773_v17 = vsel %vm8417_vm9, %v2768_v1, %v2772_v38  ;;  %v6563_v39 = vcombine.low %v2339_v18, %v2342_v29  ;;  %v2169_v50 = vrot.slane %v2167_v5, 5  ;;  %7648 = vmatprep.subr.bf16.mxu1 %v8072_v48  ;;  %7586 = vmatprep.subr.bf16.mxu0 %v8074_v14  ;;  %v2080_v28 = vld [vmem:[#allocation2 + $0x40] sm:$0xf]  ;;  %v8083_v5 = vld [vmem:[%s11058_s4 + $0x88] sm:$0xff]  }
  0xac   : > { %v6626_v59 = vcombine.low %v2763_v60, %v2773_v17  ;;  %v2175_v54 = vrot.slane %v2173_v58, 5  ;;  %v2179_v4 = vrot.slane %v2177_v32, 4  ;;  %2613 = vmatmul.mubr.bf16.gmra.mxu0 %v6554_v6  ;;  %v2183_v12 = vshll.u32 %v9061_v43, 16  ;;  %v8084_v38 = vld [vmem:[%s11058_s4 + $0x240] sm:$0xff]   ;;  %v9146_v32 = vld [vmem:[#allocation2 + $0x48] sm:$0xf] }
  0xad   : > { %v2775_v22 = vshrl.u32 %v9082_v35, 16  ;;  %v2778_v0 = vshll.u32 %v9082_v35, 16  ;;  %v2784_v11 = vshll.u32 %v9091_v40, 16  ;;  %2620 = vmatprep.mubr.bf16.mxu0 %v6563_v39  ;;  %v2170_v8 = vor.u32 %v2169_v50, %v2166_v24  ;;  %v8085_v58 = vld [vmem:[%s11058_s4 + $0x200] sm:$0xff]  }
  0xae   : > { %3151 = vmatprep.mubr.bf16.mxu1 %v6626_v59  ;;  %v2180_v19 = vor.u32 %v2179_v4, %v2175_v54  ;;  %v2788_v43 = vshrl.u32 %v9091_v40, 16  ;;  %v2794_v26 = vshll.u32 %v9100_v30, 16  ;;  %v2185_v41 = vrot.slane %v2183_v12, 5  ;;  %7587 = vmatpush3.bf16.msra.mxu0 %v8075_v49  ;;  %v9151_v49 = vld [vmem:[#allocation2 + $0x4c] sm:$0xf] }
  0xaf   : > { %3152 = vmatmul.mubr.bf16.gmra.mxu1 %v6618_v61  ;;  %v2777_v44 = vrot.slane %v2775_v22, 4  ;;  %v2780_v10 = vrot.slane %v2778_v0, 5  ;;  %v2786_v2 = vrot.slane %v2784_v11, 5  ;;  %v2171_v45 = vrot.slane %v2170_v8, 4  ;;  %7588 = vmatprep.subr.bf16.mxu0 %v8079_v63  ;;  %v9159_v11 = vld [vmem:[#allocation2 + $0x50] sm:$0x1] }
  0xb0   : > { %v2181_v48 = vrot.slane %v2180_v19, 4  ;;  %v2790_v15 = vrot.slane %v2788_v43, 4  ;;  %v2796_v18 = vrot.slane %v2794_v26, 5  ;;  %7649 = vmatpush3.bf16.msra.mxu1 %v8073_v57  ;;  %v6619_v20 = vcombine.low %v9082_v35, %v9091_v40  ;;  %v8087_v57 = vld [vmem:[%s11058_s4 + $0xc0] sm:$0xff]   ;;  %v2084_v26 = vld [vmem:[#allocation2 + $0x50] sm:$0x1] }
  0xb1   : > { %v2781_v52 = vor.u32 %v2780_v10, %v2777_v44  ;;  %v6548_v25 = vrot.slane %v2287_v34, 9  ;;  %v2345_v61 = vrot.slane %v2080_v28, 5  ;;  %7650 = vmatprep.subr.bf16.mxu1 %v8077_v9  ;;  %v2176_v55 = vsel %vm8417_vm9, %v2171_v45, %v2175_v54  ;;  %v8089_v9 = vld [vmem:[%s11058_s4 + $0x78] sm:$0xff]   ;;  %v2082_v44 = vld [vmem:[#allocation2 + $0x48] sm:$0xf] }
  0xb2   : > { %v2186_v14 = vsel %vm8417_vm9, %v2181_v48, %v2185_v41  ;;  %v2791_v47 = vor.u32 %v2790_v15, %v2786_v2  ;;  %v2348_v1 = vrot.slane %v2081_v23, 5  ;;  %7589 = vmatpush3.bf16.msra.mxu0 %v8080_v62  ;;  %v2188_v60 = vshrl.u32 %v2079_v27, 16  ;;  %v8092_v10 = vld [vmem:[%s11058_s4 + $0x178] sm:$0xff]   ;;  %v2083_v48 = vld [vmem:[#allocation2 + $0x4c] sm:$0xf] }
  0xb3   : > { %v6555_v35 = vcombine.low %v2176_v55, %v2186_v14  ;;  %v2782_v21 = vrot.slane %v2781_v52, 4  ;;  %v2346_v29 = vsel %vm8431_vm10, %v6548_v25, %v2345_v61  ;;  %v2347_v24 = vrot.slane %v2345_v61, 4  ;;  %7590 = vmatprep.subr.bf16.mxu0 %v8084_v38 }
  0xb4   : > { %v2792_v6 = vrot.slane %v2791_v47, 4  ;;  %v2191_v17 = vshll.u32 %v2079_v27, 16  ;;  %v2197_v39 = vshll.u32 %v2080_v28, 16  ;;  %7651 = vmatpush3.bf16.msra.mxu1 %v8078_v56  ;;  %v2201_v54 = vshrl.u32 %v2080_v28, 16  ;;  %v2288_v28 = vld [vmem:[#allocation2 + $0x48] sm:$0xe] }
  0xb5   : > { %2621 = vmatmul.mubr.bf16.gmra.mxu0 %v6555_v35  ;;  %v2787_v59 = vsel %vm8417_vm9, %v2782_v21, %v2786_v2  ;;  %v2349_v50 = vsel %vm8431_vm10, %v2347_v24, %v2348_v1  ;;  %v2207_v4 = vshll.u32 %v2081_v23, 16  ;;  %7652 = vmatprep.subr.bf16.mxu1 %v8082_v53  ;;  %v2190_v22 = vrot.slane %v2188_v60, 4  ;;  %v8088_v23 = vld [vmem:[%s11058_s4 + $0x80] sm:$0xff]  }
  0xb6   : > { %v2797_v63 = vsel %vm8417_vm9, %v2792_v6, %v2796_v18  ;;  %v6564_v12 = vcombine.low %v2346_v29, %v2349_v50  ;;  %v2193_v0 = vrot.slane %v2191_v17, 5  ;;  %v2199_v8 = vrot.slane %v2197_v39, 5  ;;  %7591 = vmatpush3.bf16.msra.mxu0 %v8085_v58 }
  0xb7   : > { %v6627_v62 = vcombine.low %v2787_v59, %v2797_v63  ;;  %v2203_v19 = vrot.slane %v2201_v54, 4  ;;  %v2209_v43 = vrot.slane %v2207_v4, 5  ;;  %v2799_v56 = vshrl.u32 %v9146_v32, 16  ;;  %7704 = vmatprep.subr.bf16.mxu0 %v8089_v9  ;;  %v9185_v4 = vld [vmem:[#allocation2 + $0x58] sm:$0xf] }
  0xb8   : > { %2628 = vmatprep.mubr.bf16.mxu0 %v6564_v12  ;;  %v2194_v34 = vor.u32 %v2193_v0, %v2190_v22  ;;  %v2802_v38 = vshll.u32 %v9146_v32, 16  ;;  %v2808_v41 = vshll.u32 %v9151_v49, 16  ;;  %7653 = vmatpush3.bf16.msra.mxu1 %v8083_v5  ;;  %v2812_v27 = vshrl.u32 %v9151_v49, 16  ;;  %v2699_v9 = vld [vmem:[#allocation2 + $0x5c] sm:$0x1] }
  0xb9   : > { %3159 = vmatprep.mubr.bf16.mxu1 %v6627_v62  ;;  %v2204_v2 = vor.u32 %v2203_v19, %v2199_v8  ;;  %v2818_v53 = vshll.u32 %v9159_v11, 16  ;;  %v6620_v45 = vcombine.low %v9146_v32, %v9151_v49  ;;  %7654 = vmatprep.subr.bf16.mxu1 %v8087_v57  ;;  %v2801_v18 = vrot.slane %v2799_v56, 4  ;;  %v9181_v32 = vld [vmem:[#allocation2 + $0x54] sm:$0xf] }
  0xba   : > { %3160 = vmatmul.mubr.bf16.gmra.mxu1 %v6619_v20  ;;  %v2195_v15 = vrot.slane %v2194_v34, 4  ;;  %v2804_v52 = vrot.slane %v2802_v38, 5  ;;  %v2810_v25 = vrot.slane %v2808_v41, 5  ;;  %v2814_v55 = vrot.slane %v2812_v27, 4  ;;  %v2087_v41 = vld [vmem:[#allocation2 + $0x5c] sm:$0x1] }
  0xbb   : > { %v2205_v61 = vrot.slane %v2204_v2, 4  ;;  %v2820_v14 = vrot.slane %v2818_v53, 5  ;;  %v6549_v47 = vrot.slane %v2288_v28, 9  ;;  %v2352_v58 = vrot.slane %v2083_v48, 5  ;;  %v2289_v28 = vld [vmem:[#allocation2 + $0x54] sm:$0xe] }
  0xbc   : > { %v2200_v1 = vsel %vm8417_vm9, %v2195_v15, %v2199_v8  ;;  %v2805_v5 = vor.u32 %v2804_v52, %v2801_v18  ;;  %v2355_v35 = vrot.slane %v2084_v26, 5  ;;  %7655 = vmatpush3.bf16.msra.mxu1 %v8088_v23  ;;  %v2815_v20 = vor.u32 %v2814_v55, %v2810_v25  ;;  %v2085_v27 = vld [vmem:[#allocation2 + $0x54] sm:$0xf] }
  0xbd   : > { %v2210_v21 = vsel %vm8417_vm9, %v2205_v61, %v2209_v43  ;;  %v2212_v29 = vshrl.u32 %v2082_v44, 16  ;;  %v2215_v24 = vshll.u32 %v2082_v44, 16  ;;  %7768 = vmatprep.subr.bf16.mxu1 %v8092_v10  ;;  %v2353_v60 = vsel %vm8431_vm10, %v6549_v47, %v2352_v58 }
  0xbe   : > { %v6556_v57 = vcombine.low %v2200_v1, %v2210_v21  ;;  %v2806_v6 = vrot.slane %v2805_v5, 4  ;;  %v2354_v17 = vrot.slane %v2352_v58, 4  ;;  %v2816_v39 = vrot.slane %v2815_v20, 4 }
  0xbf   : > { %v2214_v59 = vrot.slane %v2212_v29, 4  ;;  %v2217_v50 = vrot.slane %v2215_v24, 5  ;;  %v2221_v54 = vshll.u32 %v2083_v48, 16  ;;  %v2225_v22 = vshrl.u32 %v2083_v48, 16 }
  0xc0   : > { %2629 = vmatmul.mubr.bf16.gmra.mxu0 %v6556_v57  ;;  %v2811_v63 = vsel %vm8417_vm9, %v2806_v6, %v2810_v25  ;;  %v2356_v12 = vsel %vm8431_vm10, %v2354_v17, %v2355_v35  ;;  %v2231_v0 = vshll.u32 %v2084_v26, 16  ;;  %v2821_v62 = vsel %vm8417_vm9, %v2816_v39, %v2820_v14  ;;  %v2086_v14 = vld [vmem:[#allocation2 + $0x58] sm:$0xf]  ;;  %v357_v6 = vld [vmem:[#allocation2 + $0x68] sm:$0x1] }
  0xc1   : > { %v6565_v8 = vcombine.low %v2353_v60, %v2356_v12  ;;  %v2218_v19 = vor.u32 %v2217_v50, %v2214_v59  ;;  %v2223_v43 = vrot.slane %v2221_v54, 5  ;;  %v6628_v23 = vcombine.low %v2811_v63, %v2821_v62  ;;  %v9205_v60 = vld [vmem:[#allocation2 + $0x60] sm:$0xf] }
  0xc2   : > { %v2227_v34 = vrot.slane %v2225_v22, 4  ;;  %v2233_v56 = vrot.slane %v2231_v0, 5  ;;  %v2823_v38 = vshrl.u32 %v9181_v32, 16  ;;  %v2826_v10 = vshll.u32 %v9181_v32, 16  ;;  %v9209_v22 = vld [vmem:[#allocation2 + $0x64] sm:$0xf] }
  0xc3   : > { %2636 = vmatprep.mubr.bf16.mxu0 %v6565_v8  ;;  %v2219_v44 = vrot.slane %v2218_v19, 4  ;;  %v2832_v26 = vshll.u32 %v9185_v4, 16  ;;  %v2836_v2 = vshrl.u32 %v9185_v4, 16  ;;  %3167 = vmatprep.mubr.bf16.mxu1 %v6628_v23  ;;  %v2842_v15 = vshll.u32 %v2699_v9, 16 }
  0xc4   : > { %v2228_v53 = vor.u32 %v2227_v34, %v2223_v43  ;;  %v2825_v48 = vrot.slane %v2823_v38, 4  ;;  %v6621_v18 = vcombine.low %v9181_v32, %v9185_v4  ;;  %3168 = vmatmul.mubr.bf16.gmra.mxu1 %v6620_v45  ;;  %v2828_v25 = vrot.slane %v2826_v10, 5  ;;  %v2290_v34 = vld [vmem:[#allocation2 + $0x60] sm:$0xe] }
  0xc5   : > { %v2224_v52 = vsel %vm8417_vm9, %v2219_v44, %v2223_v43  ;;  %v2834_v61 = vrot.slane %v2832_v26, 5  ;;  %v2838_v55 = vrot.slane %v2836_v2, 4  ;;  %v2844_v1 = vrot.slane %v2842_v15, 5  ;;  %v2089_v26 = vld [vmem:[#allocation2 + $0x64] sm:$0xf] }
  0xc6   : > { %v2229_v47 = vrot.slane %v2228_v53, 4  ;;  %v6550_v5 = vrot.slane %v2289_v28, 9  ;;  %v2359_v58 = vrot.slane %v2086_v14, 5  ;;  %v2829_v35 = vor.u32 %v2828_v25, %v2825_v48  ;;  %v2088_v48 = vld [vmem:[#allocation2 + $0x60] sm:$0xf] }
  0xc7   : > { %v2839_v21 = vor.u32 %v2838_v55, %v2834_v61  ;;  %v2362_v20 = vrot.slane %v2087_v41, 5  ;;  %v2236_v29 = vshrl.u32 %v2085_v27, 16  ;;  %v2239_v57 = vshll.u32 %v2085_v27, 16 }
  0xc8   : > { %v2234_v24 = vsel %vm8417_vm9, %v2229_v47, %v2233_v56  ;;  %v2360_v45 = vsel %vm8431_vm10, %v6550_v5, %v2359_v58  ;;  %v2361_v32 = vrot.slane %v2359_v58, 4  ;;  %v2830_v39 = vrot.slane %v2829_v35, 4  ;;  %v304_v5 = vld [vmem:[#allocation2 + $0x6c] sm:$0x1]  ;;  %v360_v58 = vld [vmem:[#allocation2 + $0x74] sm:$0x1] }
  0xc9   : > { %v6557_v17 = vcombine.low %v2224_v52, %v2234_v24  ;;  %v2840_v59 = vrot.slane %v2839_v21, 4  ;;  %v2238_v50 = vrot.slane %v2236_v29, 4  ;;  %v2241_v4 = vrot.slane %v2239_v57, 5 }
  0xca   : > { %v2363_v54 = vsel %vm8431_vm10, %v2361_v32, %v2362_v20  ;;  %v2245_v63 = vshll.u32 %v2086_v14, 16  ;;  %v2249_v12 = vshrl.u32 %v2086_v14, 16  ;;  %v2835_v0 = vsel %vm8417_vm9, %v2830_v39, %v2834_v61 }
  0xcb   : > { %2637 = vmatmul.mubr.bf16.gmra.mxu0 %v6557_v17  ;;  %v2845_v9 = vsel %vm8417_vm9, %v2840_v59, %v2844_v1  ;;  %v6566_v62 = vcombine.low %v2360_v45, %v2363_v54  ;;  %v2255_v8 = vshll.u32 %v2087_v41, 16  ;;  %v2242_v43 = vor.u32 %v2241_v4, %v2238_v50 }
  0xcc   : > { %v6629_v19 = vcombine.low %v2835_v0, %v2845_v9  ;;  %v2247_v28 = vrot.slane %v2245_v63, 5  ;;  %v2251_v23 = vrot.slane %v2249_v12, 4  ;;  %v358_v38 = vsel %vm8372_vm4, 0, %v357_v6  ;;  %v3216_v6 = vld [vmem:[#allocation2 + $0x18] sm:$0xe] }
  0xcd   : > { %2644 = vmatprep.mubr.bf16.mxu0 %v6566_v62  ;;  %v2257_v56 = vrot.slane %v2255_v8, 5  ;;  %v2847_v44 = vshrl.u32 %v9205_v60, 16  ;;  %v2850_v10 = vshll.u32 %v9205_v60, 16  ;;  %v2243_v2 = vrot.slane %v2242_v43, 4  ;;  %359 = vst [vmem:[#allocation2 + $0x68] sm:$0x1] %v358_v38 }
  0xce   : > { %3175 = vmatprep.mubr.bf16.mxu1 %v6629_v19  ;;  %v2252_v27 = vor.u32 %v2251_v23, %v2247_v28  ;;  %v2856_v41 = vshll.u32 %v9209_v22, 16  ;;  %v2860_v53 = vshrl.u32 %v9209_v22, 16  ;;  %v6622_v25 = vcombine.low %v9205_v60, %v9209_v22  ;;  %v3728_v0 = vld [vmem:[#allocation2 + $0x64] sm:$0xf]  ;;  %v4055_v9 = vld [vmem:[#allocation2 + $0x60] sm:$0xe] }
  0xcf   : > { %3176 = vmatmul.mubr.bf16.gmra.mxu1 %v6621_v18  ;;  %v2849_v15 = vrot.slane %v2847_v44, 4  ;;  %v2852_v52 = vrot.slane %v2850_v10, 5  ;;  %v6551_v61 = vrot.slane %v2290_v34, 9  ;;  %v2248_v55 = vsel %vm8417_vm9, %v2243_v2, %v2247_v28  ;;  %v7297_v18 = vld [vmem:[%s8390_s26 + $0x40] sm:$0xff]   ;;  %v8182_v2 = vld [vmem:[#allocation2 + $0x1c] sm:$0xf] }
  0xd0   : > { %v2253_v14 = vrot.slane %v2252_v27, 4  ;;  %v9225_v47 = vrot.slane %v2856_v41, 5  ;;  %v2862_v1 = vrot.slane %v2860_v53, 4  ;;  %v2366_v21 = vrot.slane %v2089_v26, 5  ;;  %v3217_v44 = vld [vmem:[#allocation2 + $0x24] sm:$0xe] }
  0xd1   : > { %v2853_v35 = vor.u32 %v2852_v52, %v2849_v15  ;;  %v2260_v20 = vshrl.u32 %v2088_v48, 16  ;;  %v2263_v29 = vshll.u32 %v2088_v48, 16  ;;  %v2269_v32 = vshll.u32 %v2089_v26, 16  ;;  %v8183_v41 = vld [vmem:[#allocation2 + $0x20] sm:$0x1] }
  0xd2   : > { %v2258_v24 = vsel %vm8417_vm9, %v2253_v14, %v2257_v56  ;;  %v2863_v45 = vor.u32 %v2862_v1, %v9225_v47  ;;  %v2273_v57 = vshrl.u32 %v2089_v26, 16  ;;  %v9235_v59 = vsel %vm8431_vm10, %v6551_v61, %v2366_v21 }
  0xd3   : > { %v6558_v17 = vcombine.low %v2248_v55, %v2258_v24  ;;  %v9231_v39 = vrot.slane %v2853_v35, 4  ;;  %v9237_v50 = vrot.slane %v2366_v21, 4  ;;  %v2262_v4 = vrot.slane %v2260_v20, 4 }
  0xd4   : > { %v9239_v54 = vrot.slane %v2863_v45, 4  ;;  %v2265_v63 = vrot.slane %v2263_v29, 5  ;;  %v9241_v12 = vrot.slane %v2269_v32, 5  ;;  %v1079_v62 = vld [vmem:[#allocation2 + $0x68] sm:$0x1]  ;;  %v2275_v19 = vrot.slane %v2273_v57, 4 }
  0xd5   : > { %2645 = vmatmul.mubr.bf16.gmra.mxu0 %v6558_v17  ;;  %v2859_v8 = vsel %vm8417_vm9, %v9231_v39, %v9225_v47  ;;  %v305_v43 = vsel %vm8362_vm3, 0, %v304_v5  ;;  %v361_v28 = vsel %vm8372_vm4, 0, %v360_v58  ;;  %v1080_v23 = vsel %vm8362_vm3, %v838_v51, %v1079_v62  ;;  %v9274_v58 = vld [vmem:[%s11056_s2] ss:$0 sm:$0xff]  ;;  %v307_v29 = vld [vmem:[#allocation2 + $0x78] sm:$0x1] }
  0xd6   : > { %v2266_v34 = vor.u32 %v2265_v63, %v2262_v4  ;;  %306 = vst [vmem:[#allocation2 + $0x6c] sm:$0x1] %v305_v43  ;;  %362 = vst [vmem:[#allocation2 + $0x74] sm:$0x1] %v361_v28  ;;  %v7180_v56 = vunpack.c.l.bf16 %v7297_v18  ;;  %v7181_v38 = vunpack.c.h.bf16 %v7297_v18  ;;  %v2276_v10 = vor.u32 %v2275_v19, %v9241_v12  ;;  %v7298_v18 = vld [vmem:[%s8390_s26 + $0x48] sm:$0xff]   ;;  %v9286_v17 = vld [vmem:[%s8390_s26 + $0x50] sm:$0xff]  }
  0xd7   : > { %1081 = vst [vmem:[#allocation2 + $0x68] sm:$0x1] %v1080_v23  ;;  %v6680_v26 = vrot.slane %v3216_v6, 9  ;;  %v3242_v27 = vrot.slane %v8182_v2, 5  ;;  %v3245_v53 = vrot.slane %v8183_v41, 5  ;;  %v6776_v52 = vrot.slane %v4055_v9, 9 }
  0xd8   : > { %v9256_v48 = vrot.slane %v2266_v34, 4  ;;  %v474_v51 = vsub.f32 %v7180_v56, %v9261_v31  ;;  %v475_v15 = vsub.f32 %v7181_v38, %v9261_v31  ;;  %v2277_v61 = vrot.slane %v2276_v10, 4  ;;  %v8186_v57 = vld [vmem:[#allocation2 + $0x28] sm:$0xf]  ;;  %v9302_v34 = vld [vmem:[%s11057_s3] ss:$0 sm:$0xff] }
  0xd9   : > { %v3243_v55 = vsel %vm8431_vm10, %v6680_v26, %v3242_v27  ;;  %v3244_v14 = vrot.slane %v3242_v27, 4  ;;  %v4081_v1 = vrot.slane %v3728_v0, 5  ;;  %v6681_v20 = vrot.slane %v3217_v44, 9 }
  0xda   : > { %v2272_v5 = vsel %vm8417_vm9, %v9256_v48, %v9241_v12  ;;  %v512_v35 = vmul.f32 %v9274_v58, %v474_v51  ;;  %v513_v21 = vmul.f32 %v9274_v58, %v475_v15  ;;  %v3249_v6 = vrot.slane %v8186_v57, 5 }
  0xdb   : > { %v3246_v24 = vsel %vm8431_vm10, %v3244_v14, %v3245_v53  ;;  %v9283_v45 = vsel %vm8431_vm10, %v6776_v52, %v4081_v1  ;;  %v4083_v32 = vrot.slane %v4081_v1, 4  ;;  %v3252_v0 = vrot.slane %v8980_v13, 5 }
  0xdc   : > { %v550_v4 = vmul.f32 %v8469_v46, %v512_v35  ;;  %v551_v63 = vmul.f32 %v8469_v46, %v513_v21  ;;  %v9290_v12 = vcombine.low %v3243_v55, %v3246_v24  ;;  %v3250_v9 = vsel %vm8431_vm10, %v6681_v20, %v3249_v6  ;;  %v3218_v35 = vld [vmem:[#allocation2 + $0x30] sm:$0xe] }
  0xdd   : > { %v3251_v62 = vrot.slane %v3249_v6, 4  ;;  %v308_v19 = vsel %vm8362_vm3, 0, %v307_v29  ;;  %v7184_v43 = vunpack.c.l.bf16 %v7298_v18  ;;  %v7185_v44 = vunpack.c.h.bf16 %v7298_v18 }
  0xde   : > { %v9297_v28 = vld [vmem:[#allocation2 + $0x68] sm:$0x1]  ;;  %v589_v56 = vadd.f32 %v9302_v34, %v550_v4  ;;  %v590_v13 = vadd.f32 %v9302_v34, %v551_v63  ;;  %309 = vst [vmem:[#allocation2 + $0x78] sm:$0x1] %v308_v19  ;;  %v7188_v10 = vunpack.c.l.bf16 %v9286_v17  ;;  %v310_v4 = vld [vmem:[#allocation2 + $0x84] sm:$0x1] }
  0xdf   : > { %v2090_v23 = vld [vmem:[#allocation2 + $0x68] sm:$0x1]  ;;  %v2866_v26 = vshll.u32 %v9297_v28, 16  ;;  %v3253_v51 = vsel %vm8431_vm10, %v3251_v62, %v3252_v0  ;;  %v476_v15 = vsub.f32 %v7184_v43, %v9261_v31  ;;  %v1082_v62 = vld [vmem:[#allocation2 + $0x6c] sm:$0xf]  ;;  %v311_v22 = vsel %vm8362_vm3, 0, %v310_v4 }
  0xe0   : > { %v3743_v38 = vld [vmem:[#allocation2 + $0x68] sm:$0x1]  ;;  %v2369_v2 = vrot.slane %v2090_v23, 5  ;;  %v2279_v27 = vshll.u32 %v2090_v23, 16  ;;  %v7098_v53 = vpack.c.bf16 %v589_v56, %v589_v56  ;;  %v7099_v48 = vpack.c.bf16 %v590_v13, %v590_v13  ;;  %v363_v56 = vld [vmem:[#allocation2 + $0x80] sm:$0x1] }
  0xe1   : > { %v4084_v41 = vrot.slane %v3743_v38, 5  ;;  %v2868_v52 = vrot.slane %v2866_v26, 5  ;;  %v9331_v19 = vcombine.low %v3250_v9, %v3253_v51  ;;  %v514_v43 = vmul.f32 %v9274_v58, %v476_v15  ;;  %v3219_v13 = vld [vmem:[#allocation2 + $0x3c] sm:$0xe]  ;;  %312 = vst [vmem:[#allocation2 + $0x84] sm:$0x1] %v311_v22 }
  0xe2   : > { %v2370_v55 = vsel %vm8431_vm10, %v9237_v50, %v2369_v2  ;;  %v2281_v14 = vrot.slane %v2279_v27, 5  ;;  %v840_v20 = vshrl.u32 %v7098_v53, 16  ;;  %v843_v29 = vshll.u32 %v7098_v53, 16  ;;  %v9376_v4 = vld [vmem:[%s8390_s26 + $0x58] sm:$0xff]  }
  0xe3   : > { %v9316_v1 = vsel %vm8431_vm10, %v4083_v32, %v4084_v41  ;;  %v6567_v21 = vcombine.low %v9235_v59, %v2370_v55  ;;  %v848_v18 = vshrl.u32 %v7099_v48, 16  ;;  %v2869_v24 = vsel %vm8417_vm9, %v9239_v54, %v2868_v52  ;;  %v1086_v54 = vld [vmem:[#allocation2 + $0x74] sm:$0x1] }
  0xe4   : > { %v2282_v57 = vsel %vm8417_vm9, %v2277_v61, %v2281_v14  ;;  %v851_v6 = vshll.u32 %v7099_v48, 16  ;;  %v6784_v50 = vcombine.low %v9283_v45, %v9316_v1  ;;  %v6630_v59 = vcombine.low %v2859_v8, %v2869_v24  ;;  %v313_v24 = vld [vmem:[#allocation2 + $0x90] sm:$0x1] }
  0xe5   : > { %2652 = vmatprep.mubr.bf16.mxu0 %v6567_v21  ;;  %v6559_v32 = vcombine.low %v2272_v5, %v2282_v57  ;;  %v842_v63 = vrot.slane %v840_v20, 7  ;;  %v850_v0 = vrot.slane %v848_v18, 7  ;;  %v477_v61 = vsub.f32 %v7185_v44, %v9261_v31  ;;  %v8188_v44 = vld [vmem:[#allocation2 + $0x34] sm:$0xf] }
  0xe6   : > { %v6682_v23 = vrot.slane %v3218_v35, 9  ;;  %3183 = vmatprep.mubr.bf16.mxu1 %v6630_v59  ;;  %v552_v9 = vmul.f32 %v8469_v46, %v514_v43  ;;  %v3256_v26 = vrot.slane %v8188_v44, 5  ;;  %v3259_v2 = vrot.slane %v9030_v7, 5  ;;  %v8094_v35 = vld [vmem:[%s11058_s4 + $0x70] sm:$0xff]  }
  0xe7   : > { %2653 = vmatmul.mubr.bf16.gmra.mxu0 %v6559_v32  ;;  %v845_v38 = vor.u32 %v843_v29, %v842_v63  ;;  %v846_v47 = vrot.slane %v842_v63, 4  ;;  %v853_v39 = vor.u32 %v851_v6, %v850_v0  ;;  %v855_v8 = vrot.slane %v850_v0, 4  ;;  %3184 = vmatmul.mubr.bf16.gmra.mxu1 %v6622_v25  ;;  %v8091_v25 = vld [vmem:[%s11058_s4 + $0x38] sm:$0xff]   ;;  %v8098_v45 = vld [vmem:[%s11058_s4 + $0x130] sm:$0xff]  }
  0xe8   : > { %3489 = vmatprep.mubr.bf16.mxu0 %v9290_v12  ;;  %v515_v5 = vmul.f32 %v9274_v58, %v477_v61  ;;  %v591_v53 = vadd.f32 %v9302_v34, %v552_v9  ;;  %v3257_v48 = vsel %vm8431_vm10, %v6682_v23, %v3256_v26  ;;  %v3258_v51 = vrot.slane %v3256_v26, 4 }
  0xe9   : > { %v854_v27 = vsel %vm8523_vm14, %v846_v47, %v853_v39  ;;  %v1083_v41 = vsel %vm8514_vm13, %v845_v38, %v1082_v62  ;;  %v1087_v60 = vsel %vm8362_vm3, %v855_v8, %v1086_v54  ;;  %v7189_v15 = vunpack.c.h.bf16 %v9286_v17 }
  0xea   : > { %1084 = vst [vmem:[#allocation2 + $0x6c] sm:$0xf] %v1083_v41  ;;  %1085 = vst [vmem:[#allocation2 + $0x70] sm:$0xf] %v854_v27  ;;  %v553_v7 = vmul.f32 %v8469_v46, %v515_v5  ;;  %v478_v52 = vsub.f32 %v7188_v10, %v9261_v31  ;;  %v364_v55 = vsel %vm8372_vm4, 0, %v363_v56  ;;  %v6683_v14 = vrot.slane %v3219_v13, 9 }
  0xeb   : > { %1088 = vst [vmem:[#allocation2 + $0x74] sm:$0x1] %v1087_v60  ;;  %v7100_v20 = vpack.c.bf16 %v591_v53, %v591_v53  ;;  %v3260_v29 = vsel %vm8431_vm10, %v3258_v51, %v3259_v2  ;;  %365 = vst [vmem:[#allocation2 + $0x80] sm:$0x1] %v364_v55  ;;  %v3263_v18 = vrot.slane %v9091_v40, 5  ;;  %v479_v10 = vsub.f32 %v7189_v15, %v9261_v31  ;;  %v8096_v40 = vld [vmem:[%s11058_s4 + $0x30] sm:$0xff]  }
  0xec   : > { %v592_v21 = vadd.f32 %v9302_v34, %v553_v7  ;;  %v9370_v17 = vcombine.low %v3257_v48, %v3260_v29  ;;  %v516_v57 = vmul.f32 %v9274_v58, %v478_v52  ;;  %v3266_v6 = vrot.slane %v9100_v30, 5  ;;  %v1089_v13 = vld [vmem:[#allocation2 + $0x78] sm:$0xf]  ;;  %v8101_v48 = vld [vmem:[%s11058_s4 + $0x28] sm:$0xff]   ;;  %v8104_v51 = vld [vmem:[%s11058_s4 + $0x60] sm:$0xff]  }
  0xed   : > { %v857_v32 = vshrl.u32 %v7100_v20, 16  ;;  %v860_v63 = vshll.u32 %v7100_v20, 16  ;;  %v9380_v0 = vsel %vm8431_vm10, %v6683_v14, %v3263_v18  ;;  %v517_v62 = vmul.f32 %v9274_v58, %v479_v10 }
  0xee   : > { %v7101_v59 = vpack.c.bf16 %v592_v21, %v592_v21  ;;  %v554_v54 = vmul.f32 %v8469_v46, %v516_v57  ;;  %v3265_v30 = vrot.slane %v3263_v18, 4  ;;  %v314_v61 = vsel %vm8362_vm3, 0, %v313_v24 }
  0xef   : > { %3490 = vmatmul.mubr.bf16.vlgmr.msra.gmra.mxu0 %v9290_v12  ;;  %v859_v43 = vrot.slane %v857_v32, 7  ;;  %v8099_v12 = vld [vmem:[%s11058_s4 + $0x68] sm:$0xff]   ;;  %315 = vst [vmem:[#allocation2 + $0x90] sm:$0x1] %v314_v61  ;;  %v7192_v38 = vunpack.c.l.bf16 %v9376_v4  ;;  %v555_v5 = vmul.f32 %v8469_v46, %v517_v62  ;;  %v7193_v26 = vunpack.c.h.bf16 %v9376_v4  ;;  %v8106_v61 = vld [vmem:[%s11058_s4 + $0x20] sm:$0xff]  }
  0xf0   : > { %7705 = vmatpush3.bf16.msra.mxu0 %v8091_v25  ;;  %3497 = vmatprep.mubr.bf16.mxu0 %v9331_v19  ;;  %v865_v23 = vshrl.u32 %v7101_v59, 16  ;;  %v868_v56 = vshll.u32 %v7101_v59, 16  ;;  %v593_v9 = vadd.f32 %v9302_v34, %v554_v54  ;;  %v9405_v44 = vsel %vm8431_vm10, %v3265_v30, %v3266_v6 }
  0xf1   : > { %v9395_v47 = vld [vmem:[#allocation2 + $0x6c] sm:$0xf]  ;;  %v9397_v39 = vld [vmem:[#allocation2 + $0x70] sm:$0xf]  ;;  %7706 = vmatprep.subr.bf16.mxu0 %v8094_v35  ;;  %v862_v7 = vor.u32 %v860_v63, %v859_v43  ;;  %v863_v53 = vrot.slane %v859_v43, 4  ;;  %v594_v10 = vadd.f32 %v9302_v34, %v555_v5  ;;  %v8109_v43 = vld [vmem:[%s11058_s4 + $0x58] sm:$0xff]  }
  0xf2   : > { %v9399_v8 = vld [vmem:[#allocation2 + $0x74] sm:$0x1]  ;;  %v2871_v2 = vshrl.u32 %v9395_v47, 16  ;;  %v2874_v27 = vshll.u32 %v9395_v47, 16  ;;  %v2880_v41 = vshll.u32 %v9397_v39, 16  ;;  %v2884_v60 = vshrl.u32 %v9397_v39, 16 }
  0xf3   : > { %v2890_v22 = vshll.u32 %v9399_v8, 16  ;;  %v6623_v25 = vcombine.low %v9395_v47, %v9397_v39  ;;  %v3730_v35 = vld [vmem:[#allocation2 + $0x70] sm:$0xf]  ;;  %v867_v20 = vrot.slane %v865_v23, 7  ;;  %v1090_v29 = vsel %vm8514_vm13, %v862_v7, %v1089_v13  ;;  %v3744_v18 = vld [vmem:[#allocation2 + $0x74] sm:$0x1] }
  0xf4   : > { %v2873_v15 = vrot.slane %v2871_v2, 4  ;;  %v2876_v52 = vrot.slane %v2874_v27, 5  ;;  %v2882_v55 = vrot.slane %v2880_v41, 5  ;;  %v2886_v14 = vrot.slane %v2884_v60, 4  ;;  %7707 = vmatpush3.bf16.msra.mxu0 %v8096_v40  ;;  %v4056_v24 = vld [vmem:[#allocation2 + $0x6c] sm:$0xe] }
  0xf5   : > { %v2892_v21 = vrot.slane %v2890_v22, 5  ;;  %7708 = vmatprep.subr.bf16.mxu0 %v8099_v12  ;;  %1091 = vst [vmem:[#allocation2 + $0x78] sm:$0xf] %v1090_v29  ;;  %v6777_v59 = vrot.slane %v4056_v24, 9  ;;  %v4088_v32 = vrot.slane %v3730_v35, 5  ;;  %v870_v63 = vor.u32 %v868_v56, %v867_v20  ;;  %v9437_v56 = vld [vmem:[%s8390_s26 + $0x60] sm:$0xff]  }
  0xf6   : > { %v2877_v57 = vor.u32 %v2876_v52, %v2873_v15  ;;  %v2887_v6 = vor.u32 %v2886_v14, %v2882_v55  ;;  %v872_v40 = vrot.slane %v867_v20, 4  ;;  %v4091_v62 = vrot.slane %v3744_v18, 5  ;;  %v1093_v30 = vld [vmem:[#allocation2 + $0x80] sm:$0x1]  ;;  %v366_v41 = vld [vmem:[#allocation2 + $0x8c] sm:$0x1] }
  0xf7   : > { %3498 = vmatmul.mubr.bf16.gmra.mxu0 %v9331_v19  ;;  %v7102_v54 = vpack.c.bf16 %v593_v9, %v593_v9  ;;  %v9433_v12 = vsel %vm8431_vm10, %v6777_v59, %v4088_v32  ;;  %v4090_v19 = vrot.slane %v4088_v32, 4  ;;  %v871_v5 = vsel %vm8523_vm14, %v863_v53, %v870_v63  ;;  %v3220_v53 = vld [vmem:[#allocation2 + $0x48] sm:$0xe]  ;;  %v8090_v52 = vld [vmem:[#allocation2 + $0x6c] sm:$0xff]   ;;  %v1096_v20 = vld [vmem:[#allocation2 + $0x84] sm:$0xf] }
  0xf8   : > { %v2878_v23 = vrot.slane %v2877_v57, 4  ;;  %v2888_v13 = vrot.slane %v2887_v6, 4  ;;  %3505 = vmatprep.mubr.bf16.mxu0 %v9370_v17  ;;  %7709 = vmatpush3.bf16.msra.mxu0 %v8101_v48  ;;  %v7103_v9 = vpack.c.bf16 %v594_v10, %v594_v10  ;;  %1092 = vst [vmem:[#allocation2 + $0x7c] sm:$0xf] %v871_v5  ;;  %v1094_v48 = vsel %vm8362_vm3, %v872_v40, %v1093_v30  ;;  %v8114_v10 = vld [vmem:[%s11058_s4 + $0x50] sm:$0xff]  }
  0xf9   : > { %v874_v2 = vshrl.u32 %v7102_v54, 16  ;;  %v877_v27 = vshll.u32 %v7102_v54, 16  ;;  %7710 = vmatprep.subr.bf16.mxu0 %v8104_v51  ;;  %v9447_v7 = vsel %vm8431_vm10, %v4090_v19, %v4091_v62  ;;  %1095 = vst [vmem:[#allocation2 + $0x80] sm:$0x1] %v1094_v48  ;;  %v9458_v29 = vcombine.low %v9380_v0, %v9405_v44  ;;  %v316_v63 = vld [vmem:[#allocation2 + $0x9c] sm:$0x1] }
  0xfa   : > { %v2883_v60 = vsel %vm8417_vm9, %v2878_v23, %v2882_v55  ;;  %v2893_v22 = vsel %vm8417_vm9, %v2888_v13, %v2892_v21  ;;  %v6785_v51 = vcombine.low %v9433_v12, %v9447_v7  ;;  %v882_v35 = vshrl.u32 %v7103_v9, 16  ;;  %v8111_v55 = vld [vmem:[%s11058_s4 + $0x18] sm:$0xff]   ;;  %v8116_v40 = vld [vmem:[%s11058_s4 + $0x10] sm:$0xff]  }
  0xfb   : > { %v6631_v15 = vcombine.low %v2883_v60, %v2893_v22  ;;  %v876_v14 = vrot.slane %v874_v2, 7  ;;  %v885_v21 = vshll.u32 %v7103_v9, 16  ;;  %v480_v18 = vsub.f32 %v7192_v38, %v9261_v31  ;;  %v369_v23 = vld [vmem:[#allocation2 + $0x98] sm:$0x1] }
  0xfc   : > { %v481_v24 = vsub.f32 %v7193_v26, %v9261_v31  ;;  %7711 = vmatpush3.bf16.msra.mxu0 %v8106_v61  ;;  %v9469_v59 = vrot.slane %v882_v35, 7  ;;  %v4057_v0 = vld [vmem:[#allocation2 + $0x78] sm:$0xe]  ;;  %v7196_v44 = vunpack.c.l.bf16 %v9437_v56  ;;  %v367_v32 = vsel %vm8372_vm4, 0, %v366_v41  ;;  %v8097_v35 = vld [vmem:[%s11058_s4 + $0x170] sm:$0xff]  }
  0xfd   : > { %3191 = vmatprep.mubr.bf16.mxu1 %v6631_v15  ;;  %v879_v57 = vor.u32 %v877_v27, %v876_v14  ;;  %v880_v6 = vrot.slane %v876_v14, 4  ;;  %7712 = vmatprep.subr.bf16.mxu0 %v8109_v43  ;;  %v6778_v4 = vrot.slane %v4057_v0, 9  ;;  %v518_v38 = vmul.f32 %v9274_v58, %v480_v18  ;;  %368 = vst [vmem:[#allocation2 + $0x8c] sm:$0x1] %v367_v32  ;;  %v8093_v13 = vld [vmem:[%s11058_s4 + $0x138] sm:$0xff]  }
  0xfe   : > { %3192 = vmatmul.mubr.bf16.gmra.mxu1 %v6623_v25  ;;  %v519_v26 = vmul.f32 %v9274_v58, %v481_v24  ;;  %v887_v62 = vor.u32 %v885_v21, %v9469_v59  ;;  %v889_v47 = vrot.slane %v9469_v59, 4  ;;  %v6684_v54 = vrot.slane %v3220_v53, 9  ;;  %v9518_v24 = vld [vmem:[%s8390_s26 + $0x68] sm:$0xff]   ;;  %v8112_v12 = vld [vmem:[%s11058_s4 + $0x158] sm:$0xff]  }
  0xff   : > { %4392 = vmatprep.mubr.bf16.mxu1 %v8090_v52  ;;  %3506 = vmatmul.mubr.bf16.gmra.mxu0 %v9370_v17  ;;  %v1097_v25 = vsel %vm8514_vm13, %v879_v57, %v1096_v20  ;;  %v556_v30 = vmul.f32 %v8469_v46, %v518_v38  ;;  %v3270_v43 = vrot.slane %v9151_v49, 5  ;;  %v3273_v17 = vrot.slane %v9159_v11, 5  ;;  %v3732_v5 = vld [vmem:[#allocation2 + $0x7c] sm:$0xf]  ;;  %v8119_v49 = vld [vmem:[%s11058_s4 + $0x48] sm:$0xff]  }
 0x100   : > { %1098 = vst [vmem:[#allocation2 + $0x84] sm:$0xf] %v1097_v25  ;;  %3513 = vmatprep.mubr.bf16.mxu0 %v9458_v29  ;;  %v557_v61 = vmul.f32 %v8469_v46, %v519_v26  ;;  %7713 = vmatpush3.bf16.msra.mxu0 %v8111_v55  ;;  %v888_v19 = vsel %vm8523_vm14, %v880_v6, %v887_v62  ;;  %v317_v9 = vsel %vm8362_vm3, 0, %v316_v63  ;;  %v7197_v2 = vunpack.c.h.bf16 %v9437_v56  ;;  %v8095_v11 = vld [vmem:[#allocation2 + $0x78] sm:$0xff]   ;;  %v3745_v41 = vld [vmem:[#allocation2 + $0x80] sm:$0x1] }
 0x101   : > { %v482_v27 = vsub.f32 %v7196_v44, %v9261_v31  ;;  %7714 = vmatprep.subr.bf16.mxu0 %v8114_v10  ;;  %1099 = vst [vmem:[#allocation2 + $0x88] sm:$0xf] %v888_v19  ;;  %v4095_v60 = vrot.slane %v3732_v5, 5  ;;  %v595_v22 = vadd.f32 %v9302_v34, %v556_v30  ;;  %v3271_v53 = vsel %vm8431_vm10, %v6684_v54, %v3270_v43  ;;  %v9520_v10 = vpop.f32.mrf.mxu1  ;;  %v9528_v44 = vld [vmem:[#allocation2 + $0x54] sm:$0xe]  ;;  %v8124_v25 = vld [vmem:[%s11058_s4 + $0x40] sm:$0xff]  }
 0x102   : > { %v596_v48 = vadd.f32 %v9302_v34, %v557_v61  ;;  %318 = vst [vmem:[#allocation2 + $0x9c] sm:$0x1] %v317_v9  ;;  %v4098_v56 = vrot.slane %v3745_v41, 5  ;;  %v3272_v15 = vrot.slane %v3270_v43, 4  ;;  %v483_v52 = vsub.f32 %v7197_v2, %v9261_v31  ;;  %v319_v43 = vld [vmem:[#allocation2 + $0xa8] sm:$0x1] }
 0x103   : > { %v520_v14 = vmul.f32 %v9274_v58, %v482_v27  ;;  %v9515_v55 = vsel %vm8431_vm10, %v6778_v4, %v4095_v60  ;;  %v4097_v21 = vrot.slane %v4095_v60, 4  ;;  %v7104_v20 = vpack.c.bf16 %v595_v22, %v595_v22  ;;  %v8121_v4 = vld [vmem:[%s11058_s4 + $0x8] sm:$0xff]   ;;  %v1103_v5 = vld [vmem:[#allocation2 + $0x90] sm:$0xf]  ;;  %v9561_v2 = vpop.f32.mrf.mxu1  ;;  %v8126_v22 = vld [vmem:[%s11058_s4] sm:$0xff]  }
 0x104   : > { %v7105_v18 = vpack.c.bf16 %v596_v48, %v596_v48  ;;  %7715 = vmatpush3.bf16.msra.mxu0 %v8116_v40  ;;  %v3274_v57 = vsel %vm8431_vm10, %v3272_v15, %v3273_v17  ;;  %v521_v6 = vmul.f32 %v9274_v58, %v483_v52  ;;  %v370_v0 = vsel %vm8372_vm4, 0, %v369_v23  ;;  %v9533_v38 = vpop.f32.mrf.mxu0  ;;  %v1100_v62 = vld [vmem:[#allocation2 + $0x8c] sm:$0x1]  ;;  %v4653_v37 = vld [vmem:[#allocation2 + $0x78] sm:$0xf] }
 0x105   : > { %v558_v59 = vmul.f32 %v8469_v46, %v520_v14  ;;  %7716 = vmatprep.subr.bf16.mxu0 %v8119_v49  ;;  %v9540_v26 = vsel %vm8431_vm10, %v4097_v21, %v4098_v56  ;;  %v891_v32 = vshrl.u32 %v7104_v20, 16  ;;  %v894_v63 = vshll.u32 %v7104_v20, 16  ;;  %371 = vst [vmem:[#allocation2 + $0x98] sm:$0x1] %v370_v0  ;;  %v8102_v23 = vld [vmem:[%s11058_s4 + $0x168] sm:$0xff]   ;;  %v8129_v21 = vld [vmem:[%s11058_s4 + $0x1f8] sm:$0xff]  }
 0x106   : > { %4393 = vmatmul.mubr.bf16.vlgmr.msra.gmra.mxu1 %v6784_v50  ;;  %v899_v40 = vshrl.u32 %v7105_v18, 16  ;;  %v6786_v1 = vcombine.low %v9515_v55, %v9540_v26  ;;  %v902_v50 = vshll.u32 %v7105_v18, 16  ;;  %v1101_v54 = vsel %vm8362_vm3, %v889_v47, %v1100_v62  ;;  %v9554_v17 = vpop.f32.mrf.mxu0  ;;  %v8103_v27 = vld [vmem:[%s11058_s4 + $0x128] sm:$0xff]   ;;  %v9591_v62 = vpop.f32.mrf.mxu1 }
 0x107   : > { %7769 = vmatpush3.bf16.msra.mxu1 %v8093_v13  ;;  %4400 = vmatprep.mubr.bf16.mxu1 %v8095_v11  ;;  %v4058_v30 = vld [vmem:[#allocation2 + $0x84] sm:$0xe]  ;;  %v9552_v61 = vcombine.low %v3271_v53, %v3274_v57  ;;  %v893_v13 = vrot.slane %v891_v32, 7  ;;  %1102 = vst [vmem:[#allocation2 + $0x8c] sm:$0x1] %v1101_v54  ;;  %v559_v47 = vmul.f32 %v8469_v46, %v521_v6  ;;  %v7200_v41 = vunpack.c.l.bf16 %v9518_v24 }
 0x108   : > { %7770 = vmatprep.subr.bf16.mxu1 %v8097_v35  ;;  %3514 = vmatmul.mubr.bf16.gmra.mxu0 %v9458_v29  ;;  %v901_v19 = vrot.slane %v899_v40, 7  ;;  %v6779_v9 = vrot.slane %v4058_v30, 9  ;;  %v3734_v49 = vld [vmem:[#allocation2 + $0x88] sm:$0xf]  ;;  %v597_v11 = vadd.f32 %v9302_v34, %v558_v59  ;;  %v6685_v29 = vrot.slane %v9528_v44, 9  ;;  %v9574_v48 = vpop.f32.mrf.mxu0  ;;  %v8107_v35 = vld [vmem:[%s11058_s4 + $0x160] sm:$0xff]  }
 0x109   : > { %3521 = vmatprep.mubr.bf16.mxu0 %v9552_v61  ;;  %v7201_v60 = vunpack.c.h.bf16 %v9518_v24  ;;  %7717 = vmatpush3.bf16.msra.mxu0 %v8121_v4  ;;  %v8100_v53 = vld [vmem:[#allocation2 + $0x84] sm:$0xff]   ;;  %v896_v56 = vor.u32 %v894_v63, %v893_v13  ;;  %v897_v15 = vrot.slane %v893_v13, 4  ;;  %v4102_v20 = vrot.slane %v3734_v49, 5  ;;  %v8189_v57 = vld [vmem:[#allocation2 + $0x58] sm:$0xf] }
 0x10a   : > { %v904_v52 = vor.u32 %v902_v50, %v901_v19  ;;  %v906_v14 = vrot.slane %v901_v19, 4  ;;  %7718 = vmatprep.subr.bf16.mxu0 %v8124_v25  ;;  %v598_v18 = vadd.f32 %v9302_v34, %v559_v47  ;;  %v7106_v24 = vpack.c.bf16 %v597_v11, %v597_v11  ;;  %v9583_v59 = vpop.f32.mrf.mxu0  ;;  %v8190_v4 = vld [vmem:[#allocation2 + $0x5c] sm:$0x1]  ;;  %v372_v40 = vld [vmem:[#allocation2 + $0xa4] sm:$0x1] }
 0x10b   : > { %7771 = vmatpush3.bf16.msra.mxu1 %v8098_v45  ;;  %v3277_v6 = vrot.slane %v8189_v57, 5  ;;  %v1104_v44 = vsel %vm8514_vm13, %v896_v56, %v1103_v5  ;;  %v3280_v32 = vrot.slane %v8190_v4, 5  ;;  %v320_v63 = vsel %vm8362_vm3, 0, %v319_v43  ;;  %v8108_v50 = vld [vmem:[%s11058_s4 + $0x120] sm:$0xff]  }
 0x10c   : > { %7772 = vmatprep.subr.bf16.mxu1 %v8102_v23  ;;  %v905_v0 = vsel %vm8523_vm14, %v897_v15, %v904_v52  ;;  %1105 = vst [vmem:[#allocation2 + $0x90] sm:$0xf] %v1104_v44  ;;  %v9595_v25 = vsel %vm8431_vm10, %v6779_v9, %v4102_v20  ;;  %v4104_v45 = vrot.slane %v4102_v20, 4  ;;  %v7107_v54 = vpack.c.bf16 %v598_v18, %v598_v18  ;;  %v1107_v23 = vld [vmem:[#allocation2 + $0x98] sm:$0x1]  ;;  %v9602_v43 = vpop.f32.mrf.mxu0 }
 0x10d   : > { %1106 = vst [vmem:[#allocation2 + $0x94] sm:$0xf] %v905_v0  ;;  %v908_v30 = vshrl.u32 %v7106_v24, 16  ;;  %321 = vst [vmem:[#allocation2 + $0xa8] sm:$0x1] %v320_v63  ;;  %7719 = vmatpush3.bf16.msra.mxu0 %v8126_v22  ;;  %v911_v19 = vshll.u32 %v7106_v24, 16  ;;  %v1108_v5 = vsel %vm8362_vm3, %v906_v14, %v1107_v23  ;;  %v3278_v9 = vsel %vm8431_vm10, %v6685_v29, %v3277_v6  ;;  %v9623_v14 = vpop.f32.mrf.mxu1 }
 0x10e   : > { %v9600_v13 = vld [vmem:[#allocation2 + $0x60] sm:$0xe]  ;;  %4401 = vmatmul.mubr.bf16.gmra.mxu1 %v6785_v51  ;;  %v3279_v47 = vrot.slane %v3277_v6, 4  ;;  %7832 = vmatprep.subr.bf16.mxu0 %v8129_v21  ;;  %v3746_v49 = vld [vmem:[#allocation2 + $0x8c] sm:$0x1]  ;;  %v916_v22 = vshrl.u32 %v7107_v54, 16  ;;  %v484_v7 = vsub.f32 %v7200_v41, %v9261_v31  ;;  %v9615_v51 = vpop.f32.mrf.mxu0 }
 0x10f   : > { %4408 = vmatprep.mubr.bf16.mxu1 %v8100_v53  ;;  %7773 = vmatpush3.bf16.msra.mxu1 %v8103_v27  ;;  %v910_v11 = vrot.slane %v908_v30, 7  ;;  %v919_v56 = vshll.u32 %v7107_v54, 16  ;;  %1109 = vst [vmem:[#allocation2 + $0x98] sm:$0x1] %v1108_v5  ;;  %v4105_v15 = vrot.slane %v3746_v49, 5  ;;  %v485_v53 = vsub.f32 %v7201_v60, %v9261_v31  ;;  %v8113_v60 = vld [vmem:[%s11058_s4 + $0x118] sm:$0xff]  }
 0x110   : > { %7774 = vmatprep.subr.bf16.mxu1 %v8107_v35  ;;  %3522 = vmatmul.mubr.bf16.gmra.mxu0 %v9552_v61  ;;  %v1110_v29 = vld [vmem:[#allocation2 + $0x9c] sm:$0xf]  ;;  %v3281_v27 = vsel %vm8431_vm10, %v3279_v47, %v3280_v32  ;;  %v373_v52 = vsel %vm8372_vm4, 0, %v372_v40  ;;  %v9625_v20 = vrot.slane %v916_v22, 7  ;;  %v9628_v35 = vld [vmem:[%s8390_s26 + $0x70] sm:$0xff]   ;;  %v9630_v61 = vpop.f32.mrf.mxu0  ;;  %v522_v57 = vmul.f32 %v9274_v58, %v484_v7 }
 0x111   : > { %v913_v21 = vor.u32 %v911_v19, %v910_v11  ;;  %v914_v41 = vrot.slane %v910_v11, 4  ;;  %v6693_v18 = vcombine.low %v3278_v9, %v3281_v27  ;;  %374 = vst [vmem:[#allocation2 + $0xa4] sm:$0x1] %v373_v52  ;;  %v9634_v24 = vsel %vm8431_vm10, %v4104_v45, %v4105_v15  ;;  %v9643_v44 = vld [vmem:[%s8390_s26 + $0x78] sm:$0xff]   ;;  %v9645_v4 = vpop.f32.mrf.mxu1  ;;  %v8117_v54 = vld [vmem:[%s11058_s4 + $0x150] sm:$0xff]   ;;  %s10822_s26 = scalar_lea.vmem %s11059_s5, %s6401_s18 }
 0x112   : > { %v523_v6 = vmul.f32 %v9274_v58, %v485_v53  ;;  %v6686_v0 = vrot.slane %v9600_v13, 9  ;;  %v6787_v32 = vcombine.low %v9595_v25, %v9634_v24  ;;  %v921_v63 = vor.u32 %v919_v56, %v9625_v20  ;;  %v9656_v30 = vpop.f32.mrf.mxu0  ;;  %v8191_v19 = vld [vmem:[#allocation2 + $0x64] sm:$0xf]  ;;  %v325_v25 = vld [vmem:[#allocation2 + $0xc0] sm:$0x1] }
 0x113   : > { %7775 = vmatpush3.bf16.msra.mxu1 %v8108_v50  ;;  %v923_v40 = vrot.slane %v9625_v20, 4  ;;  %v1111_v45 = vsel %vm8514_vm13, %v913_v21, %v1110_v29  ;;  %3529 = vmatprep.mubr.bf16.mxu0 %v6693_v18  ;;  %v560_v13 = vmul.f32 %v8469_v46, %v522_v57  ;;  %v3284_v5 = vrot.slane %v8191_v19, 5  ;;  %v9661_v47 = vpop.f32.mrf.mxu1  ;;  %v4059_v22 = vld [vmem:[#allocation2 + $0x90] sm:$0xe]  ;;  %v8128_v24 = vld [vmem:[%s11058_s4 + $0x100] sm:$0xff]  }
 0x114   : > { %v8105_v23 = vld [vmem:[#allocation2 + $0x90] sm:$0xff]   ;;  %1112 = vst [vmem:[#allocation2 + $0x9c] sm:$0xf] %v1111_v45  ;;  %7776 = vmatprep.subr.bf16.mxu1 %v8112_v12  ;;  %v561_v50 = vmul.f32 %v8469_v46, %v523_v6  ;;  %v7204_v9 = vunpack.c.l.bf16 %v9628_v35  ;;  %v922_v49 = vsel %vm8523_vm14, %v914_v41, %v921_v63  ;;  %v7205_v56 = vunpack.c.h.bf16 %v9628_v35  ;;  %v9668_v15 = vpop.f32.mrf.mxu0 }
 0x115   : > { %v3736_v11 = vld [vmem:[#allocation2 + $0x94] sm:$0xf]  ;;  %v7208_v7 = vunpack.c.l.bf16 %v9643_v44  ;;  %v7209_v12 = vunpack.c.h.bf16 %v9643_v44  ;;  %1113 = vst [vmem:[#allocation2 + $0xa0] sm:$0xf] %v922_v49  ;;  %v6780_v27 = vrot.slane %v4059_v22, 9  ;;  %v599_v52 = vadd.f32 %v9302_v34, %v560_v13  ;;  %v9675_v20 = vpop.f32.mrf.mxu1  ;;  %v8132_v44 = vld [vmem:[%s11058_s4 + $0x278] sm:$0xff]  }
 0x116   : > { %4409 = vmatmul.mubr.bf16.gmra.mxu1 %v6786_v1  ;;  %v3747_v29 = vld [vmem:[#allocation2 + $0x98] sm:$0x1]  ;;  %v4109_v53 = vrot.slane %v3736_v11, 5  ;;  %v600_v21 = vadd.f32 %v9302_v34, %v561_v50  ;;  %v322_v41 = vld [vmem:[#allocation2 + $0xb4] sm:$0x1]  ;;  %v3285_v55 = vsel %vm8431_vm10, %v6686_v0, %v3284_v5  ;;  %v3286_v26 = vrot.slane %v3284_v5, 4  ;;  %v9683_v6 = vpop.f32.mrf.mxu0 }
 0x117   : > { %4416 = vmatprep.mubr.bf16.mxu1 %v8105_v23  ;;  %v4112_v35 = vrot.slane %v3747_v29, 5  ;;  %7777 = vmatpush3.bf16.msra.mxu1 %v8113_v60  ;;  %v8118_v57 = vld [vmem:[%s11058_s4 + $0x110] sm:$0xff]   ;;  %v3287_v1 = vrot.slane %v9297_v28, 5  ;;  %v7108_v45 = vpack.c.bf16 %v599_v52, %v599_v52  ;;  %v8122_v0 = vld [vmem:[%s11058_s4 + $0x148] sm:$0xff]   ;;  %v9692_v50 = vpop.f32.mrf.mxu1  ;;  %v486_v5 = vsub.f32 %v7204_v9, %v9261_v31  ;;  %v8192_v9 = vld [vmem:[%s11055_s1] ss:$0 sm:$0xff] }
 0x118   : > { %v9687_v34 = vsel %vm8431_vm10, %v6780_v27, %v4109_v53  ;;  %v4111_v63 = vrot.slane %v4109_v53, 4  ;;  %3530 = vmatmul.mubr.bf16.gmra.mxu0 %v6693_v18  ;;  %v7109_v60 = vpack.c.bf16 %v600_v21, %v600_v21  ;;  %v1114_v23 = vld [vmem:[#allocation2 + $0xa4] sm:$0x1]  ;;  %7778 = vmatprep.subr.bf16.mxu1 %v8117_v54  ;;  %v375_v13 = vld [vmem:[#allocation2 + $0xb0] sm:$0x1]  ;;  %v323_v18 = vsel %vm8362_vm3, 0, %v322_v41  ;;  %v9701_v49 = vpop.f32.mrf.mxu0 }
 0x119   : > { %v1115_v28 = vsel %vm8362_vm3, %v923_v40, %v1114_v23  ;;  %v3288_v19 = vsel %vm8431_vm10, %v3286_v26, %v3287_v1  ;;  %v925_v11 = vshrl.u32 %v7108_v45, 16  ;;  %v928_v22 = vshll.u32 %v7108_v45, 16  ;;  %324 = vst [vmem:[#allocation2 + $0xb4] sm:$0x1] %v323_v18  ;;  %v3223_v40 = vld [vmem:[#allocation2 + $0x6c] sm:$0xe]  ;;  %v9707_v27 = vpop.f32.mrf.mxu1 }
 0x11a   : > { %v9705_v54 = vsel %vm8431_vm10, %v4111_v63, %v4112_v35  ;;  %v933_v29 = vshrl.u32 %v7109_v60, 16  ;;  %1116 = vst [vmem:[#allocation2 + $0xa4] sm:$0x1] %v1115_v28  ;;  %v936_v53 = vshll.u32 %v7109_v60, 16  ;;  %v1117_v52 = vld [vmem:[#allocation2 + $0xa8] sm:$0xf]  ;;  %v6694_v31 = vcombine.low %v3285_v55, %v3288_v19  ;;  %v9726_v60 = vpop.f32.mrf.mxu0 }
 0x11b   : > { %v9709_v21 = vld [vmem:[#allocation2 + $0x9c] sm:$0xe]  ;;  %7779 = vmatpush3.bf16.msra.mxu1 %v8118_v57  ;;  %v487_v41 = vsub.f32 %v7205_v56, %v8192_v9  ;;  %v8123_v35 = vld [vmem:[%s11058_s4 + $0x108] sm:$0xff]   ;;  %v927_v26 = vrot.slane %v925_v11, 7  ;;  %v524_v45 = vmul.f32 %v9274_v58, %v486_v5  ;;  %v8127_v57 = vld [vmem:[%s11058_s4 + $0x140] sm:$0xff]   ;;  %v9724_v55 = vpop.f32.mrf.mxu1  ;;  %11082 = vst [vmem:[#allocation5_spill] sm:$0xff] %v9726_v60  ;;  %v488_v18 = vsub.f32 %v7208_v7, %v8192_v9 }
 0x11c   : > { %v9717_v1 = vrot.slane %v933_v29, 7  ;;  %v6781_v63 = vrot.slane %v9709_v21, 9  ;;  %7780 = vmatprep.subr.bf16.mxu1 %v8122_v0  ;;  %v8110_v56 = vld [vmem:[#allocation2 + $0x9c] sm:$0xff]   ;;  %3537 = vmatprep.mubr.bf16.mxu0 %v6694_v31  ;;  %v376_v0 = vsel %vm8372_vm4, 0, %v375_v13  ;;  %v489_v21 = vsub.f32 %v7209_v12, %v8192_v9 }
 0x11d   : > { %v3738_v28 = vld [vmem:[#allocation2 + $0xa0] sm:$0xf]  ;;  %v930_v5 = vor.u32 %v928_v22, %v927_v26  ;;  %v931_v11 = vrot.slane %v927_v26, 4  ;;  %377 = vst [vmem:[#allocation2 + $0xb0] sm:$0x1] %v376_v0  ;;  %v9743_v23 = vpop.f32.mrf.mxu1  ;;  %v562_v13 = vmul.f32 %v8469_v46, %v524_v45  ;;  %v6687_v60 = vrot.slane %v3223_v40, 9 }
 0x11e   : > { %v8193_v19 = vld [vmem:[%s11056_s2] ss:$0 sm:$0xff]  ;;  %4417 = vmatmul.mubr.bf16.gmra.mxu1 %v6787_v32  ;;  %v938_v29 = vor.u32 %v936_v53, %v9717_v1  ;;  %v3291_v22 = vrot.slane %v9397_v39, 5  ;;  %v3294_v40 = vrot.slane %v9399_v8, 5  ;;  %v9761_v9 = vpop.f32.mrf.mxu0  ;;  %v378_v39 = vld [vmem:[#allocation2 + $0xbc] sm:$0x1] }
 0x11f   : > { %v525_v58 = vmul.f32 %v8193_v19, %v487_v41  ;;  %4424 = vmatprep.mubr.bf16.mxu1 %v8110_v56  ;;  %v4116_v41 = vrot.slane %v3738_v28, 5  ;;  %7781 = vmatpush3.bf16.msra.mxu1 %v8123_v35  ;;  %v1118_v12 = vsel %vm8514_vm13, %v930_v5, %v1117_v52  ;;  %v9759_v53 = vpop.f32.mrf.mxu1  ;;  %v940_v35 = vrot.slane %v9717_v1, 4  ;;  %v8194_v52 = vld [vmem:[%s11057_s3] ss:$0 sm:$0xff] }
 0x120   : > { %v939_v32 = vsel %vm8523_vm14, %v931_v11, %v938_v29  ;;  %3538 = vmatmul.mubr.bf16.gmra.mxu0 %v6694_v31  ;;  %7782 = vmatprep.subr.bf16.mxu1 %v8127_v57  ;;  %1119 = vst [vmem:[#allocation2 + $0xa8] sm:$0xf] %v1118_v12  ;;  %v601_v31 = vadd.f32 %v8194_v52, %v562_v13  ;;  %v3293_v57 = vrot.slane %v3291_v22, 4  ;;  %v9773_v0 = vpop.f32.mrf.mxu0  ;;  %v9787_v12 = vld [vmem:[#allocation2 + $0x60] sm:$0xf] }
 0x121   : > { %v563_v7 = vmul.f32 %v8469_v46, %v525_v58  ;;  %1120 = vst [vmem:[#allocation2 + $0xac] sm:$0xf] %v939_v32  ;;  %v3748_v26 = vld [vmem:[#allocation2 + $0xa4] sm:$0x1]  ;;  %v4118_v45 = vrot.slane %v4116_v41, 4  ;;  %v3292_v8 = vsel %vm8431_vm10, %v6687_v60, %v3291_v22  ;;  %v326_v58 = vsel %vm8362_vm3, 0, %v325_v25  ;;  %v9771_v1 = vpop.f32.mrf.mxu1 }
 0x122   : > { %v4119_v28 = vrot.slane %v3748_v26, 5  ;;  %v7110_v5 = vpack.c.bf16 %v601_v31, %v601_v31  ;;  %327 = vst [vmem:[#allocation2 + $0xc0] sm:$0x1] %v326_v58  ;;  %v526_v29 = vmul.f32 %v8193_v19, %v488_v18  ;;  %v527_v32 = vmul.f32 %v8193_v19, %v489_v21  ;;  %v9793_v22 = vpop.f32.mrf.mxu0 }
 0x123   : > { %v602_v56 = vadd.f32 %v8194_v52, %v563_v7  ;;  %7783 = vmatpush3.bf16.msra.mxu1 %v8128_v24  ;;  %v9777_v13 = vsel %vm8431_vm10, %v6781_v63, %v4116_v41  ;;  %v3295_v60 = vsel %vm8431_vm10, %v3293_v57, %v3294_v40  ;;  %v379_v7 = vsel %vm8372_vm4, 0, %v378_v39  ;;  %v9789_v18 = vpop.f32.mrf.mxu1  ;;  %v1124_v39 = vld [vmem:[#allocation2 + $0xb4] sm:$0xf] }
 0x124   : > { %v9785_v25 = vadd.f32 %v9561_v2, %v9520_v10  ;;  %7896 = vmatprep.subr.bf16.mxu1 %v8132_v44  ;;  %v4120_v19 = vsel %vm8431_vm10, %v4118_v45, %v4119_v28  ;;  %v942_v63 = vshrl.u32 %v7110_v5, 16  ;;  %v945_v21 = vshll.u32 %v7110_v5, 16  ;;  %v1121_v24 = vld [vmem:[#allocation2 + $0xb0] sm:$0x1]  ;;  %380 = vst [vmem:[#allocation2 + $0xbc] sm:$0x1] %v379_v7 }
 0x125   : > { %v7111_v11 = vpack.c.bf16 %v602_v56, %v602_v56  ;;  %v11083_v40 = vcombine.low %v9687_v34, %v9705_v54  ;;  %v1122_v2 = vsel %vm8362_vm3, %v940_v35, %v1121_v24  ;;  %v6695_v44 = vcombine.low %v3292_v8, %v3295_v60  ;;  %v9801_v31 = vpop.f32.mrf.mxu1 }
 0x126   : > { %v564_v26 = vmul.f32 %v8469_v46, %v526_v29  ;;  %v944_v45 = vrot.slane %v942_v63, 7  ;;  %1123 = vst [vmem:[#allocation2 + $0xb0] sm:$0x1] %v1122_v2  ;;  %v565_v28 = vmul.f32 %v8469_v46, %v527_v32  ;;  %v3752_v57 = vshrl.u32 %v9787_v12, 16  ;;  %v9811_v46 = vpop.f32.mrf.mxu0 }
 0x127   : > { %v950_v41 = vshrl.u32 %v7111_v11, 16  ;;  %4425 = vmatmul.mubr.bf16.gmra.mxu1 %v11083_v40  ;;  %v953_v10 = vshll.u32 %v7111_v11, 16  ;;  %v6789_v34 = vcombine.low %v9777_v13, %v4120_v19  ;;  %3545 = vmatprep.mubr.bf16.mxu0 %v6695_v44  ;;  %v3755_v35 = vshll.u32 %v9787_v12, 16  ;;  %v4061_v63 = vld [vmem:[#allocation2 + $0xa8] sm:$0xe]  ;;  %v9813_v24 = vpop.f32.mrf.mxu1 }
 0x128   : > { %v8115_v58 = vld [vmem:[#allocation2 + $0xa8] sm:$0xff]   ;;  %v603_v54 = vadd.f32 %v8194_v52, %v564_v26  ;;  %v9809_v8 = vadd.f32 %v9554_v17, %v9533_v38  ;;  %v947_v5 = vor.u32 %v945_v21, %v944_v45  ;;  %v948_v11 = vrot.slane %v944_v45, 4  ;;  %3546 = vmatmul.mubr.bf16.gmra.mxu0 %v6695_v44  ;;  %v9823_v45 = vld [vmem:[#allocation2 + $0x70] sm:$0xf] }
 0x129   : > { %v952_v56 = vrot.slane %v950_v41, 7  ;;  %v3740_v7 = vld [vmem:[#allocation2 + $0xac] sm:$0xf]  ;;  %4432 = vmatprep.mubr.bf16.mxu1 %v8115_v58  ;;  %v6782_v32 = vrot.slane %v4061_v63, 9  ;;  %v604_v19 = vadd.f32 %v8194_v52, %v565_v28  ;;  %v3754_v21 = vrot.slane %v3752_v57, 4 }
 0x12a   : > { %v4123_v13 = vrot.slane %v3740_v7, 5  ;;  %v7112_v41 = vpack.c.bf16 %v603_v54, %v603_v54  ;;  %v1125_v17 = vsel %vm8514_vm13, %v947_v5, %v1124_v39  ;;  %v3757_v40 = vrot.slane %v3755_v35, 5  ;;  %v1131_v28 = vld [vmem:[#allocation2 + $0xc0] sm:$0xf]  ;;  %v9827_v57 = vld [vmem:[#allocation2 + $0x64] sm:$0xf] }
 0x12b   : > { %v955_v29 = vor.u32 %v953_v10, %v952_v56  ;;  %v957_v60 = vrot.slane %v952_v56, 4  ;;  %1126 = vst [vmem:[#allocation2 + $0xb4] sm:$0xf] %v1125_v17  ;;  %v7113_v44 = vpack.c.bf16 %v604_v19, %v604_v19  ;;  %v1128_v26 = vld [vmem:[#allocation2 + $0xbc] sm:$0x1]  ;;  %v3761_v54 = vshll.u32 %v9827_v57, 16 }
 0x12c   : > { %v9821_v10 = vsel %vm8431_vm10, %v6782_v32, %v4123_v13  ;;  %v4125_v2 = vrot.slane %v4123_v13, 4  ;;  %v959_v52 = vshrl.u32 %v7112_v41, 16  ;;  %v962_v56 = vshll.u32 %v7112_v41, 16  ;;  %v9830_v35 = vpop.f32.mrf.mxu0  ;;  %v8196_v41 = vld [vmem:[#allocation2 + $0x68] sm:$0x1] }
 0x12d   : > { %v956_v38 = vsel %vm8523_vm14, %v948_v11, %v955_v29  ;;  %v1129_v58 = vsel %vm8362_vm3, %v957_v60, %v1128_v26  ;;  %v3758_v39 = vor.u32 %v3757_v40, %v3754_v21  ;;  %v3749_v5 = vld [vmem:[#allocation2 + $0xb0] sm:$0x1]  ;;  %v967_v29 = vshrl.u32 %v7113_v44, 16  ;;  %v9833_v32 = vpop.f32.mrf.mxu1  ;;  %v9835_v17 = vld [vmem:[#allocation2 + $0x74] sm:$0x1] }
 0x12e   : > { %1127 = vst [vmem:[#allocation2 + $0xb8] sm:$0xf] %v956_v38  ;;  %v961_v11 = vrot.slane %v959_v52, 7  ;;  %v970_v7 = vshll.u32 %v7113_v44, 16  ;;  %1130 = vst [vmem:[#allocation2 + $0xbc] sm:$0x1] %v1129_v58  ;;  %v9837_v21 = vpop.f32.mrf.mxu0 }
 0x12f   : > { %4433 = vmatmul.mubr.bf16.gmra.mxu1 %v6789_v34  ;;  %v3765_v63 = vshrl.u32 %v9827_v57, 16  ;;  %v4126_v13 = vrot.slane %v3749_v5, 5  ;;  %v3759_v19 = vrot.slane %v3758_v39, 4  ;;  %v3763_v60 = vrot.slane %v3761_v54, 5  ;;  %v9841_v44 = vpop.f32.mrf.mxu1 }
 0x130   : > { %v3771_v38 = vshll.u32 %v8196_v41, 16  ;;  %v964_v40 = vor.u32 %v962_v56, %v961_v11  ;;  %v965_v34 = vrot.slane %v961_v11, 4  ;;  %v9839_v26 = vrot.slane %v967_v29, 7  ;;  %v4866_v41 = vld [vmem:[#allocation2 + $0x6c] sm:$0xe]  ;;  %v9854_v33 = vpop.f32.mrf.mxu0 }
 0x131   : > { %v3767_v52 = vrot.slane %v3765_v63, 4  ;;  %v4127_v58 = vsel %vm8431_vm10, %v4125_v2, %v4126_v13  ;;  %v3764_v39 = vsel %vm8417_vm9, %v3759_v19, %v3763_v60  ;;  %v6760_v54 = vcombine.low %v9787_v12, %v9827_v57  ;;  %v9864_v57 = vpop.f32.mrf.mxu1 }
 0x132   : > { %11084 = vst [vmem:[#allocation6_spill] sm:$0xff] %v9839_v26  ;;  %v4684_v5 = vshll.u32 %v9823_v45, 16  ;;  %v6790_v56 = vcombine.low %v9821_v10, %v4127_v58  ;;  %v972_v11 = vor.u32 %v970_v7, %v9839_v26  ;;  %v1132_v29 = vsel %vm8514_vm13, %v964_v40, %v1131_v28  ;;  %v4062_v7 = vld [vmem:[#allocation2 + $0xb4] sm:$0xe] }
 0x133   : > { %v3773_v63 = vrot.slane %v3771_v38, 5  ;;  %1133 = vst [vmem:[#allocation2 + $0xc0] sm:$0xf] %v1132_v29  ;;  %v3768_v13 = vor.u32 %v3767_v52, %v3763_v60  ;;  %v9860_v12 = vadd.f32 %v9785_v25, %v9809_v8  ;;  %v7405_v10 = vadd.f32 %v9623_v14, %v9591_v62  ;;  %v9875_v29 = vpop.f32.mrf.mxu0 }
 0x134   : > { %v9856_v19 = vrot.slane %v4684_v5, 5  ;;  %v973_v36 = vsel %vm8523_vm14, %v965_v34, %v972_v11  ;;  %v4688_v38 = vshrl.u32 %v9823_v45, 16  ;;  %v4694_v60 = vshll.u32 %v9835_v17, 16  ;;  %v4650_v11 = vld [vmem:[#allocation2 + $0x6c] sm:$0xf] }
 0x135   : > { %v8120_v2 = vld [vmem:[#allocation2 + $0xb4] sm:$0xff]   ;;  %11085 = vst [vmem:[#allocation7_spill] sm:$0xff] %v9860_v12  ;;  %v7341_v40 = vadd.f32 %v9583_v59, %v9574_v48  ;;  %1134 = vst [vmem:[#allocation2 + $0xc4] sm:$0xf] %v973_v36  ;;  %v3750_v25 = vld [vmem:[#allocation2 + $0xbc] sm:$0x1]  ;;  %v9887_v36 = vpop.f32.mrf.mxu1 }
 0x136   : > { %v3742_v28 = vld [vmem:[#allocation2 + $0xb8] sm:$0xf]  ;;  %4440 = vmatprep.mubr.bf16.mxu1 %v8120_v2  ;;  %v6783_v8 = vrot.slane %v4062_v7, 9  ;;  %v3769_v62 = vrot.slane %v3768_v13, 4  ;;  %v6864_v14 = vrot.slane %v4866_v41, 9  ;;  %v4133_v58 = vrot.slane %v3750_v25, 5 }
 0x137   : > { %v4130_v52 = vrot.slane %v3742_v28, 5  ;;  %4441 = vmatmul.mubr.bf16.gmra.mxu1 %v6790_v56  ;;  %v4690_v42 = vrot.slane %v4688_v38, 4  ;;  %v9872_v34 = vrot.slane %v4694_v60, 5  ;;  %v4900_v5 = vrot.slane %v9823_v45, 5  ;;  %v8131_v41 = vld [vmem:[%s11058_s4 + $0x1b8] sm:$0xff]   ;;  %11086 = vst [vmem:[#allocation8_spill] sm:$0xff] %v9887_v36 }
 0x138   : > { %v3774_v2 = vsel %vm8417_vm9, %v3769_v62, %v3773_v63  ;;  %v4903_v13 = vrot.slane %v9835_v17, 5  ;;  %v9885_v56 = vld [vmem:[#allocation2 + $0x6c] sm:$0xf]  ;;  %v8134_v63 = vld [vmem:[%s11058_s4 + $0x1f0] sm:$0xff]   ;;  %v4675_v60 = vshrl.u32 %v4650_v11, 16  ;;  %v4678_v25 = vshll.u32 %v4650_v11, 16 }
 0x139   : > { %v4131_v48 = vsel %vm8431_vm10, %v6783_v8, %v4130_v52  ;;  %v4132_v59 = vrot.slane %v4130_v52, 4  ;;  %v6768_v45 = vcombine.low %v3764_v39, %v3774_v2  ;;  %v4691_v28 = vor.u32 %v4690_v42, %v9856_v19  ;;  %v4867_v52 = vld [vmem:[#allocation2 + $0x78] sm:$0xe]  ;;  %v8136_v2 = vld [vmem:[%s11058_s4 + $0x1b0] sm:$0xff]  }
 0x13a   : > { %v4901_v7 = vsel %vm8431_vm10, %v6864_v14, %v4900_v5  ;;  %v4902_v38 = vrot.slane %v4900_v5, 4  ;;  %v9897_v8 = vadd.f32 %v7405_v10, %v7341_v40  ;;  %v3776_v14 = vshrl.u32 %v9885_v56, 16  ;;  %v9902_v5 = vld [vmem:[#allocation2 + $0x80] sm:$0x1]  ;;  %v8198_v12 = vld [vmem:[#allocation2 + $0x74] sm:$0x1] }
 0x13b   : > { %v4134_v17 = vsel %vm8431_vm10, %v4132_v59, %v4133_v58  ;;  %4585 = vmatprep.mubr.bf16.mxu0 %v6768_v45  ;;  %v4692_v39 = vrot.slane %v4691_v28, 4  ;;  %v9907_v58 = vpop.f32.mrf.mxu0  ;;  %v4677_v40 = vrot.slane %v4675_v60, 4  ;;  %v4680_v11 = vrot.slane %v4678_v25, 5  ;;  %v9910_v59 = vld [vmem:[#allocation2 + $0x7c] sm:$0xf]  ;;  %v9915_v45 = vpop.f32.mrf.mxu1 }
 0x13c   : > { %11087 = vst [vmem:[#allocation9_spill] sm:$0xff] %v9897_v8  ;;  %v6791_v62 = vcombine.low %v4131_v48, %v4134_v17  ;;  %v4904_v42 = vsel %vm8431_vm10, %v4902_v38, %v4903_v13  ;;  %11088 = vst [vmem:[#allocation10_spill] sm:$0xff] %v9907_v58  ;;  %4586 = vmatmul.mubr.bf16.vlgmr.msra.gmra.mxu0 %v6760_v54  ;;  %v3779_v48 = vshll.u32 %v9885_v56, 16  ;;  %v8139_v13 = vld [vmem:[%s11058_s4 + $0x1e8] sm:$0xff]   ;;  %v8125_v28 = vld [vmem:[#allocation2 + $0xc0] sm:$0xff]   ;;  %v3778_v54 = vrot.slane %v3776_v14, 4 }
 0x13d   : > { %v6880_v10 = vcombine.low %v4901_v7, %v4904_v42  ;;  %11089 = vst [vmem:[#allocation11_spill] sm:$0xff] %v9915_v45  ;;  %7833 = vmatpush3.bf16.msra.mxu0 %v8131_v41  ;;  %v4697_v38 = vsel %vm8417_vm9, %v4692_v39, %v9872_v34  ;;  %v9920_v7 = vld [vmem:[#allocation2 + $0x70] sm:$0xf]  ;;  %v9924_v25 = vpop.f32.mrf.mxu0  ;;  %v4681_v42 = vor.u32 %v4680_v11, %v4677_v40  ;;  %v3795_v26 = vshll.u32 %v8198_v12, 16  ;;  %v9928_v45 = vpop.f32.mrf.mxu1 }
 0x13e   : > { %v3785_v17 = vshll.u32 %v9920_v7, 16  ;;  %v3789_v60 = vshrl.u32 %v9920_v7, 16  ;;  %v3781_v8 = vrot.slane %v3779_v48, 5  ;;  %7834 = vmatprep.subr.bf16.mxu0 %v8134_v63  ;;  %11090 = vst [vmem:[#allocation12_spill] sm:$0xff] %v9928_v45  ;;  %4448 = vmatprep.mubr.bf16.mxu1 %v8125_v28  ;;  %v6865_v14 = vrot.slane %v4867_v52, 9  ;;  %v8141_v52 = vld [vmem:[%s11058_s4 + $0x1a8] sm:$0xff]  }
 0x13f   : > { %v4907_v58 = vrot.slane %v9910_v59, 5  ;;  %v9931_v36 = vpop.f32.mrf.mxu0  ;;  %4449 = vmatmul.mubr.bf16.gmra.mxu1 %v6791_v62  ;;  %v4682_v40 = vrot.slane %v4681_v42, 4  ;;  %v3797_v48 = vrot.slane %v3795_v26, 5  ;;  %v4910_v12 = vrot.slane %v9902_v5, 5 }
 0x140   : > { %v3787_v34 = vrot.slane %v3785_v17, 5  ;;  %v3791_v39 = vrot.slane %v3789_v60, 4  ;;  %v3782_v11 = vor.u32 %v3781_v8, %v3778_v54  ;;  %5178 = vmatprep.mubr.bf16.mxu1 %v6880_v10  ;;  %v4699_v28 = vshrl.u32 %v4653_v37, 16  ;;  %v9939_v17 = vpop.f32.mrf.mxu1  ;;  %v8133_v54 = vld [vmem:[%s11058_s4 + $0x238] sm:$0xff]  }
 0x141   : > { %v4908_v41 = vsel %vm8431_vm10, %v6865_v14, %v4907_v58  ;;  %v4909_v45 = vrot.slane %v4907_v58, 4  ;;  %7835 = vmatpush3.bf16.msra.mxu0 %v8136_v2  ;;  %v4687_v26 = vsel %vm8417_vm9, %v4682_v40, %v9856_v19  ;;  %v4702_v62 = vshll.u32 %v4653_v37, 16  ;;  %v8144_v2 = vld [vmem:[%s11058_s4 + $0x1e0] sm:$0xff]   ;;  %v9953_v19 = vpop.f32.mrf.mxu0 }
 0x142   : > { %v3792_v63 = vor.u32 %v3791_v39, %v3787_v34  ;;  %v3783_v8 = vrot.slane %v3782_v11, 4  ;;  %v4708_v10 = vshll.u32 %v9910_v59, 16  ;;  %7836 = vmatprep.subr.bf16.mxu0 %v8139_v13  ;;  %v6872_v58 = vcombine.low %v4687_v26, %v4697_v38  ;;  %v9959_v11 = vld [vmem:[#allocation2 + $0x78] sm:$0xf] }
 0x143   : > { %v4911_v42 = vsel %vm8431_vm10, %v4909_v45, %v4910_v12  ;;  %v4701_v39 = vrot.slane %v4699_v28, 4  ;;  %v4704_v14 = vrot.slane %v4702_v62, 5  ;;  %v4718_v26 = vshll.u32 %v9902_v5, 16  ;;  %v9967_v12 = vpop.f32.mrf.mxu1  ;;  %v8137_v28 = vld [vmem:[%s11058_s4 + $0x270] sm:$0xff]   ;;  %v8146_v62 = vld [vmem:[%s11058_s4 + $0x1a0] sm:$0xff]  }
 0x144   : > { %v3793_v60 = vrot.slane %v3792_v63, 4  ;;  %v3788_v37 = vsel %vm8417_vm9, %v3783_v8, %v3787_v34  ;;  %v6881_v13 = vcombine.low %v4908_v41, %v4911_v42  ;;  %v9957_v40 = vrot.slane %v4708_v10, 5  ;;  %v9990_v10 = vld [vmem:[#allocation2 + $0x7c] sm:$0xf] }
 0x145   : > { %v4712_v63 = vshrl.u32 %v9910_v59, 16  ;;  %v7344_v45 = vadd.f32 %v9615_v51, %v9602_v43  ;;  %7837 = vmatpush3.bf16.msra.mxu0 %v8141_v52  ;;  %v4705_v41 = vor.u32 %v4704_v14, %v4701_v39  ;;  %v7408_v8 = vadd.f32 %v9661_v47, %v9645_v4  ;;  %v8138_v43 = vld [vmem:[%s11058_s4 + $0x230] sm:$0xff]   ;;  %v9985_v4 = vpop.f32.mrf.mxu0  ;;  %v10003_v14 = vld [vmem:[#allocation2 + $0x88] sm:$0xf] }
 0x146   : > { %v3798_v38 = vsel %vm8417_vm9, %v3793_v60, %v3797_v48  ;;  %v7347_v59 = vadd.f32 %v9656_v30, %v9630_v61  ;;  %7838 = vmatprep.subr.bf16.mxu0 %v8144_v2  ;;  %v4720_v48 = vrot.slane %v4718_v26, 5  ;;  %v7411_v51 = vadd.f32 %v9692_v50, %v9675_v20  ;;  %v4868_v20 = vld [vmem:[#allocation2 + $0x84] sm:$0xe]  ;;  %v8149_v50 = vld [vmem:[%s11058_s4 + $0x1d8] sm:$0xff]   ;;  %v10007_v26 = vpop.f32.mrf.mxu1 }
 0x147   : > { %v6769_v34 = vcombine.low %v3788_v37, %v3798_v38  ;;  %v4714_v5 = vrot.slane %v4712_v63, 4  ;;  %v3800_v52 = vshrl.u32 %v9959_v11, 16  ;;  %5179 = vmatmul.mubr.bf16.vlgmr.msra.gmra.mxu1 %v6872_v58  ;;  %v4706_v61 = vrot.slane %v4705_v41, 4  ;;  %v10005_v38 = vld [vmem:[#allocation2 + $0x8c] sm:$0x1]  ;;  %11094 = vst [vmem:[#allocation15_spill] sm:$0xff] %v10007_v26 }
 0x148   : > { %v9987_v30 = vadd.f32 %v7408_v8, %v7344_v45  ;;  %v3803_v47 = vshll.u32 %v9959_v11, 16  ;;  %v3809_v2 = vshll.u32 %v9990_v10, 16  ;;  %7897 = vmatpush3.bf16.msra.mxu1 %v8133_v54  ;;  %v11092_v60 = vcombine.low %v9885_v56, %v9920_v7  ;;  %v4656_v63 = vld [vmem:[#allocation2 + $0x84] sm:$0xf]  ;;  %v10009_v45 = vpop.f32.mrf.mxu0  ;;  %5186 = vmatprep.mubr.bf16.mxu1 %v6881_v13  ;;  %v8142_v8 = vld [vmem:[%s11058_s4 + $0x268] sm:$0xff]   ;;  %v8151_v13 = vld [vmem:[%s11058_s4 + $0x198] sm:$0xff]  }
 0x149   : > { %4593 = vmatprep.mubr.bf16.mxu0 %v6769_v34  ;;  %v4715_v58 = vor.u32 %v4714_v5, %v9957_v40  ;;  %v10000_v42 = vadd.f32 %v7411_v51, %v7347_v59  ;;  %v3802_v39 = vrot.slane %v3800_v52, 4  ;;  %v3813_v37 = vshrl.u32 %v9990_v10, 16  ;;  %11095 = vst [vmem:[#allocation16_spill] sm:$0xff] %v10009_v45  ;;  %7898 = vmatprep.subr.bf16.mxu1 %v8137_v28  ;;  %v8200_v34 = vld [vmem:[#allocation2 + $0x80] sm:$0x1] }
 0x14a   : > { %11091 = vst [vmem:[#allocation13_spill] sm:$0xff] %v9987_v30  ;;  %4594 = vmatmul.mubr.bf16.gmra.mxu0 %v11092_v60  ;;  %v4711_v56 = vsel %vm8417_vm9, %v4706_v61, %v9957_v40  ;;  %v3805_v7 = vrot.slane %v3803_v47, 5  ;;  %v3811_v54 = vrot.slane %v3809_v2, 5  ;;  %v3819_v41 = vshll.u32 %v8200_v34, 16  ;;  %v10022_v40 = vpop.f32.mrf.mxu1  ;;  %v8143_v60 = vld [vmem:[%s11058_s4 + $0x228] sm:$0xff]  }
 0x14b   : > { %11093 = vst [vmem:[#allocation14_spill] sm:$0xff] %v10000_v42  ;;  %v4716_v59 = vrot.slane %v4715_v58, 4  ;;  %v3815_v5 = vrot.slane %v3813_v37, 4  ;;  %v6866_v52 = vrot.slane %v4868_v20, 9  ;;  %7839 = vmatpush3.bf16.msra.mxu0 %v8146_v62  ;;  %11096 = vst [vmem:[#allocation17_spill] sm:$0xff] %v10022_v40  ;;  %v4914_v47 = vrot.slane %v10003_v14, 5  ;;  %v10035_v58 = vpop.f32.mrf.mxu0 }
 0x14c   : > { %v3806_v28 = vor.u32 %v3805_v7, %v3802_v39  ;;  %v3821_v61 = vrot.slane %v3819_v41, 5  ;;  %v4917_v2 = vrot.slane %v10005_v38, 5  ;;  %v8147_v62 = vld [vmem:[%s11058_s4 + $0x260] sm:$0xff]   ;;  %7840 = vmatprep.subr.bf16.mxu0 %v8149_v50  ;;  %v8154_v20 = vld [vmem:[%s11058_s4 + $0x1d0] sm:$0xff]   ;;  %11097 = vst [vmem:[#allocation18_spill] sm:$0xff] %v10035_v58  ;;  %7899 = vmatpush3.bf16.msra.mxu1 %v8138_v43  ;;  %v4723_v7 = vshrl.u32 %v4656_v63, 16  ;;  %v10039_v41 = vpop.f32.mrf.mxu1 }
 0x14d   : > { %v4721_v39 = vsel %vm8417_vm9, %v4716_v59, %v4720_v48  ;;  %v3816_v37 = vor.u32 %v3815_v5, %v3811_v54  ;;  %v4726_v34 = vshll.u32 %v4656_v63, 16  ;;  %v4915_v50 = vsel %vm8431_vm10, %v6866_v52, %v4914_v47  ;;  %7900 = vmatprep.subr.bf16.mxu1 %v8142_v8  ;;  %v8156_v48 = vld [vmem:[%s11058_s4 + $0x190] sm:$0xff]   ;;  %v8159_v59 = vld [vmem:[%s11058_s4 + $0x1c8] sm:$0xff]   ;;  %v10056_v5 = vpop.f32.mrf.mxu0 }
 0x14e   : > { %v6873_v51 = vcombine.low %v4711_v56, %v4721_v39  ;;  %v3807_v42 = vrot.slane %v3806_v28, 4  ;;  %v4916_v30 = vrot.slane %v4914_v47, 4  ;;  %v4725_v26 = vrot.slane %v4723_v7, 4  ;;  %v10083_v39 = vld [vmem:[#allocation2 + $0x88] sm:$0xf] }
 0x14f   : > { %v3817_v40 = vrot.slane %v3816_v37, 4  ;;  %v4728_v45 = vrot.slane %v4726_v34, 5  ;;  %v4732_v58 = vshll.u32 %v10003_v14, 16  ;;  %7841 = vmatpush3.bf16.msra.mxu0 %v8151_v13  ;;  %v4736_v56 = vshrl.u32 %v10003_v14, 16  ;;  %v10065_v14 = vpop.f32.mrf.mxu1 }
 0x150   : > { %5187 = vmatmul.mubr.bf16.gmra.mxu1 %v6873_v51  ;;  %v3812_v43 = vsel %vm8417_vm9, %v3807_v42, %v3811_v54  ;;  %v4918_v63 = vsel %vm8431_vm10, %v4916_v30, %v4917_v2  ;;  %v4742_v8 = vshll.u32 %v10005_v38, 16  ;;  %7842 = vmatprep.subr.bf16.mxu0 %v8154_v20  ;;  %v10060_v54 = vld [vmem:[#allocation2 + $0x84] sm:$0xf]  ;;  %v7350_v2 = vadd.f32 %v9683_v6, %v9668_v15  ;;  %v8161_v15 = vld [vmem:[%s11058_s4 + $0x188] sm:$0xff]  }
 0x151   : > { %v3822_v51 = vsel %vm8417_vm9, %v3817_v40, %v3821_v61  ;;  %v6882_v52 = vcombine.low %v4915_v50, %v4918_v63  ;;  %v4729_v13 = vor.u32 %v4728_v45, %v4725_v26  ;;  %v4734_v42 = vrot.slane %v4732_v58, 5  ;;  %7901 = vmatpush3.bf16.msra.mxu1 %v8143_v60  ;;  %v8148_v30 = vld [vmem:[%s11058_s4 + $0x220] sm:$0xff]   ;;  %v8152_v26 = vld [vmem:[%s11058_s4 + $0x258] sm:$0xff]   ;;  %v11098_v61 = vld [vmem:[#allocation5_spill] sm:$0xff] }
 0x152   : > { %v6770_v38 = vcombine.low %v3812_v43, %v3822_v51  ;;  %v4738_v28 = vrot.slane %v4736_v56, 4  ;;  %v4744_v47 = vrot.slane %v4742_v8, 5  ;;  %7902 = vmatprep.subr.bf16.mxu1 %v8147_v62  ;;  %v7414_v40 = vadd.f32 %v9724_v55, %v9707_v27  ;;  %v4869_v55 = vld [vmem:[#allocation2 + $0x90] sm:$0xe]  ;;  %v8153_v63 = vld [vmem:[%s11058_s4 + $0x218] sm:$0xff]  }
 0x153   : > { %5194 = vmatprep.mubr.bf16.mxu1 %v6882_v52  ;;  %v4730_v45 = vrot.slane %v4729_v13, 4  ;;  %v7353_v60 = vadd.f32 %v11098_v61, %v9701_v49  ;;  %v7417_v20 = vadd.f32 %v9759_v53, %v9743_v23  ;;  %7843 = vmatpush3.bf16.msra.mxu0 %v8156_v48  ;;  %v3824_v62 = vshrl.u32 %v10060_v54, 16  ;;  %v8164_v49 = vld [vmem:[%s11058_s4 + $0x1c0] sm:$0xff]   ;;  %v10089_v23 = vpop.f32.mrf.mxu0  ;;  %v4661_v48 = vld [vmem:[#allocation2 + $0x98] sm:$0x1]  ;;  %v10104_v56 = vpop.f32.mrf.mxu1  ;;  %v8157_v51 = vld [vmem:[%s11058_s4 + $0x250] sm:$0xff]  }
 0x154   : > { %4601 = vmatprep.mubr.bf16.mxu0 %v6770_v38  ;;  %v4739_v6 = vor.u32 %v4738_v28, %v4734_v42  ;;  %v3827_v58 = vshll.u32 %v10060_v54, 16  ;;  %v3833_v27 = vshll.u32 %v10083_v39, 16  ;;  %7844 = vmatprep.subr.bf16.mxu0 %v8159_v59  ;;  %v11099_v53 = vcombine.low %v9959_v11, %v9990_v10  ;;  %v4659_v43 = vld [vmem:[#allocation2 + $0x90] sm:$0xf]  ;;  %v4660_v28 = vld [vmem:[#allocation2 + $0x94] sm:$0xf] }
 0x155   : > { %v4735_v37 = vsel %vm8417_vm9, %v4730_v45, %v4734_v42  ;;  %v10096_v7 = vadd.f32 %v7414_v40, %v7350_v2  ;;  %v10098_v34 = vadd.f32 %v7417_v20, %v7353_v60  ;;  %v3837_v50 = vshrl.u32 %v10083_v39, 16  ;;  %7903 = vmatpush3.bf16.msra.mxu1 %v8148_v30  ;;  %v10109_v52 = vpop.f32.mrf.mxu0  ;;  %v8202_v42 = vld [vmem:[#allocation2 + $0x8c] sm:$0x1]  ;;  %v8166_v45 = vld [vmem:[%s11058_s4 + $0x180] sm:$0xff]  }
 0x156   : > { %4602 = vmatmul.mubr.bf16.gmra.mxu0 %v11099_v53  ;;  %v4740_v11 = vrot.slane %v4739_v6, 4  ;;  %v3826_v10 = vrot.slane %v3824_v62, 4  ;;  %v3829_v8 = vrot.slane %v3827_v58, 5  ;;  %v3835_v59 = vrot.slane %v3833_v27, 5  ;;  %7904 = vmatprep.subr.bf16.mxu1 %v8152_v26  ;;  %v10116_v26 = vpop.f32.mrf.mxu1 }
 0x157   : > { %11100 = vst [vmem:[#allocation5_spill] sm:$0xff] %v10096_v7  ;;  %11101 = vst [vmem:[#allocation19_spill] sm:$0xff] %v10098_v34  ;;  %v3839_v13 = vrot.slane %v3837_v50, 4  ;;  %v3843_v30 = vshll.u32 %v8202_v42, 16  ;;  %v6763_v38 = vcombine.low %v10060_v54, %v10083_v39  ;;  %v6867_v2 = vrot.slane %v4869_v55, 9  ;;  %7845 = vmatpush3.bf16.msra.mxu0 %v8161_v15  ;;  %v10120_v6 = vpop.f32.mrf.mxu0  ;;  %v8158_v15 = vld [vmem:[%s11058_s4 + $0x210] sm:$0xff]  }
 0x158   : > { %v4745_v40 = vsel %vm8417_vm9, %v4740_v11, %v4744_v47  ;;  %v3830_v61 = vor.u32 %v3829_v8, %v3826_v10  ;;  %v4921_v60 = vrot.slane %v4660_v28, 5  ;;  %v4924_v20 = vrot.slane %v4661_v48, 5  ;;  %7846 = vmatprep.subr.bf16.mxu0 %v8164_v49  ;;  %v10125_v53 = vpop.f32.mrf.mxu1  ;;  %v8162_v49 = vld [vmem:[%s11058_s4 + $0x248] sm:$0xff]  }
 0x159   : > { %v6874_v62 = vcombine.low %v4735_v37, %v4745_v40  ;;  %v3840_v58 = vor.u32 %v3839_v13, %v3835_v59  ;;  %v3845_v27 = vrot.slane %v3843_v30, 5  ;;  %v4747_v55 = vshrl.u32 %v4659_v43, 16  ;;  %7905 = vmatpush3.bf16.msra.mxu1 %v8153_v63  ;;  %v10132_v37 = vpop.f32.mrf.mxu0 }
 0x15a   : > { %v3831_v50 = vrot.slane %v3830_v61, 4  ;;  %v4922_v47 = vsel %vm8431_vm10, %v6867_v2, %v4921_v60  ;;  %v4923_v11 = vrot.slane %v4921_v60, 4  ;;  %v4750_v10 = vshll.u32 %v4659_v43, 16  ;;  %7906 = vmatprep.subr.bf16.mxu1 %v8157_v51  ;;  %v10134_v30 = vpop.f32.mrf.mxu1 }
 0x15b   : > { %5195 = vmatmul.mubr.bf16.gmra.mxu1 %v6874_v62  ;;  %v3841_v63 = vrot.slane %v3840_v58, 4  ;;  %v4749_v8 = vrot.slane %v4747_v55, 4  ;;  %v4756_v13 = vshll.u32 %v4660_v28, 16  ;;  %v4760_v42 = vshrl.u32 %v4660_v28, 16  ;;  %7847 = vmatpush3.bf16.msra.mxu0 %v8166_v45  ;;  %v10140_v61 = vpop.f32.mrf.mxu0  ;;  %v10144_v28 = vld [vmem:[#allocation2 + $0x90] sm:$0xf] }
 0x15c   : > { %v3836_v2 = vsel %vm8417_vm9, %v3831_v50, %v3835_v59  ;;  %v4925_v43 = vsel %vm8431_vm10, %v4923_v11, %v4924_v20  ;;  %v4752_v51 = vrot.slane %v4750_v10, 5  ;;  %v4766_v40 = vshll.u32 %v4661_v48, 16  ;;  %v8163_v59 = vld [vmem:[%s11058_s4 + $0x208] sm:$0xff]  }
 0x15d   : > { %v3846_v60 = vsel %vm8417_vm9, %v3841_v63, %v3845_v27  ;;  %v6883_v62 = vcombine.low %v4922_v47, %v4925_v43  ;;  %v4758_v58 = vrot.slane %v4756_v13, 5  ;;  %v4762_v55 = vrot.slane %v4760_v42, 4  ;;  %7907 = vmatpush3.bf16.msra.mxu1 %v8158_v15  ;;  %v8167_v27 = vld [vmem:[%s11058_s4 + $0x240] sm:$0xff]   ;;  %v10154_v47 = vpop.f32.mrf.mxu0  ;;  %v10166_v13 = vld [vmem:[#allocation2 + $0x94] sm:$0xf] }
 0x15e   : > { %v6771_v45 = vcombine.low %v3836_v2, %v3846_v60  ;;  %v4753_v50 = vor.u32 %v4752_v51, %v4749_v8  ;;  %v4768_v20 = vrot.slane %v4766_v40, 5  ;;  %v7356_v48 = vadd.f32 %v9773_v0, %v9761_v9  ;;  %7908 = vmatprep.subr.bf16.mxu1 %v8162_v49  ;;  %v10162_v8 = vpop.f32.mrf.mxu1  ;;  %v4663_v2 = vld [vmem:[#allocation2 + $0xa0] sm:$0xf]  ;;  %v4870_v60 = vld [vmem:[#allocation2 + $0x9c] sm:$0xe] }
 0x15f   : > { %5202 = vmatprep.mubr.bf16.mxu1 %v6883_v62  ;;  %v4763_v11 = vor.u32 %v4762_v55, %v4758_v58  ;;  %v7420_v15 = vadd.f32 %v9789_v18, %v9771_v1  ;;  %v7359_v10 = vadd.f32 %v9811_v46, %v9793_v22  ;;  %v7423_v63 = vadd.f32 %v9813_v24, %v9801_v31  ;;  %v10169_v1 = vpop.f32.mrf.mxu0  ;;  %v4664_v24 = vld [vmem:[#allocation2 + $0xa4] sm:$0x1] }
 0x160   : > { %4609 = vmatprep.mubr.bf16.mxu0 %v6771_v45  ;;  %v4754_v9 = vrot.slane %v4753_v50, 4  ;;  %v3848_v0 = vshrl.u32 %v10144_v28, 16  ;;  %v3851_v49 = vshll.u32 %v10144_v28, 16  ;;  %v3857_v42 = vshll.u32 %v10166_v13, 16  ;;  %v8168_v43 = vld [vmem:[%s11058_s4 + $0x200] sm:$0xff]   ;;  %v10182_v51 = vpop.f32.mrf.mxu1 }
 0x161   : > { %4610 = vmatmul.mubr.bf16.gmra.mxu0 %v6763_v38  ;;  %v4764_v18 = vrot.slane %v4763_v11, 4  ;;  %v10174_v22 = vadd.f32 %v7420_v15, %v7356_v48  ;;  %v10176_v31 = vadd.f32 %v7423_v63, %v7359_v10  ;;  %v3861_v46 = vshrl.u32 %v10166_v13, 16  ;;  %7909 = vmatpush3.bf16.msra.mxu1 %v8163_v59  ;;  %v10186_v62 = vpop.f32.mrf.mxu0  ;;  %v8204_v45 = vld [vmem:[#allocation2 + $0x98] sm:$0x1] }
 0x162   : > { %v4759_v40 = vsel %vm8417_vm9, %v4754_v9, %v4758_v58  ;;  %v3850_v54 = vrot.slane %v3848_v0, 4  ;;  %v3853_v39 = vrot.slane %v3851_v49, 5  ;;  %v3859_v38 = vrot.slane %v3857_v42, 5  ;;  %7910 = vmatprep.subr.bf16.mxu1 %v8167_v27  ;;  %v10192_v11 = vpop.f32.mrf.mxu1  ;;  %v4662_v9 = vld [vmem:[#allocation2 + $0x9c] sm:$0xf] }
 0x163   : > { %11102 = vst [vmem:[#allocation20_spill] sm:$0xff] %v10174_v22  ;;  %11103 = vst [vmem:[#allocation21_spill] sm:$0xff] %v10176_v31  ;;  %v4769_v55 = vsel %vm8417_vm9, %v4764_v18, %v4768_v20  ;;  %v3863_v59 = vrot.slane %v3861_v46, 4  ;;  %v3867_v50 = vshll.u32 %v8204_v45, 16  ;;  %v6764_v48 = vcombine.low %v10144_v28, %v10166_v13  ;;  %v10194_v0 = vpop.f32.mrf.mxu0 }
 0x164   : > { %v6875_v15 = vcombine.low %v4759_v40, %v4769_v55  ;;  %v3854_v58 = vor.u32 %v3853_v39, %v3850_v54  ;;  %v4784_v10 = vshrl.u32 %v4663_v2, 16  ;;  %v4790_v63 = vshll.u32 %v4664_v24, 16  ;;  %v10196_v20 = vpop.f32.mrf.mxu1 }
 0x165   : > { %v3864_v27 = vor.u32 %v3863_v59, %v3859_v38  ;;  %v3869_v49 = vrot.slane %v3867_v50, 5  ;;  %v6868_v42 = vrot.slane %v4870_v60, 9  ;;  %v4928_v31 = vrot.slane %v4663_v2, 5  ;;  %7911 = vmatpush3.bf16.msra.mxu1 %v8168_v43  ;;  %v10198_v45 = vpop.f32.mrf.mxu0 }
 0x166   : > { %5203 = vmatmul.mubr.bf16.gmra.mxu1 %v6875_v15  ;;  %v3855_v18 = vrot.slane %v3854_v58, 4  ;;  %v4786_v46 = vrot.slane %v4784_v10, 4  ;;  %v4792_v28 = vrot.slane %v4790_v63, 5  ;;  %v4931_v13 = vrot.slane %v4664_v24, 5  ;;  %v10202_v59 = vpop.f32.mrf.mxu1  ;;  %v10208_v58 = vld [vmem:[#allocation2 + $0x9c] sm:$0xf] }
 0x167   : > { %v3865_v40 = vrot.slane %v3864_v27, 4  ;;  %v4929_v54 = vsel %vm8431_vm10, %v6868_v42, %v4928_v31  ;;  %v4930_v39 = vrot.slane %v4928_v31, 4  ;;  %v4771_v55 = vshrl.u32 %v4662_v9, 16  ;;  %v10210_v24 = vpop.f32.mrf.mxu0 }
 0x168   : > { %v3860_v43 = vsel %vm8417_vm9, %v3855_v18, %v3859_v38  ;;  %v4774_v60 = vshll.u32 %v4662_v9, 16  ;;  %v4780_v50 = vshll.u32 %v4663_v2, 16  ;;  %v7362_v15 = vadd.f32 %v9837_v21, %v9830_v35  ;;  %v10218_v38 = vpop.f32.mrf.mxu1 }
 0x169   : > { %v3870_v10 = vsel %vm8417_vm9, %v3865_v40, %v3869_v49  ;;  %v4932_v31 = vsel %vm8431_vm10, %v4930_v39, %v4931_v13  ;;  %v4773_v63 = vrot.slane %v4771_v55, 4  ;;  %v7426_v27 = vadd.f32 %v9841_v44, %v9833_v32  ;;  %v11105_v49 = vld [vmem:[#allocation8_spill] sm:$0xff]  ;;  %v10229_v55 = vpop.f32.mrf.mxu0 }
 0x16a   : > { %v6772_v2 = vcombine.low %v3860_v43, %v3870_v10  ;;  %v6884_v9 = vcombine.low %v4929_v54, %v4932_v31  ;;  %v4776_v42 = vrot.slane %v4774_v60, 5  ;;  %v4782_v35 = vrot.slane %v4780_v50, 5  ;;  %v10227_v39 = vpop.f32.mrf.mxu1  ;;  %v10232_v43 = vld [vmem:[#allocation2 + $0xa0] sm:$0xf]  ;;  %v4667_v31 = vld [vmem:[#allocation2 + $0xb0] sm:$0x1] }
 0x16b   : > { %v10220_v21 = vadd.f32 %v7426_v27, %v7362_v15  ;;  %v7365_v18 = vadd.f32 %v9875_v29, %v9854_v33  ;;  %v7429_v40 = vadd.f32 %v11105_v49, %v9864_v57  ;;  %v3872_v13 = vshrl.u32 %v10208_v58, 16  ;;  %11106 = vst [vmem:[#allocation8_spill] sm:$0xff] %v10227_v39  ;;  %v4666_v33 = vld [vmem:[#allocation2 + $0xac] sm:$0xf]  ;;  %v8206_v15 = vld [vmem:[#allocation2 + $0xa4] sm:$0x1] }
 0x16c   : > { %4617 = vmatprep.mubr.bf16.mxu0 %v6772_v2  ;;  %5210 = vmatprep.mubr.bf16.mxu1 %v6884_v9  ;;  %v4777_v32 = vor.u32 %v4776_v42, %v4773_v63  ;;  %v4787_v44 = vor.u32 %v4786_v46, %v4782_v35  ;;  %v3875_v54 = vshll.u32 %v10208_v58, 16  ;;  %v3881_v60 = vshll.u32 %v10232_v43, 16  ;;  %v10238_v27 = vpop.f32.mrf.mxu1  ;;  %v4871_v42 = vld [vmem:[#allocation2 + $0xa8] sm:$0xe] }
 0x16d   : > { %11104 = vst [vmem:[#allocation22_spill] sm:$0xff] %v10220_v21  ;;  %4618 = vmatmul.mubr.bf16.gmra.mxu0 %v6764_v48  ;;  %v10235_v29 = vadd.f32 %v7429_v40, %v7365_v18  ;;  %v3874_v57 = vrot.slane %v3872_v13, 4  ;;  %v3885_v50 = vshrl.u32 %v10232_v43, 16  ;;  %v3891_v10 = vshll.u32 %v8206_v15, 16  ;;  %11108 = vst [vmem:[#allocation24_spill] sm:$0xff] %v10238_v27  ;;  %v10242_v40 = vpop.f32.mrf.mxu0 }
 0x16e   : > { %v4778_v63 = vrot.slane %v4777_v32, 4  ;;  %v4788_v46 = vrot.slane %v4787_v44, 4  ;;  %v3877_v2 = vrot.slane %v3875_v54, 5  ;;  %v3883_v9 = vrot.slane %v3881_v60, 5  ;;  %v4665_v44 = vld [vmem:[#allocation2 + $0xa8] sm:$0xf] }
 0x16f   : > { %11107 = vst [vmem:[#allocation23_spill] sm:$0xff] %v10235_v29  ;;  %v3887_v49 = vrot.slane %v3885_v50, 4  ;;  %v3893_v21 = vrot.slane %v3891_v10, 5  ;;  %v6765_v48 = vcombine.low %v10208_v58, %v10232_v43  ;;  %v4808_v18 = vshrl.u32 %v4666_v33, 16  ;;  %v10248_v10 = vpop.f32.mrf.mxu1  ;;  %v10250_v27 = vpop.f32.mrf.mxu0 }
 0x170   : > { %v4783_v13 = vsel %vm8417_vm9, %v4778_v63, %v4782_v35  ;;  %v4793_v15 = vsel %vm8417_vm9, %v4788_v46, %v4792_v28  ;;  %v3878_v29 = vor.u32 %v3877_v2, %v3874_v57  ;;  %v4814_v32 = vshll.u32 %v4667_v31, 16 }
 0x171   : > { %v6876_v54 = vcombine.low %v4783_v13, %v4793_v15  ;;  %v3888_v60 = vor.u32 %v3887_v49, %v3883_v9  ;;  %v4810_v22 = vrot.slane %v4808_v18, 4  ;;  %v6869_v50 = vrot.slane %v4871_v42, 9  ;;  %v10252_v57 = vpop.f32.mrf.mxu1  ;;  %v10254_v46 = vpop.f32.mrf.mxu0 }
 0x172   : > { %v3879_v58 = vrot.slane %v3878_v29, 4  ;;  %v4816_v43 = vrot.slane %v4814_v32, 5  ;;  %v4935_v39 = vrot.slane %v4666_v33, 5  ;;  %v4938_v34 = vrot.slane %v4667_v31, 5  ;;  %11109 = vst [vmem:[#allocation25_spill] sm:$0xff] %v10252_v57  ;;  %v11110_v29 = vld [vmem:[#allocation10_spill] sm:$0xff] }
 0x173   : > { %5211 = vmatmul.mubr.bf16.gmra.mxu1 %v6876_v54  ;;  %v3889_v35 = vrot.slane %v3888_v60, 4  ;;  %v4795_v63 = vshrl.u32 %v4665_v44, 16  ;;  %v4798_v7 = vshll.u32 %v4665_v44, 16  ;;  %v4804_v28 = vshll.u32 %v4666_v33, 16  ;;  %v10264_v32 = vld [vmem:[#allocation2 + $0xa8] sm:$0xf]  ;;  %v10266_v44 = vpop.f32.mrf.mxu0 }
 0x174   : > { %v3884_v2 = vsel %vm8417_vm9, %v3879_v58, %v3883_v9  ;;  %v4936_v42 = vsel %vm8431_vm10, %v6869_v50, %v4935_v39  ;;  %v4937_v49 = vrot.slane %v4935_v39, 4  ;;  %v7368_v18 = vadd.f32 %v9924_v25, %v11110_v29  ;;  %v11111_v60 = vld [vmem:[#allocation11_spill] sm:$0xff]  ;;  %v11112_v50 = vld [vmem:[#allocation12_spill] sm:$0xff] }
 0x175   : > { %v3894_v31 = vsel %vm8417_vm9, %v3889_v35, %v3893_v21  ;;  %v4797_v13 = vrot.slane %v4795_v63, 4  ;;  %v4800_v15 = vrot.slane %v4798_v7, 5  ;;  %v4806_v33 = vrot.slane %v4804_v28, 5  ;;  %v10276_v35 = vpop.f32.mrf.mxu1  ;;  %v10278_v63 = vpop.f32.mrf.mxu0 }
 0x176   : > { %v6773_v54 = vcombine.low %v3884_v2, %v3894_v31  ;;  %v4939_v9 = vsel %vm8431_vm10, %v4937_v49, %v4938_v34  ;;  %v7432_v39 = vadd.f32 %v11112_v50, %v11111_v60  ;;  %v7371_v25 = vadd.f32 %v9953_v19, %v9931_v36  ;;  %11113 = vst [vmem:[#allocation10_spill] sm:$0xff] %v10276_v35  ;;  %v10284_v49 = vld [vmem:[#allocation2 + $0xac] sm:$0xf]  ;;  %v4669_v19 = vld [vmem:[#allocation2 + $0xb8] sm:$0xf] }
 0x177   : > { %v6885_v58 = vcombine.low %v4936_v42, %v4939_v9  ;;  %v4801_v29 = vor.u32 %v4800_v15, %v4797_v13  ;;  %v4811_v21 = vor.u32 %v4810_v22, %v4806_v33  ;;  %v7435_v7 = vadd.f32 %v9967_v12, %v9939_v17  ;;  %v4670_v31 = vld [vmem:[#allocation2 + $0xbc] sm:$0x1]  ;;  %v8208_v9 = vld [vmem:[#allocation2 + $0xb0] sm:$0x1]  ;;  %v4872_v50 = vld [vmem:[#allocation2 + $0xb4] sm:$0xe] }
 0x178   : > { %4625 = vmatprep.mubr.bf16.mxu0 %v6773_v54  ;;  %v10280_v28 = vadd.f32 %v7432_v39, %v7368_v18  ;;  %v3896_v34 = vshrl.u32 %v10264_v32, 16  ;;  %v3899_v2 = vshll.u32 %v10264_v32, 16  ;;  %v3905_v36 = vshll.u32 %v10284_v49, 16  ;;  %v10290_v18 = vpop.f32.mrf.mxu0 }
 0x179   : > { %4626 = vmatmul.mubr.bf16.gmra.mxu0 %v6765_v48  ;;  %5218 = vmatprep.mubr.bf16.mxu1 %v6885_v58  ;;  %v4802_v22 = vrot.slane %v4801_v29, 4  ;;  %v4812_v17 = vrot.slane %v4811_v21, 4  ;;  %v10287_v12 = vadd.f32 %v7435_v7, %v7371_v25  ;;  %v3909_v42 = vshrl.u32 %v10284_v49, 16  ;;  %v4668_v29 = vld [vmem:[#allocation2 + $0xb4] sm:$0xf]  ;;  %v10298_v21 = vpop.f32.mrf.mxu1 }
 0x17a   : > { %11114 = vst [vmem:[#allocation11_spill] sm:$0xff] %v10280_v28  ;;  %v3898_v13 = vrot.slane %v3896_v34, 4  ;;  %v3901_v15 = vrot.slane %v3899_v2, 5  ;;  %v3907_v54 = vrot.slane %v3905_v36, 5  ;;  %v3915_v60 = vshll.u32 %v8208_v9, 16  ;;  %11116 = vst [vmem:[#allocation26_spill] sm:$0xff] %v10298_v21  ;;  %v10300_v7 = vpop.f32.mrf.mxu0 }
 0x17b   : > { %11115 = vst [vmem:[#allocation12_spill] sm:$0xff] %v10287_v12  ;;  %v4807_v39 = vsel %vm8417_vm9, %v4802_v22, %v4806_v33  ;;  %v4817_v48 = vsel %vm8417_vm9, %v4812_v17, %v4816_v43  ;;  %v3911_v58 = vrot.slane %v3909_v42, 4  ;;  %v6766_v25 = vcombine.low %v10264_v32, %v10284_v49 }
 0x17c   : > { %v6877_v34 = vcombine.low %v4807_v39, %v4817_v48  ;;  %v3902_v2 = vor.u32 %v3901_v15, %v3898_v13  ;;  %v3917_v36 = vrot.slane %v3915_v60, 5  ;;  %v4832_v9 = vshrl.u32 %v4669_v19, 16  ;;  %v10302_v57 = vpop.f32.mrf.mxu0  ;;  %v10306_v13 = vpop.f32.mrf.mxu1 }
 0x17d   : > { %v3912_v12 = vor.u32 %v3911_v58, %v3907_v54  ;;  %v4838_v28 = vshll.u32 %v4670_v31, 16  ;;  %v6870_v35 = vrot.slane %v4872_v50, 9  ;;  %v4942_v33 = vrot.slane %v4669_v19, 5  ;;  %11117 = vst [vmem:[#allocation27_spill] sm:$0xff] %v10306_v13  ;;  %v10310_v58 = vld [vmem:[#allocation2 + $0xb4] sm:$0xf] }
 0x17e   : > { %5219 = vmatmul.mubr.bf16.gmra.mxu1 %v6877_v34  ;;  %v3903_v22 = vrot.slane %v3902_v2, 4  ;;  %v4834_v43 = vrot.slane %v4832_v9, 4  ;;  %v4945_v17 = vrot.slane %v4670_v31, 5  ;;  %v4819_v42 = vshrl.u32 %v4668_v29, 16  ;;  %v11119_v34 = vld [vmem:[#allocation15_spill] sm:$0xff]  ;;  %v11120_v2 = vld [vmem:[#allocation17_spill] sm:$0xff] }
 0x17f   : > { %v3913_v32 = vrot.slane %v3912_v12, 4  ;;  %v4840_v49 = vrot.slane %v4838_v28, 5  ;;  %v4943_v21 = vsel %vm8431_vm10, %v6870_v35, %v4942_v33  ;;  %v4944_v39 = vrot.slane %v4942_v33, 4  ;;  %v11118_v12 = vld [vmem:[#allocation16_spill] sm:$0xff] }
 0x180   : > { %v3908_v15 = vsel %vm8417_vm9, %v3903_v22, %v3907_v54  ;;  %v4821_v60 = vrot.slane %v4819_v42, 4  ;;  %v4822_v50 = vshll.u32 %v4668_v29, 16  ;;  %v4828_v48 = vshll.u32 %v4669_v19, 16  ;;  %v10320_v29 = vpop.f32.mrf.mxu0  ;;  %v11122_v42 = vld [vmem:[#allocation18_spill] sm:$0xff] }
 0x181   : > { %v3918_v31 = vsel %vm8417_vm9, %v3913_v32, %v3917_v36  ;;  %v4946_v28 = vsel %vm8431_vm10, %v4944_v39, %v4945_v17  ;;  %v7374_v35 = vadd.f32 %v11118_v12, %v9985_v4  ;;  %v7438_v9 = vadd.f32 %v11120_v2, %v11119_v34  ;;  %v10329_v4 = vpop.f32.mrf.mxu1  ;;  %v8210_v12 = vld [vmem:[#allocation2 + $0xbc] sm:$0x1]  ;;  %v10340_v2 = vld [vmem:[#allocation2 + $0xc4] sm:$0xf] }
 0x182   : > { %v6774_v33 = vcombine.low %v3908_v15, %v3918_v31  ;;  %v6886_v13 = vcombine.low %v4943_v21, %v4946_v28  ;;  %v4824_v54 = vrot.slane %v4822_v50, 5  ;;  %v4830_v22 = vrot.slane %v4828_v48, 5  ;;  %11123 = vst [vmem:[#allocation15_spill] sm:$0xff] %v10329_v4  ;;  %v10332_v50 = vld [vmem:[#allocation2 + $0xb8] sm:$0xf]  ;;  %v10335_v28 = vpop.f32.mrf.mxu0 }
 0x183   : > { %v10322_v19 = vadd.f32 %v7438_v9, %v7374_v35  ;;  %v7377_v36 = vadd.f32 %v10056_v5, %v11122_v42  ;;  %v7441_v17 = vadd.f32 %v10065_v14, %v10039_v41  ;;  %v3920_v32 = vshrl.u32 %v10310_v58, 16  ;;  %v381_v31 = vld [vmem:[#allocation2 + $0xc8] sm:$0x1] }
 0x184   : > { %4633 = vmatprep.mubr.bf16.mxu0 %v6774_v33  ;;  %5226 = vmatprep.mubr.bf16.mxu1 %v6886_v13  ;;  %v4825_v39 = vor.u32 %v4824_v54, %v4821_v60  ;;  %v4835_v21 = vor.u32 %v4834_v43, %v4830_v22  ;;  %v3923_v15 = vshll.u32 %v10310_v58, 16  ;;  %v3929_v48 = vshll.u32 %v10332_v50, 16  ;;  %v10342_v9 = vpop.f32.mrf.mxu0 }
 0x185   : > { %11121 = vst [vmem:[#allocation16_spill] sm:$0xff] %v10322_v19  ;;  %4634 = vmatmul.mubr.bf16.gmra.mxu0 %v6766_v25  ;;  %v10337_v5 = vadd.f32 %v7441_v17, %v7377_v36  ;;  %v3922_v41 = vrot.slane %v3920_v32, 4  ;;  %v3933_v14 = vshrl.u32 %v10332_v50, 16  ;;  %v3939_v35 = vshll.u32 %v8210_v12, 16  ;;  %v4671_v25 = vld [vmem:[#allocation2 + $0xc0] sm:$0xf]  ;;  %v10346_v36 = vpop.f32.mrf.mxu1 }
 0x186   : > { %v4826_v13 = vrot.slane %v4825_v39, 4  ;;  %v4836_v60 = vrot.slane %v4835_v21, 4  ;;  %v3925_v43 = vrot.slane %v3923_v15, 5  ;;  %v3931_v34 = vrot.slane %v3929_v48, 5  ;;  %11126 = vst [vmem:[#allocation18_spill] sm:$0xff] %v10346_v36  ;;  %v11127_v17 = vld [vmem:[#allocation6_spill] sm:$0xff] }
 0x187   : > { %11124 = vst [vmem:[#allocation17_spill] sm:$0xff] %v10337_v5  ;;  %v3935_v33 = vrot.slane %v3933_v14, 4  ;;  %v382_v42 = vsel %vm8372_vm4, 0, %v381_v31  ;;  %v974_v32 = vrot.slane %v11127_v17, 4  ;;  %v4873_v15 = vld [vmem:[#allocation2 + $0xc0] sm:$0xe]  ;;  %v10354_v31 = vpop.f32.mrf.mxu0  ;;  %v6767_v17 = vcombine.low %v10310_v58, %v10332_v50 }
 0x188   : > { %v4831_v12 = vsel %vm8417_vm9, %v4826_v13, %v4830_v22  ;;  %v4841_v39 = vsel %vm8417_vm9, %v4836_v60, %v4840_v49  ;;  %v3926_v21 = vor.u32 %v3925_v43, %v3922_v41  ;;  %383 = vst [vmem:[#allocation2 + $0xc8] sm:$0x1] %v382_v42  ;;  %v3941_v14 = vrot.slane %v3939_v35, 5  ;;  %v10360_v60 = vld [vmem:[#allocation2 + $0x78] sm:$0xf]  ;;  %v10362_v35 = vpop.f32.mrf.mxu1 }
 0x189   : > { %v6878_v48 = vcombine.low %v4831_v12, %v4841_v39  ;;  %v3936_v5 = vor.u32 %v3935_v33, %v3931_v34  ;;  %v4856_v54 = vshrl.u32 %v10340_v2, 16  ;;  %v4843_v36 = vshrl.u32 %v4671_v25, 16  ;;  %v10368_v50 = vld [vmem:[#allocation2 + $0x7c] sm:$0xf] }
 0x18a   : > { %v3927_v19 = vrot.slane %v3926_v21, 4  ;;  %v4846_v4 = vshll.u32 %v4671_v25, 16  ;;  %v6871_v13 = vrot.slane %v4873_v15, 9  ;;  %v4949_v49 = vrot.slane %v10340_v2, 5 }
 0x18b   : > { %5227 = vmatmul.mubr.bf16.gmra.mxu1 %v6878_v48  ;;  %v3937_v22 = vrot.slane %v3936_v5, 4  ;;  %v4852_v41 = vshll.u32 %v10340_v2, 16  ;;  %v4845_v33 = vrot.slane %v4843_v36, 4  ;;  %v7380_v58 = vadd.f32 %v10109_v52, %v10089_v23  ;;  %v10376_v39 = vpop.f32.mrf.mxu0 }
 0x18c   : > { %v3932_v43 = vsel %vm8417_vm9, %v3927_v19, %v3931_v34  ;;  %v4848_v42 = vrot.slane %v4846_v4, 5  ;;  %v4858_v25 = vrot.slane %v4856_v54, 4  ;;  %v7444_v2 = vadd.f32 %v10116_v26, %v10104_v56  ;;  %v5276_v54 = vld [vmem:[#allocation2 + $0x80] sm:$0x1]  ;;  %v10387_v26 = vpop.f32.mrf.mxu1 }
 0x18d   : > { %v3942_v5 = vsel %vm8417_vm9, %v3937_v22, %v3941_v14  ;;  %v10372_v12 = vrot.slane %v4852_v41, 5  ;;  %v7383_v19 = vadd.f32 %v10132_v37, %v10120_v6  ;;  %v7447_v23 = vadd.f32 %v10134_v30, %v10125_v53  ;;  %v10389_v48 = vpop.f32.mrf.mxu0 }
 0x18e   : > { %v6775_v21 = vcombine.low %v3932_v43, %v3942_v5  ;;  %v5285_v52 = vshrl.u32 %v10360_v60, 16  ;;  %v4849_v34 = vor.u32 %v4848_v42, %v4845_v33  ;;  %v10383_v36 = vadd.f32 %v7444_v2, %v7380_v58  ;;  %v5797_v43 = vld [vmem:[#allocation2 + $0x78] sm:$0xe] }
 0x18f   : > { %v1135_v4 = vld [vmem:[#allocation2 + $0xc8] sm:$0x1]  ;;  %v5288_v15 = vshll.u32 %v10360_v60, 16  ;;  %v5294_v56 = vshll.u32 %v10368_v50, 16  ;;  %v10393_v53 = vadd.f32 %v7447_v23, %v7383_v19  ;;  %v5298_v41 = vshrl.u32 %v10368_v50, 16  ;;  %v10396_v33 = vpop.f32.mrf.mxu0 }
 0x190   : > { %11128 = vst [vmem:[#allocation6_spill] sm:$0xff] %v10383_v36  ;;  %4641 = vmatprep.mubr.bf16.mxu0 %v6775_v21  ;;  %v1136_v37 = vsel %vm8362_vm3, %v974_v32, %v1135_v4  ;;  %v5287_v30 = vrot.slane %v5285_v52, 4  ;;  %v4950_v42 = vsel %vm8431_vm10, %v6871_v13, %v4949_v49  ;;  %v4951_v58 = vrot.slane %v4949_v49, 4  ;;  %v10402_v23 = vld [vmem:[#allocation2 + $0x84] sm:$0xf]  ;;  %v10404_v52 = vpop.f32.mrf.mxu1  ;;  %v11133_v36 = vld [vmem:[#allocation9_spill] sm:$0xff] }
 0x191   : > { %11130 = vst [vmem:[#allocation28_spill] sm:$0xff] %v10393_v53  ;;  %4642 = vmatmul.mubr.bf16.gmra.mxu0 %v6767_v17  ;;  %1137 = vst [vmem:[#allocation2 + $0xc8] sm:$0x1] %v1136_v37  ;;  %v5290_v14 = vrot.slane %v5288_v15, 5  ;;  %v5296_v22 = vrot.slane %v5294_v56, 5  ;;  %v4859_v5 = vor.u32 %v4858_v25, %v10372_v12  ;;  %v5304_v2 = vshll.u32 %v5276_v54, 16  ;;  %v10410_v49 = vpop.f32.mrf.mxu0 }
 0x192   : > { %v4850_v32 = vrot.slane %v4849_v34, 4  ;;  %v5300_v19 = vrot.slane %v5298_v41, 4  ;;  %v5823_v17 = vrot.slane %v10368_v50, 5  ;;  %11131 = vst [vmem:[#allocation29_spill] sm:$0xff] %v10404_v52  ;;  %v7000_v4 = vrot.slane %v5797_v43, 9  ;;  %v11132_v41 = vld [vmem:[#allocation7_spill] sm:$0xff] }
 0x193   : > { %v5291_v21 = vor.u32 %v5290_v14, %v5287_v30  ;;  %v5826_v15 = vrot.slane %v5276_v54, 5  ;;  %v7466_v56 = vadd.f32 %v10154_v47, %v10140_v61  ;;  %v7469_v13 = vadd.f32 %v10186_v62, %v10169_v1  ;;  %v10424_v62 = vld [vmem:[#allocation2 + $0x88] sm:$0xf]  ;;  %v5277_v43 = vld [vmem:[#allocation2 + $0x8c] sm:$0x1] }
 0x194   : > { %v5301_v34 = vor.u32 %v5300_v19, %v5296_v22  ;;  %v5306_v37 = vrot.slane %v5304_v2, 5  ;;  %v5825_v30 = vrot.slane %v5823_v17, 4  ;;  %v4860_v14 = vrot.slane %v4859_v5, 4  ;;  %v10427_v2 = vpop.f32.mrf.mxu1  ;;  %v5798_v52 = vld [vmem:[#allocation2 + $0x84] sm:$0xe] }
 0x195   : > { %v5292_v25 = vrot.slane %v5291_v21, 4  ;;  %v10413_v53 = vadd.f32 %v7466_v56, %v11132_v41  ;;  %v10416_v6 = vadd.f32 %v7469_v13, %v11133_v36  ;;  %v5309_v54 = vshrl.u32 %v10402_v23, 16  ;;  %11134 = vst [vmem:[#allocation7_spill] sm:$0xff] %v10427_v2 }
 0x196   : > { %v4855_v61 = vsel %vm8417_vm9, %v4850_v32, %v10372_v12  ;;  %v5302_v1 = vrot.slane %v5301_v34, 4  ;;  %v5312_v5 = vshll.u32 %v10402_v23, 16  ;;  %v6936_v36 = vcombine.low %v10360_v60, %v10368_v50 }
 0x197   : > { %v5297_v47 = vsel %vm8417_vm9, %v5292_v25, %v5296_v22  ;;  %v5824_v19 = vsel %vm8431_vm10, %v7000_v4, %v5823_v17  ;;  %v5827_v12 = vsel %vm8431_vm10, %v5825_v30, %v5826_v15  ;;  %v5311_v32 = vrot.slane %v5309_v54, 4  ;;  %v10435_v22 = vpop.f32.mrf.mxu0  ;;  %v10445_v54 = vpop.f32.mrf.mxu1 }
 0x198   : > { %v4673_v21 = vld [vmem:[#allocation2 + $0xc8] sm:$0x1]  ;;  %11135 = vst [vmem:[#allocation9_spill] sm:$0xff] %v10435_v22  ;;  %v5307_v25 = vsel %vm8417_vm9, %v5302_v1, %v5306_v37  ;;  %v5314_v34 = vrot.slane %v5312_v5, 5  ;;  %v5318_v2 = vshll.u32 %v10424_v62, 16  ;;  %v5322_v60 = vshrl.u32 %v10424_v62, 16 }
 0x199   : > { %v4862_v56 = vshll.u32 %v4673_v21, 16  ;;  %v4952_v13 = vrot.slane %v4673_v21, 5  ;;  %v6944_v41 = vcombine.low %v5297_v47, %v5307_v25  ;;  %v5328_v50 = vshll.u32 %v5277_v43, 16  ;;  %v10447_v5 = vpop.f32.mrf.mxu0 }
 0x19a   : > { %v10443_v15 = vcombine.low %v5824_v19, %v5827_v12  ;;  %v5315_v30 = vor.u32 %v5314_v34, %v5311_v32  ;;  %v5320_v37 = vrot.slane %v5318_v2, 5  ;;  %v5324_v1 = vrot.slane %v5322_v60, 4  ;;  %v10454_v2 = vld [vmem:[#allocation2 + $0x90] sm:$0xf] }
 0x19b   : > { %v4864_v17 = vrot.slane %v4862_v56, 5  ;;  %v4953_v4 = vsel %vm8431_vm10, %v4951_v58, %v4952_v13  ;;  %5716 = vmatprep.mubr.bf16.mxu0 %v6944_v41  ;;  %v5330_v47 = vrot.slane %v5328_v50, 5  ;;  %v7001_v22 = vrot.slane %v5798_v52, 9  ;;  %v10456_v13 = vld [vmem:[#allocation2 + $0x94] sm:$0xf]  ;;  %v11136_v41 = vld [vmem:[#allocation13_spill] sm:$0xff]  ;;  %v10469_v60 = vpop.f32.mrf.mxu0 }
 0x19c   : > { %v6887_v21 = vcombine.low %v4950_v42, %v4953_v4  ;;  %5717 = vmatmul.mubr.bf16.vlgmr.msra.gmra.mxu0 %v6936_v36  ;;  %v5316_v56 = vrot.slane %v5315_v30, 4  ;;  %v5830_v58 = vrot.slane %v10424_v62, 5  ;;  %v5325_v12 = vor.u32 %v5324_v1, %v5320_v37  ;;  %v10462_v36 = vpop.f32.mrf.mxu1  ;;  %v11137_v30 = vld [vmem:[#allocation14_spill] sm:$0xff] }
 0x19d   : > { %v4865_v25 = vsel %vm8417_vm9, %v4860_v14, %v4864_v17  ;;  %v5833_v32 = vrot.slane %v5277_v43, 5  ;;  %v7472_v42 = vadd.f32 %v10198_v45, %v10194_v0  ;;  %v7530_v34 = vadd.f32 %v10182_v51, %v10162_v8  ;;  %v5278_v51 = vld [vmem:[#allocation2 + $0x98] sm:$0x1] }
 0x19e   : > { %5234 = vmatprep.mubr.bf16.mxu1 %v6887_v21  ;;  %v6879_v19 = vcombine.low %v4855_v61, %v4865_v25  ;;  %v5321_v14 = vsel %vm8417_vm9, %v5316_v56, %v5320_v37  ;;  %v5832_v52 = vrot.slane %v5830_v58, 4  ;;  %v5326_v61 = vrot.slane %v5325_v12, 4  ;;  %v5799_v37 = vld [vmem:[#allocation2 + $0x90] sm:$0xe] }
 0x19f   : > { %v5831_v43 = vsel %vm8431_vm10, %v7001_v22, %v5830_v58  ;;  %v2663_v0 = vadd.f32 %v7472_v42, %v11136_v41  ;;  %v7475_v45 = vadd.f32 %v10229_v55, %v10210_v24  ;;  %v5333_v50 = vshrl.u32 %v10454_v2, 16  ;;  %v10486_v58 = vpop.f32.mrf.mxu1 }
 0x1a0   : > { %5235 = vmatmul.mubr.bf16.gmra.mxu1 %v6879_v19  ;;  %v5834_v8 = vsel %vm8431_vm10, %v5832_v52, %v5833_v32  ;;  %v5336_v17 = vshll.u32 %v10454_v2, 16  ;;  %v5342_v4 = vshll.u32 %v10456_v13, 16  ;;  %v7533_v22 = vadd.f32 %v10196_v20, %v10192_v11  ;;  %v10491_v32 = vpop.f32.mrf.mxu0  ;;  %v10494_v52 = vld [vmem:[#allocation2 + $0x9c] sm:$0xf] }
 0x1a1   : > { %6069 = vmatprep.mubr.bf16.mxu1 %v10443_v15  ;;  %v5331_v24 = vsel %vm8417_vm9, %v5326_v61, %v5330_v47  ;;  %v6937_v55 = vcombine.low %v10402_v23, %v10424_v62  ;;  %v10484_v21 = vadd.f32 %v7475_v45, %v11137_v30  ;;  %v5335_v25 = vrot.slane %v5333_v50, 4  ;;  %v11141_v30 = vld [vmem:[#allocation24_spill] sm:$0xff] }
 0x1a2   : > { %v6945_v1 = vcombine.low %v5321_v14, %v5331_v24  ;;  %v5338_v56 = vrot.slane %v5336_v17, 5  ;;  %v10488_v19 = vcombine.low %v5831_v43, %v5834_v8  ;;  %v5344_v12 = vrot.slane %v5342_v4, 5  ;;  %v10508_v17 = vpop.f32.mrf.mxu1 }
 0x1a3   : > { %v5346_v11 = vshrl.u32 %v10456_v13, 16  ;;  %v5352_v20 = vshll.u32 %v5278_v51, 16  ;;  %v7002_v23 = vrot.slane %v5799_v37, 9  ;;  %v5837_v62 = vrot.slane %v10456_v13, 5 }
 0x1a4   : > { %5724 = vmatprep.mubr.bf16.mxu0 %v6945_v1  ;;  %v5339_v47 = vor.u32 %v5338_v56, %v5335_v25  ;;  %v5840_v42 = vrot.slane %v5278_v51, 5  ;;  %v10497_v14 = vadd.f32 %v7530_v34, %v10413_v53  ;;  %v10500_v61 = vadd.f32 %v7533_v22, %v10416_v6  ;;  %v11138_v34 = vld [vmem:[#allocation5_spill] sm:$0xff]  ;;  %v10514_v22 = vld [vmem:[#allocation2 + $0xa0] sm:$0xf] }
 0x1a5   : > { %5725 = vmatmul.mubr.bf16.gmra.mxu0 %v6937_v55  ;;  %v5348_v43 = vrot.slane %v5346_v11, 4  ;;  %v7478_v41 = vadd.f32 %v10250_v27, %v10242_v40  ;;  %v7536_v45 = vadd.f32 %v10218_v38, %v10202_v59  ;;  %v5839_v50 = vrot.slane %v5837_v62, 4  ;;  %v11140_v55 = vld [vmem:[#allocation8_spill] sm:$0xff] }
 0x1a6   : > { %v5340_v8 = vrot.slane %v5339_v47, 4  ;;  %v7481_v51 = vadd.f32 %v10266_v44, %v10254_v46  ;;  %v5354_v6 = vrot.slane %v5352_v20, 5  ;;  %v5357_v27 = vshrl.u32 %v10494_v52, 16  ;;  %v11139_v46 = vld [vmem:[#allocation19_spill] sm:$0xff] }
 0x1a7   : > { %v5349_v53 = vor.u32 %v5348_v43, %v5344_v12  ;;  %v10512_v4 = vadd.f32 %v7478_v41, %v11138_v34  ;;  %v10517_v40 = vpop.f32.mrf.mxu0  ;;  %v5838_v59 = vsel %vm8431_vm10, %v7002_v23, %v5837_v62  ;;  %v5841_v38 = vsel %vm8431_vm10, %v5839_v50, %v5840_v42  ;;  %v5800_v42 = vld [vmem:[#allocation2 + $0x9c] sm:$0xe]  ;;  %v10538_v43 = vpop.f32.mrf.mxu1 }
 0x1a8   : > { %6070 = vmatmul.mubr.bf16.vlgmr.msra.gmra.mxu1 %v10443_v15  ;;  %v10525_v44 = vadd.f32 %v7481_v51, %v11139_v46  ;;  %v5279_v15 = vld [vmem:[#allocation2 + $0xa4] sm:$0x1]  ;;  %v5360_v24 = vshll.u32 %v10494_v52, 16  ;;  %v7539_v37 = vadd.f32 %v11141_v30, %v11140_v55  ;;  %v5345_v1 = vsel %vm8417_vm9, %v5340_v8, %v5344_v12 }
 0x1a9   : > { %6077 = vmatprep.mubr.bf16.mxu1 %v10488_v19  ;;  %v5350_v25 = vrot.slane %v5349_v53, 4  ;;  %v5359_v56 = vrot.slane %v5357_v27, 4  ;;  %v10532_v11 = vpop.f32.mrf.mxu0  ;;  %v10534_v20 = vadd.f32 %v7536_v45, %v2663_v0  ;;  %v5366_v23 = vshll.u32 %v10514_v22, 16 }
 0x1aa   : > { %v5362_v47 = vrot.slane %v5360_v24, 5  ;;  %v5370_v62 = vshrl.u32 %v10514_v22, 16  ;;  %v6938_v12 = vcombine.low %v10454_v2, %v10456_v13  ;;  %v10544_v8 = vcombine.low %v5838_v59, %v5841_v38 }
 0x1ab   : > { %v5355_v41 = vsel %vm8417_vm9, %v5350_v25, %v5354_v6  ;;  %v5376_v50 = vshll.u32 %v5279_v15, 16  ;;  %v10546_v51 = vpop.f32.mrf.mxu0  ;;  %v5368_v53 = vrot.slane %v5366_v23, 5  ;;  %v7003_v27 = vrot.slane %v5800_v42, 9  ;;  %v10551_v6 = vld [vmem:[#allocation2 + $0xa8] sm:$0xf]  ;;  %v10559_v25 = vpop.f32.mrf.mxu1 }
 0x1ac   : > { %11142 = vst [vmem:[#allocation13_spill] sm:$0xff] %v10546_v51  ;;  %v6946_v0 = vcombine.low %v5345_v1, %v5355_v41  ;;  %v5363_v45 = vor.u32 %v5362_v47, %v5359_v56  ;;  %v5372_v34 = vrot.slane %v5370_v62, 4  ;;  %v5844_v46 = vrot.slane %v10514_v22, 5  ;;  %v10557_v1 = vld [vmem:[#allocation2 + $0xac] sm:$0xf]  ;;  %v11145_v47 = vld [vmem:[#allocation20_spill] sm:$0xff] }
 0x1ad   : > { %v5847_v24 = vrot.slane %v5279_v15, 5  ;;  %v7484_v55 = vadd.f32 %v10290_v18, %v10278_v63  ;;  %v10553_v30 = vpop.f32.mrf.mxu0  ;;  %v5378_v59 = vrot.slane %v5376_v50, 5  ;;  %v7487_v38 = vadd.f32 %v10302_v57, %v10300_v7  ;;  %v11144_v63 = vld [vmem:[#allocation25_spill] sm:$0xff]  ;;  %v5280_v41 = vld [vmem:[#allocation2 + $0xb0] sm:$0x1] }
 0x1ae   : > { %11143 = vst [vmem:[#allocation14_spill] sm:$0xff] %v10553_v30  ;;  %5732 = vmatprep.mubr.bf16.mxu0 %v6946_v0  ;;  %v5364_v2 = vrot.slane %v5363_v45, 4  ;;  %v5373_v13 = vor.u32 %v5372_v34, %v5368_v53  ;;  %v10563_v15 = vadd.f32 %v7539_v37, %v10484_v21  ;;  %v7542_v18 = vadd.f32 %v11144_v63, %v10248_v10  ;;  %v5801_v0 = vld [vmem:[#allocation2 + $0xa8] sm:$0xe]  ;;  %v11148_v34 = vld [vmem:[#allocation26_spill] sm:$0xff] }
 0x1af   : > { %5733 = vmatmul.mubr.bf16.gmra.mxu0 %v6938_v12  ;;  %v5846_v56 = vrot.slane %v5844_v46, 4  ;;  %v10568_v23 = vadd.f32 %v7484_v55, %v11145_v47  ;;  %v10570_v62 = vpop.f32.mrf.mxu0  ;;  %v5381_v21 = vshrl.u32 %v10551_v6, 16  ;;  %v5845_v10 = vsel %vm8431_vm10, %v7003_v27, %v5844_v46 }
 0x1b0   : > { %6078 = vmatmul.mubr.bf16.gmra.mxu1 %v10488_v19  ;;  %v5369_v57 = vsel %vm8417_vm9, %v5364_v2, %v5368_v53  ;;  %v5374_v7 = vrot.slane %v5373_v13, 4  ;;  %v11146_v19 = vld [vmem:[#allocation21_spill] sm:$0xff]  ;;  %v5384_v12 = vshll.u32 %v10551_v6, 16  ;;  %v5390_v50 = vshll.u32 %v10557_v1, 16  ;;  %v11147_v53 = vld [vmem:[#allocation10_spill] sm:$0xff]  ;;  %v10593_v13 = vpop.f32.mrf.mxu1 }
 0x1b1   : > { %6085 = vmatprep.mubr.bf16.mxu1 %v10544_v8  ;;  %v10576_v42 = vadd.f32 %v7487_v38, %v11146_v19  ;;  %v5848_v37 = vsel %vm8431_vm10, %v5846_v56, %v5847_v24  ;;  %v10585_v45 = vpop.f32.mrf.mxu0  ;;  %v7545_v55 = vadd.f32 %v11148_v34, %v11147_v53  ;;  %v6939_v27 = vcombine.low %v10494_v52, %v10514_v22  ;;  %v10601_v22 = vld [vmem:[#allocation2 + $0xb4] sm:$0xf] }
 0x1b2   : > { %v5379_v2 = vsel %vm8417_vm9, %v5374_v7, %v5378_v59  ;;  %v5383_v46 = vrot.slane %v5381_v21, 4  ;;  %v5386_v38 = vrot.slane %v5384_v12, 5  ;;  %v5392_v63 = vrot.slane %v5390_v50, 5  ;;  %v10611_v50 = vpop.f32.mrf.mxu1 }
 0x1b3   : > { %v6947_v24 = vcombine.low %v5369_v57, %v5379_v2  ;;  %v5394_v56 = vshrl.u32 %v10557_v1, 16  ;;  %v10596_v47 = vpop.f32.mrf.mxu0  ;;  %v7011_v19 = vcombine.low %v5845_v10, %v5848_v37  ;;  %v5400_v30 = vshll.u32 %v5280_v41, 16 }
 0x1b4   : > { %v7004_v51 = vrot.slane %v5801_v0, 9  ;;  %v5851_v53 = vrot.slane %v10557_v1, 5  ;;  %v5387_v59 = vor.u32 %v5386_v38, %v5383_v46  ;;  %v5854_v34 = vrot.slane %v5280_v41, 5  ;;  %v11154_v46 = vld [vmem:[#allocation18_spill] sm:$0xff] }
 0x1b5   : > { %5740 = vmatprep.mubr.bf16.mxu0 %v6947_v24  ;;  %v5396_v7 = vrot.slane %v5394_v56, 4  ;;  %v7490_v52 = vadd.f32 %v10335_v28, %v10320_v29  ;;  %v10603_v57 = vpop.f32.mrf.mxu0  ;;  %v10606_v21 = vadd.f32 %v7542_v18, %v10512_v4  ;;  %v10609_v10 = vadd.f32 %v7545_v55, %v10525_v44  ;;  %v11151_v29 = vld [vmem:[#allocation22_spill] sm:$0xff]  ;;  %v10619_v4 = vld [vmem:[#allocation2 + $0xb8] sm:$0xf] }
 0x1b6   : > { %v5402_v37 = vrot.slane %v5400_v30, 5  ;;  %v5853_v12 = vrot.slane %v5851_v53, 4  ;;  %v5388_v41 = vrot.slane %v5387_v59, 4  ;;  %v7493_v2 = vadd.f32 %v10354_v31, %v10342_v9  ;;  %v11152_v44 = vld [vmem:[#allocation27_spill] sm:$0xff] }
 0x1b7   : > { %11149 = vst [vmem:[#allocation5_spill] sm:$0xff] %v10606_v21  ;;  %11150 = vst [vmem:[#allocation19_spill] sm:$0xff] %v10609_v10  ;;  %5741 = vmatmul.mubr.bf16.gmra.mxu0 %v6939_v27  ;;  %v5397_v0 = vor.u32 %v5396_v7, %v5392_v63  ;;  %v10615_v28 = vadd.f32 %v7490_v52, %v11151_v29  ;;  %v10621_v18 = vpop.f32.mrf.mxu0  ;;  %v11153_v30 = vld [vmem:[#allocation15_spill] sm:$0xff]  ;;  %v5405_v24 = vshrl.u32 %v10601_v22, 16  ;;  %v5408_v38 = vshll.u32 %v10601_v22, 16  ;;  %v10641_v10 = vpop.f32.mrf.mxu1 }
 0x1b8   : > { %6086 = vmatmul.mubr.bf16.gmra.mxu1 %v10544_v8  ;;  %v7548_v55 = vadd.f32 %v11153_v30, %v11152_v44  ;;  %v7551_v8 = vadd.f32 %v10362_v35, %v11154_v46  ;;  %v5281_v27 = vld [vmem:[#allocation2 + $0xbc] sm:$0x1]  ;;  %v5393_v56 = vsel %vm8417_vm9, %v5388_v41, %v5392_v63  ;;  %v5852_v31 = vsel %vm8431_vm10, %v7004_v51, %v5851_v53  ;;  %v5802_v46 = vld [vmem:[#allocation2 + $0xb4] sm:$0xe] }
 0x1b9   : > { %6093 = vmatprep.mubr.bf16.mxu1 %v7011_v19  ;;  %v5398_v9 = vrot.slane %v5397_v0, 4  ;;  %v5855_v59 = vsel %vm8431_vm10, %v5853_v12, %v5854_v34  ;;  %v10635_v7 = vpop.f32.mrf.mxu0  ;;  %v11155_v52 = vld [vmem:[#allocation23_spill] sm:$0xff]  ;;  %v5407_v35 = vrot.slane %v5405_v24, 4  ;;  %v5410_v44 = vrot.slane %v5408_v38, 5 }
 0x1ba   : > { %v10638_v29 = vadd.f32 %v7493_v2, %v11155_v52  ;;  %v5414_v30 = vshll.u32 %v10619_v4, 16  ;;  %v6940_v51 = vcombine.low %v10551_v6, %v10557_v1  ;;  %v5418_v53 = vshrl.u32 %v10619_v4, 16 }
 0x1bb   : > { %v5403_v63 = vsel %vm8417_vm9, %v5398_v9, %v5402_v37  ;;  %v5424_v34 = vshll.u32 %v5281_v27, 16  ;;  %v10648_v12 = vpop.f32.mrf.mxu0  ;;  %v10650_v0 = vcombine.low %v5852_v31, %v5855_v59  ;;  %v5411_v2 = vor.u32 %v5410_v44, %v5407_v35  ;;  %v10656_v9 = vld [vmem:[#allocation2 + $0xc0] sm:$0xf] }
 0x1bc   : > { %v6948_v41 = vcombine.low %v5393_v56, %v5403_v63  ;;  %v5416_v24 = vrot.slane %v5414_v30, 5  ;;  %v10653_v38 = vadd.f32 %v7548_v55, %v10568_v23  ;;  %v5420_v52 = vrot.slane %v5418_v53, 4 }
 0x1bd   : > { %v7005_v21 = vrot.slane %v5802_v46, 9  ;;  %v5858_v37 = vrot.slane %v10619_v4, 5  ;;  %v10658_v6 = vpop.f32.mrf.mxu0  ;;  %v10661_v1 = vadd.f32 %v7551_v8, %v10576_v42  ;;  %v5412_v56 = vrot.slane %v5411_v2, 4  ;;  %v10669_v46 = vld [vmem:[#allocation2 + $0xc4] sm:$0xf] }
 0x1be   : > { %11156 = vst [vmem:[#allocation8_spill] sm:$0xff] %v10653_v38  ;;  %5748 = vmatprep.mubr.bf16.mxu0 %v6948_v41  ;;  %v5861_v31 = vrot.slane %v5281_v27, 5  ;;  %v7496_v59 = vadd.f32 %v10389_v48, %v10376_v39  ;;  %v10665_v35 = vpop.f32.mrf.mxu1  ;;  %v5421_v23 = vor.u32 %v5420_v52, %v5416_v24  ;;  %v5426_v55 = vrot.slane %v5424_v34, 5  ;;  %v11159_v48 = vld [vmem:[#allocation11_spill] sm:$0xff]  ;;  %v5282_v34 = vld [vmem:[#allocation2 + $0xc8] sm:$0x1] }
 0x1bf   : > { %11157 = vst [vmem:[#allocation24_spill] sm:$0xff] %v10661_v1  ;;  %11158 = vst [vmem:[#allocation25_spill] sm:$0xff] %v10665_v35  ;;  %5749 = vmatmul.mubr.bf16.gmra.mxu0 %v6940_v51  ;;  %v5860_v44 = vrot.slane %v5858_v37, 4  ;;  %v7499_v30 = vadd.f32 %v10410_v49, %v10396_v33  ;;  %v10671_v42 = vpop.f32.mrf.mxu0  ;;  %v5417_v8 = vsel %vm8417_vm9, %v5412_v56, %v5416_v24  ;;  %v5429_v27 = vshrl.u32 %v10656_v9, 16  ;;  %v11161_v51 = vld [vmem:[#allocation12_spill] sm:$0xff]  ;;  %v11163_v52 = vld [vmem:[#allocation7_spill] sm:$0xff] }
 0x1c0   : > { %6094 = vmatmul.mubr.bf16.gmra.mxu1 %v7011_v19  ;;  %v5859_v39 = vsel %vm8431_vm10, %v7005_v21, %v5858_v37  ;;  %v10679_v19 = vadd.f32 %v7496_v59, %v11159_v48  ;;  %v10682_v63 = vpop.f32.mrf.mxu1  ;;  %v5422_v33 = vrot.slane %v5421_v23, 4  ;;  %v5432_v41 = vshll.u32 %v10656_v9, 16  ;;  %v11162_v21 = vld [vmem:[#allocation29_spill] sm:$0xff]  ;;  %v5803_v23 = vld [vmem:[#allocation2 + $0xc0] sm:$0xe] }
 0x1c1   : > { %6101 = vmatprep.mubr.bf16.mxu1 %v10650_v0  ;;  %11160 = vst [vmem:[#allocation20_spill] sm:$0xff] %v10682_v63  ;;  %v5862_v49 = vsel %vm8431_vm10, %v5860_v44, %v5861_v31  ;;  %v10687_v53 = vadd.f32 %v7499_v30, %v11161_v51  ;;  %v10690_v2 = vpop.f32.mrf.mxu0  ;;  %v7554_v24 = vadd.f32 %v11162_v21, %v10387_v26  ;;  %v5431_v56 = vrot.slane %v5429_v27, 4 }
 0x1c2   : > { %v7557_v37 = vadd.f32 %v10445_v54, %v11163_v52  ;;  %v5438_v59 = vshll.u32 %v10669_v46, 16  ;;  %v10697_v48 = vpop.f32.mrf.mxu1  ;;  %v5427_v31 = vsel %vm8417_vm9, %v5422_v33, %v5426_v55  ;;  %v6941_v44 = vcombine.low %v10601_v22, %v10619_v4  ;;  %v328_v33 = vld [vmem:[#allocation2 + $0xcc] sm:$0x1] }
 0x1c3   : > { %11164 = vst [vmem:[#allocation21_spill] sm:$0xff] %v10697_v48  ;;  %v5434_v30 = vrot.slane %v5432_v41, 5  ;;  %v5442_v51 = vshrl.u32 %v10669_v46, 16  ;;  %v10704_v63 = vpop.f32.mrf.mxu0  ;;  %v6949_v26 = vcombine.low %v5417_v8, %v5427_v31  ;;  %v10706_v21 = vcombine.low %v5859_v39, %v5862_v49  ;;  %v11165_v39 = vld [vmem:[#allocation9_spill] sm:$0xff]  ;;  %v384_v41 = vld [vmem:[#allocation2 + $0xd4] sm:$0x1] }
 0x1c4   : > { %v5440_v54 = vrot.slane %v5438_v59, 5  ;;  %v5448_v27 = vshll.u32 %v5282_v34, 16  ;;  %v10708_v52 = vpop.f32.mrf.mxu1  ;;  %v7006_v1 = vrot.slane %v5803_v23, 9  ;;  %v5865_v55 = vrot.slane %v10669_v46, 5 }
 0x1c5   : > { %v5435_v35 = vor.u32 %v5434_v30, %v5431_v56  ;;  %v5444_v48 = vrot.slane %v5442_v51, 4  ;;  %v10711_v38 = vpop.f32.mrf.mxu0  ;;  %v10714_v22 = vadd.f32 %v7554_v24, %v10615_v28  ;;  %5756 = vmatprep.mubr.bf16.mxu0 %v6949_v26  ;;  %v7560_v4 = vadd.f32 %v10486_v58, %v10462_v36  ;;  %v10721_v51 = vld [vmem:[#allocation2 + $0xd0] sm:$0xf] }
 0x1c6   : > { %v5868_v8 = vrot.slane %v5282_v34, 5  ;;  %v7502_v49 = vadd.f32 %v10447_v5, %v11165_v39  ;;  %v7656_v56 = vpop.f32.mrf.mxu1  ;;  %v5450_v31 = vrot.slane %v5448_v27, 5  ;;  %v5867_v30 = vrot.slane %v5865_v55, 4  ;;  %v11166_v5 = vld [vmem:[#allocation16_spill] sm:$0xff]  ;;  %v11169_v34 = vld [vmem:[#allocation6_spill] sm:$0xff] }
 0x1c7   : > { %5757 = vmatmul.mubr.bf16.gmra.mxu0 %v6941_v44  ;;  %v5436_v59 = vrot.slane %v5435_v35, 4  ;;  %v5445_v23 = vor.u32 %v5444_v48, %v5440_v54  ;;  %v7563_v36 = vadd.f32 %v10538_v43, %v10508_v17  ;;  %v5866_v58 = vsel %vm8431_vm10, %v7006_v1, %v5865_v55 }
 0x1c8   : > { %6102 = vmatmul.mubr.bf16.gmra.mxu1 %v10650_v0  ;;  %v2673_v28 = vadd.f32 %v7502_v49, %v11166_v5  ;;  %v329_v0 = vsel %vm8362_vm3, 0, %v328_v33  ;;  %v7657_v24 = vpop.f32.mrf.mxu1  ;;  %v10731_v35 = vpop.f32.mrf.mxu0  ;;  %v5869_v26 = vsel %vm8431_vm10, %v5867_v30, %v5868_v8  ;;  %v385_v43 = vsel %vm8372_vm4, 0, %v384_v41  ;;  %v5804_v33 = vld [vmem:[#allocation2 + $0xcc] sm:$0xe] }
 0x1c9   : > { %6109 = vmatprep.mubr.bf16.mxu1 %v10706_v21  ;;  %v5441_v48 = vsel %vm8417_vm9, %v5436_v59, %v5440_v54  ;;  %v5446_v44 = vrot.slane %v5445_v23, 4  ;;  %330 = vst [vmem:[#allocation2 + $0xcc] sm:$0x1] %v329_v0  ;;  %v10740_v1 = vadd.f32 %v7557_v37, %v10638_v29  ;;  %v6942_v27 = vcombine.low %v10656_v9, %v10669_v46 }
 0x1ca   : > { %v7566_v55 = vadd.f32 %v10593_v13, %v10559_v25  ;;  %386 = vst [vmem:[#allocation2 + $0xd4] sm:$0x1] %v385_v43  ;;  %v5462_v54 = vshll.u32 %v10721_v51, 16  ;;  %v7659_v39 = vpop.f32.mrf.mxu1  ;;  %v10747_v49 = vpop.f32.mrf.mxu0  ;;  %v10751_v41 = vcombine.low %v5866_v58, %v5869_v26  ;;  %v7505_v29 = vadd.f32 %v10491_v32, %v10469_v60 }
 0x1cb   : > { %v5451_v8 = vsel %vm8417_vm9, %v5446_v44, %v5450_v31  ;;  %v5466_v9 = vshrl.u32 %v10721_v51, 16  ;;  %v5872_v25 = vrot.slane %v10721_v51, 5  ;;  %v7508_v13 = vadd.f32 %v10532_v11, %v10517_v40 }
 0x1cc   : > { %v6950_v46 = vcombine.low %v5441_v48, %v5451_v8  ;;  %v10756_v37 = vrot.slane %v5462_v54, 5  ;;  %v7660_v59 = vpop.f32.mrf.mxu1  ;;  %v10761_v23 = vpop.f32.mrf.mxu0  ;;  %v10764_v31 = vadd.f32 %v7560_v4, %v10679_v19  ;;  %v10767_v30 = vadd.f32 %v7563_v36, %v10687_v53 }
 0x1cd   : > { %v5468_v60 = vrot.slane %v5466_v9, 4  ;;  %v7007_v32 = vrot.slane %v5804_v33, 9  ;;  %v10769_v58 = vadd.f32 %v7566_v55, %v2673_v28  ;;  %v10773_v5 = vadd.f32 %v10641_v10, %v10611_v50  ;;  %v11170_v50 = vld [vmem:[#allocation17_spill] sm:$0xff] }
 0x1ce   : > { %5764 = vmatprep.mubr.bf16.mxu0 %v6950_v46  ;;  %v10776_v40 = vadd.f32 %v7508_v13, %v11169_v34  ;;  %v7594_v11 = vadd.f32 %v10585_v45, %v10570_v62  ;;  %v7662_v19 = vpop.f32.mrf.mxu1  ;;  %v10780_v4 = vpop.f32.mrf.mxu0  ;;  %v10784_v36 = vadd.f32 %v7657_v24, %v7656_v56  ;;  %v7597_v10 = vadd.f32 %v10603_v57, %v10596_v47 }
 0x1cf   : > { %5765 = vmatmul.mubr.bf16.gmra.mxu0 %v6942_v27  ;;  %v5469_v53 = vor.u32 %v5468_v60, %v10756_v37  ;;  %v10790_v28 = vadd.f32 %v7505_v29, %v11170_v50  ;;  %v5874_v62 = vrot.slane %v5872_v25, 4  ;;  %v10795_v48 = vadd.f32 %v7660_v59, %v7659_v39 }
 0x1d0   : > { %6110 = vmatmul.mubr.bf16.gmra.mxu1 %v10706_v21  ;;  %v10792_v0 = vld [vmem:[#allocation2 + $0xcc] sm:$0xf]  ;;  %v3554_v45 = vadd.f32 %v7594_v11, %v10497_v14  ;;  %v7663_v21 = vpop.f32.mrf.mxu1  ;;  %v10797_v44 = vpop.f32.mrf.mxu0  ;;  %v5873_v26 = vsel %vm8431_vm10, %v7007_v32, %v5872_v25  ;;  %v3555_v8 = vadd.f32 %v7597_v10, %v10500_v61  ;;  %v7600_v29 = vadd.f32 %v10635_v7, %v10621_v18 }
 0x1d1   : > { %6117 = vmatprep.mubr.bf16.mxu1 %v10751_v41  ;;  %v5283_v56 = vld [vmem:[#allocation2 + $0xd4] sm:$0x1]  ;;  %v5453_v24 = vshrl.u32 %v10792_v0, 16  ;;  %v5456_v47 = vshll.u32 %v10792_v0, 16  ;;  %v5470_v57 = vrot.slane %v5469_v53, 4  ;;  %v6943_v43 = vcombine.low %v10792_v0, %v10721_v51 }
 0x1d2   : > { %v5472_v17 = vshll.u32 %v5283_v56, 16  ;;  %v5875_v27 = vrot.slane %v5283_v56, 5  ;;  %v3570_v14 = vmax.f32 %v3554_v45, 0.0  ;;  %v7665_v55 = vpop.f32.mrf.mxu1  ;;  %v10805_v54 = vpop.f32.mrf.mxu0  ;;  %v10812_v13 = vadd.f32 %v7663_v21, %v7662_v19  ;;  %v11171_v21 = vld [vmem:[#allocation5_spill] sm:$0xff] }
 0x1d3   : > { %v5455_v33 = vrot.slane %v5453_v24, 4  ;;  %v5458_v39 = vrot.slane %v5456_v47, 5  ;;  %v3571_v34 = vmax.f32 %v3555_v8, 0.0  ;;  %v3556_v11 = vadd.f32 %v7600_v29, %v10534_v20 }
 0x1d4   : > { %v5474_v9 = vrot.slane %v5472_v17, 5  ;;  %v5876_v46 = vsel %vm8431_vm10, %v5874_v62, %v5875_v27  ;;  %v3688_v25 = vmul.f32 %v3570_v14, %v3570_v14  ;;  %v7666_v51 = vpop.f32.mrf.mxu1  ;;  %v7619_v59 = vpop.f32.mrf.mxu0  ;;  %v7603_v16 = vadd.f32 %v10658_v6, %v10648_v12 }
 0x1d5   : > { %v5459_v60 = vor.u32 %v5458_v39, %v5455_v33  ;;  %v7015_v32 = vcombine.low %v5873_v26, %v5876_v46  ;;  %v10826_v18 = vadd.f32 %v7666_v51, %v7665_v55  ;;  %v7606_v19 = vadd.f32 %v10690_v2, %v10671_v42  ;;  %v11173_v33 = vld [vmem:[#allocation8_spill] sm:$0xff] }
 0x1d6   : > { %v5475_v61 = vsel %vm8417_vm9, %v5470_v57, %v5474_v9  ;;  %v7668_v7 = vpop.f32.mrf.mxu1  ;;  %v7620_v20 = vpop.f32.mrf.mxu0  ;;  %v7213_v10 = vpack.c.bf16 %v3571_v34, %v3570_v14  ;;  %v3666_v50 = vadd.f32 %v3571_v34, %v3570_v14  ;;  %v3689_v0 = vmul.f32 %v3571_v34, %v3571_v34 }
 0x1d7   : > { %v5460_v53 = vrot.slane %v5459_v60, 4  ;;  %v3572_v62 = vmax.f32 %v3556_v11, 0.0  ;;  %v3557_v45 = vadd.f32 %v7603_v16, %v10563_v15  ;;  %v3558_v12 = vadd.f32 %v7606_v19, %v11171_v21  ;;  %v11174_v16 = vld [vmem:[#allocation24_spill] sm:$0xff] }
 0x1d8   : > { %6118 = vmatmul.mubr.bf16.gmra.mxu1 %v10751_v41  ;;  %v7669_v6 = vpop.f32.mrf.mxu1  ;;  %v7609_v56 = vadd.f32 %v10711_v38, %v10704_v63  ;;  %v7622_v24 = vpop.f32.mrf.mxu0  ;;  %7214 = vst [vmem:[%s10822_s26] sm:$0xff] %v7213_v10   ;;  %v3704_v2 = vadd.f32 %v3689_v0, %v3688_v25  ;;  %v7612_v47 = vadd.f32 %v10747_v49, %v10731_v35  ;;  %v11172_v38 = vld [vmem:[#allocation19_spill] sm:$0xff] }
 0x1d9   : > { %6125 = vmatprep.mubr.bf16.mxu1 %v7015_v32  ;;  %v5465_v42 = vsel %vm8417_vm9, %v5460_v53, %v10756_v37  ;;  %v10839_v41 = vadd.f32 %v7669_v6, %v7668_v7  ;;  %v3667_v15 = vadd.f32 %v3666_v50, %v3572_v62  ;;  %v3690_v26 = vmul.f32 %v3572_v62, %v3572_v62 }
 0x1da   : > { %v6951_v57 = vcombine.low %v5465_v42, %v5475_v61  ;;  %v3573_v17 = vmax.f32 %v3557_v45, 0.0  ;;  %v7671_v27 = vpop.f32.mrf.mxu1  ;;  %v7623_v14 = vpop.f32.mrf.mxu0  ;;  %v3574_v55 = vmax.f32 %v3558_v12, 0.0  ;;  %v3559_v63 = vadd.f32 %v7609_v56, %v11172_v38 }
 0x1db   : > { %v3560_v3 = vadd.f32 %v7612_v47, %v11173_v33  ;;  %v7615_v37 = vadd.f32 %v10780_v4, %v10761_v23  ;;  %v3705_v39 = vadd.f32 %v3704_v2, %v3690_v26  ;;  %v7618_v4 = vadd.f32 %v10805_v54, %v10797_v44 }
 0x1dc   : > { %5772 = vmatprep.mubr.bf16.mxu0 %v6951_v57  ;;  %v7218_v8 = vpack.c.bf16 %v3573_v17, %v3572_v62  ;;  %v3668_v29 = vadd.f32 %v3667_v15, %v3573_v17  ;;  %v3691_v35 = vmul.f32 %v3573_v17, %v3573_v17  ;;  %v7672_v49 = vpop.f32.mrf.mxu1  ;;  %v7625_v9 = vpop.f32.mrf.mxu0  ;;  %v3692_v46 = vmul.f32 %v3574_v55, %v3574_v55 }
 0x1dd   : > { %5773 = vmatmul.mubr.bf16.gmra.mxu0 %v6943_v43  ;;  %v3575_v25 = vmax.f32 %v3559_v63, 0.0  ;;  %v10847_v51 = vadd.f32 %v7672_v49, %v7671_v27  ;;  %v3576_v60 = vmax.f32 %v3560_v3, 0.0  ;;  %v3561_v23 = vadd.f32 %v7615_v37, %v11174_v16  ;;  %v11177_v49 = vld [vmem:[#allocation13_spill] sm:$0xff] }
 0x1de   : > { %7305 = vst [vmem:[%s10822_s26 + $0x8] sm:$0xff] %v7218_v8   ;;  %v3706_v34 = vadd.f32 %v3705_v39, %v3691_v35  ;;  %v3669_v11 = vadd.f32 %v3668_v29, %v3574_v55  ;;  %v7674_v61 = vpop.f32.mrf.mxu1  ;;  %v7626_v7 = vpop.f32.mrf.mxu0  ;;  %v7621_v10 = vadd.f32 %v7620_v20, %v7619_v59  ;;  %v3562_v21 = vadd.f32 %v7618_v4, %v10714_v22  ;;  %v11175_v35 = vld [vmem:[#allocation25_spill] sm:$0xff] }
 0x1df   : > { %v7223_v19 = vpack.c.bf16 %v3575_v25, %v3574_v55  ;;  %v3693_v53 = vmul.f32 %v3575_v25, %v3575_v25  ;;  %v3694_v43 = vmul.f32 %v3576_v60, %v3576_v60  ;;  %v3577_v45 = vmax.f32 %v3561_v23, 0.0 }
 0x1e0   : > { %6126 = vmatmul.mubr.bf16.gmra.mxu1 %v7015_v32  ;;  %v3707_v50 = vadd.f32 %v3706_v34, %v3692_v46  ;;  %v3670_v0 = vadd.f32 %v3669_v11, %v3575_v25  ;;  %v7675_v62 = vpop.f32.mrf.mxu1  ;;  %v7628_v12 = vpop.f32.mrf.mxu0  ;;  %v3563_v56 = vadd.f32 %v7621_v10, %v10740_v1  ;;  %v7624_v44 = vadd.f32 %v7623_v14, %v7622_v24 }
 0x1e1   : > { %7306 = vst [vmem:[%s10822_s26 + $0x10] sm:$0xff] %v7223_v19   ;;  %v10855_v6 = vadd.f32 %v7675_v62, %v7674_v61  ;;  %v7627_v54 = vadd.f32 %v7626_v7, %v7625_v9  ;;  %v7228_v47 = vpack.c.bf16 %v3577_v45, %v3576_v60  ;;  %v3695_v59 = vmul.f32 %v3577_v45, %v3577_v45  ;;  %v11178_v9 = vld [vmem:[#allocation14_spill] sm:$0xff] }
 0x1e2   : > { %v3708_v32 = vadd.f32 %v3707_v50, %v3693_v53  ;;  %v3671_v42 = vadd.f32 %v3670_v0, %v3576_v60  ;;  %v7677_v2 = vpop.f32.mrf.mxu1  ;;  %v7629_v20 = vpop.f32.mrf.mxu0  ;;  %v3578_v57 = vmax.f32 %v3562_v21, 0.0  ;;  %v3579_v15 = vmax.f32 %v3563_v56, 0.0  ;;  %v11180_v21 = vld [vmem:[#allocation21_spill] sm:$0xff] }
 0x1e3   : > { %v3564_v26 = vadd.f32 %v7624_v44, %v10764_v31  ;;  %v3565_v22 = vadd.f32 %v7627_v54, %v10767_v30  ;;  %v3213_v17 = vadd.f32 %v10773_v5, %v10790_v28  ;;  %7307 = vst [vmem:[%s10822_s26 + $0x18] sm:$0xff] %v7228_v47   ;;  %v7630_v14 = vadd.f32 %v7629_v20, %v7628_v12  ;;  %v11176_v5 = vld [vmem:[#allocation20_spill] sm:$0xff] }
 0x1e4   : > { %v3709_v27 = vadd.f32 %v3708_v32, %v3694_v43  ;;  %v3672_v1 = vadd.f32 %v3671_v42, %v3577_v45  ;;  %v7678_v24 = vpop.f32.mrf.mxu1  ;;  %v7631_v55 = vpop.f32.mrf.mxu0  ;;  %v3696_v63 = vmul.f32 %v3578_v57, %v3578_v57  ;;  %v7233_v33 = vpack.c.bf16 %v3579_v15, %v3578_v57  ;;  %v11179_v45 = vld [vmem:[#allocation28_spill] sm:$0xff] }
 0x1e5   : > { %v10863_v38 = vadd.f32 %v7678_v24, %v7677_v2  ;;  %v3697_v3 = vmul.f32 %v3579_v15, %v3579_v15  ;;  %v3580_v8 = vmax.f32 %v3564_v26, 0.0  ;;  %v3581_v30 = vmax.f32 %v3565_v22, 0.0 }
 0x1e6   : > { %v3710_v37 = vadd.f32 %v3709_v27, %v3695_v59  ;;  %v3673_v31 = vadd.f32 %v3672_v1, %v3578_v57  ;;  %v7632_v29 = vpop.f32.mrf.mxu0  ;;  %v7572_v28 = vadd.f32 %v11176_v5, %v11175_v35  ;;  %v7511_v46 = vadd.f32 %v11178_v9, %v11177_v49  ;;  %7308 = vst [vmem:[%s10822_s26 + $0x20] sm:$0xff] %v7233_v33  }
 0x1e7   : > { %v7680_v39 = vpop.f32.mrf.mxu1  ;;  %v3566_v25 = vadd.f32 %v7630_v14, %v10769_v58  ;;  %v7633_v60 = vadd.f32 %v7632_v29, %v7631_v55  ;;  %v3698_v16 = vmul.f32 %v3580_v8, %v3580_v8  ;;  %v7238_v23 = vpack.c.bf16 %v3581_v30, %v3580_v8 }
 0x1e8   : > { %v3711_v34 = vadd.f32 %v3710_v37, %v3696_v63  ;;  %v3674_v61 = vadd.f32 %v3673_v31, %v3579_v15  ;;  %v7634_v53 = vpop.f32.mrf.mxu0  ;;  %v3699_v0 = vmul.f32 %v3581_v30, %v3581_v30  ;;  %v3214_v62 = vadd.f32 %v7572_v28, %v10776_v40 }
 0x1e9   : > { %v7681_v11 = vpop.f32.mrf.mxu1  ;;  %v3582_v7 = vmax.f32 %v3566_v25, 0.0  ;;  %v3567_v19 = vadd.f32 %v7633_v60, %v3213_v17  ;;  %7309 = vst [vmem:[%s10822_s26 + $0x28] sm:$0xff] %v7238_v23   ;;  %v2676_v58 = vadd.f32 %v7511_v46, %v11179_v45  ;;  %v7575_v12 = vadd.f32 %v10708_v52, %v11180_v21 }
 0x1ea   : > { %v10871_v4 = vadd.f32 %v7681_v11, %v7680_v39  ;;  %v3712_v10 = vadd.f32 %v3711_v34, %v3697_v3  ;;  %v3675_v50 = vadd.f32 %v3674_v61, %v3580_v8  ;;  %v7635_v44 = vpop.f32.mrf.mxu0 }
 0x1eb   : > { %v7683_v43 = vpop.f32.mrf.mxu1  ;;  %v3583_v56 = vmax.f32 %v3567_v19, 0.0  ;;  %v3700_v2 = vmul.f32 %v3582_v7, %v3582_v7  ;;  %v7636_v47 = vadd.f32 %v7635_v44, %v7634_v53  ;;  %v3215_v27 = vadd.f32 %v7575_v12, %v2676_v58 }
 0x1ec   : > { %v3713_v32 = vadd.f32 %v3712_v10, %v3698_v16  ;;  %v3676_v42 = vadd.f32 %v3675_v50, %v3581_v30  ;;  %v7637_v57 = vpop.f32.mrf.mxu0 }
 0x1ed   : > { %v7684_v54 = vpop.f32.mrf.mxu1  ;;  %v7243_v20 = vpack.c.bf16 %v3583_v56, %v3582_v7  ;;  %v3701_v22 = vmul.f32 %v3583_v56, %v3583_v56  ;;  %v3568_v17 = vadd.f32 %v7636_v47, %v3214_v62 }
 0x1ee   : > { %v10878_v59 = vadd.f32 %v7684_v54, %v7683_v43  ;;  %v3714_v26 = vadd.f32 %v3713_v32, %v3699_v0  ;;  %v3677_v40 = vadd.f32 %v3676_v42, %v3582_v7  ;;  %v7638_v52 = vpop.f32.mrf.mxu0 }
 0x1ef   : > { %v7686_v15 = vpop.f32.mrf.mxu1  ;;  %7310 = vst [vmem:[%s10822_s26 + $0x30] sm:$0xff] %v7243_v20   ;;  %v3584_v55 = vmax.f32 %v3568_v17, 0.0  ;;  %v7639_v63 = vadd.f32 %v7638_v52, %v7637_v57 }
 0x1f0   : > { %v3715_v24 = vadd.f32 %v3714_v26, %v3700_v2  ;;  %v3678_v14 = vadd.f32 %v3677_v40, %v3583_v56 }
 0x1f1   : > { %v7687_v1 = vpop.f32.mrf.mxu1  ;;  %v3702_v31 = vmul.f32 %v3584_v55, %v3584_v55  ;;  %v3569_v8 = vadd.f32 %v7639_v63, %v3215_v27 }
 0x1f2   : > { %v10881_v33 = vadd.f32 %v7687_v1, %v7686_v15  ;;  %v3716_v37 = vadd.f32 %v3715_v24, %v3701_v22  ;;  %v3679_v39 = vadd.f32 %v3678_v14, %v3584_v55 }
 0x1f3   : > { %v7689_v3 = vpop.f32.mrf.mxu1  ;;  %v3585_v35 = vmax.f32 %v3569_v8, 0.0 }
 0x1f4   : > { %v3717_v29 = vadd.f32 %v3716_v37, %v3702_v31 }
 0x1f5   : > { %v7690_v30 = vpop.f32.mrf.mxu1  ;;  %v7248_v49 = vpack.c.bf16 %v3585_v35, %v3584_v55  ;;  %v10885_v9 = vadd.f32 %v3679_v39, %v3585_v35  ;;  %v3703_v46 = vmul.f32 %v3585_v35, %v3585_v35 }
 0x1f6   : > { %v10883_v5 = vadd.f32 %v7690_v30, %v7689_v3 }
 0x1f7   : > { %v7692_v28 = vpop.f32.mrf.mxu1  ;;  %11181 = vst [vmem:[#allocation10_spill] sm:$0xff] %v10885_v9  ;;  %7311 = vst [vmem:[%s10822_s26 + $0x38] sm:$0xff] %v7248_v49   ;;  %v10888_v60 = vadd.f32 %v3717_v29, %v3703_v46 }
 0x1f9   : > { %v7693_v25 = vpop.f32.mrf.mxu1  ;;  %11182 = vst [vmem:[#allocation26_spill] sm:$0xff] %v10888_v60 }
 0x1fa   : > { %v10890_v34 = vadd.f32 %v7693_v25, %v7692_v28 }
 0x1fb   : > { %v7695_v11 = vpop.f32.mrf.mxu1 }
 0x1fc   : > { %v7720_v61 = vpop.f32.mrf.mxu0 }
 0x1fd   : > { %v7696_v16 = vpop.f32.mrf.mxu1 }
 0x1fe   : > { %v10892_v23 = vadd.f32 %v7696_v16, %v7695_v11  ;;  %v7721_v7 = vpop.f32.mrf.mxu0 }
 0x1ff   : > { %v7722_v19 = vadd.f32 %v7721_v7, %v7720_v61  ;;  %v7698_v53 = vpop.f32.mrf.mxu1 }
 0x200   : > { %v10895_v10 = vpop.f32.mrf.mxu0 }
 0x201   : > { %v4588_v43 = vadd.f32 %v7722_v19, %v10784_v36  ;;  %v7699_v50 = vpop.f32.mrf.mxu1 }
 0x202   : > { %v10897_v0 = vadd.f32 %v7699_v50, %v7698_v53  ;;  %v10899_v45 = vpop.f32.mrf.mxu0 }
 0x203   : > { %v7701_v62 = vpop.f32.mrf.mxu1 }
 0x205   : > { %v7702_v58 = vpop.f32.mrf.mxu1 }
 0x206   : > { %v10901_v21 = vadd.f32 %v7702_v58, %v7701_v62 }
 0x207   : > { %v7784_v12 = vpop.f32.mrf.mxu1 }
 0x209   : > { %v7785_v44 = vpop.f32.mrf.mxu1 }
 0x20a   : > { %v7726_v56 = vpop.f32.mrf.mxu0  ;;  %v7786_v54 = vadd.f32 %v7785_v44, %v7784_v12 }
 0x20b   : > { %v10903_v42 = vpop.f32.mrf.mxu1 }
 0x20c   : > { %v7727_v32 = vpop.f32.mrf.mxu0  ;;  %v10905_v36 = vadd.f32 %v7786_v54, %v4588_v43 }
 0x20d   : > { %v7728_v2 = vadd.f32 %v7727_v32, %v7726_v56  ;;  %v10909_v20 = vpop.f32.mrf.mxu1 }
 0x20e   : > { %v10907_v47 = vpop.f32.mrf.mxu0 }
 0x20f   : > { %v4596_v57 = vadd.f32 %v7728_v2, %v10812_v13 }
 0x210   : > { %v7790_v15 = vpop.f32.mrf.mxu1  ;;  %v10912_v26 = vpop.f32.mrf.mxu0 }
 0x212   : > { %v7791_v40 = vpop.f32.mrf.mxu1 }
 0x213   : > { %v7792_v22 = vadd.f32 %v7791_v40, %v7790_v15 }
 0x214   : > { %v10914_v17 = vpop.f32.mrf.mxu1 }
 0x215   : > { %v10916_v27 = vadd.f32 %v7792_v22, %v4596_v57 }
 0x216   : > { %v7732_v52 = vpop.f32.mrf.mxu0  ;;  %v10918_v1 = vpop.f32.mrf.mxu1 }
 0x218   : > { %v7733_v24 = vpop.f32.mrf.mxu0 }
 0x219   : > { %v7734_v14 = vadd.f32 %v7733_v24, %v7732_v52 }
 0x21a   : > { %v10920_v55 = vpop.f32.mrf.mxu0 }
 0x21b   : > { %v4604_v63 = vadd.f32 %v7734_v14, %v10839_v41  ;;  %v7796_v3 = vpop.f32.mrf.mxu1 }
 0x21c   : > { %v10923_v37 = vpop.f32.mrf.mxu0 }
 0x21d   : > { %v7797_v13 = vpop.f32.mrf.mxu1 }
 0x21e   : > { %v7798_v39 = vadd.f32 %v7797_v13, %v7796_v3 }
 0x21f   : > { %v10925_v31 = vpop.f32.mrf.mxu1 }
 0x220   : > { %v10927_v8 = vadd.f32 %v7798_v39, %v4604_v63 }
 0x221   : > { %v7738_v30 = vpop.f32.mrf.mxu0  ;;  %v10929_v29 = vpop.f32.mrf.mxu1 }
 0x223   : > { %v7739_v35 = vpop.f32.mrf.mxu0 }
 0x224   : > { %v7740_v28 = vadd.f32 %v7739_v35, %v7738_v30 }
 0x225   : > { %v10931_v49 = vpop.f32.mrf.mxu0 }
 0x226   : > { %v7802_v46 = vpop.f32.mrf.mxu1  ;;  %v4612_v25 = vadd.f32 %v7740_v28, %v10855_v6 }
 0x227   : > { %v10934_v61 = vpop.f32.mrf.mxu0 }
 0x228   : > { %v7803_v41 = vpop.f32.mrf.mxu1 }
 0x229   : > { %v7804_v11 = vadd.f32 %v7803_v41, %v7802_v46 }
 0x22a   : > { %v10938_v7 = vpop.f32.mrf.mxu1 }
 0x22b   : > { %v10936_v16 = vadd.f32 %v7804_v11, %v4612_v25 }
 0x22c   : > { %v10940_v53 = vpop.f32.mrf.mxu1 }
 0x22d   : > { %v7744_v19 = vpop.f32.mrf.mxu0 }
 0x22f   : > { %v7745_v43 = vpop.f32.mrf.mxu0 }
 0x230   : > { %v7746_v50 = vadd.f32 %v7745_v43, %v7744_v19 }
 0x231   : > { %v10942_v62 = vpop.f32.mrf.mxu0 }
 0x232   : > { %v4620_v58 = vadd.f32 %v7746_v50, %v10871_v4 }
 0x233   : > { %v7808_v12 = vpop.f32.mrf.mxu1  ;;  %v10945_v6 = vpop.f32.mrf.mxu0 }
 0x235   : > { %v7809_v56 = vpop.f32.mrf.mxu1 }
 0x236   : > { %v7810_v44 = vadd.f32 %v7809_v56, %v7808_v12 }
 0x237   : > { %v10947_v54 = vpop.f32.mrf.mxu1 }
 0x238   : > { %v10949_v32 = vadd.f32 %v7810_v44, %v4620_v58 }
 0x239   : > { %v7750_v2 = vpop.f32.mrf.mxu0  ;;  %v10951_v57 = vpop.f32.mrf.mxu1 }
 0x23b   : > { %v7751_v15 = vpop.f32.mrf.mxu0 }
 0x23c   : > { %v7752_v40 = vadd.f32 %v7751_v15, %v7750_v2 }
 0x23d   : > { %v10953_v22 = vpop.f32.mrf.mxu0 }
 0x23e   : > { %v7814_v52 = vpop.f32.mrf.mxu1  ;;  %v4628_v24 = vadd.f32 %v7752_v40, %v10881_v33 }
 0x23f   : > { %v10956_v63 = vpop.f32.mrf.mxu0 }
 0x240   : > { %v7815_v4 = vpop.f32.mrf.mxu1 }
 0x241   : > { %v7816_v14 = vadd.f32 %v7815_v4, %v7814_v52 }
 0x242   : > { %v10960_v13 = vpop.f32.mrf.mxu1 }
 0x243   : > { %v10958_v3 = vadd.f32 %v7816_v14, %v4628_v24 }
 0x244   : > { %v10962_v30 = vpop.f32.mrf.mxu1 }
 0x245   : > { %v7756_v39 = vpop.f32.mrf.mxu0 }
 0x247   : > { %v7757_v35 = vpop.f32.mrf.mxu0 }
 0x248   : > { %v7758_v28 = vadd.f32 %v7757_v35, %v7756_v39  ;;  %v7725_v39 = vadd.f32 %v10899_v45, %v10895_v10  ;;  %v7731_v45 = vadd.f32 %v10912_v26, %v10907_v47 }
 0x249   : > { %v10964_v46 = vpop.f32.mrf.mxu0 }
 0x24a   : > { %v4636_v25 = vadd.f32 %v7758_v28, %v10890_v34 }
 0x24b   : > { %v7820_v41 = vpop.f32.mrf.mxu1  ;;  %v10967_v33 = vpop.f32.mrf.mxu0 }
 0x24d   : > { %v7821_v11 = vpop.f32.mrf.mxu1 }
 0x24e   : > { %v7822_v19 = vadd.f32 %v7821_v11, %v7820_v41 }
 0x24f   : > { %v10974_v2 = vpop.f32.mrf.mxu1 }
 0x250   : > { %v10969_v43 = vadd.f32 %v7822_v19, %v4636_v25 }
 0x251   : > { %v7762_v50 = vpop.f32.mrf.mxu0  ;;  %v10978_v40 = vpop.f32.mrf.mxu1 }
 0x253   : > { %v7763_v58 = vpop.f32.mrf.mxu0 }
 0x254   : > { %v7764_v12 = vadd.f32 %v7763_v58, %v7762_v50  ;;  %v4591_v50 = vadd.f32 %v7725_v39, %v10795_v48  ;;  %v7789_v58 = vadd.f32 %v10909_v20, %v10903_v42  ;;  %v4599_v39 = vadd.f32 %v7731_v45, %v10826_v18 }
 0x255   : > { %v10971_v56 = vpop.f32.mrf.mxu0  ;;  %v7795_v42 = vadd.f32 %v10918_v1, %v10914_v17 }
 0x256   : > { %v4644_v44 = vadd.f32 %v7764_v12, %v10897_v0 }
 0x257   : > { %v10976_v15 = vpop.f32.mrf.mxu0 }
 0x25c   : > { %v7848_v34 = vpop.f32.mrf.mxu0 }
 0x25e   : > { %v7849_v52 = vpop.f32.mrf.mxu0 }
 0x25f   : > { %v7850_v0 = vadd.f32 %v7849_v52, %v7848_v34 }
 0x260   : > { %v7826_v24 = vpop.f32.mrf.mxu1  ;;  %v7851_v4 = vpop.f32.mrf.mxu0 }
 0x261   : > { %v5781_v9 = vadd.f32 %v7850_v0, %v10905_v36 }
 0x262   : > { %v7827_v14 = vpop.f32.mrf.mxu1  ;;  %v7852_v28 = vpop.f32.mrf.mxu0 }
 0x263   : > { %v7828_v35 = vadd.f32 %v7827_v14, %v7826_v24  ;;  %v7853_v10 = vadd.f32 %v7852_v28, %v7851_v4  ;;  %v5244_v14 = vadd.f32 %v7789_v58, %v4591_v50  ;;  %v5246_v58 = vadd.f32 %v7795_v42, %v4599_v39 }
 0x264   : > { %v10982_v25 = vpop.f32.mrf.mxu1 }
 0x265   : > { %v10984_v41 = vadd.f32 %v7828_v35, %v4644_v44  ;;  %v7854_v19 = vpop.f32.mrf.mxu0 }
 0x266   : > { %v10986_v11 = vpop.f32.mrf.mxu1 }
 0x267   : > { %11183 = vst [vmem:[#allocation22_spill] sm:$0xff] %v10984_v41  ;;  %11184 = vst [vmem:[#allocation27_spill] sm:$0xff] %v10986_v11  ;;  %v7855_v60 = vpop.f32.mrf.mxu0  ;;  %v5782_v11 = vadd.f32 %v7853_v10, %v5244_v14 }
 0x268   : > { %v7912_v12 = vpop.f32.mrf.mxu1  ;;  %v7856_v48 = vadd.f32 %v7855_v60, %v7854_v19 }
 0x269   : > { %v7857_v44 = vpop.f32.mrf.mxu0 }
 0x26a   : > { %v7913_v24 = vpop.f32.mrf.mxu1  ;;  %v5783_v50 = vadd.f32 %v7856_v48, %v10916_v27 }
 0x26b   : > { %v7914_v34 = vadd.f32 %v7913_v24, %v7912_v12  ;;  %v7858_v35 = vpop.f32.mrf.mxu0 }
 0x26c   : > { %v7915_v52 = vpop.f32.mrf.mxu1  ;;  %v7859_v0 = vadd.f32 %v7858_v35, %v7857_v44 }
 0x26d   : > { %v6134_v41 = vadd.f32 %v7914_v34, %v5781_v9  ;;  %v7737_v9 = vadd.f32 %v10923_v37, %v10920_v55  ;;  %v7801_v34 = vadd.f32 %v10929_v29, %v10925_v31 }
 0x26e   : > { %v7916_v20 = vpop.f32.mrf.mxu1  ;;  %v5784_v1 = vadd.f32 %v7859_v0, %v5246_v58 }
 0x26f   : > { %v7917_v36 = vadd.f32 %v7916_v20, %v7915_v52  ;;  %v6150_v4 = vmax.f32 %v6134_v41, 0.0  ;;  %v7860_v47 = vpop.f32.mrf.mxu0  ;;  %v4607_v27 = vadd.f32 %v7737_v9, %v10847_v51  ;;  %v7743_v51 = vadd.f32 %v10934_v61, %v10931_v49 }
 0x270   : > { %v7918_v28 = vpop.f32.mrf.mxu1 }
 0x271   : > { %v6135_v26 = vadd.f32 %v7917_v36, %v5782_v11  ;;  %v7861_v60 = vpop.f32.mrf.mxu0  ;;  %v6268_v10 = vmul.f32 %v6150_v4, %v6150_v4 }
 0x272   : > { %v7919_v12 = vpop.f32.mrf.mxu1  ;;  %v7862_v45 = vadd.f32 %v7861_v60, %v7860_v47  ;;  %v5248_v47 = vadd.f32 %v7801_v34, %v4607_v27 }
 0x273   : > { %v6151_v18 = vmax.f32 %v6135_v26, 0.0  ;;  %v7920_v19 = vadd.f32 %v7919_v12, %v7918_v28  ;;  %v7863_v41 = vpop.f32.mrf.mxu0 }
 0x274   : > { %v7921_v17 = vpop.f32.mrf.mxu1 }
 0x275   : > { %v7253_v24 = vpack.c.bf16 %v6151_v18, %v6150_v4  ;;  %v6246_v44 = vadd.f32 %v6151_v18, %v6150_v4  ;;  %v6269_v14 = vmul.f32 %v6151_v18, %v6151_v18  ;;  %v6136_v11 = vadd.f32 %v7920_v19, %v5783_v50  ;;  %v7864_v37 = vpop.f32.mrf.mxu0 }
 0x276   : > { %v7922_v55 = vpop.f32.mrf.mxu1  ;;  %v7865_v42 = vadd.f32 %v7864_v37, %v7863_v41  ;;  %v5785_v4 = vadd.f32 %v7862_v45, %v10927_v8  ;;  %v4615_v8 = vadd.f32 %v7743_v51, %v10863_v38  ;;  %v7807_v45 = vadd.f32 %v10940_v53, %v10938_v7 }
 0x277   : > { %7312 = vst [vmem:[%s10822_s26 + $0x40] sm:$0xff] %v7253_v24   ;;  %v6284_v52 = vadd.f32 %v6269_v14, %v6268_v10  ;;  %v6152_v35 = vmax.f32 %v6136_v11, 0.0  ;;  %v7923_v48 = vadd.f32 %v7922_v55, %v7921_v17  ;;  %v7866_v20 = vpop.f32.mrf.mxu0  ;;  %v7749_v38 = vadd.f32 %v10945_v6, %v10942_v62 }
 0x278   : > { %v7924_v39 = vpop.f32.mrf.mxu1  ;;  %v5786_v12 = vadd.f32 %v7865_v42, %v5248_v47 }
 0x279   : > { %v6247_v36 = vadd.f32 %v6246_v44, %v6152_v35  ;;  %v6270_v28 = vmul.f32 %v6152_v35, %v6152_v35  ;;  %v6137_v0 = vadd.f32 %v7923_v48, %v5784_v1  ;;  %v7867_v31 = vpop.f32.mrf.mxu0 }
 0x27a   : > { %v7925_v26 = vpop.f32.mrf.mxu1  ;;  %v7868_v60 = vadd.f32 %v7867_v31, %v7866_v20  ;;  %v7813_v31 = vadd.f32 %v10951_v57, %v10947_v54 }
 0x27b   : > { %v6285_v29 = vadd.f32 %v6284_v52, %v6270_v28  ;;  %v6153_v50 = vmax.f32 %v6137_v0, 0.0  ;;  %v7926_v58 = vadd.f32 %v7925_v26, %v7924_v39  ;;  %v7869_v18 = vpop.f32.mrf.mxu0 }
 0x27c   : > { %v7927_v9 = vpop.f32.mrf.mxu1  ;;  %v5787_v52 = vadd.f32 %v7868_v60, %v10936_v16  ;;  %v4623_v16 = vadd.f32 %v7749_v38, %v10878_v59  ;;  %v7755_v59 = vadd.f32 %v10956_v63, %v10953_v22 }
 0x27d   : > { %v7258_v19 = vpack.c.bf16 %v6153_v50, %v6152_v35  ;;  %v6248_v10 = vadd.f32 %v6247_v36, %v6153_v50  ;;  %v6271_v17 = vmul.f32 %v6153_v50, %v6153_v50  ;;  %v6138_v1 = vadd.f32 %v7926_v58, %v5785_v4  ;;  %v7870_v61 = vpop.f32.mrf.mxu0 }
 0x27e   : > { %v7928_v49 = vpop.f32.mrf.mxu1  ;;  %v7871_v11 = vadd.f32 %v7870_v61, %v7869_v18  ;;  %v5250_v35 = vadd.f32 %v7807_v45, %v4615_v8 }
 0x27f   : > { %7313 = vst [vmem:[%s10822_s26 + $0x48] sm:$0xff] %v7258_v19   ;;  %v6286_v41 = vadd.f32 %v6285_v29, %v6271_v17  ;;  %v6154_v24 = vmax.f32 %v6138_v1, 0.0  ;;  %v7929_v44 = vadd.f32 %v7928_v49, %v7927_v9  ;;  %v7872_v27 = vpop.f32.mrf.mxu0  ;;  %v5252_v1 = vadd.f32 %v7813_v31, %v4623_v16 }
 0x280   : > { %v7930_v14 = vpop.f32.mrf.mxu1  ;;  %v5788_v36 = vadd.f32 %v7871_v11, %v5250_v35 }
 0x281   : > { %v6249_v34 = vadd.f32 %v6248_v10, %v6154_v24  ;;  %v6272_v55 = vmul.f32 %v6154_v24, %v6154_v24  ;;  %v6139_v37 = vadd.f32 %v7929_v44, %v5786_v12  ;;  %v7873_v7 = vpop.f32.mrf.mxu0 }
 0x282   : > { %v7931_v48 = vpop.f32.mrf.mxu1  ;;  %v7874_v28 = vadd.f32 %v7873_v7, %v7872_v27 }
 0x283   : > { %v6287_v53 = vadd.f32 %v6286_v41, %v6272_v55  ;;  %v6155_v39 = vmax.f32 %v6139_v37, 0.0  ;;  %v7932_v42 = vadd.f32 %v7931_v48, %v7930_v14  ;;  %v7875_v0 = vpop.f32.mrf.mxu0  ;;  %v7819_v55 = vadd.f32 %v10962_v30, %v10960_v13 }
 0x284   : > { %v7933_v20 = vpop.f32.mrf.mxu1  ;;  %v5789_v17 = vadd.f32 %v7874_v28, %v10949_v32  ;;  %v4631_v32 = vadd.f32 %v7755_v59, %v10883_v5  ;;  %v7761_v5 = vadd.f32 %v10967_v33, %v10964_v46 }
 0x285   : > { %v7263_v4 = vpack.c.bf16 %v6155_v39, %v6154_v24  ;;  %v6250_v47 = vadd.f32 %v6249_v34, %v6155_v39  ;;  %v6273_v51 = vmul.f32 %v6155_v39, %v6155_v39  ;;  %v6140_v26 = vadd.f32 %v7932_v42, %v5787_v52  ;;  %v7876_v6 = vpop.f32.mrf.mxu0 }
 0x286   : > { %v7934_v62 = vpop.f32.mrf.mxu1  ;;  %v7877_v12 = vadd.f32 %v7876_v6, %v7875_v0 }
 0x287   : > { %7314 = vst [vmem:[%s10822_s26 + $0x50] sm:$0xff] %v7263_v4   ;;  %v6288_v29 = vadd.f32 %v6287_v53, %v6273_v51  ;;  %v6156_v50 = vmax.f32 %v6140_v26, 0.0  ;;  %v7935_v58 = vadd.f32 %v7934_v62, %v7933_v20  ;;  %v7878_v60 = vpop.f32.mrf.mxu0 }
 0x288   : > { %v7936_v9 = vpop.f32.mrf.mxu1  ;;  %v5790_v41 = vadd.f32 %v7877_v12, %v5252_v1 }
 0x289   : > { %v6251_v18 = vadd.f32 %v6250_v47, %v6156_v50  ;;  %v6274_v19 = vmul.f32 %v6156_v50, %v6156_v50  ;;  %v6141_v10 = vadd.f32 %v7935_v58, %v5788_v36  ;;  %v7879_v54 = vpop.f32.mrf.mxu0  ;;  %v5254_v36 = vadd.f32 %v7819_v55, %v4631_v32 }
 0x28a   : > { %v7937_v8 = vpop.f32.mrf.mxu1  ;;  %v7880_v24 = vadd.f32 %v7879_v54, %v7878_v60 }
 0x28b   : > { %v6289_v57 = vadd.f32 %v6288_v29, %v6274_v19  ;;  %v6157_v45 = vmax.f32 %v6141_v10, 0.0  ;;  %v7938_v49 = vadd.f32 %v7937_v8, %v7936_v9  ;;  %v7881_v44 = vpop.f32.mrf.mxu0 }
 0x28c   : > { %v7939_v61 = vpop.f32.mrf.mxu1  ;;  %v5791_v20 = vadd.f32 %v7880_v24, %v10958_v3  ;;  %v4639_v3 = vadd.f32 %v7761_v5, %v10892_v23  ;;  %v7767_v24 = vadd.f32 %v10976_v15, %v10971_v56 }
 0x28d   : > { %v7268_v14 = vpack.c.bf16 %v6157_v45, %v6156_v50  ;;  %v6252_v11 = vadd.f32 %v6251_v18, %v6157_v45  ;;  %v6275_v27 = vmul.f32 %v6157_v45, %v6157_v45  ;;  %v6142_v34 = vadd.f32 %v7938_v49, %v5789_v17  ;;  %v7882_v63 = vpop.f32.mrf.mxu0 }
 0x28e   : > { %v7940_v22 = vpop.f32.mrf.mxu1  ;;  %v7883_v48 = vadd.f32 %v7882_v63, %v7881_v44  ;;  %v7825_v50 = vadd.f32 %v10978_v40, %v10974_v2 }
 0x28f   : > { %7315 = vst [vmem:[%s10822_s26 + $0x58] sm:$0xff] %v7268_v14   ;;  %v6290_v37 = vadd.f32 %v6289_v57, %v6275_v27  ;;  %v6158_v52 = vmax.f32 %v6142_v34, 0.0  ;;  %v7941_v35 = vadd.f32 %v7940_v22, %v7939_v61  ;;  %v7884_v7 = vpop.f32.mrf.mxu0 }
 0x290   : > { %v7942_v38 = vpop.f32.mrf.mxu1  ;;  %v5792_v51 = vadd.f32 %v7883_v48, %v5254_v36  ;;  %v5256_v59 = vadd.f32 %v7825_v50, %v4639_v3 }
 0x291   : > { %v6253_v53 = vadd.f32 %v6252_v11, %v6158_v52  ;;  %v6276_v39 = vmul.f32 %v6158_v52, %v6158_v52  ;;  %v6143_v42 = vadd.f32 %v7941_v35, %v5790_v41  ;;  %v7885_v13 = vpop.f32.mrf.mxu0  ;;  %v11185_v35 = vld [vmem:[#allocation27_spill] sm:$0xff] }
 0x292   : > { %v7943_v28 = vpop.f32.mrf.mxu1  ;;  %v7886_v26 = vadd.f32 %v7885_v13, %v7884_v7 }
 0x293   : > { %v6291_v30 = vadd.f32 %v6290_v37, %v6276_v39  ;;  %v6159_v0 = vmax.f32 %v6143_v42, 0.0  ;;  %v7944_v4 = vadd.f32 %v7943_v28, %v7942_v38  ;;  %v7887_v16 = vpop.f32.mrf.mxu0  ;;  %v7831_v38 = vadd.f32 %v11185_v35, %v10982_v25 }
 0x294   : > { %v7945_v47 = vpop.f32.mrf.mxu1  ;;  %v5793_v1 = vadd.f32 %v7886_v26, %v10969_v43 }
 0x295   : > { %v7273_v31 = vpack.c.bf16 %v6159_v0, %v6158_v52  ;;  %v6254_v62 = vadd.f32 %v6253_v53, %v6159_v0  ;;  %v6277_v6 = vmul.f32 %v6159_v0, %v6159_v0  ;;  %v6144_v29 = vadd.f32 %v7944_v4, %v5791_v20  ;;  %v7888_v33 = vpop.f32.mrf.mxu0  ;;  %v11186_v53 = vld [vmem:[#allocation22_spill] sm:$0xff] }
 0x296   : > { %v7946_v46 = vpop.f32.mrf.mxu1  ;;  %v7889_v18 = vadd.f32 %v7888_v33, %v7887_v16  ;;  %v4647_v52 = vadd.f32 %v7767_v24, %v10901_v21  ;;  %v11187_v0 = vld [vmem:[#allocation10_spill] sm:$0xff] }
 0x297   : > { %7316 = vst [vmem:[%s10822_s26 + $0x60] sm:$0xff] %v7273_v31   ;;  %v6292_v58 = vadd.f32 %v6291_v30, %v6277_v6  ;;  %v6160_v9 = vmax.f32 %v6144_v29, 0.0  ;;  %v7947_v12 = vadd.f32 %v7946_v46, %v7945_v47  ;;  %v3681_v4 = vrot.slane %v11187_v0, 4  ;;  %v11188_v31 = vld [vmem:[#allocation26_spill] sm:$0xff] }
 0x298   : > { %v7948_v60 = vpop.f32.mrf.mxu1  ;;  %v5794_v40 = vadd.f32 %v7889_v18, %v5256_v59  ;;  %v5258_v21 = vadd.f32 %v7831_v38, %v4647_v52 }
 0x299   : > { %v6255_v19 = vadd.f32 %v6254_v62, %v6160_v9  ;;  %v6278_v10 = vmul.f32 %v6160_v9, %v6160_v9  ;;  %v6145_v17 = vadd.f32 %v7947_v12, %v5792_v51  ;;  %v3719_v62 = vrot.slane %v11188_v31, 4 }
 0x29a   : > { %v7949_v8 = vpop.f32.mrf.mxu1  ;;  %v3682_v50 = vadd.f32 %v3681_v4, %v11187_v0 }
 0x29b   : > { %v6293_v23 = vadd.f32 %v6292_v58, %v6278_v10  ;;  %v6161_v54 = vmax.f32 %v6145_v17, 0.0  ;;  %v7950_v57 = vadd.f32 %v7949_v8, %v7948_v60  ;;  %v3720_v58 = vadd.f32 %v3719_v62, %v11188_v31 }
 0x29c   : > { %v7951_v2 = vpop.f32.mrf.mxu1  ;;  %v3683_v12 = vrot.slane %v3682_v50, 2 }
 0x29d   : > { %v7278_v45 = vpack.c.bf16 %v6161_v54, %v6160_v9  ;;  %v6256_v49 = vadd.f32 %v6255_v19, %v6161_v54  ;;  %v6279_v61 = vmul.f32 %v6161_v54, %v6161_v54  ;;  %v6146_v41 = vadd.f32 %v7950_v57, %v5793_v1  ;;  %v7890_v14 = vpop.f32.mrf.mxu0 }
 0x29e   : > { %v7952_v44 = vpop.f32.mrf.mxu1  ;;  %v3721_v10 = vrot.slane %v3720_v58, 2  ;;  %v3684_v59 = vadd.f32 %v3683_v12, %v3682_v50 }
 0x29f   : > { %7317 = vst [vmem:[%s10822_s26 + $0x68] sm:$0xff] %v7278_v45   ;;  %v6294_v11 = vadd.f32 %v6293_v23, %v6279_v61  ;;  %v6162_v27 = vmax.f32 %v6146_v41, 0.0  ;;  %v7953_v43 = vadd.f32 %v7952_v44, %v7951_v2  ;;  %v7891_v32 = vpop.f32.mrf.mxu0 }
 0x2a0   : > { %v7954_v34 = vpop.f32.mrf.mxu1  ;;  %v7892_v37 = vadd.f32 %v7891_v32, %v7890_v14  ;;  %v3722_v54 = vadd.f32 %v3721_v10, %v3720_v58 }
 0x2a1   : > { %v6257_v55 = vadd.f32 %v6256_v49, %v6162_v27  ;;  %v6280_v22 = vmul.f32 %v6162_v27, %v6162_v27  ;;  %v6147_v63 = vadd.f32 %v7953_v43, %v5794_v40  ;;  %v7893_v56 = vpop.f32.mrf.mxu0  ;;  %v3685_v40 = vrot.slane %v3684_v59, 1 }
 0x2a2   : > { %v7955_v48 = vpop.f32.mrf.mxu1  ;;  %v5795_v39 = vadd.f32 %v7892_v37, %v11186_v53  ;;  %v3723_v61 = vrot.slane %v3722_v54, 1 }
 0x2a3   : > { %v6295_v15 = vadd.f32 %v6294_v11, %v6280_v22  ;;  %v6163_v7 = vmax.f32 %v6147_v63, 0.0  ;;  %v7956_v42 = vadd.f32 %v7955_v48, %v7954_v34  ;;  %v7894_v36 = vpop.f32.mrf.mxu0  ;;  %v3686_v44 = vadd.f32 %v3685_v40, %v3684_v59 }
 0x2a4   : > { %v7957_v20 = vpop.f32.mrf.mxu1  ;;  %v7895_v47 = vadd.f32 %v7894_v36, %v7893_v56 }
 0x2a5   : > { %v7283_v5 = vpack.c.bf16 %v6163_v7, %v6162_v27  ;;  %v6258_v28 = vadd.f32 %v6257_v55, %v6163_v7  ;;  %v6281_v13 = vmul.f32 %v6163_v7, %v6163_v7  ;;  %v6148_v30 = vadd.f32 %v7956_v42, %v5795_v39 }
 0x2a6   : > { %v7958_v51 = vpop.f32.mrf.mxu1  ;;  %v5796_v6 = vadd.f32 %v7895_v47, %v5258_v21  ;;  %v3724_v27 = vadd.f32 %v3723_v61, %v3722_v54 }
 0x2a7   : > { %7318 = vst [vmem:[%s10822_s26 + $0x70] sm:$0xff] %v7283_v5   ;;  %v6296_v25 = vadd.f32 %v6295_v15, %v6281_v13  ;;  %v6164_v26 = vmax.f32 %v6148_v30, 0.0  ;;  %v7959_v16 = vadd.f32 %v7958_v51, %v7957_v20 }
 0x2a9   : > { %v6259_v29 = vadd.f32 %v6258_v28, %v6164_v26  ;;  %v6282_v3 = vmul.f32 %v6164_v26, %v6164_v26  ;;  %v6149_v46 = vadd.f32 %v7959_v16, %v5796_v6 }
 0x2ab   : > { %v6297_v33 = vadd.f32 %v6296_v25, %v6282_v3  ;;  %v6165_v9 = vmax.f32 %v6149_v46, 0.0 }
 0x2ad   : > { %v7288_v60 = vpack.c.bf16 %v6165_v9, %v6164_v26  ;;  %v6260_v18 = vadd.f32 %v6259_v29, %v6165_v9  ;;  %v6283_v19 = vmul.f32 %v6165_v9, %v6165_v9 }
 0x2af   : > { %7319 = vst [vmem:[%s10822_s26 + $0x78] sm:$0xff] %v7288_v60   ;;  %v6261_v17 = vrot.slane %v6260_v18, 4  ;;  %v6298_v1 = vadd.f32 %v6297_v33, %v6283_v19 }
 0x2b1   : > { %v6262_v8 = vadd.f32 %v6261_v17, %v6260_v18  ;;  %v6299_v23 = vrot.slane %v6298_v1, 4 }
 0x2b3   : > { %v6263_v57 = vrot.slane %v6262_v8, 2  ;;  %v6300_v2 = vadd.f32 %v6299_v23, %v6298_v1 }
 0x2b5   : > { %v6264_v45 = vadd.f32 %v6263_v57, %v6262_v8  ;;  %v6301_v49 = vrot.slane %v6300_v2, 2 }
 0x2b7   : > { %v6265_v41 = vrot.slane %v6264_v45, 1  ;;  %v6302_v24 = vadd.f32 %v6301_v49, %v6300_v2 }
 0x2b9   : > { %v6266_v14 = vadd.f32 %v6265_v41, %v6264_v45  ;;  %v6303_v11 = vrot.slane %v6302_v24, 1 }
 0x2bb   : > { %v6267_v43 = vadd.f32 %v6266_v14, %v3686_v44  ;;  %v6304_v34 = vadd.f32 %v6303_v11, %v6302_v24 }
 0x2bd   : > { %v6305_v32 = vadd.f32 %v6304_v34, %v3724_v27  ;;  %6306 = vst [vmem:[%s265_s19] sm:$0x1] %v6267_v43 }
 0x2bf   : > { %6307 = vst [vmem:[%s265_s19 + $0x1] sm:$0x1] %v6305_v32 }
 0x2c0 PF: > { %s17_s21 = sadd.s32 1, %s8217_s21  }
 0x2c1   : > { %p14_p5 = scmp.ge.s32.totalorder %s17_s21, 4  }
 0x2c3   :  { %16 = sbr.rel (!%p14_p5) target bundleno = 1 (0x1), region = 92 }

</bundles_post_ra>
